<compile_context>
chip_gen: v5e
topology: v5e:2x2
jax: 0.10.0
libtpu: 0.0.40
codegen_flags: <defaults>
</compile_context>

<pallas_src>
import jax
import jax.numpy as jnp
from jax import lax
from jax.experimental import pallas as pl
from jax.experimental.pallas import tpu as pltpu


_LPAD = 8      # interior starts at sublane-aligned column 8 -> aligned stores
_RC = 8        # image rows per conv chunk (bounds live vregs; Mc = _RC * W)


# ------------------------------ Pallas kernel --------------------------------

def colorpredictor_kernel(x_ref, w1_ref, w2_ref, wmlp_ref, b_ref, o_ref,
                          pad1_ref, pad2_ref):
    """BB images end-to-end: conv1 -> conv2 -> sum-pool -> MLP -> sigmoid.

    x_ref  : [BB, H, W, 3]
    w1     : [9, 3, 16]    (per-tap conv weights, tap = kh*3+kw)
    w2     : [9, 16, 32]
    wmlp   : [32+128+128, 128]  rows 0:32 = w_fc/(H*W), 32:160 = w_r1 (col-padded),
                                160:288 = w_r2 (row/col zero-padded)
    b      : [8, 128]      rows: b_c1 | b_c2 | b_fc | b_r1(pad0) | b_r2(pad0)
    o_ref  : [BB, 128]     (cols 3: are padding, sliced off in the wrapper)
    pad1/2 : VMEM zero-border scratch [BB, H+2, _LPAD+W+1, 3|16]
    """
    BB, H, W, Cin = x_ref.shape
    Cmid = w1_ref.shape[-1]        # 16
    Cout2 = w2_ref.shape[-1]       # 32
    e_dim = wmlp_ref.shape[-1]     # 128
    c_lo = _LPAD - 1               # leftmost column the shifted windows read
    c_hi = _LPAD + W               # rightmost column the shifted windows read
    nrb = H // _RC
    Mc = _RC * W

    # --- 1. zero ONLY the border stripes the shifted windows read ------------
    # (interiors are fully rewritten every step -> no full-buffer zeroing, and
    #  no cross-step state so "parallel" core splitting stays correct)
    for ref in (pad1_ref, pad2_ref):
        C = ref.shape[-1]
        ref[:, 0:1, c_lo:c_hi + 1, :] = jnp.zeros((BB, 1, W + 2, C), jnp.float32)
        ref[:, H + 1:H + 2, c_lo:c_hi + 1, :] = jnp.zeros((BB, 1, W + 2, C), jnp.float32)
        ref[:, :, c_lo:c_lo + 1, :] = jnp.zeros((BB, H + 2, 1, C), jnp.float32)
        ref[:, :, c_hi:c_hi + 1, :] = jnp.zeros((BB, H + 2, 1, C), jnp.float32)

    # --- 2. input block -> pad1 interior (sublane-aligned store) -------------
    pad1_ref[:, 1:H + 1, _LPAD:_LPAD + W, :] = x_ref[...]

    # packed biases (a single vreg)
    b_c1 = b_ref[0:1, 0:Cmid]
    b_c2 = b_ref[1:2, 0:Cout2]
    b_fc = b_ref[2:3, :]
    b_r1 = b_ref[3:4, :]
    b_r2 = b_ref[4:5, :]

    def conv_chunk(pad_ref, w_ref, bias, b, rb):
        """3x3 SAME conv + ReLU on an [_RC x W] row block of image b.

        Nine accumulated shifted-window dots straight from the padded scratch:
        no im2col concatenate (no lane relayout), accumulator stays at
        Mc/8 = 16 vregs.
        """
        cin = pad_ref.shape[-1]
        cout = w_ref.shape[-1]
        r0 = rb * _RC
        acc = jnp.zeros((Mc, cout), jnp.float32)
        for kh in range(3):
            for kw in range(3):
                win = pad_ref[b, r0 + kh:r0 + kh + _RC,
                              c_lo + kw:c_lo + kw + W, :].reshape(Mc, cin)
                acc = acc + jnp.dot(win, w_ref[kh * 3 + kw],
                                    preferred_element_type=jnp.float32)
        return jnp.maximum(acc + bias, 0.0)                       # [Mc, cout]

    # --- 3. conv1: write feature map straight into pad2's interior -----------
    for b in range(BB):
        for rb in range(nrb):
            h1 = conv_chunk(pad1_ref, w1_ref, b_c1, b, rb)        # [Mc, Cmid]
            pad2_ref[b, 1 + rb * _RC:1 + rb * _RC + _RC,
                     _LPAD:_LPAD + W, :] = h1.reshape(_RC, W, Cmid)

    # --- 4. conv2 + global sum pool (1/(H*W) folded into w_fc) ---------------
    pooled_rows = []
    for b in range(BB):
        s = jnp.zeros((1, Cout2), jnp.float32)
        for rb in range(nrb):
            h2 = conv_chunk(pad2_ref, w2_ref, b_c2, b, rb)        # [Mc, Cout2]
            s = s + jnp.sum(h2, axis=0, keepdims=True)
        pooled_rows.append(s)
    pooled = jnp.concatenate(pooled_rows, axis=0)                 # [BB, Cout2]

    # --- 5. MLP head + sigmoid, once per BB-image block ----------------------
    wfc = wmlp_ref[0:Cout2, :]
    wr1 = wmlp_ref[Cout2:Cout2 + e_dim, :]
    wr2 = wmlp_ref[Cout2 + e_dim:Cout2 + 2 * e_dim, :]
    z = jnp.maximum(
        jnp.dot(pooled, wfc, preferred_element_type=jnp.float32) + b_fc, 0.0)
    r = jnp.maximum(
        jnp.dot(z, wr1, preferred_element_type=jnp.float32) + b_r1, 0.0)
    a = jnp.dot(r, wr2, preferred_element_type=jnp.float32) + b_r2
    o_ref[...] = jax.nn.sigmoid(a)                                # dense [BB,128]


# --------------------------------- wrapper -----------------------------------

def color_predictor(x_nchw, params):
    # layout: NCHW (PyTorch) -> NHWC for the TPU kernel.
    x = jnp.transpose(x_nchw, (0, 2, 3, 1)).astype(jnp.float32)
    B, H, W, Cin = x.shape
    # TODO(synk): generalize to H/W not multiples of 8 (pad spatially).
    assert H % _RC == 0 and W % 8 == 0, "kernel assumes H % 8 == 0 and W % 8 == 0"

    Cmid = params["w_c1"].shape[-1]          # 16
    Cout2 = params["w_c2"].shape[-1]         # 32
    e_dim = params["w_fc"].shape[-1]         # 128
    hid = params["w_r1"].shape[-1]           # 64
    n_out = params["w_r2"].shape[-1]         # 3

    # batch blocking: BB images per grid step (whole batch in one step here).
    BB = B if B <= 8 else 8
    B_pad = -(-B // BB) * BB
    if B_pad != B:
        x = jnp.pad(x, ((0, B_pad - B), (0, 0), (0, 0), (0, 0)))
    nb = B_pad // BB
    Wp = _LPAD + W + 1                        # padded scratch width (sublane dim)

    # --- weight packing (5 kernel inputs instead of 12) ---
    w1 = params["w_c1"]                                      # [9, Cin, Cmid]
    w2 = params["w_c2"]                                      # [9, Cmid, Cout2]
    wfc_s = params["w_fc"] * jnp.float32(1.0 / (H * W))      # fold avg-pool scale
    wr1p = jnp.zeros((e_dim, e_dim), jnp.float32).at[:, :hid].set(params["w_r1"])
    wr2p = jnp.zeros((e_dim, e_dim), jnp.float32).at[:hid, :n_out].set(params["w_r2"])
    w_mlp = jnp.concatenate([wfc_s, wr1p, wr2p], axis=0)     # [Cout2+2*e_dim, e_dim]

    biases = jnp.zeros((8, e_dim), jnp.float32)
    biases = biases.at[0, :Cmid].set(params["b_c1"].reshape(-1))
    biases = biases.at[1, :Cout2].set(params["b_c2"].reshape(-1))
    biases = biases.at[2, :e_dim].set(params["b_fc"].reshape(-1))
    biases = biases.at[3, :hid].set(params["b_r1"].reshape(-1))
    biases = biases.at[4, :n_out].set(params["b_r2"].reshape(-1))

    flops = (2 * B_pad * H * W * (9 * Cin * Cmid + 9 * Cmid * Cout2)
             + 2 * B_pad * (Cout2 * e_dim + 2 * e_dim * e_dim))
    bytes_accessed = 4 * (x.size + w1.size + w2.size + w_mlp.size
                          + biases.size + B_pad * e_dim)

    out = pl.pallas_call(
        colorpredictor_kernel,
        out_shape=jax.ShapeDtypeStruct((B_pad, e_dim), jnp.float32),
        grid_spec=pltpu.PrefetchScalarGridSpec(
            num_scalar_prefetch=0,
            grid=(nb,),
            in_specs=[
                pl.BlockSpec((BB, H, W, Cin), lambda i: (i, 0, 0, 0)),
                pl.BlockSpec(w1.shape, lambda i: (0, 0, 0)),
                pl.BlockSpec(w2.shape, lambda i: (0, 0, 0)),
                pl.BlockSpec(w_mlp.shape, lambda i: (0, 0)),
                pl.BlockSpec(biases.shape, lambda i: (0, 0)),
            ],
            out_specs=pl.BlockSpec((BB, e_dim), lambda i: (i, 0)),
            scratch_shapes=[
                pltpu.VMEM((BB, H + 2, Wp, Cin), jnp.float32),
                pltpu.VMEM((BB, H + 2, Wp, Cmid), jnp.float32),
            ]),
        compiler_params=pltpu.CompilerParams(
            dimension_semantics=("parallel",)),
        cost_estimate=pl.CostEstimate(flops=int(flops),
                                      transcendentals=int(B_pad * e_dim),
                                      bytes_accessed=int(bytes_accessed)),
    )(x, w1, w2, w_mlp, biases)
    return out[:B, :n_out]


# ----------------------------- pure-JAX reference ----------------------------

def reference(x_nchw, p):
    x = jnp.transpose(x_nchw, (0, 2, 3, 1)).astype(jnp.float32)

    def conv(x, w9, b):
        cin, cout = w9.shape[1], w9.shape[2]
        w = w9.reshape(3, 3, cin, cout)  # HWIO, tap order kh-major
        y = lax.conv_general_dilated(
            x, w, window_strides=(1, 1), padding="SAME",
            dimension_numbers=("NHWC", "HWIO", "NHWC"))
        return jnp.maximum(y + b.reshape(1, 1, 1, cout), 0.0)

    h = conv(conv(x, p["w_c1"], p["b_c1"]), p["w_c2"], p["b_c2"])
    pooled = jnp.mean(h, axis=(1, 2))
    z = jnp.maximum(pooled @ p["w_fc"] + p["b_fc"], 0.0)
    r = jnp.maximum(z @ p["w_r1"] + p["b_r1"], 0.0)
    a = r @ p["w_r2"] + p["b_r2"]
    return jax.nn.sigmoid(a)


# ------------------------------------ main ------------------------------------

def init_params(key):
    e_dim, hidden = 128, 64
    ks = jax.random.split(key, 10)

    def w(k, shape, fan_in):
        return jax.random.normal(k, shape, jnp.float32) / jnp.sqrt(fan_in)

    return {
        "w_c1": w(ks[0], (9, 3, 16), 9 * 3),
        "b_c1": w(ks[1], (1, 16), 16),
        "w_c2": w(ks[2], (9, 16, 32), 9 * 16),
        "b_c2": w(ks[3], (1, 32), 32),
        "w_fc": w(ks[4], (32, e_dim), 32),
        "b_fc": w(ks[5], (1, e_dim), e_dim),
        "w_r1": w(ks[6], (e_dim, hidden), e_dim),
        "b_r1": w(ks[7], (1, hidden), hidden),
        "w_r2": w(ks[8], (hidden, 3), hidden),
        "b_r2": w(ks[9], (1, 3), 3),
    }


if __name__ == "__main__":
    key = jax.random.PRNGKey(0)
    k_x, k_p = jax.random.split(key)
    x = jax.random.normal(k_x, (2, 3, 16, 16), jnp.float32)  # NCHW like PyTorch
    params = init_params(k_p)

    out = jax.block_until_ready(jax.jit(color_predictor)(x, params))
    ref = jax.block_until_ready(reference(x, params))

    assert out.shape == (2, 3), out.shape
    assert jnp.allclose(out, ref, atol=1e-4, rtol=1e-4), (out, ref)
    print("KERNEL_OK")
</pallas_src>

<mosaic_0001>
module attributes {stable_mosaic.version = 11 : i64} {
  func.func @colorpredictor_kernel(%arg0: i32, %arg1: memref<2x16x16x3xf32, #tpu.memory_space<vmem>>, %arg2: memref<9x3x16xf32, #tpu.memory_space<vmem>>, %arg3: memref<9x16x32xf32, #tpu.memory_space<vmem>>, %arg4: memref<288x128xf32, #tpu.memory_space<vmem>>, %arg5: memref<8x128xf32, #tpu.memory_space<vmem>>, %arg6: memref<2x128xf32, #tpu.memory_space<vmem>>, %arg7: memref<2x18x25x3xf32, #tpu.memory_space<vmem>>, %arg8: memref<2x18x25x16xf32, #tpu.memory_space<vmem>>) attributes {dimension_semantics = [#tpu.dimension_semantics<parallel>], iteration_bounds = array<i64: 1>, scalar_prefetch = 0 : i64, scratch_operands = 2 : i64, tpu.core_type = #tpu.core_type<tc>, window_params = [{transform_indices = @transform_0, window_bounds = array<i64: 2, 16, 16, 3>}, {pipeline_mode = #tpu.pipeline_mode<synchronous>, transform_indices = @transform_1, window_bounds = array<i64: 9, 3, 16>}, {pipeline_mode = #tpu.pipeline_mode<synchronous>, transform_indices = @transform_2, window_bounds = array<i64: 9, 16, 32>}, {pipeline_mode = #tpu.pipeline_mode<synchronous>, transform_indices = @transform_3, window_bounds = array<i64: 288, 128>}, {pipeline_mode = #tpu.pipeline_mode<synchronous>, transform_indices = @transform_4, window_bounds = array<i64: 8, 128>}, {transform_indices = @transform_5, window_bounds = array<i64: 2, 128>}]} {
    %cst = arith.constant 0.000000e+00 : f32
    %0 = vector.broadcast %cst : f32 to vector<2x1x18x3xf32>
    %c0 = arith.constant 0 : index
    %c0_0 = arith.constant 0 : index
    %c7 = arith.constant 7 : index
    %c0_1 = arith.constant 0 : index
    %1 = vector.load %arg7[%c0, %c0_0, %c7, %c0_1] : memref<2x18x25x3xf32, #tpu.memory_space<vmem>>, vector<2x1x18x3xf32>
    tpu.vector_store %arg7[%c0, %c0_0, %c7, %c0_1], %0 {strides = array<i32>} : memref<2x18x25x3xf32, #tpu.memory_space<vmem>>, vector<2x1x18x3xf32>,
    %cst_2 = arith.constant 0.000000e+00 : f32
    %2 = vector.broadcast %cst_2 : f32 to vector<2x1x18x3xf32>
    %c0_3 = arith.constant 0 : index
    %c17 = arith.constant 17 : index
    %c7_4 = arith.constant 7 : index
    %c0_5 = arith.constant 0 : index
    %3 = vector.load %arg7[%c0_3, %c17, %c7_4, %c0_5] : memref<2x18x25x3xf32, #tpu.memory_space<vmem>>, vector<2x1x18x3xf32>
    tpu.vector_store %arg7[%c0_3, %c17, %c7_4, %c0_5], %2 {strides = array<i32>} : memref<2x18x25x3xf32, #tpu.memory_space<vmem>>, vector<2x1x18x3xf32>,
    %cst_6 = arith.constant 0.000000e+00 : f32
    %4 = vector.broadcast %cst_6 : f32 to vector<2x18x1x3xf32>
    %c0_7 = arith.constant 0 : index
    %c0_8 = arith.constant 0 : index
    %c7_9 = arith.constant 7 : index
    %c0_10 = arith.constant 0 : index
    %5 = vector.load %arg7[%c0_7, %c0_8, %c7_9, %c0_10] : memref<2x18x25x3xf32, #tpu.memory_space<vmem>>, vector<2x18x1x3xf32>
    tpu.vector_store %arg7[%c0_7, %c0_8, %c7_9, %c0_10], %4 {strides = array<i32>} : memref<2x18x25x3xf32, #tpu.memory_space<vmem>>, vector<2x18x1x3xf32>,
    %cst_11 = arith.constant 0.000000e+00 : f32
    %6 = vector.broadcast %cst_11 : f32 to vector<2x18x1x3xf32>
    %c0_12 = arith.constant 0 : index
    %c0_13 = arith.constant 0 : index
    %c24 = arith.constant 24 : index
    %c0_14 = arith.constant 0 : index
    %7 = vector.load %arg7[%c0_12, %c0_13, %c24, %c0_14] : memref<2x18x25x3xf32, #tpu.memory_space<vmem>>, vector<2x18x1x3xf32>
    tpu.vector_store %arg7[%c0_12, %c0_13, %c24, %c0_14], %6 {strides = array<i32>} : memref<2x18x25x3xf32, #tpu.memory_space<vmem>>, vector<2x18x1x3xf32>,
    %cst_15 = arith.constant 0.000000e+00 : f32
    %8 = vector.broadcast %cst_15 : f32 to vector<2x1x18x16xf32>
    %c0_16 = arith.constant 0 : index
    %c0_17 = arith.constant 0 : index
    %c7_18 = arith.constant 7 : index
    %c0_19 = arith.constant 0 : index
    %9 = vector.load %arg8[%c0_16, %c0_17, %c7_18, %c0_19] : memref<2x18x25x16xf32, #tpu.memory_space<vmem>>, vector<2x1x18x16xf32>
    tpu.vector_store %arg8[%c0_16, %c0_17, %c7_18, %c0_19], %8 {strides = array<i32>} : memref<2x18x25x16xf32, #tpu.memory_space<vmem>>, vector<2x1x18x16xf32>,
    %cst_20 = arith.constant 0.000000e+00 : f32
    %10 = vector.broadcast %cst_20 : f32 to vector<2x1x18x16xf32>
    %c0_21 = arith.constant 0 : index
    %c17_22 = arith.constant 17 : index
    %c7_23 = arith.constant 7 : index
    %c0_24 = arith.constant 0 : index
    %11 = vector.load %arg8[%c0_21, %c17_22, %c7_23, %c0_24] : memref<2x18x25x16xf32, #tpu.memory_space<vmem>>, vector<2x1x18x16xf32>
    tpu.vector_store %arg8[%c0_21, %c17_22, %c7_23, %c0_24], %10 {strides = array<i32>} : memref<2x18x25x16xf32, #tpu.memory_space<vmem>>, vector<2x1x18x16xf32>,
    %cst_25 = arith.constant 0.000000e+00 : f32
    %12 = vector.broadcast %cst_25 : f32 to vector<2x18x1x16xf32>
    %c0_26 = arith.constant 0 : index
    %c0_27 = arith.constant 0 : index
    %c7_28 = arith.constant 7 : index
    %c0_29 = arith.constant 0 : index
    %13 = vector.load %arg8[%c0_26, %c0_27, %c7_28, %c0_29] : memref<2x18x25x16xf32, #tpu.memory_space<vmem>>, vector<2x18x1x16xf32>
    tpu.vector_store %arg8[%c0_26, %c0_27, %c7_28, %c0_29], %12 {strides = array<i32>} : memref<2x18x25x16xf32, #tpu.memory_space<vmem>>, vector<2x18x1x16xf32>,
    %cst_30 = arith.constant 0.000000e+00 : f32
    %14 = vector.broadcast %cst_30 : f32 to vector<2x18x1x16xf32>
    %c0_31 = arith.constant 0 : index
    %c0_32 = arith.constant 0 : index
    %c24_33 = arith.constant 24 : index
    %c0_34 = arith.constant 0 : index
    %15 = vector.load %arg8[%c0_31, %c0_32, %c24_33, %c0_34] : memref<2x18x25x16xf32, #tpu.memory_space<vmem>>, vector<2x18x1x16xf32>
    tpu.vector_store %arg8[%c0_31, %c0_32, %c24_33, %c0_34], %14 {strides = array<i32>} : memref<2x18x25x16xf32, #tpu.memory_space<vmem>>, vector<2x18x1x16xf32>,
    %c0_35 = arith.constant 0 : index
    %c0_36 = arith.constant 0 : index
    %c0_37 = arith.constant 0 : index
    %c0_38 = arith.constant 0 : index
    %16 = vector.load %arg1[%c0_35, %c0_36, %c0_37, %c0_38] : memref<2x16x16x3xf32, #tpu.memory_space<vmem>>, vector<2x16x16x3xf32>
    %c0_39 = arith.constant 0 : index
    %c1 = arith.constant 1 : index
    %c8 = arith.constant 8 : index
    %c0_40 = arith.constant 0 : index
    %17 = vector.load %arg7[%c0_39, %c1, %c8, %c0_40] : memref<2x18x25x3xf32, #tpu.memory_space<vmem>>, vector<2x16x16x3xf32>
    tpu.vector_store %arg7[%c0_39, %c1, %c8, %c0_40], %16 {strides = array<i32>} : memref<2x18x25x3xf32, #tpu.memory_space<vmem>>, vector<2x16x16x3xf32>,
    %c0_41 = arith.constant 0 : index
    %c0_42 = arith.constant 0 : index
    %18 = vector.load %arg5[%c0_41, %c0_42] : memref<8x128xf32, #tpu.memory_space<vmem>>, vector<1x16xf32>
    %c1_43 = arith.constant 1 : index
    %c0_44 = arith.constant 0 : index
    %19 = vector.load %arg5[%c1_43, %c0_44] : memref<8x128xf32, #tpu.memory_space<vmem>>, vector<1x32xf32>
    %c2 = arith.constant 2 : index
    %c0_45 = arith.constant 0 : index
    %20 = vector.load %arg5[%c2, %c0_45] : memref<8x128xf32, #tpu.memory_space<vmem>>, vector<1x128xf32>
    %c3 = arith.constant 3 : index
    %c0_46 = arith.constant 0 : index
    %21 = vector.load %arg5[%c3, %c0_46] : memref<8x128xf32, #tpu.memory_space<vmem>>, vector<1x128xf32>
    %c4 = arith.constant 4 : index
    %c0_47 = arith.constant 0 : index
    %22 = vector.load %arg5[%c4, %c0_47] : memref<8x128xf32, #tpu.memory_space<vmem>>, vector<1x128xf32>
    %cst_48 = arith.constant 0.000000e+00 : f32
    %23 = vector.broadcast %cst_48 : f32 to vector<128x16xf32>
    %c0_49 = arith.constant 0 : index
    %c0_50 = arith.constant 0 : index
    %c7_51 = arith.constant 7 : index
    %c0_52 = arith.constant 0 : index
    %24 = vector.load %arg7[%c0_49, %c0_50, %c7_51, %c0_52] : memref<2x18x25x3xf32, #tpu.memory_space<vmem>>, vector<1x8x16x3xf32>
    %25 = vector.shape_cast %24 : vector<1x8x16x3xf32> to vector<8x16x3xf32>
    %26 = vector.shape_cast %25 : vector<8x16x3xf32> to vector<128x3xf32>
    %c0_53 = arith.constant 0 : index
    %c0_54 = arith.constant 0 : index
    %c0_55 = arith.constant 0 : index
    %27 = vector.load %arg2[%c0_53, %c0_54, %c0_55] : memref<9x3x16xf32, #tpu.memory_space<vmem>>, vector<1x3x16xf32>
    %28 = vector.shape_cast %27 : vector<1x3x16xf32> to vector<3x16xf32>
    %cst_56 = arith.constant dense<0.000000e+00> : vector<128x16xf32>
    %29 = tpu.matmul %26, %28, %cst_56 {dimension_numbers = #tpu.dot_dimension_numbers<[1], [0], [0], [1], [0, 0, 1, 1], [], []>} : vector<128x3xf32>, vector<3x16xf32>, vector<128x16xf32> -> vector<128x16xf32>
    %30 = arith.addf %23, %29 : vector<128x16xf32>
    %c0_57 = arith.constant 0 : index
    %c0_58 = arith.constant 0 : index
    %c8_59 = arith.constant 8 : index
    %c0_60 = arith.constant 0 : index
    %31 = vector.load %arg7[%c0_57, %c0_58, %c8_59, %c0_60] : memref<2x18x25x3xf32, #tpu.memory_space<vmem>>, vector<1x8x16x3xf32>
    %32 = vector.shape_cast %31 : vector<1x8x16x3xf32> to vector<8x16x3xf32>
    %33 = vector.shape_cast %32 : vector<8x16x3xf32> to vector<128x3xf32>
    %c1_61 = arith.constant 1 : index
    %c0_62 = arith.constant 0 : index
    %c0_63 = arith.constant 0 : index
    %34 = vector.load %arg2[%c1_61, %c0_62, %c0_63] : memref<9x3x16xf32, #tpu.memory_space<vmem>>, vector<1x3x16xf32>
    %35 = vector.shape_cast %34 : vector<1x3x16xf32> to vector<3x16xf32>
    %cst_64 = arith.constant dense<0.000000e+00> : vector<128x16xf32>
    %36 = tpu.matmul %33, %35, %cst_64 {dimension_numbers = #tpu.dot_dimension_numbers<[1], [0], [0], [1], [0, 0, 1, 1], [], []>} : vector<128x3xf32>, vector<3x16xf32>, vector<128x16xf32> -> vector<128x16xf32>
    %37 = arith.addf %30, %36 : vector<128x16xf32>
    %c0_65 = arith.constant 0 : index
    %c0_66 = arith.constant 0 : index
    %c9 = arith.constant 9 : index
    %c0_67 = arith.constant 0 : index
    %38 = vector.load %arg7[%c0_65, %c0_66, %c9, %c0_67] : memref<2x18x25x3xf32, #tpu.memory_space<vmem>>, vector<1x8x16x3xf32>
    %39 = vector.shape_cast %38 : vector<1x8x16x3xf32> to vector<8x16x3xf32>
    %40 = vector.shape_cast %39 : vector<8x16x3xf32> to vector<128x3xf32>
    %c2_68 = arith.constant 2 : index
    %c0_69 = arith.constant 0 : index
    %c0_70 = arith.constant 0 : index
    %41 = vector.load %arg2[%c2_68, %c0_69, %c0_70] : memref<9x3x16xf32, #tpu.memory_space<vmem>>, vector<1x3x16xf32>
    %42 = vector.shape_cast %41 : vector<1x3x16xf32> to vector<3x16xf32>
    %cst_71 = arith.constant dense<0.000000e+00> : vector<128x16xf32>
    %43 = tpu.matmul %40, %42, %cst_71 {dimension_numbers = #tpu.dot_dimension_numbers<[1], [0], [0], [1], [0, 0, 1, 1], [], []>} : vector<128x3xf32>, vector<3x16xf32>, vector<128x16xf32> -> vector<128x16xf32>
    %44 = arith.addf %37, %43 : vector<128x16xf32>
    %c0_72 = arith.constant 0 : index
    %c1_73 = arith.constant 1 : index
    %c7_74 = arith.constant 7 : index
    %c0_75 = arith.constant 0 : index
    %45 = vector.load %arg7[%c0_72, %c1_73, %c7_74, %c0_75] : memref<2x18x25x3xf32, #tpu.memory_space<vmem>>, vector<1x8x16x3xf32>
    %46 = vector.shape_cast %45 : vector<1x8x16x3xf32> to vector<8x16x3xf32>
    %47 = vector.shape_cast %46 : vector<8x16x3xf32> to vector<128x3xf32>
    %c3_76 = arith.constant 3 : index
    %c0_77 = arith.constant 0 : index
    %c0_78 = arith.constant 0 : index
    %48 = vector.load %arg2[%c3_76, %c0_77, %c0_78] : memref<9x3x16xf32, #tpu.memory_space<vmem>>, vector<1x3x16xf32>
    %49 = vector.shape_cast %48 : vector<1x3x16xf32> to vector<3x16xf32>
    %cst_79 = arith.constant dense<0.000000e+00> : vector<128x16xf32>
    %50 = tpu.matmul %47, %49, %cst_79 {dimension_numbers = #tpu.dot_dimension_numbers<[1], [0], [0], [1], [0, 0, 1, 1], [], []>} : vector<128x3xf32>, vector<3x16xf32>, vector<128x16xf32> -> vector<128x16xf32>
    %51 = arith.addf %44, %50 : vector<128x16xf32>
    %c0_80 = arith.constant 0 : index
    %c1_81 = arith.constant 1 : index
    %c8_82 = arith.constant 8 : index
    %c0_83 = arith.constant 0 : index
    %52 = vector.load %arg7[%c0_80, %c1_81, %c8_82, %c0_83] : memref<2x18x25x3xf32, #tpu.memory_space<vmem>>, vector<1x8x16x3xf32>
    %53 = vector.shape_cast %52 : vector<1x8x16x3xf32> to vector<8x16x3xf32>
    %54 = vector.shape_cast %53 : vector<8x16x3xf32> to vector<128x3xf32>
    %c4_84 = arith.constant 4 : index
    %c0_85 = arith.constant 0 : index
    %c0_86 = arith.constant 0 : index
    %55 = vector.load %arg2[%c4_84, %c0_85, %c0_86] : memref<9x3x16xf32, #tpu.memory_space<vmem>>, vector<1x3x16xf32>
    %56 = vector.shape_cast %55 : vector<1x3x16xf32> to vector<3x16xf32>
    %cst_87 = arith.constant dense<0.000000e+00> : vector<128x16xf32>
    %57 = tpu.matmul %54, %56, %cst_87 {dimension_numbers = #tpu.dot_dimension_numbers<[1], [0], [0], [1], [0, 0, 1, 1], [], []>} : vector<128x3xf32>, vector<3x16xf32>, vector<128x16xf32> -> vector<128x16xf32>
    %58 = arith.addf %51, %57 : vector<128x16xf32>
    %c0_88 = arith.constant 0 : index
    %c1_89 = arith.constant 1 : index
    %c9_90 = arith.constant 9 : index
    %c0_91 = arith.constant 0 : index
    %59 = vector.load %arg7[%c0_88, %c1_89, %c9_90, %c0_91] : memref<2x18x25x3xf32, #tpu.memory_space<vmem>>, vector<1x8x16x3xf32>
    %60 = vector.shape_cast %59 : vector<1x8x16x3xf32> to vector<8x16x3xf32>
    %61 = vector.shape_cast %60 : vector<8x16x3xf32> to vector<128x3xf32>
    %c5 = arith.constant 5 : index
    %c0_92 = arith.constant 0 : index
    %c0_93 = arith.constant 0 : index
    %62 = vector.load %arg2[%c5, %c0_92, %c0_93] : memref<9x3x16xf32, #tpu.memory_space<vmem>>, vector<1x3x16xf32>
    %63 = vector.shape_cast %62 : vector<1x3x16xf32> to vector<3x16xf32>
    %cst_94 = arith.constant dense<0.000000e+00> : vector<128x16xf32>
    %64 = tpu.matmul %61, %63, %cst_94 {dimension_numbers = #tpu.dot_dimension_numbers<[1], [0], [0], [1], [0, 0, 1, 1], [], []>} : vector<128x3xf32>, vector<3x16xf32>, vector<128x16xf32> -> vector<128x16xf32>
    %65 = arith.addf %58, %64 : vector<128x16xf32>
    %c0_95 = arith.constant 0 : index
    %c2_96 = arith.constant 2 : index
    %c7_97 = arith.constant 7 : index
    %c0_98 = arith.constant 0 : index
    %66 = vector.load %arg7[%c0_95, %c2_96, %c7_97, %c0_98] : memref<2x18x25x3xf32, #tpu.memory_space<vmem>>, vector<1x8x16x3xf32>
    %67 = vector.shape_cast %66 : vector<1x8x16x3xf32> to vector<8x16x3xf32>
    %68 = vector.shape_cast %67 : vector<8x16x3xf32> to vector<128x3xf32>
    %c6 = arith.constant 6 : index
    %c0_99 = arith.constant 0 : index
    %c0_100 = arith.constant 0 : index
    %69 = vector.load %arg2[%c6, %c0_99, %c0_100] : memref<9x3x16xf32, #tpu.memory_space<vmem>>, vector<1x3x16xf32>
    %70 = vector.shape_cast %69 : vector<1x3x16xf32> to vector<3x16xf32>
    %cst_101 = arith.constant dense<0.000000e+00> : vector<128x16xf32>
    %71 = tpu.matmul %68, %70, %cst_101 {dimension_numbers = #tpu.dot_dimension_numbers<[1], [0], [0], [1], [0, 0, 1, 1], [], []>} : vector<128x3xf32>, vector<3x16xf32>, vector<128x16xf32> -> vector<128x16xf32>
    %72 = arith.addf %65, %71 : vector<128x16xf32>
    %c0_102 = arith.constant 0 : index
    %c2_103 = arith.constant 2 : index
    %c8_104 = arith.constant 8 : index
    %c0_105 = arith.constant 0 : index
    %73 = vector.load %arg7[%c0_102, %c2_103, %c8_104, %c0_105] : memref<2x18x25x3xf32, #tpu.memory_space<vmem>>, vector<1x8x16x3xf32>
    %74 = vector.shape_cast %73 : vector<1x8x16x3xf32> to vector<8x16x3xf32>
    %75 = vector.shape_cast %74 : vector<8x16x3xf32> to vector<128x3xf32>
    %c7_106 = arith.constant 7 : index
    %c0_107 = arith.constant 0 : index
    %c0_108 = arith.constant 0 : index
    %76 = vector.load %arg2[%c7_106, %c0_107, %c0_108] : memref<9x3x16xf32, #tpu.memory_space<vmem>>, vector<1x3x16xf32>
    %77 = vector.shape_cast %76 : vector<1x3x16xf32> to vector<3x16xf32>
    %cst_109 = arith.constant dense<0.000000e+00> : vector<128x16xf32>
    %78 = tpu.matmul %75, %77, %cst_109 {dimension_numbers = #tpu.dot_dimension_numbers<[1], [0], [0], [1], [0, 0, 1, 1], [], []>} : vector<128x3xf32>, vector<3x16xf32>, vector<128x16xf32> -> vector<128x16xf32>
    %79 = arith.addf %72, %78 : vector<128x16xf32>
    %c0_110 = arith.constant 0 : index
    %c2_111 = arith.constant 2 : index
    %c9_112 = arith.constant 9 : index
    %c0_113 = arith.constant 0 : index
    %80 = vector.load %arg7[%c0_110, %c2_111, %c9_112, %c0_113] : memref<2x18x25x3xf32, #tpu.memory_space<vmem>>, vector<1x8x16x3xf32>
    %81 = vector.shape_cast %80 : vector<1x8x16x3xf32> to vector<8x16x3xf32>
    %82 = vector.shape_cast %81 : vector<8x16x3xf32> to vector<128x3xf32>
    %c8_114 = arith.constant 8 : index
    %c0_115 = arith.constant 0 : index
    %c0_116 = arith.constant 0 : index
    %83 = vector.load %arg2[%c8_114, %c0_115, %c0_116] : memref<9x3x16xf32, #tpu.memory_space<vmem>>, vector<1x3x16xf32>
    %84 = vector.shape_cast %83 : vector<1x3x16xf32> to vector<3x16xf32>
    %cst_117 = arith.constant dense<0.000000e+00> : vector<128x16xf32>
    %85 = tpu.matmul %82, %84, %cst_117 {dimension_numbers = #tpu.dot_dimension_numbers<[1], [0], [0], [1], [0, 0, 1, 1], [], []>} : vector<128x3xf32>, vector<3x16xf32>, vector<128x16xf32> -> vector<128x16xf32>
    %86 = arith.addf %79, %85 : vector<128x16xf32>
    %87 = vector.broadcast %18 : vector<1x16xf32> to vector<128x16xf32>
    %88 = arith.addf %86, %87 : vector<128x16xf32>
    %cst_118 = arith.constant 0.000000e+00 : f32
    %89 = vector.broadcast %cst_118 : f32 to vector<128x16xf32>
    %90 = arith.maximumf %88, %89 : vector<128x16xf32>
    %91 = vector.shape_cast %90 : vector<128x16xf32> to vector<8x16x16xf32>
    %c0_119 = arith.constant 0 : index
    %c1_120 = arith.constant 1 : index
    %c8_121 = arith.constant 8 : index
    %c0_122 = arith.constant 0 : index
    %92 = vector.load %arg8[%c0_119, %c1_120, %c8_121, %c0_122] : memref<2x18x25x16xf32, #tpu.memory_space<vmem>>, vector<1x8x16x16xf32>
    %93 = vector.shape_cast %92 : vector<1x8x16x16xf32> to vector<8x16x16xf32>
    %94 = vector.shape_cast %91 : vector<8x16x16xf32> to vector<1x8x16x16xf32>
    tpu.vector_store %arg8[%c0_119, %c1_120, %c8_121, %c0_122], %94 {strides = array<i32>} : memref<2x18x25x16xf32, #tpu.memory_space<vmem>>, vector<1x8x16x16xf32>,
    %cst_123 = arith.constant 0.000000e+00 : f32
    %95 = vector.broadcast %cst_123 : f32 to vector<128x16xf32>
    %c0_124 = arith.constant 0 : index
    %c8_125 = arith.constant 8 : index
    %c7_126 = arith.constant 7 : index
    %c0_127 = arith.constant 0 : index
    %96 = vector.load %arg7[%c0_124, %c8_125, %c7_126, %c0_127] : memref<2x18x25x3xf32, #tpu.memory_space<vmem>>, vector<1x8x16x3xf32>
    %97 = vector.shape_cast %96 : vector<1x8x16x3xf32> to vector<8x16x3xf32>
    %98 = vector.shape_cast %97 : vector<8x16x3xf32> to vector<128x3xf32>
    %c0_128 = arith.constant 0 : index
    %c0_129 = arith.constant 0 : index
    %c0_130 = arith.constant 0 : index
    %99 = vector.load %arg2[%c0_128, %c0_129, %c0_130] : memref<9x3x16xf32, #tpu.memory_space<vmem>>, vector<1x3x16xf32>
    %100 = vector.shape_cast %99 : vector<1x3x16xf32> to vector<3x16xf32>
    %cst_131 = arith.constant dense<0.000000e+00> : vector<128x16xf32>
    %101 = tpu.matmul %98, %100, %cst_131 {dimension_numbers = #tpu.dot_dimension_numbers<[1], [0], [0], [1], [0, 0, 1, 1], [], []>} : vector<128x3xf32>, vector<3x16xf32>, vector<128x16xf32> -> vector<128x16xf32>
    %102 = arith.addf %95, %101 : vector<128x16xf32>
    %c0_132 = arith.constant 0 : index
    %c8_133 = arith.constant 8 : index
    %c8_134 = arith.constant 8 : index
    %c0_135 = arith.constant 0 : index
    %103 = vector.load %arg7[%c0_132, %c8_133, %c8_134, %c0_135] : memref<2x18x25x3xf32, #tpu.memory_space<vmem>>, vector<1x8x16x3xf32>
    %104 = vector.shape_cast %103 : vector<1x8x16x3xf32> to vector<8x16x3xf32>
    %105 = vector.shape_cast %104 : vector<8x16x3xf32> to vector<128x3xf32>
    %c1_136 = arith.constant 1 : index
    %c0_137 = arith.constant 0 : index
    %c0_138 = arith.constant 0 : index
    %106 = vector.load %arg2[%c1_136, %c0_137, %c0_138] : memref<9x3x16xf32, #tpu.memory_space<vmem>>, vector<1x3x16xf32>
    %107 = vector.shape_cast %106 : vector<1x3x16xf32> to vector<3x16xf32>
    %cst_139 = arith.constant dense<0.000000e+00> : vector<128x16xf32>
    %108 = tpu.matmul %105, %107, %cst_139 {dimension_numbers = #tpu.dot_dimension_numbers<[1], [0], [0], [1], [0, 0, 1, 1], [], []>} : vector<128x3xf32>, vector<3x16xf32>, vector<128x16xf32> -> vector<128x16xf32>
    %109 = arith.addf %102, %108 : vector<128x16xf32>
    %c0_140 = arith.constant 0 : index
    %c8_141 = arith.constant 8 : index
    %c9_142 = arith.constant 9 : index
    %c0_143 = arith.constant 0 : index
    %110 = vector.load %arg7[%c0_140, %c8_141, %c9_142, %c0_143] : memref<2x18x25x3xf32, #tpu.memory_space<vmem>>, vector<1x8x16x3xf32>
    %111 = vector.shape_cast %110 : vector<1x8x16x3xf32> to vector<8x16x3xf32>
    %112 = vector.shape_cast %111 : vector<8x16x3xf32> to vector<128x3xf32>
    %c2_144 = arith.constant 2 : index
    %c0_145 = arith.constant 0 : index
    %c0_146 = arith.constant 0 : index
    %113 = vector.load %arg2[%c2_144, %c0_145, %c0_146] : memref<9x3x16xf32, #tpu.memory_space<vmem>>, vector<1x3x16xf32>
    %114 = vector.shape_cast %113 : vector<1x3x16xf32> to vector<3x16xf32>
    %cst_147 = arith.constant dense<0.000000e+00> : vector<128x16xf32>
    %115 = tpu.matmul %112, %114, %cst_147 {dimension_numbers = #tpu.dot_dimension_numbers<[1], [0], [0], [1], [0, 0, 1, 1], [], []>} : vector<128x3xf32>, vector<3x16xf32>, vector<128x16xf32> -> vector<128x16xf32>
    %116 = arith.addf %109, %115 : vector<128x16xf32>
    %c0_148 = arith.constant 0 : index
    %c9_149 = arith.constant 9 : index
    %c7_150 = arith.constant 7 : index
    %c0_151 = arith.constant 0 : index
    %117 = vector.load %arg7[%c0_148, %c9_149, %c7_150, %c0_151] : memref<2x18x25x3xf32, #tpu.memory_space<vmem>>, vector<1x8x16x3xf32>
    %118 = vector.shape_cast %117 : vector<1x8x16x3xf32> to vector<8x16x3xf32>
    %119 = vector.shape_cast %118 : vector<8x16x3xf32> to vector<128x3xf32>
    %c3_152 = arith.constant 3 : index
    %c0_153 = arith.constant 0 : index
    %c0_154 = arith.constant 0 : index
    %120 = vector.load %arg2[%c3_152, %c0_153, %c0_154] : memref<9x3x16xf32, #tpu.memory_space<vmem>>, vector<1x3x16xf32>
    %121 = vector.shape_cast %120 : vector<1x3x16xf32> to vector<3x16xf32>
    %cst_155 = arith.constant dense<0.000000e+00> : vector<128x16xf32>
    %122 = tpu.matmul %119, %121, %cst_155 {dimension_numbers = #tpu.dot_dimension_numbers<[1], [0], [0], [1], [0, 0, 1, 1], [], []>} : vector<128x3xf32>, vector<3x16xf32>, vector<128x16xf32> -> vector<128x16xf32>
    %123 = arith.addf %116, %122 : vector<128x16xf32>
    %c0_156 = arith.constant 0 : index
    %c9_157 = arith.constant 9 : index
    %c8_158 = arith.constant 8 : index
    %c0_159 = arith.constant 0 : index
    %124 = vector.load %arg7[%c0_156, %c9_157, %c8_158, %c0_159] : memref<2x18x25x3xf32, #tpu.memory_space<vmem>>, vector<1x8x16x3xf32>
    %125 = vector.shape_cast %124 : vector<1x8x16x3xf32> to vector<8x16x3xf32>
    %126 = vector.shape_cast %125 : vector<8x16x3xf32> to vector<128x3xf32>
    %c4_160 = arith.constant 4 : index
    %c0_161 = arith.constant 0 : index
    %c0_162 = arith.constant 0 : index
    %127 = vector.load %arg2[%c4_160, %c0_161, %c0_162] : memref<9x3x16xf32, #tpu.memory_space<vmem>>, vector<1x3x16xf32>
    %128 = vector.shape_cast %127 : vector<1x3x16xf32> to vector<3x16xf32>
    %cst_163 = arith.constant dense<0.000000e+00> : vector<128x16xf32>
    %129 = tpu.matmul %126, %128, %cst_163 {dimension_numbers = #tpu.dot_dimension_numbers<[1], [0], [0], [1], [0, 0, 1, 1], [], []>} : vector<128x3xf32>, vector<3x16xf32>, vector<128x16xf32> -> vector<128x16xf32>
    %130 = arith.addf %123, %129 : vector<128x16xf32>
    %c0_164 = arith.constant 0 : index
    %c9_165 = arith.constant 9 : index
    %c9_166 = arith.constant 9 : index
    %c0_167 = arith.constant 0 : index
    %131 = vector.load %arg7[%c0_164, %c9_165, %c9_166, %c0_167] : memref<2x18x25x3xf32, #tpu.memory_space<vmem>>, vector<1x8x16x3xf32>
    %132 = vector.shape_cast %131 : vector<1x8x16x3xf32> to vector<8x16x3xf32>
    %133 = vector.shape_cast %132 : vector<8x16x3xf32> to vector<128x3xf32>
    %c5_168 = arith.constant 5 : index
    %c0_169 = arith.constant 0 : index
    %c0_170 = arith.constant 0 : index
    %134 = vector.load %arg2[%c5_168, %c0_169, %c0_170] : memref<9x3x16xf32, #tpu.memory_space<vmem>>, vector<1x3x16xf32>
    %135 = vector.shape_cast %134 : vector<1x3x16xf32> to vector<3x16xf32>
    %cst_171 = arith.constant dense<0.000000e+00> : vector<128x16xf32>
    %136 = tpu.matmul %133, %135, %cst_171 {dimension_numbers = #tpu.dot_dimension_numbers<[1], [0], [0], [1], [0, 0, 1, 1], [], []>} : vector<128x3xf32>, vector<3x16xf32>, vector<128x16xf32> -> vector<128x16xf32>
    %137 = arith.addf %130, %136 : vector<128x16xf32>
    %c0_172 = arith.constant 0 : index
    %c10 = arith.constant 10 : index
    %c7_173 = arith.constant 7 : index
    %c0_174 = arith.constant 0 : index
    %138 = vector.load %arg7[%c0_172, %c10, %c7_173, %c0_174] : memref<2x18x25x3xf32, #tpu.memory_space<vmem>>, vector<1x8x16x3xf32>
    %139 = vector.shape_cast %138 : vector<1x8x16x3xf32> to vector<8x16x3xf32>
    %140 = vector.shape_cast %139 : vector<8x16x3xf32> to vector<128x3xf32>
    %c6_175 = arith.constant 6 : index
    %c0_176 = arith.constant 0 : index
    %c0_177 = arith.constant 0 : index
    %141 = vector.load %arg2[%c6_175, %c0_176, %c0_177] : memref<9x3x16xf32, #tpu.memory_space<vmem>>, vector<1x3x16xf32>
    %142 = vector.shape_cast %141 : vector<1x3x16xf32> to vector<3x16xf32>
    %cst_178 = arith.constant dense<0.000000e+00> : vector<128x16xf32>
    %143 = tpu.matmul %140, %142, %cst_178 {dimension_numbers = #tpu.dot_dimension_numbers<[1], [0], [0], [1], [0, 0, 1, 1], [], []>} : vector<128x3xf32>, vector<3x16xf32>, vector<128x16xf32> -> vector<128x16xf32>
    %144 = arith.addf %137, %143 : vector<128x16xf32>
    %c0_179 = arith.constant 0 : index
    %c10_180 = arith.constant 10 : index
    %c8_181 = arith.constant 8 : index
    %c0_182 = arith.constant 0 : index
    %145 = vector.load %arg7[%c0_179, %c10_180, %c8_181, %c0_182] : memref<2x18x25x3xf32, #tpu.memory_space<vmem>>, vector<1x8x16x3xf32>
    %146 = vector.shape_cast %145 : vector<1x8x16x3xf32> to vector<8x16x3xf32>
    %147 = vector.shape_cast %146 : vector<8x16x3xf32> to vector<128x3xf32>
    %c7_183 = arith.constant 7 : index
    %c0_184 = arith.constant 0 : index
    %c0_185 = arith.constant 0 : index
    %148 = vector.load %arg2[%c7_183, %c0_184, %c0_185] : memref<9x3x16xf32, #tpu.memory_space<vmem>>, vector<1x3x16xf32>
    %149 = vector.shape_cast %148 : vector<1x3x16xf32> to vector<3x16xf32>
    %cst_186 = arith.constant dense<0.000000e+00> : vector<128x16xf32>
    %150 = tpu.matmul %147, %149, %cst_186 {dimension_numbers = #tpu.dot_dimension_numbers<[1], [0], [0], [1], [0, 0, 1, 1], [], []>} : vector<128x3xf32>, vector<3x16xf32>, vector<128x16xf32> -> vector<128x16xf32>
    %151 = arith.addf %144, %150 : vector<128x16xf32>
    %c0_187 = arith.constant 0 : index
    %c10_188 = arith.constant 10 : index
    %c9_189 = arith.constant 9 : index
    %c0_190 = arith.constant 0 : index
    %152 = vector.load %arg7[%c0_187, %c10_188, %c9_189, %c0_190] : memref<2x18x25x3xf32, #tpu.memory_space<vmem>>, vector<1x8x16x3xf32>
    %153 = vector.shape_cast %152 : vector<1x8x16x3xf32> to vector<8x16x3xf32>
    %154 = vector.shape_cast %153 : vector<8x16x3xf32> to vector<128x3xf32>
    %c8_191 = arith.constant 8 : index
    %c0_192 = arith.constant 0 : index
    %c0_193 = arith.constant 0 : index
    %155 = vector.load %arg2[%c8_191, %c0_192, %c0_193] : memref<9x3x16xf32, #tpu.memory_space<vmem>>, vector<1x3x16xf32>
    %156 = vector.shape_cast %155 : vector<1x3x16xf32> to vector<3x16xf32>
    %cst_194 = arith.constant dense<0.000000e+00> : vector<128x16xf32>
    %157 = tpu.matmul %154, %156, %cst_194 {dimension_numbers = #tpu.dot_dimension_numbers<[1], [0], [0], [1], [0, 0, 1, 1], [], []>} : vector<128x3xf32>, vector<3x16xf32>, vector<128x16xf32> -> vector<128x16xf32>
    %158 = arith.addf %151, %157 : vector<128x16xf32>
    %159 = vector.broadcast %18 : vector<1x16xf32> to vector<128x16xf32>
    %160 = arith.addf %158, %159 : vector<128x16xf32>
    %cst_195 = arith.constant 0.000000e+00 : f32
    %161 = vector.broadcast %cst_195 : f32 to vector<128x16xf32>
    %162 = arith.maximumf %160, %161 : vector<128x16xf32>
    %163 = vector.shape_cast %162 : vector<128x16xf32> to vector<8x16x16xf32>
    %c0_196 = arith.constant 0 : index
    %c9_197 = arith.constant 9 : index
    %c8_198 = arith.constant 8 : index
    %c0_199 = arith.constant 0 : index
    %164 = vector.load %arg8[%c0_196, %c9_197, %c8_198, %c0_199] : memref<2x18x25x16xf32, #tpu.memory_space<vmem>>, vector<1x8x16x16xf32>
    %165 = vector.shape_cast %164 : vector<1x8x16x16xf32> to vector<8x16x16xf32>
    %166 = vector.shape_cast %163 : vector<8x16x16xf32> to vector<1x8x16x16xf32>
    tpu.vector_store %arg8[%c0_196, %c9_197, %c8_198, %c0_199], %166 {strides = array<i32>} : memref<2x18x25x16xf32, #tpu.memory_space<vmem>>, vector<1x8x16x16xf32>,
    %cst_200 = arith.constant 0.000000e+00 : f32
    %167 = vector.broadcast %cst_200 : f32 to vector<128x16xf32>
    %c1_201 = arith.constant 1 : index
    %c0_202 = arith.constant 0 : index
    %c7_203 = arith.constant 7 : index
    %c0_204 = arith.constant 0 : index
    %168 = vector.load %arg7[%c1_201, %c0_202, %c7_203, %c0_204] : memref<2x18x25x3xf32, #tpu.memory_space<vmem>>, vector<1x8x16x3xf32>
    %169 = vector.shape_cast %168 : vector<1x8x16x3xf32> to vector<8x16x3xf32>
    %170 = vector.shape_cast %169 : vector<8x16x3xf32> to vector<128x3xf32>
    %c0_205 = arith.constant 0 : index
    %c0_206 = arith.constant 0 : index
    %c0_207 = arith.constant 0 : index
    %171 = vector.load %arg2[%c0_205, %c0_206, %c0_207] : memref<9x3x16xf32, #tpu.memory_space<vmem>>, vector<1x3x16xf32>
    %172 = vector.shape_cast %171 : vector<1x3x16xf32> to vector<3x16xf32>
    %cst_208 = arith.constant dense<0.000000e+00> : vector<128x16xf32>
    %173 = tpu.matmul %170, %172, %cst_208 {dimension_numbers = #tpu.dot_dimension_numbers<[1], [0], [0], [1], [0, 0, 1, 1], [], []>} : vector<128x3xf32>, vector<3x16xf32>, vector<128x16xf32> -> vector<128x16xf32>
    %174 = arith.addf %167, %173 : vector<128x16xf32>
    %c1_209 = arith.constant 1 : index
    %c0_210 = arith.constant 0 : index
    %c8_211 = arith.constant 8 : index
    %c0_212 = arith.constant 0 : index
    %175 = vector.load %arg7[%c1_209, %c0_210, %c8_211, %c0_212] : memref<2x18x25x3xf32, #tpu.memory_space<vmem>>, vector<1x8x16x3xf32>
    %176 = vector.shape_cast %175 : vector<1x8x16x3xf32> to vector<8x16x3xf32>
    %177 = vector.shape_cast %176 : vector<8x16x3xf32> to vector<128x3xf32>
    %c1_213 = arith.constant 1 : index
    %c0_214 = arith.constant 0 : index
    %c0_215 = arith.constant 0 : index
    %178 = vector.load %arg2[%c1_213, %c0_214, %c0_215] : memref<9x3x16xf32, #tpu.memory_space<vmem>>, vector<1x3x16xf32>
    %179 = vector.shape_cast %178 : vector<1x3x16xf32> to vector<3x16xf32>
    %cst_216 = arith.constant dense<0.000000e+00> : vector<128x16xf32>
    %180 = tpu.matmul %177, %179, %cst_216 {dimension_numbers = #tpu.dot_dimension_numbers<[1], [0], [0], [1], [0, 0, 1, 1], [], []>} : vector<128x3xf32>, vector<3x16xf32>, vector<128x16xf32> -> vector<128x16xf32>
    %181 = arith.addf %174, %180 : vector<128x16xf32>
    %c1_217 = arith.constant 1 : index
    %c0_218 = arith.constant 0 : index
    %c9_219 = arith.constant 9 : index
    %c0_220 = arith.constant 0 : index
    %182 = vector.load %arg7[%c1_217, %c0_218, %c9_219, %c0_220] : memref<2x18x25x3xf32, #tpu.memory_space<vmem>>, vector<1x8x16x3xf32>
    %183 = vector.shape_cast %182 : vector<1x8x16x3xf32> to vector<8x16x3xf32>
    %184 = vector.shape_cast %183 : vector<8x16x3xf32> to vector<128x3xf32>
    %c2_221 = arith.constant 2 : index
    %c0_222 = arith.constant 0 : index
    %c0_223 = arith.constant 0 : index
    %185 = vector.load %arg2[%c2_221, %c0_222, %c0_223] : memref<9x3x16xf32, #tpu.memory_space<vmem>>, vector<1x3x16xf32>
    %186 = vector.shape_cast %185 : vector<1x3x16xf32> to vector<3x16xf32>
    %cst_224 = arith.constant dense<0.000000e+00> : vector<128x16xf32>
    %187 = tpu.matmul %184, %186, %cst_224 {dimension_numbers = #tpu.dot_dimension_numbers<[1], [0], [0], [1], [0, 0, 1, 1], [], []>} : vector<128x3xf32>, vector<3x16xf32>, vector<128x16xf32> -> vector<128x16xf32>
    %188 = arith.addf %181, %187 : vector<128x16xf32>
    %c1_225 = arith.constant 1 : index
    %c1_226 = arith.constant 1 : index
    %c7_227 = arith.constant 7 : index
    %c0_228 = arith.constant 0 : index
    %189 = vector.load %arg7[%c1_225, %c1_226, %c7_227, %c0_228] : memref<2x18x25x3xf32, #tpu.memory_space<vmem>>, vector<1x8x16x3xf32>
    %190 = vector.shape_cast %189 : vector<1x8x16x3xf32> to vector<8x16x3xf32>
    %191 = vector.shape_cast %190 : vector<8x16x3xf32> to vector<128x3xf32>
    %c3_229 = arith.constant 3 : index
    %c0_230 = arith.constant 0 : index
    %c0_231 = arith.constant 0 : index
    %192 = vector.load %arg2[%c3_229, %c0_230, %c0_231] : memref<9x3x16xf32, #tpu.memory_space<vmem>>, vector<1x3x16xf32>
    %193 = vector.shape_cast %192 : vector<1x3x16xf32> to vector<3x16xf32>
    %cst_232 = arith.constant dense<0.000000e+00> : vector<128x16xf32>
    %194 = tpu.matmul %191, %193, %cst_232 {dimension_numbers = #tpu.dot_dimension_numbers<[1], [0], [0], [1], [0, 0, 1, 1], [], []>} : vector<128x3xf32>, vector<3x16xf32>, vector<128x16xf32> -> vector<128x16xf32>
    %195 = arith.addf %188, %194 : vector<128x16xf32>
    %c1_233 = arith.constant 1 : index
    %c1_234 = arith.constant 1 : index
    %c8_235 = arith.constant 8 : index
    %c0_236 = arith.constant 0 : index
    %196 = vector.load %arg7[%c1_233, %c1_234, %c8_235, %c0_236] : memref<2x18x25x3xf32, #tpu.memory_space<vmem>>, vector<1x8x16x3xf32>
    %197 = vector.shape_cast %196 : vector<1x8x16x3xf32> to vector<8x16x3xf32>
    %198 = vector.shape_cast %197 : vector<8x16x3xf32> to vector<128x3xf32>
    %c4_237 = arith.constant 4 : index
    %c0_238 = arith.constant 0 : index
    %c0_239 = arith.constant 0 : index
    %199 = vector.load %arg2[%c4_237, %c0_238, %c0_239] : memref<9x3x16xf32, #tpu.memory_space<vmem>>, vector<1x3x16xf32>
    %200 = vector.shape_cast %199 : vector<1x3x16xf32> to vector<3x16xf32>
    %cst_240 = arith.constant dense<0.000000e+00> : vector<128x16xf32>
    %201 = tpu.matmul %198, %200, %cst_240 {dimension_numbers = #tpu.dot_dimension_numbers<[1], [0], [0], [1], [0, 0, 1, 1], [], []>} : vector<128x3xf32>, vector<3x16xf32>, vector<128x16xf32> -> vector<128x16xf32>
    %202 = arith.addf %195, %201 : vector<128x16xf32>
    %c1_241 = arith.constant 1 : index
    %c1_242 = arith.constant 1 : index
    %c9_243 = arith.constant 9 : index
    %c0_244 = arith.constant 0 : index
    %203 = vector.load %arg7[%c1_241, %c1_242, %c9_243, %c0_244] : memref<2x18x25x3xf32, #tpu.memory_space<vmem>>, vector<1x8x16x3xf32>
    %204 = vector.shape_cast %203 : vector<1x8x16x3xf32> to vector<8x16x3xf32>
    %205 = vector.shape_cast %204 : vector<8x16x3xf32> to vector<128x3xf32>
    %c5_245 = arith.constant 5 : index
    %c0_246 = arith.constant 0 : index
    %c0_247 = arith.constant 0 : index
    %206 = vector.load %arg2[%c5_245, %c0_246, %c0_247] : memref<9x3x16xf32, #tpu.memory_space<vmem>>, vector<1x3x16xf32>
    %207 = vector.shape_cast %206 : vector<1x3x16xf32> to vector<3x16xf32>
    %cst_248 = arith.constant dense<0.000000e+00> : vector<128x16xf32>
    %208 = tpu.matmul %205, %207, %cst_248 {dimension_numbers = #tpu.dot_dimension_numbers<[1], [0], [0], [1], [0, 0, 1, 1], [], []>} : vector<128x3xf32>, vector<3x16xf32>, vector<128x16xf32> -> vector<128x16xf32>
    %209 = arith.addf %202, %208 : vector<128x16xf32>
    %c1_249 = arith.constant 1 : index
    %c2_250 = arith.constant 2 : index
    %c7_251 = arith.constant 7 : index
    %c0_252 = arith.constant 0 : index
    %210 = vector.load %arg7[%c1_249, %c2_250, %c7_251, %c0_252] : memref<2x18x25x3xf32, #tpu.memory_space<vmem>>, vector<1x8x16x3xf32>
    %211 = vector.shape_cast %210 : vector<1x8x16x3xf32> to vector<8x16x3xf32>
    %212 = vector.shape_cast %211 : vector<8x16x3xf32> to vector<128x3xf32>
    %c6_253 = arith.constant 6 : index
    %c0_254 = arith.constant 0 : index
    %c0_255 = arith.constant 0 : index
    %213 = vector.load %arg2[%c6_253, %c0_254, %c0_255] : memref<9x3x16xf32, #tpu.memory_space<vmem>>, vector<1x3x16xf32>
    %214 = vector.shape_cast %213 : vector<1x3x16xf32> to vector<3x16xf32>
    %cst_256 = arith.constant dense<0.000000e+00> : vector<128x16xf32>
    %215 = tpu.matmul %212, %214, %cst_256 {dimension_numbers = #tpu.dot_dimension_numbers<[1], [0], [0], [1], [0, 0, 1, 1], [], []>} : vector<128x3xf32>, vector<3x16xf32>, vector<128x16xf32> -> vector<128x16xf32>
    %216 = arith.addf %209, %215 : vector<128x16xf32>
    %c1_257 = arith.constant 1 : index
    %c2_258 = arith.constant 2 : index
    %c8_259 = arith.constant 8 : index
    %c0_260 = arith.constant 0 : index
    %217 = vector.load %arg7[%c1_257, %c2_258, %c8_259, %c0_260] : memref<2x18x25x3xf32, #tpu.memory_space<vmem>>, vector<1x8x16x3xf32>
    %218 = vector.shape_cast %217 : vector<1x8x16x3xf32> to vector<8x16x3xf32>
    %219 = vector.shape_cast %218 : vector<8x16x3xf32> to vector<128x3xf32>
    %c7_261 = arith.constant 7 : index
    %c0_262 = arith.constant 0 : index
    %c0_263 = arith.constant 0 : index
    %220 = vector.load %arg2[%c7_261, %c0_262, %c0_263] : memref<9x3x16xf32, #tpu.memory_space<vmem>>, vector<1x3x16xf32>
    %221 = vector.shape_cast %220 : vector<1x3x16xf32> to vector<3x16xf32>
    %cst_264 = arith.constant dense<0.000000e+00> : vector<128x16xf32>
    %222 = tpu.matmul %219, %221, %cst_264 {dimension_numbers = #tpu.dot_dimension_numbers<[1], [0], [0], [1], [0, 0, 1, 1], [], []>} : vector<128x3xf32>, vector<3x16xf32>, vector<128x16xf32> -> vector<128x16xf32>
    %223 = arith.addf %216, %222 : vector<128x16xf32>
    %c1_265 = arith.constant 1 : index
    %c2_266 = arith.constant 2 : index
    %c9_267 = arith.constant 9 : index
    %c0_268 = arith.constant 0 : index
    %224 = vector.load %arg7[%c1_265, %c2_266, %c9_267, %c0_268] : memref<2x18x25x3xf32, #tpu.memory_space<vmem>>, vector<1x8x16x3xf32>
    %225 = vector.shape_cast %224 : vector<1x8x16x3xf32> to vector<8x16x3xf32>
    %226 = vector.shape_cast %225 : vector<8x16x3xf32> to vector<128x3xf32>
    %c8_269 = arith.constant 8 : index
    %c0_270 = arith.constant 0 : index
    %c0_271 = arith.constant 0 : index
    %227 = vector.load %arg2[%c8_269, %c0_270, %c0_271] : memref<9x3x16xf32, #tpu.memory_space<vmem>>, vector<1x3x16xf32>
    %228 = vector.shape_cast %227 : vector<1x3x16xf32> to vector<3x16xf32>
    %cst_272 = arith.constant dense<0.000000e+00> : vector<128x16xf32>
    %229 = tpu.matmul %226, %228, %cst_272 {dimension_numbers = #tpu.dot_dimension_numbers<[1], [0], [0], [1], [0, 0, 1, 1], [], []>} : vector<128x3xf32>, vector<3x16xf32>, vector<128x16xf32> -> vector<128x16xf32>
    %230 = arith.addf %223, %229 : vector<128x16xf32>
    %231 = vector.broadcast %18 : vector<1x16xf32> to vector<128x16xf32>
    %232 = arith.addf %230, %231 : vector<128x16xf32>
    %cst_273 = arith.constant 0.000000e+00 : f32
    %233 = vector.broadcast %cst_273 : f32 to vector<128x16xf32>
    %234 = arith.maximumf %232, %233 : vector<128x16xf32>
    %235 = vector.shape_cast %234 : vector<128x16xf32> to vector<8x16x16xf32>
    %c1_274 = arith.constant 1 : index
    %c1_275 = arith.constant 1 : index
    %c8_276 = arith.constant 8 : index
    %c0_277 = arith.constant 0 : index
    %236 = vector.load %arg8[%c1_274, %c1_275, %c8_276, %c0_277] : memref<2x18x25x16xf32, #tpu.memory_space<vmem>>, vector<1x8x16x16xf32>
    %237 = vector.shape_cast %236 : vector<1x8x16x16xf32> to vector<8x16x16xf32>
    %238 = vector.shape_cast %235 : vector<8x16x16xf32> to vector<1x8x16x16xf32>
    tpu.vector_store %arg8[%c1_274, %c1_275, %c8_276, %c0_277], %238 {strides = array<i32>} : memref<2x18x25x16xf32, #tpu.memory_space<vmem>>, vector<1x8x16x16xf32>,
    %cst_278 = arith.constant 0.000000e+00 : f32
    %239 = vector.broadcast %cst_278 : f32 to vector<128x16xf32>
    %c1_279 = arith.constant 1 : index
    %c8_280 = arith.constant 8 : index
    %c7_281 = arith.constant 7 : index
    %c0_282 = arith.constant 0 : index
    %240 = vector.load %arg7[%c1_279, %c8_280, %c7_281, %c0_282] : memref<2x18x25x3xf32, #tpu.memory_space<vmem>>, vector<1x8x16x3xf32>
    %241 = vector.shape_cast %240 : vector<1x8x16x3xf32> to vector<8x16x3xf32>
    %242 = vector.shape_cast %241 : vector<8x16x3xf32> to vector<128x3xf32>
    %c0_283 = arith.constant 0 : index
    %c0_284 = arith.constant 0 : index
    %c0_285 = arith.constant 0 : index
    %243 = vector.load %arg2[%c0_283, %c0_284, %c0_285] : memref<9x3x16xf32, #tpu.memory_space<vmem>>, vector<1x3x16xf32>
    %244 = vector.shape_cast %243 : vector<1x3x16xf32> to vector<3x16xf32>
    %cst_286 = arith.constant dense<0.000000e+00> : vector<128x16xf32>
    %245 = tpu.matmul %242, %244, %cst_286 {dimension_numbers = #tpu.dot_dimension_numbers<[1], [0], [0], [1], [0, 0, 1, 1], [], []>} : vector<128x3xf32>, vector<3x16xf32>, vector<128x16xf32> -> vector<128x16xf32>
    %246 = arith.addf %239, %245 : vector<128x16xf32>
    %c1_287 = arith.constant 1 : index
    %c8_288 = arith.constant 8 : index
    %c8_289 = arith.constant 8 : index
    %c0_290 = arith.constant 0 : index
    %247 = vector.load %arg7[%c1_287, %c8_288, %c8_289, %c0_290] : memref<2x18x25x3xf32, #tpu.memory_space<vmem>>, vector<1x8x16x3xf32>
    %248 = vector.shape_cast %247 : vector<1x8x16x3xf32> to vector<8x16x3xf32>
    %249 = vector.shape_cast %248 : vector<8x16x3xf32> to vector<128x3xf32>
    %c1_291 = arith.constant 1 : index
    %c0_292 = arith.constant 0 : index
    %c0_293 = arith.constant 0 : index
    %250 = vector.load %arg2[%c1_291, %c0_292, %c0_293] : memref<9x3x16xf32, #tpu.memory_space<vmem>>, vector<1x3x16xf32>
    %251 = vector.shape_cast %250 : vector<1x3x16xf32> to vector<3x16xf32>
    %cst_294 = arith.constant dense<0.000000e+00> : vector<128x16xf32>
    %252 = tpu.matmul %249, %251, %cst_294 {dimension_numbers = #tpu.dot_dimension_numbers<[1], [0], [0], [1], [0, 0, 1, 1], [], []>} : vector<128x3xf32>, vector<3x16xf32>, vector<128x16xf32> -> vector<128x16xf32>
    %253 = arith.addf %246, %252 : vector<128x16xf32>
    %c1_295 = arith.constant 1 : index
    %c8_296 = arith.constant 8 : index
    %c9_297 = arith.constant 9 : index
    %c0_298 = arith.constant 0 : index
    %254 = vector.load %arg7[%c1_295, %c8_296, %c9_297, %c0_298] : memref<2x18x25x3xf32, #tpu.memory_space<vmem>>, vector<1x8x16x3xf32>
    %255 = vector.shape_cast %254 : vector<1x8x16x3xf32> to vector<8x16x3xf32>
    %256 = vector.shape_cast %255 : vector<8x16x3xf32> to vector<128x3xf32>
    %c2_299 = arith.constant 2 : index
    %c0_300 = arith.constant 0 : index
    %c0_301 = arith.constant 0 : index
    %257 = vector.load %arg2[%c2_299, %c0_300, %c0_301] : memref<9x3x16xf32, #tpu.memory_space<vmem>>, vector<1x3x16xf32>
    %258 = vector.shape_cast %257 : vector<1x3x16xf32> to vector<3x16xf32>
    %cst_302 = arith.constant dense<0.000000e+00> : vector<128x16xf32>
    %259 = tpu.matmul %256, %258, %cst_302 {dimension_numbers = #tpu.dot_dimension_numbers<[1], [0], [0], [1], [0, 0, 1, 1], [], []>} : vector<128x3xf32>, vector<3x16xf32>, vector<128x16xf32> -> vector<128x16xf32>
    %260 = arith.addf %253, %259 : vector<128x16xf32>
    %c1_303 = arith.constant 1 : index
    %c9_304 = arith.constant 9 : index
    %c7_305 = arith.constant 7 : index
    %c0_306 = arith.constant 0 : index
    %261 = vector.load %arg7[%c1_303, %c9_304, %c7_305, %c0_306] : memref<2x18x25x3xf32, #tpu.memory_space<vmem>>, vector<1x8x16x3xf32>
    %262 = vector.shape_cast %261 : vector<1x8x16x3xf32> to vector<8x16x3xf32>
    %263 = vector.shape_cast %262 : vector<8x16x3xf32> to vector<128x3xf32>
    %c3_307 = arith.constant 3 : index
    %c0_308 = arith.constant 0 : index
    %c0_309 = arith.constant 0 : index
    %264 = vector.load %arg2[%c3_307, %c0_308, %c0_309] : memref<9x3x16xf32, #tpu.memory_space<vmem>>, vector<1x3x16xf32>
    %265 = vector.shape_cast %264 : vector<1x3x16xf32> to vector<3x16xf32>
    %cst_310 = arith.constant dense<0.000000e+00> : vector<128x16xf32>
    %266 = tpu.matmul %263, %265, %cst_310 {dimension_numbers = #tpu.dot_dimension_numbers<[1], [0], [0], [1], [0, 0, 1, 1], [], []>} : vector<128x3xf32>, vector<3x16xf32>, vector<128x16xf32> -> vector<128x16xf32>
    %267 = arith.addf %260, %266 : vector<128x16xf32>
    %c1_311 = arith.constant 1 : index
    %c9_312 = arith.constant 9 : index
    %c8_313 = arith.constant 8 : index
    %c0_314 = arith.constant 0 : index
    %268 = vector.load %arg7[%c1_311, %c9_312, %c8_313, %c0_314] : memref<2x18x25x3xf32, #tpu.memory_space<vmem>>, vector<1x8x16x3xf32>
    %269 = vector.shape_cast %268 : vector<1x8x16x3xf32> to vector<8x16x3xf32>
    %270 = vector.shape_cast %269 : vector<8x16x3xf32> to vector<128x3xf32>
    %c4_315 = arith.constant 4 : index
    %c0_316 = arith.constant 0 : index
    %c0_317 = arith.constant 0 : index
    %271 = vector.load %arg2[%c4_315, %c0_316, %c0_317] : memref<9x3x16xf32, #tpu.memory_space<vmem>>, vector<1x3x16xf32>
    %272 = vector.shape_cast %271 : vector<1x3x16xf32> to vector<3x16xf32>
    %cst_318 = arith.constant dense<0.000000e+00> : vector<128x16xf32>
    %273 = tpu.matmul %270, %272, %cst_318 {dimension_numbers = #tpu.dot_dimension_numbers<[1], [0], [0], [1], [0, 0, 1, 1], [], []>} : vector<128x3xf32>, vector<3x16xf32>, vector<128x16xf32> -> vector<128x16xf32>
    %274 = arith.addf %267, %273 : vector<128x16xf32>
    %c1_319 = arith.constant 1 : index
    %c9_320 = arith.constant 9 : index
    %c9_321 = arith.constant 9 : index
    %c0_322 = arith.constant 0 : index
    %275 = vector.load %arg7[%c1_319, %c9_320, %c9_321, %c0_322] : memref<2x18x25x3xf32, #tpu.memory_space<vmem>>, vector<1x8x16x3xf32>
    %276 = vector.shape_cast %275 : vector<1x8x16x3xf32> to vector<8x16x3xf32>
    %277 = vector.shape_cast %276 : vector<8x16x3xf32> to vector<128x3xf32>
    %c5_323 = arith.constant 5 : index
    %c0_324 = arith.constant 0 : index
    %c0_325 = arith.constant 0 : index
    %278 = vector.load %arg2[%c5_323, %c0_324, %c0_325] : memref<9x3x16xf32, #tpu.memory_space<vmem>>, vector<1x3x16xf32>
    %279 = vector.shape_cast %278 : vector<1x3x16xf32> to vector<3x16xf32>
    %cst_326 = arith.constant dense<0.000000e+00> : vector<128x16xf32>
    %280 = tpu.matmul %277, %279, %cst_326 {dimension_numbers = #tpu.dot_dimension_numbers<[1], [0], [0], [1], [0, 0, 1, 1], [], []>} : vector<128x3xf32>, vector<3x16xf32>, vector<128x16xf32> -> vector<128x16xf32>
    %281 = arith.addf %274, %280 : vector<128x16xf32>
    %c1_327 = arith.constant 1 : index
    %c10_328 = arith.constant 10 : index
    %c7_329 = arith.constant 7 : index
    %c0_330 = arith.constant 0 : index
    %282 = vector.load %arg7[%c1_327, %c10_328, %c7_329, %c0_330] : memref<2x18x25x3xf32, #tpu.memory_space<vmem>>, vector<1x8x16x3xf32>
    %283 = vector.shape_cast %282 : vector<1x8x16x3xf32> to vector<8x16x3xf32>
    %284 = vector.shape_cast %283 : vector<8x16x3xf32> to vector<128x3xf32>
    %c6_331 = arith.constant 6 : index
    %c0_332 = arith.constant 0 : index
    %c0_333 = arith.constant 0 : index
    %285 = vector.load %arg2[%c6_331, %c0_332, %c0_333] : memref<9x3x16xf32, #tpu.memory_space<vmem>>, vector<1x3x16xf32>
    %286 = vector.shape_cast %285 : vector<1x3x16xf32> to vector<3x16xf32>
    %cst_334 = arith.constant dense<0.000000e+00> : vector<128x16xf32>
    %287 = tpu.matmul %284, %286, %cst_334 {dimension_numbers = #tpu.dot_dimension_numbers<[1], [0], [0], [1], [0, 0, 1, 1], [], []>} : vector<128x3xf32>, vector<3x16xf32>, vector<128x16xf32> -> vector<128x16xf32>
    %288 = arith.addf %281, %287 : vector<128x16xf32>
    %c1_335 = arith.constant 1 : index
    %c10_336 = arith.constant 10 : index
    %c8_337 = arith.constant 8 : index
    %c0_338 = arith.constant 0 : index
    %289 = vector.load %arg7[%c1_335, %c10_336, %c8_337, %c0_338] : memref<2x18x25x3xf32, #tpu.memory_space<vmem>>, vector<1x8x16x3xf32>
    %290 = vector.shape_cast %289 : vector<1x8x16x3xf32> to vector<8x16x3xf32>
    %291 = vector.shape_cast %290 : vector<8x16x3xf32> to vector<128x3xf32>
    %c7_339 = arith.constant 7 : index
    %c0_340 = arith.constant 0 : index
    %c0_341 = arith.constant 0 : index
    %292 = vector.load %arg2[%c7_339, %c0_340, %c0_341] : memref<9x3x16xf32, #tpu.memory_space<vmem>>, vector<1x3x16xf32>
    %293 = vector.shape_cast %292 : vector<1x3x16xf32> to vector<3x16xf32>
    %cst_342 = arith.constant dense<0.000000e+00> : vector<128x16xf32>
    %294 = tpu.matmul %291, %293, %cst_342 {dimension_numbers = #tpu.dot_dimension_numbers<[1], [0], [0], [1], [0, 0, 1, 1], [], []>} : vector<128x3xf32>, vector<3x16xf32>, vector<128x16xf32> -> vector<128x16xf32>
    %295 = arith.addf %288, %294 : vector<128x16xf32>
    %c1_343 = arith.constant 1 : index
    %c10_344 = arith.constant 10 : index
    %c9_345 = arith.constant 9 : index
    %c0_346 = arith.constant 0 : index
    %296 = vector.load %arg7[%c1_343, %c10_344, %c9_345, %c0_346] : memref<2x18x25x3xf32, #tpu.memory_space<vmem>>, vector<1x8x16x3xf32>
    %297 = vector.shape_cast %296 : vector<1x8x16x3xf32> to vector<8x16x3xf32>
    %298 = vector.shape_cast %297 : vector<8x16x3xf32> to vector<128x3xf32>
    %c8_347 = arith.constant 8 : index
    %c0_348 = arith.constant 0 : index
    %c0_349 = arith.constant 0 : index
    %299 = vector.load %arg2[%c8_347, %c0_348, %c0_349] : memref<9x3x16xf32, #tpu.memory_space<vmem>>, vector<1x3x16xf32>
    %300 = vector.shape_cast %299 : vector<1x3x16xf32> to vector<3x16xf32>
    %cst_350 = arith.constant dense<0.000000e+00> : vector<128x16xf32>
    %301 = tpu.matmul %298, %300, %cst_350 {dimension_numbers = #tpu.dot_dimension_numbers<[1], [0], [0], [1], [0, 0, 1, 1], [], []>} : vector<128x3xf32>, vector<3x16xf32>, vector<128x16xf32> -> vector<128x16xf32>
    %302 = arith.addf %295, %301 : vector<128x16xf32>
    %303 = vector.broadcast %18 : vector<1x16xf32> to vector<128x16xf32>
    %304 = arith.addf %302, %303 : vector<128x16xf32>
    %cst_351 = arith.constant 0.000000e+00 : f32
    %305 = vector.broadcast %cst_351 : f32 to vector<128x16xf32>
    %306 = arith.maximumf %304, %305 : vector<128x16xf32>
    %307 = vector.shape_cast %306 : vector<128x16xf32> to vector<8x16x16xf32>
    %c1_352 = arith.constant 1 : index
    %c9_353 = arith.constant 9 : index
    %c8_354 = arith.constant 8 : index
    %c0_355 = arith.constant 0 : index
    %308 = vector.load %arg8[%c1_352, %c9_353, %c8_354, %c0_355] : memref<2x18x25x16xf32, #tpu.memory_space<vmem>>, vector<1x8x16x16xf32>
    %309 = vector.shape_cast %308 : vector<1x8x16x16xf32> to vector<8x16x16xf32>
    %310 = vector.shape_cast %307 : vector<8x16x16xf32> to vector<1x8x16x16xf32>
    tpu.vector_store %arg8[%c1_352, %c9_353, %c8_354, %c0_355], %310 {strides = array<i32>} : memref<2x18x25x16xf32, #tpu.memory_space<vmem>>, vector<1x8x16x16xf32>,
    %cst_356 = arith.constant 0.000000e+00 : f32
    %311 = vector.broadcast %cst_356 : f32 to vector<1x32xf32>
    %cst_357 = arith.constant 0.000000e+00 : f32
    %312 = vector.broadcast %cst_357 : f32 to vector<128x32xf32>
    %c0_358 = arith.constant 0 : index
    %c0_359 = arith.constant 0 : index
    %c7_360 = arith.constant 7 : index
    %c0_361 = arith.constant 0 : index
    %313 = vector.load %arg8[%c0_358, %c0_359, %c7_360, %c0_361] : memref<2x18x25x16xf32, #tpu.memory_space<vmem>>, vector<1x8x16x16xf32>
    %314 = vector.shape_cast %313 : vector<1x8x16x16xf32> to vector<8x16x16xf32>
    %315 = vector.shape_cast %314 : vector<8x16x16xf32> to vector<128x16xf32>
    %c0_362 = arith.constant 0 : index
    %c0_363 = arith.constant 0 : index
    %c0_364 = arith.constant 0 : index
    %316 = vector.load %arg3[%c0_362, %c0_363, %c0_364] : memref<9x16x32xf32, #tpu.memory_space<vmem>>, vector<1x16x32xf32>
    %317 = vector.shape_cast %316 : vector<1x16x32xf32> to vector<16x32xf32>
    %cst_365 = arith.constant dense<0.000000e+00> : vector<128x32xf32>
    %318 = tpu.matmul %315, %317, %cst_365 {dimension_numbers = #tpu.dot_dimension_numbers<[1], [0], [0], [1], [0, 0, 1, 1], [], []>} : vector<128x16xf32>, vector<16x32xf32>, vector<128x32xf32> -> vector<128x32xf32>
    %319 = arith.addf %312, %318 : vector<128x32xf32>
    %c0_366 = arith.constant 0 : index
    %c0_367 = arith.constant 0 : index
    %c8_368 = arith.constant 8 : index
    %c0_369 = arith.constant 0 : index
    %320 = vector.load %arg8[%c0_366, %c0_367, %c8_368, %c0_369] : memref<2x18x25x16xf32, #tpu.memory_space<vmem>>, vector<1x8x16x16xf32>
    %321 = vector.shape_cast %320 : vector<1x8x16x16xf32> to vector<8x16x16xf32>
    %322 = vector.shape_cast %321 : vector<8x16x16xf32> to vector<128x16xf32>
    %c1_370 = arith.constant 1 : index
    %c0_371 = arith.constant 0 : index
    %c0_372 = arith.constant 0 : index
    %323 = vector.load %arg3[%c1_370, %c0_371, %c0_372] : memref<9x16x32xf32, #tpu.memory_space<vmem>>, vector<1x16x32xf32>
    %324 = vector.shape_cast %323 : vector<1x16x32xf32> to vector<16x32xf32>
    %cst_373 = arith.constant dense<0.000000e+00> : vector<128x32xf32>
    %325 = tpu.matmul %322, %324, %cst_373 {dimension_numbers = #tpu.dot_dimension_numbers<[1], [0], [0], [1], [0, 0, 1, 1], [], []>} : vector<128x16xf32>, vector<16x32xf32>, vector<128x32xf32> -> vector<128x32xf32>
    %326 = arith.addf %319, %325 : vector<128x32xf32>
    %c0_374 = arith.constant 0 : index
    %c0_375 = arith.constant 0 : index
    %c9_376 = arith.constant 9 : index
    %c0_377 = arith.constant 0 : index
    %327 = vector.load %arg8[%c0_374, %c0_375, %c9_376, %c0_377] : memref<2x18x25x16xf32, #tpu.memory_space<vmem>>, vector<1x8x16x16xf32>
    %328 = vector.shape_cast %327 : vector<1x8x16x16xf32> to vector<8x16x16xf32>
    %329 = vector.shape_cast %328 : vector<8x16x16xf32> to vector<128x16xf32>
    %c2_378 = arith.constant 2 : index
    %c0_379 = arith.constant 0 : index
    %c0_380 = arith.constant 0 : index
    %330 = vector.load %arg3[%c2_378, %c0_379, %c0_380] : memref<9x16x32xf32, #tpu.memory_space<vmem>>, vector<1x16x32xf32>
    %331 = vector.shape_cast %330 : vector<1x16x32xf32> to vector<16x32xf32>
    %cst_381 = arith.constant dense<0.000000e+00> : vector<128x32xf32>
    %332 = tpu.matmul %329, %331, %cst_381 {dimension_numbers = #tpu.dot_dimension_numbers<[1], [0], [0], [1], [0, 0, 1, 1], [], []>} : vector<128x16xf32>, vector<16x32xf32>, vector<128x32xf32> -> vector<128x32xf32>
    %333 = arith.addf %326, %332 : vector<128x32xf32>
    %c0_382 = arith.constant 0 : index
    %c1_383 = arith.constant 1 : index
    %c7_384 = arith.constant 7 : index
    %c0_385 = arith.constant 0 : index
    %334 = vector.load %arg8[%c0_382, %c1_383, %c7_384, %c0_385] : memref<2x18x25x16xf32, #tpu.memory_space<vmem>>, vector<1x8x16x16xf32>
    %335 = vector.shape_cast %334 : vector<1x8x16x16xf32> to vector<8x16x16xf32>
    %336 = vector.shape_cast %335 : vector<8x16x16xf32> to vector<128x16xf32>
    %c3_386 = arith.constant 3 : index
    %c0_387 = arith.constant 0 : index
    %c0_388 = arith.constant 0 : index
    %337 = vector.load %arg3[%c3_386, %c0_387, %c0_388] : memref<9x16x32xf32, #tpu.memory_space<vmem>>, vector<1x16x32xf32>
    %338 = vector.shape_cast %337 : vector<1x16x32xf32> to vector<16x32xf32>
    %cst_389 = arith.constant dense<0.000000e+00> : vector<128x32xf32>
    %339 = tpu.matmul %336, %338, %cst_389 {dimension_numbers = #tpu.dot_dimension_numbers<[1], [0], [0], [1], [0, 0, 1, 1], [], []>} : vector<128x16xf32>, vector<16x32xf32>, vector<128x32xf32> -> vector<128x32xf32>
    %340 = arith.addf %333, %339 : vector<128x32xf32>
    %c0_390 = arith.constant 0 : index
    %c1_391 = arith.constant 1 : index
    %c8_392 = arith.constant 8 : index
    %c0_393 = arith.constant 0 : index
    %341 = vector.load %arg8[%c0_390, %c1_391, %c8_392, %c0_393] : memref<2x18x25x16xf32, #tpu.memory_space<vmem>>, vector<1x8x16x16xf32>
    %342 = vector.shape_cast %341 : vector<1x8x16x16xf32> to vector<8x16x16xf32>
    %343 = vector.shape_cast %342 : vector<8x16x16xf32> to vector<128x16xf32>
    %c4_394 = arith.constant 4 : index
    %c0_395 = arith.constant 0 : index
    %c0_396 = arith.constant 0 : index
    %344 = vector.load %arg3[%c4_394, %c0_395, %c0_396] : memref<9x16x32xf32, #tpu.memory_space<vmem>>, vector<1x16x32xf32>
    %345 = vector.shape_cast %344 : vector<1x16x32xf32> to vector<16x32xf32>
    %cst_397 = arith.constant dense<0.000000e+00> : vector<128x32xf32>
    %346 = tpu.matmul %343, %345, %cst_397 {dimension_numbers = #tpu.dot_dimension_numbers<[1], [0], [0], [1], [0, 0, 1, 1], [], []>} : vector<128x16xf32>, vector<16x32xf32>, vector<128x32xf32> -> vector<128x32xf32>
    %347 = arith.addf %340, %346 : vector<128x32xf32>
    %c0_398 = arith.constant 0 : index
    %c1_399 = arith.constant 1 : index
    %c9_400 = arith.constant 9 : index
    %c0_401 = arith.constant 0 : index
    %348 = vector.load %arg8[%c0_398, %c1_399, %c9_400, %c0_401] : memref<2x18x25x16xf32, #tpu.memory_space<vmem>>, vector<1x8x16x16xf32>
    %349 = vector.shape_cast %348 : vector<1x8x16x16xf32> to vector<8x16x16xf32>
    %350 = vector.shape_cast %349 : vector<8x16x16xf32> to vector<128x16xf32>
    %c5_402 = arith.constant 5 : index
    %c0_403 = arith.constant 0 : index
    %c0_404 = arith.constant 0 : index
    %351 = vector.load %arg3[%c5_402, %c0_403, %c0_404] : memref<9x16x32xf32, #tpu.memory_space<vmem>>, vector<1x16x32xf32>
    %352 = vector.shape_cast %351 : vector<1x16x32xf32> to vector<16x32xf32>
    %cst_405 = arith.constant dense<0.000000e+00> : vector<128x32xf32>
    %353 = tpu.matmul %350, %352, %cst_405 {dimension_numbers = #tpu.dot_dimension_numbers<[1], [0], [0], [1], [0, 0, 1, 1], [], []>} : vector<128x16xf32>, vector<16x32xf32>, vector<128x32xf32> -> vector<128x32xf32>
    %354 = arith.addf %347, %353 : vector<128x32xf32>
    %c0_406 = arith.constant 0 : index
    %c2_407 = arith.constant 2 : index
    %c7_408 = arith.constant 7 : index
    %c0_409 = arith.constant 0 : index
    %355 = vector.load %arg8[%c0_406, %c2_407, %c7_408, %c0_409] : memref<2x18x25x16xf32, #tpu.memory_space<vmem>>, vector<1x8x16x16xf32>
    %356 = vector.shape_cast %355 : vector<1x8x16x16xf32> to vector<8x16x16xf32>
    %357 = vector.shape_cast %356 : vector<8x16x16xf32> to vector<128x16xf32>
    %c6_410 = arith.constant 6 : index
    %c0_411 = arith.constant 0 : index
    %c0_412 = arith.constant 0 : index
    %358 = vector.load %arg3[%c6_410, %c0_411, %c0_412] : memref<9x16x32xf32, #tpu.memory_space<vmem>>, vector<1x16x32xf32>
    %359 = vector.shape_cast %358 : vector<1x16x32xf32> to vector<16x32xf32>
    %cst_413 = arith.constant dense<0.000000e+00> : vector<128x32xf32>
    %360 = tpu.matmul %357, %359, %cst_413 {dimension_numbers = #tpu.dot_dimension_numbers<[1], [0], [0], [1], [0, 0, 1, 1], [], []>} : vector<128x16xf32>, vector<16x32xf32>, vector<128x32xf32> -> vector<128x32xf32>
    %361 = arith.addf %354, %360 : vector<128x32xf32>
    %c0_414 = arith.constant 0 : index
    %c2_415 = arith.constant 2 : index
    %c8_416 = arith.constant 8 : index
    %c0_417 = arith.constant 0 : index
    %362 = vector.load %arg8[%c0_414, %c2_415, %c8_416, %c0_417] : memref<2x18x25x16xf32, #tpu.memory_space<vmem>>, vector<1x8x16x16xf32>
    %363 = vector.shape_cast %362 : vector<1x8x16x16xf32> to vector<8x16x16xf32>
    %364 = vector.shape_cast %363 : vector<8x16x16xf32> to vector<128x16xf32>
    %c7_418 = arith.constant 7 : index
    %c0_419 = arith.constant 0 : index
    %c0_420 = arith.constant 0 : index
    %365 = vector.load %arg3[%c7_418, %c0_419, %c0_420] : memref<9x16x32xf32, #tpu.memory_space<vmem>>, vector<1x16x32xf32>
    %366 = vector.shape_cast %365 : vector<1x16x32xf32> to vector<16x32xf32>
    %cst_421 = arith.constant dense<0.000000e+00> : vector<128x32xf32>
    %367 = tpu.matmul %364, %366, %cst_421 {dimension_numbers = #tpu.dot_dimension_numbers<[1], [0], [0], [1], [0, 0, 1, 1], [], []>} : vector<128x16xf32>, vector<16x32xf32>, vector<128x32xf32> -> vector<128x32xf32>
    %368 = arith.addf %361, %367 : vector<128x32xf32>
    %c0_422 = arith.constant 0 : index
    %c2_423 = arith.constant 2 : index
    %c9_424 = arith.constant 9 : index
    %c0_425 = arith.constant 0 : index
    %369 = vector.load %arg8[%c0_422, %c2_423, %c9_424, %c0_425] : memref<2x18x25x16xf32, #tpu.memory_space<vmem>>, vector<1x8x16x16xf32>
    %370 = vector.shape_cast %369 : vector<1x8x16x16xf32> to vector<8x16x16xf32>
    %371 = vector.shape_cast %370 : vector<8x16x16xf32> to vector<128x16xf32>
    %c8_426 = arith.constant 8 : index
    %c0_427 = arith.constant 0 : index
    %c0_428 = arith.constant 0 : index
    %372 = vector.load %arg3[%c8_426, %c0_427, %c0_428] : memref<9x16x32xf32, #tpu.memory_space<vmem>>, vector<1x16x32xf32>
    %373 = vector.shape_cast %372 : vector<1x16x32xf32> to vector<16x32xf32>
    %cst_429 = arith.constant dense<0.000000e+00> : vector<128x32xf32>
    %374 = tpu.matmul %371, %373, %cst_429 {dimension_numbers = #tpu.dot_dimension_numbers<[1], [0], [0], [1], [0, 0, 1, 1], [], []>} : vector<128x16xf32>, vector<16x32xf32>, vector<128x32xf32> -> vector<128x32xf32>
    %375 = arith.addf %368, %374 : vector<128x32xf32>
    %376 = vector.broadcast %19 : vector<1x32xf32> to vector<128x32xf32>
    %377 = arith.addf %375, %376 : vector<128x32xf32>
    %cst_430 = arith.constant 0.000000e+00 : f32
    %378 = vector.broadcast %cst_430 : f32 to vector<128x32xf32>
    %379 = arith.maximumf %377, %378 : vector<128x32xf32>
    %cst_431 = arith.constant dense<0.000000e+00> : vector<32xf32>
    %380 = vector.multi_reduction <add>, %379, %cst_431 [0] : vector<128x32xf32> to vector<32xf32>
    %381 = vector.shape_cast %380 : vector<32xf32> to vector<1x32xf32>
    %382 = arith.addf %311, %381 : vector<1x32xf32>
    %cst_432 = arith.constant 0.000000e+00 : f32
    %383 = vector.broadcast %cst_432 : f32 to vector<128x32xf32>
    %c0_433 = arith.constant 0 : index
    %c8_434 = arith.constant 8 : index
    %c7_435 = arith.constant 7 : index
    %c0_436 = arith.constant 0 : index
    %384 = vector.load %arg8[%c0_433, %c8_434, %c7_435, %c0_436] : memref<2x18x25x16xf32, #tpu.memory_space<vmem>>, vector<1x8x16x16xf32>
    %385 = vector.shape_cast %384 : vector<1x8x16x16xf32> to vector<8x16x16xf32>
    %386 = vector.shape_cast %385 : vector<8x16x16xf32> to vector<128x16xf32>
    %c0_437 = arith.constant 0 : index
    %c0_438 = arith.constant 0 : index
    %c0_439 = arith.constant 0 : index
    %387 = vector.load %arg3[%c0_437, %c0_438, %c0_439] : memref<9x16x32xf32, #tpu.memory_space<vmem>>, vector<1x16x32xf32>
    %388 = vector.shape_cast %387 : vector<1x16x32xf32> to vector<16x32xf32>
    %cst_440 = arith.constant dense<0.000000e+00> : vector<128x32xf32>
    %389 = tpu.matmul %386, %388, %cst_440 {dimension_numbers = #tpu.dot_dimension_numbers<[1], [0], [0], [1], [0, 0, 1, 1], [], []>} : vector<128x16xf32>, vector<16x32xf32>, vector<128x32xf32> -> vector<128x32xf32>
    %390 = arith.addf %383, %389 : vector<128x32xf32>
    %c0_441 = arith.constant 0 : index
    %c8_442 = arith.constant 8 : index
    %c8_443 = arith.constant 8 : index
    %c0_444 = arith.constant 0 : index
    %391 = vector.load %arg8[%c0_441, %c8_442, %c8_443, %c0_444] : memref<2x18x25x16xf32, #tpu.memory_space<vmem>>, vector<1x8x16x16xf32>
    %392 = vector.shape_cast %391 : vector<1x8x16x16xf32> to vector<8x16x16xf32>
    %393 = vector.shape_cast %392 : vector<8x16x16xf32> to vector<128x16xf32>
    %c1_445 = arith.constant 1 : index
    %c0_446 = arith.constant 0 : index
    %c0_447 = arith.constant 0 : index
    %394 = vector.load %arg3[%c1_445, %c0_446, %c0_447] : memref<9x16x32xf32, #tpu.memory_space<vmem>>, vector<1x16x32xf32>
    %395 = vector.shape_cast %394 : vector<1x16x32xf32> to vector<16x32xf32>
    %cst_448 = arith.constant dense<0.000000e+00> : vector<128x32xf32>
    %396 = tpu.matmul %393, %395, %cst_448 {dimension_numbers = #tpu.dot_dimension_numbers<[1], [0], [0], [1], [0, 0, 1, 1], [], []>} : vector<128x16xf32>, vector<16x32xf32>, vector<128x32xf32> -> vector<128x32xf32>
    %397 = arith.addf %390, %396 : vector<128x32xf32>
    %c0_449 = arith.constant 0 : index
    %c8_450 = arith.constant 8 : index
    %c9_451 = arith.constant 9 : index
    %c0_452 = arith.constant 0 : index
    %398 = vector.load %arg8[%c0_449, %c8_450, %c9_451, %c0_452] : memref<2x18x25x16xf32, #tpu.memory_space<vmem>>, vector<1x8x16x16xf32>
    %399 = vector.shape_cast %398 : vector<1x8x16x16xf32> to vector<8x16x16xf32>
    %400 = vector.shape_cast %399 : vector<8x16x16xf32> to vector<128x16xf32>
    %c2_453 = arith.constant 2 : index
    %c0_454 = arith.constant 0 : index
    %c0_455 = arith.constant 0 : index
    %401 = vector.load %arg3[%c2_453, %c0_454, %c0_455] : memref<9x16x32xf32, #tpu.memory_space<vmem>>, vector<1x16x32xf32>
    %402 = vector.shape_cast %401 : vector<1x16x32xf32> to vector<16x32xf32>
    %cst_456 = arith.constant dense<0.000000e+00> : vector<128x32xf32>
    %403 = tpu.matmul %400, %402, %cst_456 {dimension_numbers = #tpu.dot_dimension_numbers<[1], [0], [0], [1], [0, 0, 1, 1], [], []>} : vector<128x16xf32>, vector<16x32xf32>, vector<128x32xf32> -> vector<128x32xf32>
    %404 = arith.addf %397, %403 : vector<128x32xf32>
    %c0_457 = arith.constant 0 : index
    %c9_458 = arith.constant 9 : index
    %c7_459 = arith.constant 7 : index
    %c0_460 = arith.constant 0 : index
    %405 = vector.load %arg8[%c0_457, %c9_458, %c7_459, %c0_460] : memref<2x18x25x16xf32, #tpu.memory_space<vmem>>, vector<1x8x16x16xf32>
    %406 = vector.shape_cast %405 : vector<1x8x16x16xf32> to vector<8x16x16xf32>
    %407 = vector.shape_cast %406 : vector<8x16x16xf32> to vector<128x16xf32>
    %c3_461 = arith.constant 3 : index
    %c0_462 = arith.constant 0 : index
    %c0_463 = arith.constant 0 : index
    %408 = vector.load %arg3[%c3_461, %c0_462, %c0_463] : memref<9x16x32xf32, #tpu.memory_space<vmem>>, vector<1x16x32xf32>
    %409 = vector.shape_cast %408 : vector<1x16x32xf32> to vector<16x32xf32>
    %cst_464 = arith.constant dense<0.000000e+00> : vector<128x32xf32>
    %410 = tpu.matmul %407, %409, %cst_464 {dimension_numbers = #tpu.dot_dimension_numbers<[1], [0], [0], [1], [0, 0, 1, 1], [], []>} : vector<128x16xf32>, vector<16x32xf32>, vector<128x32xf32> -> vector<128x32xf32>
    %411 = arith.addf %404, %410 : vector<128x32xf32>
    %c0_465 = arith.constant 0 : index
    %c9_466 = arith.constant 9 : index
    %c8_467 = arith.constant 8 : index
    %c0_468 = arith.constant 0 : index
    %412 = vector.load %arg8[%c0_465, %c9_466, %c8_467, %c0_468] : memref<2x18x25x16xf32, #tpu.memory_space<vmem>>, vector<1x8x16x16xf32>
    %413 = vector.shape_cast %412 : vector<1x8x16x16xf32> to vector<8x16x16xf32>
    %414 = vector.shape_cast %413 : vector<8x16x16xf32> to vector<128x16xf32>
    %c4_469 = arith.constant 4 : index
    %c0_470 = arith.constant 0 : index
    %c0_471 = arith.constant 0 : index
    %415 = vector.load %arg3[%c4_469, %c0_470, %c0_471] : memref<9x16x32xf32, #tpu.memory_space<vmem>>, vector<1x16x32xf32>
    %416 = vector.shape_cast %415 : vector<1x16x32xf32> to vector<16x32xf32>
    %cst_472 = arith.constant dense<0.000000e+00> : vector<128x32xf32>
    %417 = tpu.matmul %414, %416, %cst_472 {dimension_numbers = #tpu.dot_dimension_numbers<[1], [0], [0], [1], [0, 0, 1, 1], [], []>} : vector<128x16xf32>, vector<16x32xf32>, vector<128x32xf32> -> vector<128x32xf32>
    %418 = arith.addf %411, %417 : vector<128x32xf32>
    %c0_473 = arith.constant 0 : index
    %c9_474 = arith.constant 9 : index
    %c9_475 = arith.constant 9 : index
    %c0_476 = arith.constant 0 : index
    %419 = vector.load %arg8[%c0_473, %c9_474, %c9_475, %c0_476] : memref<2x18x25x16xf32, #tpu.memory_space<vmem>>, vector<1x8x16x16xf32>
    %420 = vector.shape_cast %419 : vector<1x8x16x16xf32> to vector<8x16x16xf32>
    %421 = vector.shape_cast %420 : vector<8x16x16xf32> to vector<128x16xf32>
    %c5_477 = arith.constant 5 : index
    %c0_478 = arith.constant 0 : index
    %c0_479 = arith.constant 0 : index
    %422 = vector.load %arg3[%c5_477, %c0_478, %c0_479] : memref<9x16x32xf32, #tpu.memory_space<vmem>>, vector<1x16x32xf32>
    %423 = vector.shape_cast %422 : vector<1x16x32xf32> to vector<16x32xf32>
    %cst_480 = arith.constant dense<0.000000e+00> : vector<128x32xf32>
    %424 = tpu.matmul %421, %423, %cst_480 {dimension_numbers = #tpu.dot_dimension_numbers<[1], [0], [0], [1], [0, 0, 1, 1], [], []>} : vector<128x16xf32>, vector<16x32xf32>, vector<128x32xf32> -> vector<128x32xf32>
    %425 = arith.addf %418, %424 : vector<128x32xf32>
    %c0_481 = arith.constant 0 : index
    %c10_482 = arith.constant 10 : index
    %c7_483 = arith.constant 7 : index
    %c0_484 = arith.constant 0 : index
    %426 = vector.load %arg8[%c0_481, %c10_482, %c7_483, %c0_484] : memref<2x18x25x16xf32, #tpu.memory_space<vmem>>, vector<1x8x16x16xf32>
    %427 = vector.shape_cast %426 : vector<1x8x16x16xf32> to vector<8x16x16xf32>
    %428 = vector.shape_cast %427 : vector<8x16x16xf32> to vector<128x16xf32>
    %c6_485 = arith.constant 6 : index
    %c0_486 = arith.constant 0 : index
    %c0_487 = arith.constant 0 : index
    %429 = vector.load %arg3[%c6_485, %c0_486, %c0_487] : memref<9x16x32xf32, #tpu.memory_space<vmem>>, vector<1x16x32xf32>
    %430 = vector.shape_cast %429 : vector<1x16x32xf32> to vector<16x32xf32>
    %cst_488 = arith.constant dense<0.000000e+00> : vector<128x32xf32>
    %431 = tpu.matmul %428, %430, %cst_488 {dimension_numbers = #tpu.dot_dimension_numbers<[1], [0], [0], [1], [0, 0, 1, 1], [], []>} : vector<128x16xf32>, vector<16x32xf32>, vector<128x32xf32> -> vector<128x32xf32>
    %432 = arith.addf %425, %431 : vector<128x32xf32>
    %c0_489 = arith.constant 0 : index
    %c10_490 = arith.constant 10 : index
    %c8_491 = arith.constant 8 : index
    %c0_492 = arith.constant 0 : index
    %433 = vector.load %arg8[%c0_489, %c10_490, %c8_491, %c0_492] : memref<2x18x25x16xf32, #tpu.memory_space<vmem>>, vector<1x8x16x16xf32>
    %434 = vector.shape_cast %433 : vector<1x8x16x16xf32> to vector<8x16x16xf32>
    %435 = vector.shape_cast %434 : vector<8x16x16xf32> to vector<128x16xf32>
    %c7_493 = arith.constant 7 : index
    %c0_494 = arith.constant 0 : index
    %c0_495 = arith.constant 0 : index
    %436 = vector.load %arg3[%c7_493, %c0_494, %c0_495] : memref<9x16x32xf32, #tpu.memory_space<vmem>>, vector<1x16x32xf32>
    %437 = vector.shape_cast %436 : vector<1x16x32xf32> to vector<16x32xf32>
    %cst_496 = arith.constant dense<0.000000e+00> : vector<128x32xf32>
    %438 = tpu.matmul %435, %437, %cst_496 {dimension_numbers = #tpu.dot_dimension_numbers<[1], [0], [0], [1], [0, 0, 1, 1], [], []>} : vector<128x16xf32>, vector<16x32xf32>, vector<128x32xf32> -> vector<128x32xf32>
    %439 = arith.addf %432, %438 : vector<128x32xf32>
    %c0_497 = arith.constant 0 : index
    %c10_498 = arith.constant 10 : index
    %c9_499 = arith.constant 9 : index
    %c0_500 = arith.constant 0 : index
    %440 = vector.load %arg8[%c0_497, %c10_498, %c9_499, %c0_500] : memref<2x18x25x16xf32, #tpu.memory_space<vmem>>, vector<1x8x16x16xf32>
    %441 = vector.shape_cast %440 : vector<1x8x16x16xf32> to vector<8x16x16xf32>
    %442 = vector.shape_cast %441 : vector<8x16x16xf32> to vector<128x16xf32>
    %c8_501 = arith.constant 8 : index
    %c0_502 = arith.constant 0 : index
    %c0_503 = arith.constant 0 : index
    %443 = vector.load %arg3[%c8_501, %c0_502, %c0_503] : memref<9x16x32xf32, #tpu.memory_space<vmem>>, vector<1x16x32xf32>
    %444 = vector.shape_cast %443 : vector<1x16x32xf32> to vector<16x32xf32>
    %cst_504 = arith.constant dense<0.000000e+00> : vector<128x32xf32>
    %445 = tpu.matmul %442, %444, %cst_504 {dimension_numbers = #tpu.dot_dimension_numbers<[1], [0], [0], [1], [0, 0, 1, 1], [], []>} : vector<128x16xf32>, vector<16x32xf32>, vector<128x32xf32> -> vector<128x32xf32>
    %446 = arith.addf %439, %445 : vector<128x32xf32>
    %447 = vector.broadcast %19 : vector<1x32xf32> to vector<128x32xf32>
    %448 = arith.addf %446, %447 : vector<128x32xf32>
    %cst_505 = arith.constant 0.000000e+00 : f32
    %449 = vector.broadcast %cst_505 : f32 to vector<128x32xf32>
    %450 = arith.maximumf %448, %449 : vector<128x32xf32>
    %cst_506 = arith.constant dense<0.000000e+00> : vector<32xf32>
    %451 = vector.multi_reduction <add>, %450, %cst_506 [0] : vector<128x32xf32> to vector<32xf32>
    %452 = vector.shape_cast %451 : vector<32xf32> to vector<1x32xf32>
    %453 = arith.addf %382, %452 : vector<1x32xf32>
    %cst_507 = arith.constant 0.000000e+00 : f32
    %454 = vector.broadcast %cst_507 : f32 to vector<1x32xf32>
    %cst_508 = arith.constant 0.000000e+00 : f32
    %455 = vector.broadcast %cst_508 : f32 to vector<128x32xf32>
    %c1_509 = arith.constant 1 : index
    %c0_510 = arith.constant 0 : index
    %c7_511 = arith.constant 7 : index
    %c0_512 = arith.constant 0 : index
    %456 = vector.load %arg8[%c1_509, %c0_510, %c7_511, %c0_512] : memref<2x18x25x16xf32, #tpu.memory_space<vmem>>, vector<1x8x16x16xf32>
    %457 = vector.shape_cast %456 : vector<1x8x16x16xf32> to vector<8x16x16xf32>
    %458 = vector.shape_cast %457 : vector<8x16x16xf32> to vector<128x16xf32>
    %c0_513 = arith.constant 0 : index
    %c0_514 = arith.constant 0 : index
    %c0_515 = arith.constant 0 : index
    %459 = vector.load %arg3[%c0_513, %c0_514, %c0_515] : memref<9x16x32xf32, #tpu.memory_space<vmem>>, vector<1x16x32xf32>
    %460 = vector.shape_cast %459 : vector<1x16x32xf32> to vector<16x32xf32>
    %cst_516 = arith.constant dense<0.000000e+00> : vector<128x32xf32>
    %461 = tpu.matmul %458, %460, %cst_516 {dimension_numbers = #tpu.dot_dimension_numbers<[1], [0], [0], [1], [0, 0, 1, 1], [], []>} : vector<128x16xf32>, vector<16x32xf32>, vector<128x32xf32> -> vector<128x32xf32>
    %462 = arith.addf %455, %461 : vector<128x32xf32>
    %c1_517 = arith.constant 1 : index
    %c0_518 = arith.constant 0 : index
    %c8_519 = arith.constant 8 : index
    %c0_520 = arith.constant 0 : index
    %463 = vector.load %arg8[%c1_517, %c0_518, %c8_519, %c0_520] : memref<2x18x25x16xf32, #tpu.memory_space<vmem>>, vector<1x8x16x16xf32>
    %464 = vector.shape_cast %463 : vector<1x8x16x16xf32> to vector<8x16x16xf32>
    %465 = vector.shape_cast %464 : vector<8x16x16xf32> to vector<128x16xf32>
    %c1_521 = arith.constant 1 : index
    %c0_522 = arith.constant 0 : index
    %c0_523 = arith.constant 0 : index
    %466 = vector.load %arg3[%c1_521, %c0_522, %c0_523] : memref<9x16x32xf32, #tpu.memory_space<vmem>>, vector<1x16x32xf32>
    %467 = vector.shape_cast %466 : vector<1x16x32xf32> to vector<16x32xf32>
    %cst_524 = arith.constant dense<0.000000e+00> : vector<128x32xf32>
    %468 = tpu.matmul %465, %467, %cst_524 {dimension_numbers = #tpu.dot_dimension_numbers<[1], [0], [0], [1], [0, 0, 1, 1], [], []>} : vector<128x16xf32>, vector<16x32xf32>, vector<128x32xf32> -> vector<128x32xf32>
    %469 = arith.addf %462, %468 : vector<128x32xf32>
    %c1_525 = arith.constant 1 : index
    %c0_526 = arith.constant 0 : index
    %c9_527 = arith.constant 9 : index
    %c0_528 = arith.constant 0 : index
    %470 = vector.load %arg8[%c1_525, %c0_526, %c9_527, %c0_528] : memref<2x18x25x16xf32, #tpu.memory_space<vmem>>, vector<1x8x16x16xf32>
    %471 = vector.shape_cast %470 : vector<1x8x16x16xf32> to vector<8x16x16xf32>
    %472 = vector.shape_cast %471 : vector<8x16x16xf32> to vector<128x16xf32>
    %c2_529 = arith.constant 2 : index
    %c0_530 = arith.constant 0 : index
    %c0_531 = arith.constant 0 : index
    %473 = vector.load %arg3[%c2_529, %c0_530, %c0_531] : memref<9x16x32xf32, #tpu.memory_space<vmem>>, vector<1x16x32xf32>
    %474 = vector.shape_cast %473 : vector<1x16x32xf32> to vector<16x32xf32>
    %cst_532 = arith.constant dense<0.000000e+00> : vector<128x32xf32>
    %475 = tpu.matmul %472, %474, %cst_532 {dimension_numbers = #tpu.dot_dimension_numbers<[1], [0], [0], [1], [0, 0, 1, 1], [], []>} : vector<128x16xf32>, vector<16x32xf32>, vector<128x32xf32> -> vector<128x32xf32>
    %476 = arith.addf %469, %475 : vector<128x32xf32>
    %c1_533 = arith.constant 1 : index
    %c1_534 = arith.constant 1 : index
    %c7_535 = arith.constant 7 : index
    %c0_536 = arith.constant 0 : index
    %477 = vector.load %arg8[%c1_533, %c1_534, %c7_535, %c0_536] : memref<2x18x25x16xf32, #tpu.memory_space<vmem>>, vector<1x8x16x16xf32>
    %478 = vector.shape_cast %477 : vector<1x8x16x16xf32> to vector<8x16x16xf32>
    %479 = vector.shape_cast %478 : vector<8x16x16xf32> to vector<128x16xf32>
    %c3_537 = arith.constant 3 : index
    %c0_538 = arith.constant 0 : index
    %c0_539 = arith.constant 0 : index
    %480 = vector.load %arg3[%c3_537, %c0_538, %c0_539] : memref<9x16x32xf32, #tpu.memory_space<vmem>>, vector<1x16x32xf32>
    %481 = vector.shape_cast %480 : vector<1x16x32xf32> to vector<16x32xf32>
    %cst_540 = arith.constant dense<0.000000e+00> : vector<128x32xf32>
    %482 = tpu.matmul %479, %481, %cst_540 {dimension_numbers = #tpu.dot_dimension_numbers<[1], [0], [0], [1], [0, 0, 1, 1], [], []>} : vector<128x16xf32>, vector<16x32xf32>, vector<128x32xf32> -> vector<128x32xf32>
    %483 = arith.addf %476, %482 : vector<128x32xf32>
    %c1_541 = arith.constant 1 : index
    %c1_542 = arith.constant 1 : index
    %c8_543 = arith.constant 8 : index
    %c0_544 = arith.constant 0 : index
    %484 = vector.load %arg8[%c1_541, %c1_542, %c8_543, %c0_544] : memref<2x18x25x16xf32, #tpu.memory_space<vmem>>, vector<1x8x16x16xf32>
    %485 = vector.shape_cast %484 : vector<1x8x16x16xf32> to vector<8x16x16xf32>
    %486 = vector.shape_cast %485 : vector<8x16x16xf32> to vector<128x16xf32>
    %c4_545 = arith.constant 4 : index
    %c0_546 = arith.constant 0 : index
    %c0_547 = arith.constant 0 : index
    %487 = vector.load %arg3[%c4_545, %c0_546, %c0_547] : memref<9x16x32xf32, #tpu.memory_space<vmem>>, vector<1x16x32xf32>
    %488 = vector.shape_cast %487 : vector<1x16x32xf32> to vector<16x32xf32>
    %cst_548 = arith.constant dense<0.000000e+00> : vector<128x32xf32>
    %489 = tpu.matmul %486, %488, %cst_548 {dimension_numbers = #tpu.dot_dimension_numbers<[1], [0], [0], [1], [0, 0, 1, 1], [], []>} : vector<128x16xf32>, vector<16x32xf32>, vector<128x32xf32> -> vector<128x32xf32>
    %490 = arith.addf %483, %489 : vector<128x32xf32>
    %c1_549 = arith.constant 1 : index
    %c1_550 = arith.constant 1 : index
    %c9_551 = arith.constant 9 : index
    %c0_552 = arith.constant 0 : index
    %491 = vector.load %arg8[%c1_549, %c1_550, %c9_551, %c0_552] : memref<2x18x25x16xf32, #tpu.memory_space<vmem>>, vector<1x8x16x16xf32>
    %492 = vector.shape_cast %491 : vector<1x8x16x16xf32> to vector<8x16x16xf32>
    %493 = vector.shape_cast %492 : vector<8x16x16xf32> to vector<128x16xf32>
    %c5_553 = arith.constant 5 : index
    %c0_554 = arith.constant 0 : index
    %c0_555 = arith.constant 0 : index
    %494 = vector.load %arg3[%c5_553, %c0_554, %c0_555] : memref<9x16x32xf32, #tpu.memory_space<vmem>>, vector<1x16x32xf32>
    %495 = vector.shape_cast %494 : vector<1x16x32xf32> to vector<16x32xf32>
    %cst_556 = arith.constant dense<0.000000e+00> : vector<128x32xf32>
    %496 = tpu.matmul %493, %495, %cst_556 {dimension_numbers = #tpu.dot_dimension_numbers<[1], [0], [0], [1], [0, 0, 1, 1], [], []>} : vector<128x16xf32>, vector<16x32xf32>, vector<128x32xf32> -> vector<128x32xf32>
    %497 = arith.addf %490, %496 : vector<128x32xf32>
    %c1_557 = arith.constant 1 : index
    %c2_558 = arith.constant 2 : index
    %c7_559 = arith.constant 7 : index
    %c0_560 = arith.constant 0 : index
    %498 = vector.load %arg8[%c1_557, %c2_558, %c7_559, %c0_560] : memref<2x18x25x16xf32, #tpu.memory_space<vmem>>, vector<1x8x16x16xf32>
    %499 = vector.shape_cast %498 : vector<1x8x16x16xf32> to vector<8x16x16xf32>
    %500 = vector.shape_cast %499 : vector<8x16x16xf32> to vector<128x16xf32>
    %c6_561 = arith.constant 6 : index
    %c0_562 = arith.constant 0 : index
    %c0_563 = arith.constant 0 : index
    %501 = vector.load %arg3[%c6_561, %c0_562, %c0_563] : memref<9x16x32xf32, #tpu.memory_space<vmem>>, vector<1x16x32xf32>
    %502 = vector.shape_cast %501 : vector<1x16x32xf32> to vector<16x32xf32>
    %cst_564 = arith.constant dense<0.000000e+00> : vector<128x32xf32>
    %503 = tpu.matmul %500, %502, %cst_564 {dimension_numbers = #tpu.dot_dimension_numbers<[1], [0], [0], [1], [0, 0, 1, 1], [], []>} : vector<128x16xf32>, vector<16x32xf32>, vector<128x32xf32> -> vector<128x32xf32>
    %504 = arith.addf %497, %503 : vector<128x32xf32>
    %c1_565 = arith.constant 1 : index
    %c2_566 = arith.constant 2 : index
    %c8_567 = arith.constant 8 : index
    %c0_568 = arith.constant 0 : index
    %505 = vector.load %arg8[%c1_565, %c2_566, %c8_567, %c0_568] : memref<2x18x25x16xf32, #tpu.memory_space<vmem>>, vector<1x8x16x16xf32>
    %506 = vector.shape_cast %505 : vector<1x8x16x16xf32> to vector<8x16x16xf32>
    %507 = vector.shape_cast %506 : vector<8x16x16xf32> to vector<128x16xf32>
    %c7_569 = arith.constant 7 : index
    %c0_570 = arith.constant 0 : index
    %c0_571 = arith.constant 0 : index
    %508 = vector.load %arg3[%c7_569, %c0_570, %c0_571] : memref<9x16x32xf32, #tpu.memory_space<vmem>>, vector<1x16x32xf32>
    %509 = vector.shape_cast %508 : vector<1x16x32xf32> to vector<16x32xf32>
    %cst_572 = arith.constant dense<0.000000e+00> : vector<128x32xf32>
    %510 = tpu.matmul %507, %509, %cst_572 {dimension_numbers = #tpu.dot_dimension_numbers<[1], [0], [0], [1], [0, 0, 1, 1], [], []>} : vector<128x16xf32>, vector<16x32xf32>, vector<128x32xf32> -> vector<128x32xf32>
    %511 = arith.addf %504, %510 : vector<128x32xf32>
    %c1_573 = arith.constant 1 : index
    %c2_574 = arith.constant 2 : index
    %c9_575 = arith.constant 9 : index
    %c0_576 = arith.constant 0 : index
    %512 = vector.load %arg8[%c1_573, %c2_574, %c9_575, %c0_576] : memref<2x18x25x16xf32, #tpu.memory_space<vmem>>, vector<1x8x16x16xf32>
    %513 = vector.shape_cast %512 : vector<1x8x16x16xf32> to vector<8x16x16xf32>
    %514 = vector.shape_cast %513 : vector<8x16x16xf32> to vector<128x16xf32>
    %c8_577 = arith.constant 8 : index
    %c0_578 = arith.constant 0 : index
    %c0_579 = arith.constant 0 : index
    %515 = vector.load %arg3[%c8_577, %c0_578, %c0_579] : memref<9x16x32xf32, #tpu.memory_space<vmem>>, vector<1x16x32xf32>
    %516 = vector.shape_cast %515 : vector<1x16x32xf32> to vector<16x32xf32>
    %cst_580 = arith.constant dense<0.000000e+00> : vector<128x32xf32>
    %517 = tpu.matmul %514, %516, %cst_580 {dimension_numbers = #tpu.dot_dimension_numbers<[1], [0], [0], [1], [0, 0, 1, 1], [], []>} : vector<128x16xf32>, vector<16x32xf32>, vector<128x32xf32> -> vector<128x32xf32>
    %518 = arith.addf %511, %517 : vector<128x32xf32>
    %519 = vector.broadcast %19 : vector<1x32xf32> to vector<128x32xf32>
    %520 = arith.addf %518, %519 : vector<128x32xf32>
    %cst_581 = arith.constant 0.000000e+00 : f32
    %521 = vector.broadcast %cst_581 : f32 to vector<128x32xf32>
    %522 = arith.maximumf %520, %521 : vector<128x32xf32>
    %cst_582 = arith.constant dense<0.000000e+00> : vector<32xf32>
    %523 = vector.multi_reduction <add>, %522, %cst_582 [0] : vector<128x32xf32> to vector<32xf32>
    %524 = vector.shape_cast %523 : vector<32xf32> to vector<1x32xf32>
    %525 = arith.addf %454, %524 : vector<1x32xf32>
    %cst_583 = arith.constant 0.000000e+00 : f32
    %526 = vector.broadcast %cst_583 : f32 to vector<128x32xf32>
    %c1_584 = arith.constant 1 : index
    %c8_585 = arith.constant 8 : index
    %c7_586 = arith.constant 7 : index
    %c0_587 = arith.constant 0 : index
    %527 = vector.load %arg8[%c1_584, %c8_585, %c7_586, %c0_587] : memref<2x18x25x16xf32, #tpu.memory_space<vmem>>, vector<1x8x16x16xf32>
    %528 = vector.shape_cast %527 : vector<1x8x16x16xf32> to vector<8x16x16xf32>
    %529 = vector.shape_cast %528 : vector<8x16x16xf32> to vector<128x16xf32>
    %c0_588 = arith.constant 0 : index
    %c0_589 = arith.constant 0 : index
    %c0_590 = arith.constant 0 : index
    %530 = vector.load %arg3[%c0_588, %c0_589, %c0_590] : memref<9x16x32xf32, #tpu.memory_space<vmem>>, vector<1x16x32xf32>
    %531 = vector.shape_cast %530 : vector<1x16x32xf32> to vector<16x32xf32>
    %cst_591 = arith.constant dense<0.000000e+00> : vector<128x32xf32>
    %532 = tpu.matmul %529, %531, %cst_591 {dimension_numbers = #tpu.dot_dimension_numbers<[1], [0], [0], [1], [0, 0, 1, 1], [], []>} : vector<128x16xf32>, vector<16x32xf32>, vector<128x32xf32> -> vector<128x32xf32>
    %533 = arith.addf %526, %532 : vector<128x32xf32>
    %c1_592 = arith.constant 1 : index
    %c8_593 = arith.constant 8 : index
    %c8_594 = arith.constant 8 : index
    %c0_595 = arith.constant 0 : index
    %534 = vector.load %arg8[%c1_592, %c8_593, %c8_594, %c0_595] : memref<2x18x25x16xf32, #tpu.memory_space<vmem>>, vector<1x8x16x16xf32>
    %535 = vector.shape_cast %534 : vector<1x8x16x16xf32> to vector<8x16x16xf32>
    %536 = vector.shape_cast %535 : vector<8x16x16xf32> to vector<128x16xf32>
    %c1_596 = arith.constant 1 : index
    %c0_597 = arith.constant 0 : index
    %c0_598 = arith.constant 0 : index
    %537 = vector.load %arg3[%c1_596, %c0_597, %c0_598] : memref<9x16x32xf32, #tpu.memory_space<vmem>>, vector<1x16x32xf32>
    %538 = vector.shape_cast %537 : vector<1x16x32xf32> to vector<16x32xf32>
    %cst_599 = arith.constant dense<0.000000e+00> : vector<128x32xf32>
    %539 = tpu.matmul %536, %538, %cst_599 {dimension_numbers = #tpu.dot_dimension_numbers<[1], [0], [0], [1], [0, 0, 1, 1], [], []>} : vector<128x16xf32>, vector<16x32xf32>, vector<128x32xf32> -> vector<128x32xf32>
    %540 = arith.addf %533, %539 : vector<128x32xf32>
    %c1_600 = arith.constant 1 : index
    %c8_601 = arith.constant 8 : index
    %c9_602 = arith.constant 9 : index
    %c0_603 = arith.constant 0 : index
    %541 = vector.load %arg8[%c1_600, %c8_601, %c9_602, %c0_603] : memref<2x18x25x16xf32, #tpu.memory_space<vmem>>, vector<1x8x16x16xf32>
    %542 = vector.shape_cast %541 : vector<1x8x16x16xf32> to vector<8x16x16xf32>
    %543 = vector.shape_cast %542 : vector<8x16x16xf32> to vector<128x16xf32>
    %c2_604 = arith.constant 2 : index
    %c0_605 = arith.constant 0 : index
    %c0_606 = arith.constant 0 : index
    %544 = vector.load %arg3[%c2_604, %c0_605, %c0_606] : memref<9x16x32xf32, #tpu.memory_space<vmem>>, vector<1x16x32xf32>
    %545 = vector.shape_cast %544 : vector<1x16x32xf32> to vector<16x32xf32>
    %cst_607 = arith.constant dense<0.000000e+00> : vector<128x32xf32>
    %546 = tpu.matmul %543, %545, %cst_607 {dimension_numbers = #tpu.dot_dimension_numbers<[1], [0], [0], [1], [0, 0, 1, 1], [], []>} : vector<128x16xf32>, vector<16x32xf32>, vector<128x32xf32> -> vector<128x32xf32>
    %547 = arith.addf %540, %546 : vector<128x32xf32>
    %c1_608 = arith.constant 1 : index
    %c9_609 = arith.constant 9 : index
    %c7_610 = arith.constant 7 : index
    %c0_611 = arith.constant 0 : index
    %548 = vector.load %arg8[%c1_608, %c9_609, %c7_610, %c0_611] : memref<2x18x25x16xf32, #tpu.memory_space<vmem>>, vector<1x8x16x16xf32>
    %549 = vector.shape_cast %548 : vector<1x8x16x16xf32> to vector<8x16x16xf32>
    %550 = vector.shape_cast %549 : vector<8x16x16xf32> to vector<128x16xf32>
    %c3_612 = arith.constant 3 : index
    %c0_613 = arith.constant 0 : index
    %c0_614 = arith.constant 0 : index
    %551 = vector.load %arg3[%c3_612, %c0_613, %c0_614] : memref<9x16x32xf32, #tpu.memory_space<vmem>>, vector<1x16x32xf32>
    %552 = vector.shape_cast %551 : vector<1x16x32xf32> to vector<16x32xf32>
    %cst_615 = arith.constant dense<0.000000e+00> : vector<128x32xf32>
    %553 = tpu.matmul %550, %552, %cst_615 {dimension_numbers = #tpu.dot_dimension_numbers<[1], [0], [0], [1], [0, 0, 1, 1], [], []>} : vector<128x16xf32>, vector<16x32xf32>, vector<128x32xf32> -> vector<128x32xf32>
    %554 = arith.addf %547, %553 : vector<128x32xf32>
    %c1_616 = arith.constant 1 : index
    %c9_617 = arith.constant 9 : index
    %c8_618 = arith.constant 8 : index
    %c0_619 = arith.constant 0 : index
    %555 = vector.load %arg8[%c1_616, %c9_617, %c8_618, %c0_619] : memref<2x18x25x16xf32, #tpu.memory_space<vmem>>, vector<1x8x16x16xf32>
    %556 = vector.shape_cast %555 : vector<1x8x16x16xf32> to vector<8x16x16xf32>
    %557 = vector.shape_cast %556 : vector<8x16x16xf32> to vector<128x16xf32>
    %c4_620 = arith.constant 4 : index
    %c0_621 = arith.constant 0 : index
    %c0_622 = arith.constant 0 : index
    %558 = vector.load %arg3[%c4_620, %c0_621, %c0_622] : memref<9x16x32xf32, #tpu.memory_space<vmem>>, vector<1x16x32xf32>
    %559 = vector.shape_cast %558 : vector<1x16x32xf32> to vector<16x32xf32>
    %cst_623 = arith.constant dense<0.000000e+00> : vector<128x32xf32>
    %560 = tpu.matmul %557, %559, %cst_623 {dimension_numbers = #tpu.dot_dimension_numbers<[1], [0], [0], [1], [0, 0, 1, 1], [], []>} : vector<128x16xf32>, vector<16x32xf32>, vector<128x32xf32> -> vector<128x32xf32>
    %561 = arith.addf %554, %560 : vector<128x32xf32>
    %c1_624 = arith.constant 1 : index
    %c9_625 = arith.constant 9 : index
    %c9_626 = arith.constant 9 : index
    %c0_627 = arith.constant 0 : index
    %562 = vector.load %arg8[%c1_624, %c9_625, %c9_626, %c0_627] : memref<2x18x25x16xf32, #tpu.memory_space<vmem>>, vector<1x8x16x16xf32>
    %563 = vector.shape_cast %562 : vector<1x8x16x16xf32> to vector<8x16x16xf32>
    %564 = vector.shape_cast %563 : vector<8x16x16xf32> to vector<128x16xf32>
    %c5_628 = arith.constant 5 : index
    %c0_629 = arith.constant 0 : index
    %c0_630 = arith.constant 0 : index
    %565 = vector.load %arg3[%c5_628, %c0_629, %c0_630] : memref<9x16x32xf32, #tpu.memory_space<vmem>>, vector<1x16x32xf32>
    %566 = vector.shape_cast %565 : vector<1x16x32xf32> to vector<16x32xf32>
    %cst_631 = arith.constant dense<0.000000e+00> : vector<128x32xf32>
    %567 = tpu.matmul %564, %566, %cst_631 {dimension_numbers = #tpu.dot_dimension_numbers<[1], [0], [0], [1], [0, 0, 1, 1], [], []>} : vector<128x16xf32>, vector<16x32xf32>, vector<128x32xf32> -> vector<128x32xf32>
    %568 = arith.addf %561, %567 : vector<128x32xf32>
    %c1_632 = arith.constant 1 : index
    %c10_633 = arith.constant 10 : index
    %c7_634 = arith.constant 7 : index
    %c0_635 = arith.constant 0 : index
    %569 = vector.load %arg8[%c1_632, %c10_633, %c7_634, %c0_635] : memref<2x18x25x16xf32, #tpu.memory_space<vmem>>, vector<1x8x16x16xf32>
    %570 = vector.shape_cast %569 : vector<1x8x16x16xf32> to vector<8x16x16xf32>
    %571 = vector.shape_cast %570 : vector<8x16x16xf32> to vector<128x16xf32>
    %c6_636 = arith.constant 6 : index
    %c0_637 = arith.constant 0 : index
    %c0_638 = arith.constant 0 : index
    %572 = vector.load %arg3[%c6_636, %c0_637, %c0_638] : memref<9x16x32xf32, #tpu.memory_space<vmem>>, vector<1x16x32xf32>
    %573 = vector.shape_cast %572 : vector<1x16x32xf32> to vector<16x32xf32>
    %cst_639 = arith.constant dense<0.000000e+00> : vector<128x32xf32>
    %574 = tpu.matmul %571, %573, %cst_639 {dimension_numbers = #tpu.dot_dimension_numbers<[1], [0], [0], [1], [0, 0, 1, 1], [], []>} : vector<128x16xf32>, vector<16x32xf32>, vector<128x32xf32> -> vector<128x32xf32>
    %575 = arith.addf %568, %574 : vector<128x32xf32>
    %c1_640 = arith.constant 1 : index
    %c10_641 = arith.constant 10 : index
    %c8_642 = arith.constant 8 : index
    %c0_643 = arith.constant 0 : index
    %576 = vector.load %arg8[%c1_640, %c10_641, %c8_642, %c0_643] : memref<2x18x25x16xf32, #tpu.memory_space<vmem>>, vector<1x8x16x16xf32>
    %577 = vector.shape_cast %576 : vector<1x8x16x16xf32> to vector<8x16x16xf32>
    %578 = vector.shape_cast %577 : vector<8x16x16xf32> to vector<128x16xf32>
    %c7_644 = arith.constant 7 : index
    %c0_645 = arith.constant 0 : index
    %c0_646 = arith.constant 0 : index
    %579 = vector.load %arg3[%c7_644, %c0_645, %c0_646] : memref<9x16x32xf32, #tpu.memory_space<vmem>>, vector<1x16x32xf32>
    %580 = vector.shape_cast %579 : vector<1x16x32xf32> to vector<16x32xf32>
    %cst_647 = arith.constant dense<0.000000e+00> : vector<128x32xf32>
    %581 = tpu.matmul %578, %580, %cst_647 {dimension_numbers = #tpu.dot_dimension_numbers<[1], [0], [0], [1], [0, 0, 1, 1], [], []>} : vector<128x16xf32>, vector<16x32xf32>, vector<128x32xf32> -> vector<128x32xf32>
    %582 = arith.addf %575, %581 : vector<128x32xf32>
    %c1_648 = arith.constant 1 : index
    %c10_649 = arith.constant 10 : index
    %c9_650 = arith.constant 9 : index
    %c0_651 = arith.constant 0 : index
    %583 = vector.load %arg8[%c1_648, %c10_649, %c9_650, %c0_651] : memref<2x18x25x16xf32, #tpu.memory_space<vmem>>, vector<1x8x16x16xf32>
    %584 = vector.shape_cast %583 : vector<1x8x16x16xf32> to vector<8x16x16xf32>
    %585 = vector.shape_cast %584 : vector<8x16x16xf32> to vector<128x16xf32>
    %c8_652 = arith.constant 8 : index
    %c0_653 = arith.constant 0 : index
    %c0_654 = arith.constant 0 : index
    %586 = vector.load %arg3[%c8_652, %c0_653, %c0_654] : memref<9x16x32xf32, #tpu.memory_space<vmem>>, vector<1x16x32xf32>
    %587 = vector.shape_cast %586 : vector<1x16x32xf32> to vector<16x32xf32>
    %cst_655 = arith.constant dense<0.000000e+00> : vector<128x32xf32>
    %588 = tpu.matmul %585, %587, %cst_655 {dimension_numbers = #tpu.dot_dimension_numbers<[1], [0], [0], [1], [0, 0, 1, 1], [], []>} : vector<128x16xf32>, vector<16x32xf32>, vector<128x32xf32> -> vector<128x32xf32>
    %589 = arith.addf %582, %588 : vector<128x32xf32>
    %590 = vector.broadcast %19 : vector<1x32xf32> to vector<128x32xf32>
    %591 = arith.addf %589, %590 : vector<128x32xf32>
    %cst_656 = arith.constant 0.000000e+00 : f32
    %592 = vector.broadcast %cst_656 : f32 to vector<128x32xf32>
    %593 = arith.maximumf %591, %592 : vector<128x32xf32>
    %cst_657 = arith.constant dense<0.000000e+00> : vector<32xf32>
    %594 = vector.multi_reduction <add>, %593, %cst_657 [0] : vector<128x32xf32> to vector<32xf32>
    %595 = vector.shape_cast %594 : vector<32xf32> to vector<1x32xf32>
    %596 = arith.addf %525, %595 : vector<1x32xf32>
    %597 = tpu.concatenate %453, %596 in 0 : vector<1x32xf32>, vector<1x32xf32> -> vector<2x32xf32>
    %c0_658 = arith.constant 0 : index
    %c0_659 = arith.constant 0 : index
    %598 = vector.load %arg4[%c0_658, %c0_659] : memref<288x128xf32, #tpu.memory_space<vmem>>, vector<32x128xf32>
    %c32 = arith.constant 32 : index
    %c0_660 = arith.constant 0 : index
    %599 = vector.load %arg4[%c32, %c0_660] : memref<288x128xf32, #tpu.memory_space<vmem>>, vector<128x128xf32>
    %c160 = arith.constant 160 : index
    %c0_661 = arith.constant 0 : index
    %600 = vector.load %arg4[%c160, %c0_661] : memref<288x128xf32, #tpu.memory_space<vmem>>, vector<128x128xf32>
    %cst_662 = arith.constant dense<0.000000e+00> : vector<2x128xf32>
    %601 = tpu.matmul %597, %598, %cst_662 {dimension_numbers = #tpu.dot_dimension_numbers<[1], [0], [0], [1], [0, 0, 1, 1], [], []>} : vector<2x32xf32>, vector<32x128xf32>, vector<2x128xf32> -> vector<2x128xf32>
    %602 = vector.broadcast %20 : vector<1x128xf32> to vector<2x128xf32>
    %603 = arith.addf %601, %602 : vector<2x128xf32>
    %cst_663 = arith.constant 0.000000e+00 : f32
    %604 = vector.broadcast %cst_663 : f32 to vector<2x128xf32>
    %605 = arith.maximumf %603, %604 : vector<2x128xf32>
    %cst_664 = arith.constant dense<0.000000e+00> : vector<2x128xf32>
    %606 = tpu.matmul %605, %599, %cst_664 {dimension_numbers = #tpu.dot_dimension_numbers<[1], [0], [0], [1], [0, 0, 1, 1], [], []>} : vector<2x128xf32>, vector<128x128xf32>, vector<2x128xf32> -> vector<2x128xf32>
    %607 = vector.broadcast %21 : vector<1x128xf32> to vector<2x128xf32>
    %608 = arith.addf %606, %607 : vector<2x128xf32>
    %cst_665 = arith.constant 0.000000e+00 : f32
    %609 = vector.broadcast %cst_665 : f32 to vector<2x128xf32>
    %610 = arith.maximumf %608, %609 : vector<2x128xf32>
    %cst_666 = arith.constant dense<0.000000e+00> : vector<2x128xf32>
    %611 = tpu.matmul %610, %600, %cst_666 {dimension_numbers = #tpu.dot_dimension_numbers<[1], [0], [0], [1], [0, 0, 1, 1], [], []>} : vector<2x128xf32>, vector<128x128xf32>, vector<2x128xf32> -> vector<2x128xf32>
    %612 = vector.broadcast %22 : vector<1x128xf32> to vector<2x128xf32>
    %613 = arith.addf %611, %612 : vector<2x128xf32>
    %614 = arith.negf %613 : vector<2x128xf32>
    %615 = math.exp %614 : vector<2x128xf32>
    %cst_667 = arith.constant 1.000000e+00 : f32
    %616 = vector.broadcast %cst_667 : f32 to vector<2x128xf32>
    %617 = arith.addf %616, %615 : vector<2x128xf32>
    %618 = arith.divf %616, %617 : vector<2x128xf32>
    %c0_668 = arith.constant 0 : index
    %c0_669 = arith.constant 0 : index
    %619 = vector.load %arg6[%c0_668, %c0_669] : memref<2x128xf32, #tpu.memory_space<vmem>>, vector<2x128xf32>
    tpu.vector_store %arg6[%c0_668, %c0_669], %618 {strides = array<i32>} : memref<2x128xf32, #tpu.memory_space<vmem>>, vector<2x128xf32>,
    return
  }
  func.func @transform_0(%arg0: i32) -> (i32, i32, i32, i32) {
    %c0_i32 = arith.constant 0 : i32
    %c0_i32_0 = arith.constant 0 : i32
    %c0_i32_1 = arith.constant 0 : i32
    %c0_i32_2 = arith.constant 0 : i32
    return %arg0, %c0_i32, %c0_i32_0, %c0_i32_1 : i32, i32, i32, i32
  }
  func.func @transform_1(%arg0: i32) -> (i32, i32, i32) {
    %c0_i32 = arith.constant 0 : i32
    %c0_i32_0 = arith.constant 0 : i32
    %c0_i32_1 = arith.constant 0 : i32
    %c0_i32_2 = arith.constant 0 : i32
    return %c0_i32, %c0_i32_0, %c0_i32_1 : i32, i32, i32
  }
  func.func @transform_2(%arg0: i32) -> (i32, i32, i32) {
    %c0_i32 = arith.constant 0 : i32
    %c0_i32_0 = arith.constant 0 : i32
    %c0_i32_1 = arith.constant 0 : i32
    %c0_i32_2 = arith.constant 0 : i32
    return %c0_i32, %c0_i32_0, %c0_i32_1 : i32, i32, i32
  }
  func.func @transform_3(%arg0: i32) -> (i32, i32) {
    %c0_i32 = arith.constant 0 : i32
    %c0_i32_0 = arith.constant 0 : i32
    %c0_i32_1 = arith.constant 0 : i32
    return %c0_i32, %c0_i32_0 : i32, i32
  }
  func.func @transform_4(%arg0: i32) -> (i32, i32) {
    %c0_i32 = arith.constant 0 : i32
    %c0_i32_0 = arith.constant 0 : i32
    %c0_i32_1 = arith.constant 0 : i32
    return %c0_i32, %c0_i32_0 : i32, i32
  }
  func.func @transform_5(%arg0: i32) -> (i32, i32) {
    %c0_i32 = arith.constant 0 : i32
    %c0_i32_0 = arith.constant 0 : i32
    return %arg0, %c0_i32 : i32, i32
  }
}

</mosaic_0001>

<bundles_post_ra>
// kernel: color_predictor.1
= control target key start
LH: loop header
LB: loop body
LE: loop exit
PB: predicated region body
PF: predicated region fallthrough
CT: control target
= control target key end

     0   :  { %vm414_vm0 = vcmask 1042432   ;;  %vm21_vm1 = vcmask 23552   ;;  %v17708_v4 = vmov 0.0   ;;  %s17702_s0 = inlined_call_operand.vmem [shape: f32[2,16,16,3], index: 0, kind: input, shape index: {}]   ;;  %s17703_s1 = inlined_call_operand.vmem [shape: f32[9,3,16], index: 1, kind: input, shape index: {}]   ;;  %s17704_s2 = inlined_call_operand.vmem [shape: f32[9,16,32], index: 2, kind: input, shape index: {}]   ;;  %s17705_s3 = inlined_call_operand.vmem [shape: f32[288,128], index: 3, kind: input, shape index: {}]   ;;  %s17706_s4 = inlined_call_operand.vmem [shape: f32[8,128], index: 4, kind: input, shape index: {}]   ;;  %s17707_s5 = inlined_call_operand.hbm [shape: f32[2,128], index: 5, kind: output, shape index: {}]  }
   0x1   :  { %v11332_v0 = vld [vmem:[%s17703_s1 + $0x4] sm:$0x7]  ;;  %v11367_v1 = vld [vmem:[%s17703_s1 + $0x8] sm:$0x7]  ;;  %v11385_v2 = vld [vmem:[%s17703_s1 + $0xc] sm:$0x7] }
   0x2   :  { %11333 = vmatpush.msk.msra.mxu0 %vm414_vm0, %v11332_v0  ;;  %11368 = vmatpush.msk.msra.mxu2 %vm414_vm0, %v11367_v1  ;;  %v347_v3 = vld [vmem:[%s17703_s1] sm:$0x7]  ;;  %22 = vst.msk [vmem:[#allocation2 + $0x7] sm:$0xff] %vm21_vm1, %v17708_v4 }
   0x3   :  { %11386 = vmatpush.msk.msra.mxu3 %vm414_vm0, %v11385_v2  ;;  %11350 = vmatpush.msk.msra.mxu1 %vm414_vm0, %v347_v3  ;;  %23 = vst.msk [vmem:[#allocation2 + $0xf] sm:$0xff] %vm21_vm1, %v17708_v4 }
   0x4   :  { %26 = vst.msk [vmem:[#allocation2 + $0x247] sm:$0xff] %vm21_vm1, %v17708_v4 }
   0x5   :  { %27 = vst.msk [vmem:[#allocation2 + $0x24f] sm:$0xff] %vm21_vm1, %v17708_v4 }
   0x6   :  { %10 = vsyncpa [#allocation5], 0  ;;  %30 = vst.msk [vmem:[#allocation2 + $0x227] sm:$0xff] %vm21_vm1, %v17708_v4  ;;  %vm36_vm2 = vcmask 16384   ;;  %v197_v5 = vld [vmem:[%s17702_s0] sm:$0xff]  ;;  %vm24_vm3 = vcmask 17408  }
   0x7   :  { %31 = vst.msk [vmem:[#allocation2 + $0x22f] sm:$0xff] %vm21_vm1, %v17708_v4  ;;  %v11439_v10 = vld [vmem:[%s17703_s1 + $0x18] sm:$0x7]  ;;  %v11403_v11 = vld [vmem:[%s17703_s1 + $0x10] sm:$0x7]  ;;  %v198_v15 = vld [vmem:[%s17702_s0 + $0x8] sm:$0xff] }
   0x8   :  { %33 = vst.msk [vmem:[#allocation2 + $0x467] sm:$0xff] %vm21_vm1, %v17708_v4  ;;  %11440 = vmatpush.msk.msrb.mxu2 %vm414_vm0, %v11439_v10  ;;  %11404 = vmatpush.msk.msrb.mxu0 %vm414_vm0, %v11403_v11  ;;  %v11457_v12 = vld [vmem:[%s17703_s1 + $0x1c] sm:$0x7]  ;;  %v11421_v13 = vld [vmem:[%s17703_s1 + $0x14] sm:$0x7]  ;;  %v201_v19 = vld [vmem:[%s17702_s0 + $0x20] sm:$0xff] }
   0x9   :  { %34 = vst.msk [vmem:[#allocation2 + $0x46f] sm:$0xff] %vm21_vm1, %v17708_v4  ;;  %11458 = vmatpush.msk.msrb.mxu3 %vm414_vm0, %v11457_v12  ;;  %11422 = vmatpush.msk.msrb.mxu1 %vm414_vm0, %v11421_v13  ;;  %v199_v16 = vld [vmem:[%s17702_s0 + $0x10] sm:$0xff]  ;;  %v200_v18 = vld [vmem:[%s17702_s0 + $0x18] sm:$0xff]  ;;  %v202_v20 = vld [vmem:[%s17702_s0 + $0x28] sm:$0xff]  ;;  %vm109_vm4 = vcmask 130048   ;;  %vm124_vm5 = vcmask 122880  }
   0xa   :  { %v348_v6 = vld [vmem:[#allocation2 + $0x8] sm:$0xff]  ;;  %38 = vst.msk [vmem:[#allocation2 + $0x27] sm:$0x1] %vm36_vm2, %v17708_v4  ;;  %v203_v25 = vld [vmem:[%s17702_s0 + $0x30] sm:$0xff]  ;;  %v204_v28 = vld [vmem:[%s17702_s0 + $0x38] sm:$0xff]  ;;  %vm112_vm6 = vcmask 123904  }
   0xb   :  { %v599_v7 = vld [vmem:[#allocation2 + $0x9] sm:$0xff]  ;;  %11334 = vmatmul.msk.f32.vlgmr.msra.gmra.mxu0 %vm21_vm1, %v348_v6  ;;  %262 = vst.msk [vmem:[#allocation2 + $0x28] sm:$0xff] %vm21_vm1, %v197_v5  ;;  %v205_v32 = vld [vmem:[%s17702_s0 + $0x40] sm:$0xff]  ;;  %v208_v44 = vld [vmem:[%s17702_s0 + $0x58] sm:$0xff]  ;;  %vm7116_vm7 = vcmask 261120   ;;  %vm11190_vm8 = vcmask 1040384  }
   0xc   :  { %11369 = vmatmul.msk.f32.vlgmr.msra.gmra.mxu2 %vm21_vm1, %v599_v7  ;;  %37 = vst.msk [vmem:[#allocation2 + $0x7] sm:$0x1] %vm36_vm2, %v17708_v4  ;;  %v332_v14 = vld [vmem:[#allocation2 + $0xf] sm:$0xff]  ;;  %v209_v48 = vld [vmem:[%s17702_s0 + $0x60] sm:$0xff]  ;;  %v212_v60 = vld [vmem:[%s17702_s0 + $0x78] sm:$0xff] }
   0xd   :  { %39 = vst.msk [vmem:[#allocation2 + $0x47] sm:$0x1] %vm36_vm2, %v17708_v4  ;;  %v206_v36 = vld [vmem:[%s17702_s0 + $0x48] sm:$0xff]  ;;  %v207_v40 = vld [vmem:[%s17702_s0 + $0x50] sm:$0xff]  ;;  %v1717_v3 = vld [vmem:[%s17703_s1] sm:$0x7] }
   0xe   :  { %40 = vst.msk [vmem:[#allocation2 + $0x67] sm:$0x1] %vm36_vm2, %v17708_v4  ;;  %v210_v52 = vld [vmem:[%s17702_s0 + $0x68] sm:$0xff]  ;;  %v211_v56 = vld [vmem:[%s17702_s0 + $0x70] sm:$0xff]  ;;  %v11475_v5 = vld [vmem:[%s17703_s1 + $0x20] sm:$0x7]  ;;  %11511 = vmatpush.msk.msra.mxu2 %vm414_vm0, %v1717_v3 }
   0xf   :  { %41 = vst.msk [vmem:[#allocation2 + $0x87] sm:$0x1] %vm36_vm2, %v17708_v4  ;;  %v11528_v6 = vld [vmem:[%s17703_s1 + $0x8] sm:$0x7]  ;;  %11476 = vmatpush.msk.msra.mxu0 %vm414_vm0, %v11475_v5 }
  0x10   :  { %42 = vst.msk [vmem:[#allocation2 + $0xa7] sm:$0x1] %vm36_vm2, %v17708_v4 }
  0x11   :  { %43 = vst.msk [vmem:[#allocation2 + $0xc7] sm:$0x1] %vm36_vm2, %v17708_v4 }
  0x12   :  { %v12728_v8 = vld [vmem:[#allocation2 + $0x27] sm:$0xff]  ;;  %44 = vst.msk [vmem:[#allocation2 + $0xe7] sm:$0x1] %vm36_vm2, %v17708_v4 }
  0x13   :  { %11387 = vmatmul.msk.f32.vlgmr.msra.gmra.mxu3 %vm21_vm1, %v12728_v8  ;;  %45 = vst.msk [vmem:[#allocation2 + $0x107] sm:$0x1] %vm36_vm2, %v17708_v4  ;;  %v331_v9 = vld [vmem:[#allocation2 + $0x7] sm:$0xff] }
  0x14   :  { %46 = vst.msk [vmem:[#allocation2 + $0x127] sm:$0x1] %vm36_vm2, %v17708_v4  ;;  %11351 = vmatmul.msk.f32.vlgmr.msra.gmra.mxu1 %vm21_vm1, %v331_v9  ;;  %v12908_v22 = vld [vmem:[#allocation2 + $0x28] sm:$0xff]  ;;  %11529 = vmatpush.msk.msra.mxu3 %vm414_vm0, %v11528_v6 }
  0x15   :  { %47 = vst.msk [vmem:[#allocation2 + $0x147] sm:$0x1] %vm36_vm2, %v17708_v4 }
  0x16   :  { %48 = vst.msk [vmem:[#allocation2 + $0x167] sm:$0x1] %vm36_vm2, %v17708_v4 }
  0x17   :  { %49 = vst.msk [vmem:[#allocation2 + $0x187] sm:$0x1] %vm36_vm2, %v17708_v4 }
  0x18   :  { %50 = vst.msk [vmem:[#allocation2 + $0x1a7] sm:$0x1] %vm36_vm2, %v17708_v4 }
  0x19   :  { %51 = vst.msk [vmem:[#allocation2 + $0x1c7] sm:$0x1] %vm36_vm2, %v17708_v4 }
  0x1a   :  { %52 = vst.msk [vmem:[#allocation2 + $0x1e7] sm:$0x1] %vm36_vm2, %v17708_v4 }
  0x1b   :  { %53 = vst.msk [vmem:[#allocation2 + $0x207] sm:$0x1] %vm36_vm2, %v17708_v4 }
  0x1c   :  { %54 = vst.msk [vmem:[#allocation2 + $0x227] sm:$0x1] %vm36_vm2, %v17708_v4  ;;  %11352 = vmatmul.msk.f32.gmra.mxu1 %vm21_vm1, %v332_v14 }
  0x1d   :  { %55 = vst.msk [vmem:[#allocation2 + $0x247] sm:$0x1] %vm36_vm2, %v17708_v4 }
  0x1e   :  { %56 = vst.msk [vmem:[#allocation2 + $0x267] sm:$0x1] %vm36_vm2, %v17708_v4 }
  0x1f   :  { %57 = vst.msk [vmem:[#allocation2 + $0x287] sm:$0x1] %vm36_vm2, %v17708_v4 }
  0x20   :  { %58 = vst.msk [vmem:[#allocation2 + $0x2a7] sm:$0x1] %vm36_vm2, %v17708_v4 }
  0x21   :  { %59 = vst.msk [vmem:[#allocation2 + $0x2c7] sm:$0x1] %vm36_vm2, %v17708_v4 }
  0x22   :  { %60 = vst.msk [vmem:[#allocation2 + $0x2e7] sm:$0x1] %vm36_vm2, %v17708_v4 }
  0x23   :  { %61 = vst.msk [vmem:[#allocation2 + $0x307] sm:$0x1] %vm36_vm2, %v17708_v4 }
  0x24   :  { %62 = vst.msk [vmem:[#allocation2 + $0x327] sm:$0x1] %vm36_vm2, %v17708_v4  ;;  %11353 = vmatmul.msk.f32.gmra.mxu1 %vm21_vm1, %v12728_v8  ;;  %v11493_v8 = vld [vmem:[%s17703_s1 + $0x4] sm:$0x7] }
  0x25   :  { %63 = vst.msk [vmem:[#allocation2 + $0x347] sm:$0x1] %vm36_vm2, %v17708_v4  ;;  %11494 = vmatpush.msk.msra.mxu1 %vm414_vm0, %v11493_v8 }
  0x26   :  { %64 = vst.msk [vmem:[#allocation2 + $0x367] sm:$0x1] %vm36_vm2, %v17708_v4 }
  0x27   :  { %65 = vst.msk [vmem:[#allocation2 + $0x387] sm:$0x1] %vm36_vm2, %v17708_v4 }
  0x28   :  { %66 = vst.msk [vmem:[#allocation2 + $0x3a7] sm:$0x1] %vm36_vm2, %v17708_v4 }
  0x29   :  { %67 = vst.msk [vmem:[#allocation2 + $0x3c7] sm:$0x1] %vm36_vm2, %v17708_v4 }
  0x2a   :  { %68 = vst.msk [vmem:[#allocation2 + $0x3e7] sm:$0x1] %vm36_vm2, %v17708_v4 }
  0x2b   :  { %69 = vst.msk [vmem:[#allocation2 + $0x407] sm:$0x1] %vm36_vm2, %v17708_v4 }
  0x2c   :  { %70 = vst.msk [vmem:[#allocation2 + $0x427] sm:$0x1] %vm36_vm2, %v17708_v4 }
  0x2d   :  { %71 = vst.msk [vmem:[#allocation2 + $0x447] sm:$0x1] %vm36_vm2, %v17708_v4 }
  0x2e   :  { %72 = vst.msk [vmem:[#allocation2 + $0x467] sm:$0x1] %vm36_vm2, %v17708_v4 }
  0x2f   :  { %74 = vst.msk [vmem:[#allocation2 + $0x38] sm:$0x1] %vm36_vm2, %v17708_v4 }
  0x30   :  { %75 = vst.msk [vmem:[#allocation2 + $0x58] sm:$0x1] %vm36_vm2, %v17708_v4 }
  0x31   :  { %76 = vst.msk [vmem:[#allocation2 + $0x78] sm:$0x1] %vm36_vm2, %v17708_v4 }
  0x32   :  { %77 = vst.msk [vmem:[#allocation2 + $0x98] sm:$0x1] %vm36_vm2, %v17708_v4 }
  0x33   :  { %78 = vst.msk [vmem:[#allocation2 + $0xb8] sm:$0x1] %vm36_vm2, %v17708_v4 }
  0x34   :  { %79 = vst.msk [vmem:[#allocation2 + $0xd8] sm:$0x1] %vm36_vm2, %v17708_v4 }
  0x35   :  { %80 = vst.msk [vmem:[#allocation2 + $0xf8] sm:$0x1] %vm36_vm2, %v17708_v4 }
  0x36   :  { %81 = vst.msk [vmem:[#allocation2 + $0x118] sm:$0x1] %vm36_vm2, %v17708_v4 }
  0x37   :  { %82 = vst.msk [vmem:[#allocation2 + $0x138] sm:$0x1] %vm36_vm2, %v17708_v4 }
  0x38   :  { %83 = vst.msk [vmem:[#allocation2 + $0x158] sm:$0x1] %vm36_vm2, %v17708_v4 }
  0x39   :  { %84 = vst.msk [vmem:[#allocation2 + $0x178] sm:$0x1] %vm36_vm2, %v17708_v4 }
  0x3a   :  { %85 = vst.msk [vmem:[#allocation2 + $0x198] sm:$0x1] %vm36_vm2, %v17708_v4 }
  0x3b   :  { %86 = vst.msk [vmem:[#allocation2 + $0x1b8] sm:$0x1] %vm36_vm2, %v17708_v4 }
  0x3c   :  { %87 = vst.msk [vmem:[#allocation2 + $0x1d8] sm:$0x1] %vm36_vm2, %v17708_v4 }
  0x3d   :  { %88 = vst.msk [vmem:[#allocation2 + $0x1f8] sm:$0x1] %vm36_vm2, %v17708_v4 }
  0x3e   :  { %89 = vst.msk [vmem:[#allocation2 + $0x218] sm:$0x1] %vm36_vm2, %v17708_v4 }
  0x3f   :  { %92 = vst.msk [vmem:[#allocation2 + $0x278] sm:$0x1] %vm36_vm2, %v17708_v4 }
  0x40   :  { %93 = vst.msk [vmem:[#allocation2 + $0x298] sm:$0x1] %vm36_vm2, %v17708_v4 }
  0x41   :  { %94 = vst.msk [vmem:[#allocation2 + $0x2b8] sm:$0x1] %vm36_vm2, %v17708_v4 }
  0x42   :  { %95 = vst.msk [vmem:[#allocation2 + $0x2d8] sm:$0x1] %vm36_vm2, %v17708_v4 }
  0x43   :  { %96 = vst.msk [vmem:[#allocation2 + $0x2f8] sm:$0x1] %vm36_vm2, %v17708_v4 }
  0x44   :  { %97 = vst.msk [vmem:[#allocation2 + $0x318] sm:$0x1] %vm36_vm2, %v17708_v4 }
  0x45   :  { %98 = vst.msk [vmem:[#allocation2 + $0x338] sm:$0x1] %vm36_vm2, %v17708_v4 }
  0x46   :  { %99 = vst.msk [vmem:[#allocation2 + $0x358] sm:$0x1] %vm36_vm2, %v17708_v4 }
  0x47   :  { %100 = vst.msk [vmem:[#allocation2 + $0x378] sm:$0x1] %vm36_vm2, %v17708_v4 }
  0x48   :  { %101 = vst.msk [vmem:[#allocation2 + $0x398] sm:$0x1] %vm36_vm2, %v17708_v4 }
  0x49   :  { %102 = vst.msk [vmem:[#allocation2 + $0x3b8] sm:$0x1] %vm36_vm2, %v17708_v4 }
  0x4a   :  { %103 = vst.msk [vmem:[#allocation2 + $0x3d8] sm:$0x1] %vm36_vm2, %v17708_v4 }
  0x4b   :  { %104 = vst.msk [vmem:[#allocation2 + $0x3f8] sm:$0x1] %vm36_vm2, %v17708_v4 }
  0x4c   :  { %105 = vst.msk [vmem:[#allocation2 + $0x418] sm:$0x1] %vm36_vm2, %v17708_v4 }
  0x4d   :  { %106 = vst.msk [vmem:[#allocation2 + $0x438] sm:$0x1] %vm36_vm2, %v17708_v4 }
  0x4e   :  { %107 = vst.msk [vmem:[#allocation2 + $0x458] sm:$0x1] %vm36_vm2, %v17708_v4 }
  0x4f   :  { %25 = vst.msk [vmem:[#allocation2 + $0x17] sm:$0x3] %vm24_vm3, %v17708_v4 }
  0x50   :  { %28 = vst.msk [vmem:[#allocation2 + $0x257] sm:$0x3] %vm24_vm3, %v17708_v4 }
  0x51   :  { %32 = vst.msk [vmem:[#allocation2 + $0x237] sm:$0x3] %vm24_vm3, %v17708_v4 }
  0x52   :  { %35 = vst.msk [vmem:[#allocation2 + $0x477] sm:$0x3] %vm24_vm3, %v17708_v4 }
  0x53   :  { %73 = vst.msk [vmem:[#allocation2 + $0x18] sm:$0x1] %vm36_vm2, %v17708_v4 }
  0x54   :  { %90 = vst.msk [vmem:[#allocation2 + $0x238] sm:$0x1] %vm36_vm2, %v17708_v4 }
  0x55   :  { %91 = vst.msk [vmem:[#allocation2 + $0x258] sm:$0x1] %vm36_vm2, %v17708_v4 }
  0x56   :  { %v349_v17 = vld [vmem:[#allocation2 + $0x10] sm:$0xff]  ;;  %108 = vst.msk [vmem:[#allocation2 + $0x478] sm:$0x1] %vm36_vm2, %v17708_v4 }
  0x57   :  { %11335 = vmatmul.msk.f32.gmra.mxu0 %vm21_vm1, %v349_v17  ;;  %263 = vst.msk [vmem:[#allocation2 + $0x30] sm:$0xff] %vm21_vm1, %v198_v15 }
  0x58   :  { %264 = vst.msk [vmem:[#allocation2 + $0x48] sm:$0xff] %vm21_vm1, %v199_v16 }
  0x59   :  { %265 = vst.msk [vmem:[#allocation2 + $0x50] sm:$0xff] %vm21_vm1, %v200_v18 }
  0x5a   :  { %v600_v21 = vld [vmem:[#allocation2 + $0x11] sm:$0xff]  ;;  %266 = vst.msk [vmem:[#allocation2 + $0x68] sm:$0xff] %vm21_vm1, %v201_v19 }
  0x5b   :  { %11370 = vmatmul.msk.f32.gmra.mxu2 %vm21_vm1, %v600_v21  ;;  %267 = vst.msk [vmem:[#allocation2 + $0x70] sm:$0xff] %vm21_vm1, %v202_v20 }
  0x5c   :  { %268 = vst.msk [vmem:[#allocation2 + $0x88] sm:$0xff] %vm21_vm1, %v203_v25 }
  0x5d   :  { %269 = vst.msk [vmem:[#allocation2 + $0x90] sm:$0xff] %vm21_vm1, %v204_v28 }
  0x5e   :  { %v750_v23 = vld [vmem:[#allocation2 + $0x2f] sm:$0xff]  ;;  %270 = vst.msk [vmem:[#allocation2 + $0xa8] sm:$0xff] %vm21_vm1, %v205_v32 }
  0x5f   :  { %11388 = vmatmul.msk.f32.gmra.mxu3 %vm21_vm1, %v750_v23  ;;  %11336 = vmatmul.msk.f32.gmra.mxu0 %vm21_vm1, %v12908_v22  ;;  %v12913_v24 = vld [vmem:[#allocation2 + $0x29] sm:$0xff]  ;;  %v12934_v29 = vld [vmem:[#allocation2 + $0x31] sm:$0xff]  ;;  %271 = vst.msk [vmem:[#allocation2 + $0xb0] sm:$0xff] %vm21_vm1, %v206_v36 }
  0x60   :  { %11354 = vmatmul.msk.f32.gmra.mxu1 %vm21_vm1, %v750_v23  ;;  %v12922_v26 = vld [vmem:[#allocation2 + $0x47] sm:$0xff]  ;;  %v12924_v27 = vld [vmem:[#allocation2 + $0x30] sm:$0xff]  ;;  %272 = vst.msk [vmem:[#allocation2 + $0xc8] sm:$0xff] %vm21_vm1, %v207_v40 }
  0x61   :  { %v12940_v30 = vld [vmem:[#allocation2 + $0x4f] sm:$0xff]  ;;  %v12958_v34 = vld [vmem:[#allocation2 + $0x67] sm:$0xff]  ;;  %273 = vst.msk [vmem:[#allocation2 + $0xd0] sm:$0xff] %vm21_vm1, %v208_v44 }
  0x62   :  { %v12942_v31 = vld [vmem:[#allocation2 + $0x48] sm:$0xff]  ;;  %v12960_v35 = vld [vmem:[#allocation2 + $0x50] sm:$0xff]  ;;  %274 = vst.msk [vmem:[#allocation2 + $0xe8] sm:$0xff] %vm21_vm1, %v209_v48 }
  0x63   :  { %11371 = vmatmul.msk.f32.gmra.mxu2 %vm21_vm1, %v12913_v24  ;;  %v12952_v33 = vld [vmem:[#allocation2 + $0x49] sm:$0xff]  ;;  %v12970_v37 = vld [vmem:[#allocation2 + $0x51] sm:$0xff]  ;;  %275 = vst.msk [vmem:[#allocation2 + $0xf0] sm:$0xff] %vm21_vm1, %v210_v52 }
  0x64   :  { %v12976_v38 = vld [vmem:[#allocation2 + $0x6f] sm:$0xff]  ;;  %v12994_v42 = vld [vmem:[#allocation2 + $0x87] sm:$0xff]  ;;  %276 = vst.msk [vmem:[#allocation2 + $0x108] sm:$0xff] %vm21_vm1, %v211_v56 }
  0x65   :  { %v12978_v39 = vld [vmem:[#allocation2 + $0x68] sm:$0xff]  ;;  %v12996_v43 = vld [vmem:[#allocation2 + $0x70] sm:$0xff]  ;;  %277 = vst.msk [vmem:[#allocation2 + $0x110] sm:$0xff] %vm21_vm1, %v212_v60 }
  0x66   :  { %v12988_v41 = vld [vmem:[#allocation2 + $0x69] sm:$0xff]  ;;  %v13006_v45 = vld [vmem:[#allocation2 + $0x71] sm:$0xff]  ;;  %110 = vst.msk [vmem:[#allocation3 + $0x7] sm:$0xff] %vm109_vm4, %v17708_v4 }
  0x67   :  { %11389 = vmatmul.msk.f32.gmra.mxu3 %vm21_vm1, %v12922_v26  ;;  %11337 = vmatmul.msk.f32.gmra.mxu0 %vm21_vm1, %v12924_v27  ;;  %v13012_v46 = vld [vmem:[#allocation2 + $0x8f] sm:$0xff]  ;;  %v13030_v50 = vld [vmem:[#allocation2 + $0xa7] sm:$0xff]  ;;  %111 = vst.msk [vmem:[#allocation3 + $0xf] sm:$0xff] %vm109_vm4, %v17708_v4 }
  0x68   :  { %11355 = vmatmul.msk.f32.gmra.mxu1 %vm21_vm1, %v12922_v26  ;;  %v13014_v47 = vld [vmem:[#allocation2 + $0x88] sm:$0xff]  ;;  %v13032_v51 = vld [vmem:[#allocation2 + $0x90] sm:$0xff]  ;;  %114 = vst.msk [vmem:[#allocation3 + $0x247] sm:$0xff] %vm109_vm4, %v17708_v4 }
  0x69   :  { %v13024_v49 = vld [vmem:[#allocation2 + $0x89] sm:$0xff]  ;;  %v13042_v53 = vld [vmem:[#allocation2 + $0x91] sm:$0xff]  ;;  %115 = vst.msk [vmem:[#allocation3 + $0x24f] sm:$0xff] %vm109_vm4, %v17708_v4 }
  0x6a   :  { %v13048_v54 = vld [vmem:[#allocation2 + $0xaf] sm:$0xff]  ;;  %v13066_v58 = vld [vmem:[#allocation2 + $0xc7] sm:$0xff]  ;;  %118 = vst.msk [vmem:[#allocation3 + $0x227] sm:$0xff] %vm109_vm4, %v17708_v4 }
  0x6b   :  { %11372 = vmatmul.msk.f32.gmra.mxu2 %vm21_vm1, %v12934_v29  ;;  %v13050_v55 = vld [vmem:[#allocation2 + $0xa8] sm:$0xff]  ;;  %v13068_v59 = vld [vmem:[#allocation2 + $0xb0] sm:$0xff]  ;;  %119 = vst.msk [vmem:[#allocation3 + $0x22f] sm:$0xff] %vm109_vm4, %v17708_v4 }
  0x6c   :  { %v13060_v57 = vld [vmem:[#allocation2 + $0xa9] sm:$0xff]  ;;  %v13078_v61 = vld [vmem:[#allocation2 + $0xb1] sm:$0xff]  ;;  %121 = vst.msk [vmem:[#allocation3 + $0x467] sm:$0xff] %vm109_vm4, %v17708_v4 }
  0x6d   :  { %v13084_v62 = vld [vmem:[#allocation2 + $0xcf] sm:$0xff]  ;;  %v13098_v1 = vld [vmem:[#allocation2 + $0xe7] sm:$0xff]  ;;  %122 = vst.msk [vmem:[#allocation3 + $0x46f] sm:$0xff] %vm109_vm4, %v17708_v4 }
  0x6e   :  { %v13086_v63 = vld [vmem:[#allocation2 + $0xc8] sm:$0xff]  ;;  %v13100_v2 = vld [vmem:[#allocation2 + $0xd0] sm:$0xff]  ;;  %126 = vst.msk [vmem:[#allocation3 + $0x27] sm:$0x1] %vm124_vm5, %v17708_v4 }
  0x6f   :  { %11390 = vmatmul.msk.f32.gmra.mxu3 %vm21_vm1, %v12940_v30  ;;  %11338 = vmatmul.msk.f32.gmra.mxu0 %vm21_vm1, %v12942_v31  ;;  %v13092_v0 = vld [vmem:[#allocation2 + $0xc9] sm:$0xff]  ;;  %v13115_v7 = vld [vmem:[#allocation2 + $0xd1] sm:$0xff]  ;;  %125 = vst.msk [vmem:[#allocation3 + $0x7] sm:$0x1] %vm124_vm5, %v17708_v4 }
  0x70   :  { %11356 = vmatmul.msk.f32.gmra.mxu1 %vm21_vm1, %v12940_v30  ;;  %v13128_v9 = vld [vmem:[#allocation2 + $0xef] sm:$0xff]  ;;  %v13144_v13 = vld [vmem:[#allocation2 + $0x107] sm:$0xff]  ;;  %127 = vst.msk [vmem:[#allocation3 + $0x47] sm:$0x1] %vm124_vm5, %v17708_v4 }
  0x71   :  { %v13130_v10 = vld [vmem:[#allocation2 + $0xe8] sm:$0xff]  ;;  %v13146_v14 = vld [vmem:[#allocation2 + $0xf0] sm:$0xff]  ;;  %128 = vst.msk [vmem:[#allocation3 + $0x67] sm:$0x1] %vm124_vm5, %v17708_v4 }
  0x72   :  { %v13138_v12 = vld [vmem:[#allocation2 + $0xe9] sm:$0xff]  ;;  %v13152_v15 = vld [vmem:[#allocation2 + $0xf1] sm:$0xff]  ;;  %129 = vst.msk [vmem:[#allocation3 + $0x87] sm:$0x1] %vm124_vm5, %v17708_v4 }
  0x73   :  { %11373 = vmatmul.msk.f32.gmra.mxu2 %vm21_vm1, %v12952_v33  ;;  %v13160_v18 = vld [vmem:[#allocation2 + $0x10f] sm:$0xff]  ;;  %130 = vst.msk [vmem:[#allocation3 + $0xa7] sm:$0x1] %vm124_vm5, %v17708_v4 }
  0x74   :  { %131 = vst.msk [vmem:[#allocation3 + $0xc7] sm:$0x1] %vm124_vm5, %v17708_v4 }
  0x75   :  { %132 = vst.msk [vmem:[#allocation3 + $0xe7] sm:$0x1] %vm124_vm5, %v17708_v4 }
  0x76   :  { %133 = vst.msk [vmem:[#allocation3 + $0x107] sm:$0x1] %vm124_vm5, %v17708_v4 }
  0x77   :  { %11391 = vmatmul.msk.f32.gmra.mxu3 %vm21_vm1, %v12958_v34  ;;  %11339 = vmatmul.msk.f32.gmra.mxu0 %vm21_vm1, %v12960_v35  ;;  %134 = vst.msk [vmem:[#allocation3 + $0x127] sm:$0x1] %vm124_vm5, %v17708_v4 }
  0x78   :  { %11357 = vmatmul.msk.f32.gmra.mxu1 %vm21_vm1, %v12958_v34  ;;  %135 = vst.msk [vmem:[#allocation3 + $0x147] sm:$0x1] %vm124_vm5, %v17708_v4 }
  0x79   :  { %136 = vst.msk [vmem:[#allocation3 + $0x167] sm:$0x1] %vm124_vm5, %v17708_v4 }
  0x7a   :  { %137 = vst.msk [vmem:[#allocation3 + $0x187] sm:$0x1] %vm124_vm5, %v17708_v4 }
  0x7b   :  { %11374 = vmatmul.msk.f32.gmra.mxu2 %vm21_vm1, %v12970_v37  ;;  %138 = vst.msk [vmem:[#allocation3 + $0x1a7] sm:$0x1] %vm124_vm5, %v17708_v4 }
  0x7c   :  { %139 = vst.msk [vmem:[#allocation3 + $0x1c7] sm:$0x1] %vm124_vm5, %v17708_v4 }
  0x7d   :  { %140 = vst.msk [vmem:[#allocation3 + $0x1e7] sm:$0x1] %vm124_vm5, %v17708_v4 }
  0x7e   :  { %141 = vst.msk [vmem:[#allocation3 + $0x207] sm:$0x1] %vm124_vm5, %v17708_v4 }
  0x7f   :  { %11392 = vmatmul.msk.f32.gmra.mxu3 %vm21_vm1, %v12976_v38  ;;  %11340 = vmatmul.msk.f32.gmra.mxu0 %vm21_vm1, %v12978_v39  ;;  %142 = vst.msk [vmem:[#allocation3 + $0x227] sm:$0x1] %vm124_vm5, %v17708_v4 }
  0x80   :  { %11358 = vmatmul.msk.f32.gmra.mxu1 %vm21_vm1, %v12976_v38  ;;  %143 = vst.msk [vmem:[#allocation3 + $0x247] sm:$0x1] %vm124_vm5, %v17708_v4 }
  0x81   :  { %144 = vst.msk [vmem:[#allocation3 + $0x267] sm:$0x1] %vm124_vm5, %v17708_v4 }
  0x82   :  { %145 = vst.msk [vmem:[#allocation3 + $0x287] sm:$0x1] %vm124_vm5, %v17708_v4 }
  0x83   :  { %11375 = vmatmul.msk.f32.gmra.mxu2 %vm21_vm1, %v12988_v41  ;;  %146 = vst.msk [vmem:[#allocation3 + $0x2a7] sm:$0x1] %vm124_vm5, %v17708_v4 }
  0x84   :  { %147 = vst.msk [vmem:[#allocation3 + $0x2c7] sm:$0x1] %vm124_vm5, %v17708_v4 }
  0x85   :  { %148 = vst.msk [vmem:[#allocation3 + $0x2e7] sm:$0x1] %vm124_vm5, %v17708_v4 }
  0x86   :  { %149 = vst.msk [vmem:[#allocation3 + $0x307] sm:$0x1] %vm124_vm5, %v17708_v4 }
  0x87   :  { %11393 = vmatmul.msk.f32.gmra.mxu3 %vm21_vm1, %v12994_v42  ;;  %11341 = vmatmul.msk.f32.gmra.mxu0 %vm21_vm1, %v12996_v43  ;;  %150 = vst.msk [vmem:[#allocation3 + $0x327] sm:$0x1] %vm124_vm5, %v17708_v4 }
  0x88   :  { %11359 = vmatmul.msk.f32.gmra.mxu1 %vm21_vm1, %v12994_v42  ;;  %v13156_v17 = vpop.f32.mrf.mxu0  ;;  %151 = vst.msk [vmem:[#allocation3 + $0x347] sm:$0x1] %vm124_vm5, %v17708_v4 }
  0x89   :  { %152 = vst.msk [vmem:[#allocation3 + $0x367] sm:$0x1] %vm124_vm5, %v17708_v4 }
  0x8a   :  { %153 = vst.msk [vmem:[#allocation3 + $0x387] sm:$0x1] %vm124_vm5, %v17708_v4 }
  0x8b   :  { %11376 = vmatmul.msk.f32.gmra.mxu2 %vm21_vm1, %v13006_v45  ;;  %154 = vst.msk [vmem:[#allocation3 + $0x3a7] sm:$0x1] %vm124_vm5, %v17708_v4 }
  0x8c   :  { %155 = vst.msk [vmem:[#allocation3 + $0x3c7] sm:$0x1] %vm124_vm5, %v17708_v4 }
  0x8d   :  { %156 = vst.msk [vmem:[#allocation3 + $0x3e7] sm:$0x1] %vm124_vm5, %v17708_v4 }
  0x8e   :  { %157 = vst.msk [vmem:[#allocation3 + $0x407] sm:$0x1] %vm124_vm5, %v17708_v4 }
  0x8f   :  { %11394 = vmatmul.msk.f32.gmra.mxu3 %vm21_vm1, %v13012_v46  ;;  %11342 = vmatmul.msk.f32.gmra.mxu0 %vm21_vm1, %v13014_v47  ;;  %v13170_v20 = vpop.f32.mrf.mxu2  ;;  %158 = vst.msk [vmem:[#allocation3 + $0x427] sm:$0x1] %vm124_vm5, %v17708_v4 }
  0x90   :  { %11360 = vmatmul.msk.f32.gmra.mxu1 %vm21_vm1, %v13012_v46  ;;  %159 = vst.msk [vmem:[#allocation3 + $0x447] sm:$0x1] %vm124_vm5, %v17708_v4 }
  0x91   :  { %v13136_v11 = vpop.f32.mrf.mxu1  ;;  %160 = vst.msk [vmem:[#allocation3 + $0x467] sm:$0x1] %vm124_vm5, %v17708_v4 }
  0x92   :  { %162 = vst.msk [vmem:[#allocation3 + $0x38] sm:$0x1] %vm124_vm5, %v17708_v4 }
  0x93   :  { %11377 = vmatmul.msk.f32.gmra.mxu2 %vm21_vm1, %v13024_v49  ;;  %163 = vst.msk [vmem:[#allocation3 + $0x58] sm:$0x1] %vm124_vm5, %v17708_v4 }
  0x94   :  { %164 = vst.msk [vmem:[#allocation3 + $0x78] sm:$0x1] %vm124_vm5, %v17708_v4 }
  0x95   :  { %165 = vst.msk [vmem:[#allocation3 + $0x98] sm:$0x1] %vm124_vm5, %v17708_v4 }
  0x96   :  { %v13176_v23 = vpop.f32.mrf.mxu3  ;;  %166 = vst.msk [vmem:[#allocation3 + $0xb8] sm:$0x1] %vm124_vm5, %v17708_v4 }
  0x97   :  { %11395 = vmatmul.msk.f32.gmra.mxu3 %vm21_vm1, %v13030_v50  ;;  %11343 = vmatmul.msk.f32.gmra.mxu0 %vm21_vm1, %v13032_v51  ;;  %167 = vst.msk [vmem:[#allocation3 + $0xd8] sm:$0x1] %vm124_vm5, %v17708_v4 }
  0x98   :  { %11361 = vmatmul.msk.f32.gmra.mxu1 %vm21_vm1, %v13030_v50  ;;  %168 = vst.msk [vmem:[#allocation3 + $0xf8] sm:$0x1] %vm124_vm5, %v17708_v4 }
  0x99   :  { %v554_v16 = vpop.f32.mrf.mxu1  ;;  %169 = vst.msk [vmem:[#allocation3 + $0x118] sm:$0x1] %vm124_vm5, %v17708_v4 }
  0x9a   :  { %170 = vst.msk [vmem:[#allocation3 + $0x138] sm:$0x1] %vm124_vm5, %v17708_v4 }
  0x9b   :  { %11378 = vmatmul.msk.f32.gmra.mxu2 %vm21_vm1, %v13042_v53  ;;  %171 = vst.msk [vmem:[#allocation3 + $0x158] sm:$0x1] %vm124_vm5, %v17708_v4 }
  0x9c   :  { %172 = vst.msk [vmem:[#allocation3 + $0x178] sm:$0x1] %vm124_vm5, %v17708_v4 }
  0x9d   :  { %173 = vst.msk [vmem:[#allocation3 + $0x198] sm:$0x1] %vm124_vm5, %v17708_v4 }
  0x9e   :  { %174 = vst.msk [vmem:[#allocation3 + $0x1b8] sm:$0x1] %vm124_vm5, %v17708_v4 }
  0x9f   :  { %11396 = vmatmul.msk.f32.gmra.mxu3 %vm21_vm1, %v13048_v54  ;;  %11344 = vmatmul.msk.f32.gmra.mxu0 %vm21_vm1, %v13050_v55  ;;  %175 = vst.msk [vmem:[#allocation3 + $0x1d8] sm:$0x1] %vm124_vm5, %v17708_v4 }
  0xa0   :  { %11362 = vmatmul.msk.f32.gmra.mxu1 %vm21_vm1, %v13048_v54  ;;  %176 = vst.msk [vmem:[#allocation3 + $0x1f8] sm:$0x1] %vm124_vm5, %v17708_v4 }
  0xa1   :  { %v557_v19 = vpop.f32.mrf.mxu1  ;;  %177 = vst.msk [vmem:[#allocation3 + $0x218] sm:$0x1] %vm124_vm5, %v17708_v4 }
  0xa2   :  { %180 = vst.msk [vmem:[#allocation3 + $0x278] sm:$0x1] %vm124_vm5, %v17708_v4 }
  0xa3   :  { %11379 = vmatmul.msk.f32.gmra.mxu2 %vm21_vm1, %v13060_v57  ;;  %181 = vst.msk [vmem:[#allocation3 + $0x298] sm:$0x1] %vm124_vm5, %v17708_v4 }
  0xa4   :  { %182 = vst.msk [vmem:[#allocation3 + $0x2b8] sm:$0x1] %vm124_vm5, %v17708_v4 }
  0xa5   :  { %183 = vst.msk [vmem:[#allocation3 + $0x2d8] sm:$0x1] %vm124_vm5, %v17708_v4 }
  0xa6   :  { %184 = vst.msk [vmem:[#allocation3 + $0x2f8] sm:$0x1] %vm124_vm5, %v17708_v4 }
  0xa7   :  { %11397 = vmatmul.msk.f32.gmra.mxu3 %vm21_vm1, %v13066_v58  ;;  %11345 = vmatmul.msk.f32.gmra.mxu0 %vm21_vm1, %v13068_v59  ;;  %185 = vst.msk [vmem:[#allocation3 + $0x318] sm:$0x1] %vm124_vm5, %v17708_v4 }
  0xa8   :  { %11363 = vmatmul.msk.f32.gmra.mxu1 %vm21_vm1, %v13066_v58  ;;  %186 = vst.msk [vmem:[#allocation3 + $0x338] sm:$0x1] %vm124_vm5, %v17708_v4 }
  0xa9   :  { %187 = vst.msk [vmem:[#allocation3 + $0x358] sm:$0x1] %vm124_vm5, %v17708_v4 }
  0xaa   :  { %188 = vst.msk [vmem:[#allocation3 + $0x378] sm:$0x1] %vm124_vm5, %v17708_v4 }
  0xab   :  { %11380 = vmatmul.msk.f32.gmra.mxu2 %vm21_vm1, %v13078_v61  ;;  %189 = vst.msk [vmem:[#allocation3 + $0x398] sm:$0x1] %vm124_vm5, %v17708_v4 }
  0xac   :  { %190 = vst.msk [vmem:[#allocation3 + $0x3b8] sm:$0x1] %vm124_vm5, %v17708_v4 }
  0xad   :  { %191 = vst.msk [vmem:[#allocation3 + $0x3d8] sm:$0x1] %vm124_vm5, %v17708_v4 }
  0xae   :  { %192 = vst.msk [vmem:[#allocation3 + $0x3f8] sm:$0x1] %vm124_vm5, %v17708_v4 }
  0xaf   :  { %11398 = vmatmul.msk.f32.gmra.mxu3 %vm21_vm1, %v13084_v62  ;;  %11346 = vmatmul.msk.f32.gmra.mxu0 %vm21_vm1, %v13086_v63  ;;  %193 = vst.msk [vmem:[#allocation3 + $0x418] sm:$0x1] %vm124_vm5, %v17708_v4 }
  0xb0   :  { %11364 = vmatmul.msk.f32.gmra.mxu1 %vm21_vm1, %v13084_v62  ;;  %194 = vst.msk [vmem:[#allocation3 + $0x438] sm:$0x1] %vm124_vm5, %v17708_v4 }
  0xb1   :  { %195 = vst.msk [vmem:[#allocation3 + $0x458] sm:$0x1] %vm124_vm5, %v17708_v4 }
  0xb3   :  { %11381 = vmatmul.msk.f32.gmra.mxu2 %vm21_vm1, %v13092_v0 }
  0xb7   :  { %11399 = vmatmul.msk.f32.gmra.mxu3 %vm21_vm1, %v13098_v1  ;;  %11347 = vmatmul.msk.f32.gmra.mxu0 %vm21_vm1, %v13100_v2 }
  0xb8   :  { %11365 = vmatmul.msk.f32.gmra.mxu1 %vm21_vm1, %v13098_v1 }
  0xbb   :  { %11382 = vmatmul.msk.f32.gmra.mxu2 %vm21_vm1, %v13115_v7 }
  0xbf   :  { %11400 = vmatmul.msk.f32.gmra.mxu3 %vm21_vm1, %v13128_v9  ;;  %11348 = vmatmul.msk.f32.gmra.mxu0 %vm21_vm1, %v13130_v10 }
  0xc0   :  { %11366 = vmatmul.msk.f32.gmra.mxu1 %vm21_vm1, %v13128_v9 }
  0xc3   :  { %11383 = vmatmul.msk.f32.gmra.mxu2 %vm21_vm1, %v13138_v12 }
  0xc7   :  { %11401 = vmatmul.msk.f32.gmra.mxu3 %vm21_vm1, %v13144_v13  ;;  %11349 = vmatmul.msk.f32.gmra.mxu0 %vm21_vm1, %v13146_v14 }
  0xc8   :  { %11423 = vmatmul.msk.f32.vlgmr.msrb.gmra.mxu1 %vm21_vm1, %v12913_v24 }
  0xcb   :  { %11384 = vmatmul.msk.f32.gmra.mxu2 %vm21_vm1, %v13152_v15 }
  0xcf   :  { %11402 = vmatmul.msk.f32.gmra.mxu3 %vm21_vm1, %v13160_v18  ;;  %11405 = vmatmul.msk.f32.vlgmr.msrb.gmra.mxu0 %vm21_vm1, %v12908_v22 }
  0xd0   :  { %11424 = vmatmul.msk.f32.gmra.mxu1 %vm21_vm1, %v12934_v29 }
  0xd3   :  { %11441 = vmatmul.msk.f32.vlgmr.msrb.gmra.mxu2 %vm21_vm1, %v12922_v26 }
  0xd4   :  { %v438_v21 = vpop.f32.mrf.mxu0 }
  0xd5   :  { %v555_v24 = vadd.f32 %v554_v16, %v438_v21 }
  0xd7   :  { %11459 = vmatmul.msk.f32.vlgmr.msrb.gmra.mxu3 %vm21_vm1, %v12942_v31  ;;  %11406 = vmatmul.msk.f32.gmra.mxu0 %vm21_vm1, %v12924_v27 }
  0xd8   :  { %11425 = vmatmul.msk.f32.gmra.mxu1 %vm21_vm1, %v12952_v33 }
  0xdb   :  { %11442 = vmatmul.msk.f32.gmra.mxu2 %vm21_vm1, %v12940_v30 }
  0xdc   :  { %v441_v22 = vpop.f32.mrf.mxu0 }
  0xdd   :  { %v560_v25 = vpop.f32.mrf.mxu1  ;;  %v558_v32 = vadd.f32 %v557_v19, %v441_v22 }
  0xde   :  { %v688_v26 = vpop.f32.mrf.mxu2 }
  0xdf   :  { %11460 = vmatmul.msk.f32.gmra.mxu3 %vm21_vm1, %v12960_v35  ;;  %v734_v28 = vadd.f32 %v688_v26, %v555_v24  ;;  %11407 = vmatmul.msk.f32.gmra.mxu0 %vm21_vm1, %v12942_v31 }
  0xe0   :  { %11426 = vmatmul.msk.f32.gmra.mxu1 %vm21_vm1, %v12970_v37 }
  0xe2   :  { %v838_v27 = vpop.f32.mrf.mxu3 }
  0xe3   :  { %v13188_v29 = vadd.f32 %v838_v27, %v734_v28  ;;  %11443 = vmatmul.msk.f32.gmra.mxu2 %vm21_vm1, %v12958_v34 }
  0xe4   :  { %v444_v30 = vpop.f32.mrf.mxu0 }
  0xe5   :  { %v563_v36 = vpop.f32.mrf.mxu1  ;;  %v561_v52 = vadd.f32 %v560_v25, %v444_v30 }
  0xe6   :  { %v691_v40 = vpop.f32.mrf.mxu2 }
  0xe7   :  { %11461 = vmatmul.msk.f32.gmra.mxu3 %vm21_vm1, %v12978_v39  ;;  %v735_v44 = vadd.f32 %v691_v40, %v558_v32  ;;  %11408 = vmatmul.msk.f32.gmra.mxu0 %vm21_vm1, %v12960_v35 }
  0xe8   :  { %11427 = vmatmul.msk.f32.gmra.mxu1 %vm21_vm1, %v12988_v41 }
  0xea   :  { %v841_v31 = vpop.f32.mrf.mxu3 }
  0xeb   :  { %v13198_v48 = vadd.f32 %v841_v31, %v735_v44  ;;  %11444 = vmatmul.msk.f32.gmra.mxu2 %vm21_vm1, %v12976_v38 }
  0xec   :  { %v447_v34 = vpop.f32.mrf.mxu0 }
  0xed   :  { %v566_v56 = vpop.f32.mrf.mxu1  ;;  %v564_v6 = vadd.f32 %v563_v36, %v447_v34 }
  0xee   :  { %v694_v60 = vpop.f32.mrf.mxu2 }
  0xef   :  { %11462 = vmatmul.msk.f32.gmra.mxu3 %vm21_vm1, %v12996_v43  ;;  %v736_v3 = vadd.f32 %v694_v60, %v561_v52  ;;  %11409 = vmatmul.msk.f32.gmra.mxu0 %vm21_vm1, %v12978_v39 }
  0xf0   :  { %11428 = vmatmul.msk.f32.gmra.mxu1 %vm21_vm1, %v13006_v45 }
  0xf2   :  { %v844_v35 = vpop.f32.mrf.mxu3 }
  0xf3   :  { %v13208_v5 = vadd.f32 %v844_v35, %v736_v3  ;;  %11445 = vmatmul.msk.f32.gmra.mxu2 %vm21_vm1, %v12994_v42 }
  0xf4   :  { %v450_v38 = vpop.f32.mrf.mxu0 }
  0xf5   :  { %v569_v8 = vpop.f32.mrf.mxu1  ;;  %v567_v22 = vadd.f32 %v566_v56, %v450_v38 }
  0xf6   :  { %v697_v16 = vpop.f32.mrf.mxu2 }
  0xf7   :  { %11463 = vmatmul.msk.f32.gmra.mxu3 %vm21_vm1, %v13014_v47  ;;  %v737_v19 = vadd.f32 %v697_v16, %v564_v6  ;;  %11410 = vmatmul.msk.f32.gmra.mxu0 %vm21_vm1, %v12996_v43 }
  0xf8   :  { %11429 = vmatmul.msk.f32.gmra.mxu1 %vm21_vm1, %v13024_v49 }
  0xfa   :  { %v847_v39 = vpop.f32.mrf.mxu3 }
  0xfb   :  { %v13218_v21 = vadd.f32 %v847_v39, %v737_v19  ;;  %11446 = vmatmul.msk.f32.gmra.mxu2 %vm21_vm1, %v13012_v46  ;;  %v213_v39 = vld [vmem:[%s17702_s0 + $0x80] sm:$0xff] }
  0xfc   :  { %v453_v42 = vpop.f32.mrf.mxu0  ;;  %278 = vst.msk [vmem:[#allocation2 + $0x128] sm:$0xff] %vm21_vm1, %v213_v39 }
  0xfd   :  { %v572_v24 = vpop.f32.mrf.mxu1  ;;  %v570_v27 = vadd.f32 %v569_v8, %v453_v42 }
  0xfe   :  { %v700_v25 = vpop.f32.mrf.mxu2 }
  0xff   :  { %11464 = vmatmul.msk.f32.gmra.mxu3 %vm21_vm1, %v13032_v51  ;;  %v738_v26 = vadd.f32 %v700_v25, %v567_v22  ;;  %11411 = vmatmul.msk.f32.gmra.mxu0 %vm21_vm1, %v13014_v47 }
 0x100   :  { %11430 = vmatmul.msk.f32.gmra.mxu1 %vm21_vm1, %v13042_v53 }
 0x102   :  { %v850_v43 = vpop.f32.mrf.mxu3 }
 0x103   :  { %v13228_v28 = vadd.f32 %v850_v43, %v738_v26  ;;  %11447 = vmatmul.msk.f32.gmra.mxu2 %vm21_vm1, %v13030_v50  ;;  %v214_v43 = vld [vmem:[%s17702_s0 + $0x88] sm:$0xff] }
 0x104   :  { %v456_v46 = vpop.f32.mrf.mxu0  ;;  %279 = vst.msk [vmem:[#allocation2 + $0x130] sm:$0xff] %vm21_vm1, %v214_v43 }
 0x105   :  { %v575_v30 = vpop.f32.mrf.mxu1  ;;  %v573_v44 = vadd.f32 %v572_v24, %v456_v46 }
 0x106   :  { %v703_v32 = vpop.f32.mrf.mxu2 }
 0x107   :  { %11465 = vmatmul.msk.f32.gmra.mxu3 %vm21_vm1, %v13050_v55  ;;  %v739_v36 = vadd.f32 %v703_v32, %v570_v27  ;;  %11412 = vmatmul.msk.f32.gmra.mxu0 %vm21_vm1, %v13032_v51 }
 0x108   :  { %11431 = vmatmul.msk.f32.gmra.mxu1 %vm21_vm1, %v13060_v57 }
 0x10a   :  { %v853_v47 = vpop.f32.mrf.mxu3 }
 0x10b   :  { %v13238_v40 = vadd.f32 %v853_v47, %v739_v36  ;;  %11448 = vmatmul.msk.f32.gmra.mxu2 %vm21_vm1, %v13048_v54 }
 0x10c   :  { %v459_v50 = vpop.f32.mrf.mxu0 }
 0x10d   :  { %v578_v31 = vpop.f32.mrf.mxu1  ;;  %v576_v60 = vadd.f32 %v575_v30, %v459_v50 }
 0x10e   :  { %v706_v34 = vpop.f32.mrf.mxu2 }
 0x10f   :  { %11466 = vmatmul.msk.f32.gmra.mxu3 %vm21_vm1, %v13068_v59  ;;  %v740_v52 = vadd.f32 %v706_v34, %v573_v44  ;;  %11413 = vmatmul.msk.f32.gmra.mxu0 %vm21_vm1, %v13050_v55 }
 0x110   :  { %11432 = vmatmul.msk.f32.gmra.mxu1 %vm21_vm1, %v13078_v61 }
 0x112   :  { %v856_v51 = vpop.f32.mrf.mxu3 }
 0x113   :  { %v13248_v56 = vadd.f32 %v856_v51, %v740_v52  ;;  %11449 = vmatmul.msk.f32.gmra.mxu2 %vm21_vm1, %v13066_v58  ;;  %v13300_v52 = vld [vmem:[#allocation2 + $0x109] sm:$0xff] }
 0x114   :  { %v462_v54 = vpop.f32.mrf.mxu0 }
 0x115   :  { %v581_v3 = vpop.f32.mrf.mxu1  ;;  %v579_v8 = vadd.f32 %v578_v31, %v462_v54 }
 0x116   :  { %v709_v35 = vpop.f32.mrf.mxu2 }
 0x117   :  { %11467 = vmatmul.msk.f32.gmra.mxu3 %vm21_vm1, %v13086_v63  ;;  %v741_v38 = vadd.f32 %v709_v35, %v576_v60  ;;  %11414 = vmatmul.msk.f32.gmra.mxu0 %vm21_vm1, %v13068_v59  ;;  %v11546_v60 = vld [vmem:[%s17703_s1 + $0xc] sm:$0x7] }
 0x118   :  { %11433 = vmatmul.msk.f32.gmra.mxu1 %vm21_vm1, %v13092_v0  ;;  %11547 = vmatpush.msk.msrb.mxu0 %vm414_vm0, %v11546_v60 }
 0x11a   :  { %v859_v55 = vpop.f32.mrf.mxu3 }
 0x11b   :  { %v13258_v6 = vadd.f32 %v859_v55, %v741_v38  ;;  %11450 = vmatmul.msk.f32.gmra.mxu2 %vm21_vm1, %v13084_v62  ;;  %v11564_v38 = vld [vmem:[%s17703_s1 + $0x10] sm:$0x7] }
 0x11c   :  { %v465_v58 = vpop.f32.mrf.mxu0  ;;  %v1363_v55 = vld [vmem:[#allocation2 + $0x110] sm:$0xff]  ;;  %11565 = vmatpush.msk.msrb.mxu1 %vm414_vm0, %v11564_v38 }
 0x11d   :  { %v584_v16 = vpop.f32.mrf.mxu1  ;;  %v582_v24 = vadd.f32 %v581_v3, %v465_v58  ;;  %v11600_v3 = vld [vmem:[%s17703_s1 + $0x18] sm:$0x7] }
 0x11e   :  { %v712_v19 = vpop.f32.mrf.mxu2  ;;  %11601 = vmatpush.msk.msrb.mxu3 %vm414_vm0, %v11600_v3 }
 0x11f   :  { %11468 = vmatmul.msk.f32.gmra.mxu3 %vm21_vm1, %v13100_v2  ;;  %v742_v59 = vadd.f32 %v712_v19, %v579_v8  ;;  %11415 = vmatmul.msk.f32.gmra.mxu0 %vm21_vm1, %v13086_v63  ;;  %v13327_v19 = vld [vmem:[#allocation2 + $0x111] sm:$0xff] }
 0x120   :  { %11434 = vmatmul.msk.f32.gmra.mxu1 %vm21_vm1, %v13115_v7 }
 0x122   :  { %v862_v62 = vpop.f32.mrf.mxu3 }
 0x123   :  { %v13272_v42 = vadd.f32 %v862_v62, %v742_v59  ;;  %11451 = vmatmul.msk.f32.gmra.mxu2 %vm21_vm1, %v13098_v1  ;;  %v13331_v62 = vld [vmem:[#allocation2 + $0x127] sm:$0xff] }
 0x124   :  { %v468_v22 = vpop.f32.mrf.mxu0 }
 0x125   :  { %v587_v25 = vpop.f32.mrf.mxu1  ;;  %v585_v30 = vadd.f32 %v584_v16, %v468_v22 }
 0x126   :  { %v715_v26 = vpop.f32.mrf.mxu2 }
 0x127   :  { %11469 = vmatmul.msk.f32.gmra.mxu3 %vm21_vm1, %v13130_v10  ;;  %v743_v63 = vadd.f32 %v715_v26, %v582_v24  ;;  %11416 = vmatmul.msk.f32.gmra.mxu0 %vm21_vm1, %v13100_v2 }
 0x128   :  { %11435 = vmatmul.msk.f32.gmra.mxu1 %vm21_vm1, %v13138_v12 }
 0x12a   :  { %v865_v1 = vpop.f32.mrf.mxu3 }
 0x12b   :  { %v13286_v46 = vadd.f32 %v865_v1, %v743_v63  ;;  %11452 = vmatmul.msk.f32.gmra.mxu2 %vm21_vm1, %v13128_v9  ;;  %v1362_v9 = vld [vmem:[#allocation2 + $0x108] sm:$0xff] }
 0x12c   :  { %v471_v27 = vpop.f32.mrf.mxu0 }
 0x12d   :  { %v590_v32 = vpop.f32.mrf.mxu1  ;;  %v588_v31 = vadd.f32 %v587_v25, %v471_v27  ;;  %v13339_v25 = vld [vmem:[#allocation2 + $0x128] sm:$0xff] }
 0x12e   :  { %v718_v36 = vpop.f32.mrf.mxu2 }
 0x12f   :  { %11470 = vmatmul.msk.f32.gmra.mxu3 %vm21_vm1, %v13146_v14  ;;  %v744_v47 = vadd.f32 %v718_v36, %v585_v30  ;;  %11417 = vmatmul.msk.f32.gmra.mxu0 %vm21_vm1, %v13130_v10  ;;  %v11582_v10 = vld [vmem:[%s17703_s1 + $0x14] sm:$0x7] }
 0x130   :  { %11436 = vmatmul.msk.f32.gmra.mxu1 %vm21_vm1, %v13152_v15  ;;  %11583 = vmatpush.msk.msrb.mxu2 %vm414_vm0, %v11582_v10  ;;  %v13344_v30 = vld [vmem:[#allocation2 + $0x12f] sm:$0xff] }
 0x132   :  { %v868_v2 = vpop.f32.mrf.mxu3 }
 0x133   :  { %v13296_v50 = vadd.f32 %v868_v2, %v744_v47  ;;  %11453 = vmatmul.msk.f32.gmra.mxu2 %vm21_vm1, %v13144_v13 }
 0x134   :  { %v474_v44 = vpop.f32.mrf.mxu0 }
 0x135   :  { %v593_v34 = vpop.f32.mrf.mxu1  ;;  %v591_v8 = vadd.f32 %v590_v32, %v474_v44  ;;  %v552_v32 = vadd.f32 %v13136_v11, %v13156_v17  ;;  %v13354_v44 = vld [vmem:[#allocation2 + $0x130] sm:$0xff]  ;;  %v216_v11 = vld [vmem:[%s17702_s0 + $0x98] sm:$0xff] }
 0x136   :  { %v721_v51 = vpop.f32.mrf.mxu2  ;;  %281 = vst.msk [vmem:[#allocation2 + $0x150] sm:$0xff] %vm21_vm1, %v216_v11 }
 0x137   :  { %11471 = vmatmul.msk.f32.gmra.mxu3 %vm21_vm1, %v1362_v9  ;;  %v745_v54 = vadd.f32 %v721_v51, %v588_v31  ;;  %11418 = vmatmul.msk.f32.gmra.mxu0 %vm21_vm1, %v13146_v14  ;;  %v733_v47 = vadd.f32 %v13170_v20, %v552_v32 }
 0x138   :  { %11437 = vmatmul.msk.f32.gmra.mxu1 %vm21_vm1, %v13300_v52 }
 0x139   :  { %v883_v17 = vadd.f32 %v13176_v23, %v733_v47 }
 0x13a   :  { %v871_v14 = vpop.f32.mrf.mxu3 }
 0x13b   :  { %v13319_v35 = vadd.f32 %v871_v14, %v745_v54  ;;  %11454 = vmatmul.msk.f32.gmra.mxu2 %vm21_vm1, %v13160_v18 }
 0x13c   :  { %v477_v58 = vpop.f32.mrf.mxu0 }
 0x13d   :  { %v596_v16 = vpop.f32.mrf.mxu1  ;;  %v594_v43 = vadd.f32 %v593_v34, %v477_v58 }
 0x13e   :  { %v724_v39 = vpop.f32.mrf.mxu2 }
 0x13f   :  { %11472 = vmatmul.msk.f32.gmra.mxu3 %vm21_vm1, %v1363_v55  ;;  %v746_v59 = vadd.f32 %v724_v39, %v591_v8  ;;  %11419 = vmatmul.msk.f32.gmra.mxu0 %vm21_vm1, %v1362_v9 }
 0x140   :  { %11438 = vmatmul.msk.f32.gmra.mxu1 %vm21_vm1, %v13327_v19 }
 0x142   :  { %v874_v22 = vpop.f32.mrf.mxu3 }
 0x143   :  { %v13335_v24 = vadd.f32 %v874_v22, %v746_v59  ;;  %11455 = vmatmul.msk.f32.gmra.mxu2 %vm21_vm1, %v13331_v62 }
 0x144   :  { %v480_v26 = vpop.f32.mrf.mxu0 }
 0x145   :  { %v1135_v63 = vpop.f32.mrf.mxu1  ;;  %v597_v34 = vadd.f32 %v596_v16, %v480_v26  ;;  %v217_v26 = vld [vmem:[%s17702_s0 + $0xa0] sm:$0xff] }
 0x146   :  { %v727_v1 = vpop.f32.mrf.mxu2  ;;  %282 = vst.msk [vmem:[#allocation2 + $0x168] sm:$0xff] %vm21_vm1, %v217_v26 }
 0x147   :  { %11473 = vmatmul.msk.f32.gmra.mxu3 %vm21_vm1, %v13339_v25  ;;  %v747_v27 = vadd.f32 %v727_v1, %v594_v43  ;;  %11420 = vmatmul.msk.f32.gmra.mxu0 %vm21_vm1, %v1363_v55  ;;  %v13404_v1 = vld [vmem:[#allocation2 + $0x129] sm:$0xff] }
 0x148   :  { %11495 = vmatmul.msk.f32.vlgmr.msra.gmra.mxu1 %vm21_vm1, %v1362_v9  ;;  %v215_v9 = vld [vmem:[%s17702_s0 + $0x90] sm:$0xff] }
 0x149   :  { %280 = vst.msk [vmem:[#allocation2 + $0x148] sm:$0xff] %vm21_vm1, %v215_v9 }
 0x14a   :  { %v877_v36 = vpop.f32.mrf.mxu3 }
 0x14b   :  { %v13350_v2 = vadd.f32 %v877_v36, %v747_v27  ;;  %11456 = vmatmul.msk.f32.gmra.mxu2 %vm21_vm1, %v13344_v30 }
 0x14c   :  { %v985_v31 = vpop.f32.mrf.mxu0 }
 0x14d   :  { %v1138_v51 = vpop.f32.mrf.mxu1  ;;  %v1033_v10 = vadd.f32 %v985_v31, %v883_v17 }
 0x14e   :  { %v730_v54 = vpop.f32.mrf.mxu2 }
 0x14f   :  { %11474 = vmatmul.msk.f32.gmra.mxu3 %vm21_vm1, %v13354_v44  ;;  %v748_v20 = vadd.f32 %v730_v54, %v597_v34  ;;  %11477 = vmatmul.msk.f32.vlgmr.msra.gmra.mxu0 %vm21_vm1, %v12952_v33  ;;  %v1183_v14 = vadd.f32 %v1135_v63, %v1033_v10 }
 0x150   :  { %11496 = vmatmul.msk.f32.gmra.mxu1 %vm21_vm1, %v1363_v55 }
 0x152   :  { %v880_v60 = vpop.f32.mrf.mxu3 }
 0x153   :  { %v13370_v3 = vadd.f32 %v880_v60, %v748_v20  ;;  %11512 = vmatmul.msk.f32.vlgmr.msra.gmra.mxu2 %vm21_vm1, %v13144_v13  ;;  %v13422_v20 = vld [vmem:[#allocation2 + $0x150] sm:$0xff]  ;;  %v220_v60 = vld [vmem:[%s17702_s0 + $0xb8] sm:$0xff] }
 0x154   :  { %v988_v23 = vpop.f32.mrf.mxu0  ;;  %285 = vst.msk [vmem:[#allocation2 + $0x190] sm:$0xff] %vm21_vm1, %v220_v60 }
 0x155   :  { %v1034_v38 = vadd.f32 %v988_v23, %v13188_v29  ;;  %v1141_v58 = vpop.f32.mrf.mxu1 }
 0x156   :  { %v1286_v8 = vpop.f32.mrf.mxu2 }
 0x157   :  { %11530 = vmatmul.msk.f32.vlgmr.msra.gmra.mxu3 %vm21_vm1, %v13300_v52  ;;  %v1334_v33 = vadd.f32 %v1286_v8, %v1183_v14  ;;  %v1184_v55 = vadd.f32 %v1138_v51, %v1034_v38  ;;  %11478 = vmatmul.msk.f32.gmra.mxu0 %vm21_vm1, %v12970_v37  ;;  %v218_v37 = vld [vmem:[%s17702_s0 + $0xa8] sm:$0xff] }
 0x158   :  { %11497 = vmatmul.msk.f32.gmra.mxu1 %vm21_vm1, %v13339_v25  ;;  %283 = vst.msk [vmem:[#allocation2 + $0x170] sm:$0xff] %vm21_vm1, %v218_v37  ;;  %v13444_v8 = vld [vmem:[#allocation2 + $0x149] sm:$0xff] }
 0x15a   :  { %v1436_v16 = vpop.f32.mrf.mxu3 }
 0x15b   :  { %v13381_v39 = vadd.f32 %v1436_v16, %v1334_v33  ;;  %11513 = vmatmul.msk.f32.gmra.mxu2 %vm21_vm1, %v13160_v18  ;;  %v13447_v16 = vld [vmem:[#allocation2 + $0x168] sm:$0xff] }
 0x15c   :  { %v991_v13 = vpop.f32.mrf.mxu0 }
 0x15d   :  { %v1035_v29 = vadd.f32 %v991_v13, %v13198_v48  ;;  %v1144_v59 = vpop.f32.mrf.mxu1 }
 0x15e   :  { %v1289_v22 = vpop.f32.mrf.mxu2 }
 0x15f   :  { %11531 = vmatmul.msk.f32.gmra.mxu3 %vm21_vm1, %v13327_v19  ;;  %v1335_v43 = vadd.f32 %v1289_v22, %v1184_v55  ;;  %v1185_v63 = vadd.f32 %v1141_v58, %v1035_v29  ;;  %11479 = vmatmul.msk.f32.gmra.mxu0 %vm21_vm1, %v12988_v41  ;;  %v13407_v41 = vld [vmem:[#allocation2 + $0x148] sm:$0xff] }
 0x160   :  { %11498 = vmatmul.msk.f32.gmra.mxu1 %vm21_vm1, %v13354_v44  ;;  %v13453_v22 = vld [vmem:[#allocation2 + $0x14f] sm:$0xff] }
 0x162   :  { %v1439_v18 = vpop.f32.mrf.mxu3 }
 0x163   :  { %v13400_v48 = vadd.f32 %v1439_v18, %v1335_v43  ;;  %11514 = vmatmul.msk.f32.gmra.mxu2 %vm21_vm1, %v13331_v62 }
 0x164   :  { %v994_v27 = vpop.f32.mrf.mxu0 }
 0x165   :  { %v1036_v32 = vadd.f32 %v994_v27, %v13208_v5  ;;  %v1147_v36 = vpop.f32.mrf.mxu1  ;;  %v13419_v5 = vld [vmem:[#allocation2 + $0x131] sm:$0xff] }
 0x166   :  { %v1292_v47 = vpop.f32.mrf.mxu2  ;;  %v13464_v27 = vld [vmem:[#allocation2 + $0x170] sm:$0xff] }
 0x167   :  { %11532 = vmatmul.msk.f32.gmra.mxu3 %vm21_vm1, %v13404_v1  ;;  %v1336_v31 = vadd.f32 %v1292_v47, %v1185_v63  ;;  %v1186_v34 = vadd.f32 %v1144_v59, %v1036_v32  ;;  %11480 = vmatmul.msk.f32.gmra.mxu0 %vm21_vm1, %v13006_v45  ;;  %v219_v45 = vld [vmem:[%s17702_s0 + $0xb0] sm:$0xff]  ;;  %v221_v32 = vld [vmem:[%s17702_s0 + $0xc0] sm:$0xff] }
 0x168   :  { %11499 = vmatmul.msk.f32.gmra.mxu1 %vm21_vm1, %v13407_v41  ;;  %284 = vst.msk [vmem:[#allocation2 + $0x188] sm:$0xff] %vm21_vm1, %v219_v45 }
 0x169   :  { %286 = vst.msk [vmem:[#allocation2 + $0x1a8] sm:$0xff] %vm21_vm1, %v221_v32 }
 0x16a   :  { %v1442_v51 = vpop.f32.mrf.mxu3 }
 0x16b   :  { %v13415_v54 = vadd.f32 %v1442_v51, %v1336_v31  ;;  %11515 = vmatmul.msk.f32.gmra.mxu2 %vm21_vm1, %v13344_v30 }
 0x16c   :  { %v997_v9 = vpop.f32.mrf.mxu0 }
 0x16d   :  { %v1037_v11 = vadd.f32 %v997_v9, %v13218_v21  ;;  %v1150_v17 = vpop.f32.mrf.mxu1  ;;  %v13435_v21 = vld [vmem:[#allocation2 + $0x147] sm:$0xff] }
 0x16e   :  { %v1295_v10 = vpop.f32.mrf.mxu2  ;;  %v13486_v9 = vld [vmem:[#allocation2 + $0x169] sm:$0xff] }
 0x16f   :  { %11533 = vmatmul.msk.f32.gmra.mxu3 %vm21_vm1, %v13419_v5  ;;  %v1337_v23 = vadd.f32 %v1295_v10, %v1186_v34  ;;  %v1187_v14 = vadd.f32 %v1147_v36, %v1037_v11  ;;  %11481 = vmatmul.msk.f32.gmra.mxu0 %vm21_vm1, %v13024_v49  ;;  %v222_v36 = vld [vmem:[%s17702_s0 + $0xc8] sm:$0xff] }
 0x170   :  { %11500 = vmatmul.msk.f32.gmra.mxu1 %vm21_vm1, %v13422_v20  ;;  %287 = vst.msk [vmem:[#allocation2 + $0x1b0] sm:$0xff] %vm21_vm1, %v222_v36  ;;  %v13489_v10 = vld [vmem:[#allocation2 + $0x188] sm:$0xff] }
 0x171   :  { %v13528_v32 = vld [vmem:[#allocation2 + $0x189] sm:$0xff] }
 0x172   :  { %v1445_v38 = vpop.f32.mrf.mxu3 }
 0x173   :  { %v13440_v58 = vadd.f32 %v1445_v38, %v1337_v23  ;;  %11516 = vmatmul.msk.f32.gmra.mxu2 %vm21_vm1, %v13435_v21 }
 0x174   :  { %v1000_v33 = vpop.f32.mrf.mxu0 }
 0x175   :  { %v1038_v49 = vadd.f32 %v1000_v33, %v13228_v28  ;;  %v1153_v55 = vpop.f32.mrf.mxu1  ;;  %v13461_v28 = vld [vmem:[#allocation2 + $0x151] sm:$0xff] }
 0x176   :  { %v1298_v13 = vpop.f32.mrf.mxu2 }
 0x177   :  { %11534 = vmatmul.msk.f32.gmra.mxu3 %vm21_vm1, %v13444_v8  ;;  %v1338_v29 = vadd.f32 %v1298_v13, %v1187_v14  ;;  %v1188_v59 = vadd.f32 %v1150_v17, %v1038_v49  ;;  %11482 = vmatmul.msk.f32.gmra.mxu0 %vm21_vm1, %v13042_v53  ;;  %v13495_v14 = vld [vmem:[#allocation2 + $0x16f] sm:$0xff] }
 0x178   :  { %11501 = vmatmul.msk.f32.gmra.mxu1 %vm21_vm1, %v13447_v16 }
 0x17a   :  { %v1448_v26 = vpop.f32.mrf.mxu3 }
 0x17b   :  { %v13457_v37 = vadd.f32 %v1448_v26, %v1338_v29  ;;  %11517 = vmatmul.msk.f32.gmra.mxu2 %vm21_vm1, %v13453_v22  ;;  %v13506_v29 = vld [vmem:[#allocation2 + $0x190] sm:$0xff]  ;;  %v224_v26 = vld [vmem:[%s17702_s0 + $0xd8] sm:$0xff] }
 0x17c   :  { %v1003_v43 = vpop.f32.mrf.mxu0  ;;  %289 = vst.msk [vmem:[#allocation2 + $0x1d0] sm:$0xff] %vm21_vm1, %v224_v26 }
 0x17d   :  { %v1039_v63 = vadd.f32 %v1003_v43, %v13238_v40  ;;  %v1156_v18 = vpop.f32.mrf.mxu1  ;;  %v13477_v40 = vld [vmem:[#allocation2 + $0x167] sm:$0xff] }
 0x17e   :  { %v1301_v53 = vpop.f32.mrf.mxu2 }
 0x17f   :  { %11535 = vmatmul.msk.f32.gmra.mxu3 %vm21_vm1, %v13461_v28  ;;  %v1339_v47 = vadd.f32 %v1301_v53, %v1188_v59  ;;  %v1189_v31 = vadd.f32 %v1153_v55, %v1039_v63  ;;  %11483 = vmatmul.msk.f32.gmra.mxu0 %vm21_vm1, %v13060_v57  ;;  %v223_v59 = vld [vmem:[%s17702_s0 + $0xd0] sm:$0xff] }
 0x180   :  { %11502 = vmatmul.msk.f32.gmra.mxu1 %vm21_vm1, %v13464_v27  ;;  %288 = vst.msk [vmem:[#allocation2 + $0x1c8] sm:$0xff] %vm21_vm1, %v223_v59 }
 0x182   :  { %v1451_v34 = vpop.f32.mrf.mxu3 }
 0x183   :  { %v13482_v51 = vadd.f32 %v1451_v34, %v1339_v47  ;;  %11518 = vmatmul.msk.f32.gmra.mxu2 %vm21_vm1, %v13477_v40 }
 0x184   :  { %v1006_v11 = vpop.f32.mrf.mxu0 }
 0x185   :  { %v1040_v57 = vadd.f32 %v1006_v11, %v13248_v56  ;;  %v1159_v17 = vpop.f32.mrf.mxu1  ;;  %v13503_v56 = vld [vmem:[#allocation2 + $0x171] sm:$0xff] }
 0x186   :  { %v1304_v45 = vpop.f32.mrf.mxu2 }
 0x187   :  { %11536 = vmatmul.msk.f32.gmra.mxu3 %vm21_vm1, %v13486_v9  ;;  %v1340_v60 = vadd.f32 %v1304_v45, %v1189_v31  ;;  %v1190_v23 = vadd.f32 %v1156_v18, %v1040_v57  ;;  %11484 = vmatmul.msk.f32.gmra.mxu0 %vm21_vm1, %v13078_v61  ;;  %v13531_v31 = vld [vmem:[#allocation2 + $0x1a8] sm:$0xff] }
 0x188   :  { %11503 = vmatmul.msk.f32.gmra.mxu1 %vm21_vm1, %v13489_v10 }
 0x18a   :  { %v1454_v38 = vpop.f32.mrf.mxu3 }
 0x18b   :  { %v13499_v33 = vadd.f32 %v1454_v38, %v1340_v60  ;;  %11519 = vmatmul.msk.f32.gmra.mxu2 %vm21_vm1, %v13495_v14 }
 0x18c   :  { %v1009_v49 = vpop.f32.mrf.mxu0 }
 0x18d   :  { %v1041_v55 = vadd.f32 %v1009_v49, %v13258_v6  ;;  %v1162_v13 = vpop.f32.mrf.mxu1  ;;  %v13519_v6 = vld [vmem:[#allocation2 + $0x187] sm:$0xff] }
 0x18e   :  { %v1307_v61 = vpop.f32.mrf.mxu2 }
 0x18f   :  { %11537 = vmatmul.msk.f32.gmra.mxu3 %vm21_vm1, %v13503_v56  ;;  %v1341_v43 = vadd.f32 %v1307_v61, %v1190_v23  ;;  %v1191_v63 = vadd.f32 %v1159_v17, %v1041_v55  ;;  %11485 = vmatmul.msk.f32.gmra.mxu0 %vm21_vm1, %v13092_v0  ;;  %v13537_v17 = vld [vmem:[#allocation2 + $0x18f] sm:$0xff] }
 0x190   :  { %11504 = vmatmul.msk.f32.gmra.mxu1 %vm21_vm1, %v13506_v29  ;;  %v13548_v55 = vld [vmem:[#allocation2 + $0x1b0] sm:$0xff]  ;;  %v226_v61 = vld [vmem:[%s17702_s0 + $0xe8] sm:$0xff] }
 0x191   :  { %291 = vst.msk [vmem:[#allocation2 + $0x1f0] sm:$0xff] %vm21_vm1, %v226_v61  ;;  %v13590_v61 = vld [vmem:[#allocation2 + $0x1d0] sm:$0xff] }
 0x192   :  { %v1457_v18 = vpop.f32.mrf.mxu3 }
 0x193   :  { %v13524_v53 = vadd.f32 %v1457_v18, %v1341_v43  ;;  %11520 = vmatmul.msk.f32.gmra.mxu2 %vm21_vm1, %v13519_v6  ;;  %v13570_v18 = vld [vmem:[#allocation2 + $0x1a9] sm:$0xff] }
 0x194   :  { %v1012_v36 = vpop.f32.mrf.mxu0 }
 0x195   :  { %v1042_v0 = vadd.f32 %v1012_v36, %v13272_v42  ;;  %v1165_v47 = vpop.f32.mrf.mxu1  ;;  %v13545_v42 = vld [vmem:[#allocation2 + $0x191] sm:$0xff] }
 0x196   :  { %v1310_v34 = vpop.f32.mrf.mxu2 }
 0x197   :  { %11538 = vmatmul.msk.f32.gmra.mxu3 %vm21_vm1, %v13528_v32  ;;  %v1342_v11 = vadd.f32 %v1310_v34, %v1191_v63  ;;  %v1192_v57 = vadd.f32 %v1162_v13, %v1042_v0  ;;  %11486 = vmatmul.msk.f32.gmra.mxu0 %vm21_vm1, %v13115_v7  ;;  %v225_v13 = vld [vmem:[%s17702_s0 + $0xe0] sm:$0xff] }
 0x198   :  { %11505 = vmatmul.msk.f32.gmra.mxu1 %vm21_vm1, %v13531_v31  ;;  %290 = vst.msk [vmem:[#allocation2 + $0x1e8] sm:$0xff] %vm21_vm1, %v225_v13 }
 0x19a   :  { %v1460_v45 = vpop.f32.mrf.mxu3 }
 0x19b   :  { %v13541_v60 = vadd.f32 %v1460_v45, %v1342_v11  ;;  %11521 = vmatmul.msk.f32.gmra.mxu2 %vm21_vm1, %v13537_v17  ;;  %v13579_v45 = vld [vmem:[#allocation2 + $0x1af] sm:$0xff] }
 0x19c   :  { %v1015_v23 = vpop.f32.mrf.mxu0 }
 0x19d   :  { %v1043_v38 = vadd.f32 %v1015_v23, %v13286_v46  ;;  %v1168_v49 = vpop.f32.mrf.mxu1  ;;  %v13561_v46 = vld [vmem:[#allocation2 + $0x1a7] sm:$0xff] }
 0x19e   :  { %v1313_v7 = vpop.f32.mrf.mxu2 }
 0x19f   :  { %11539 = vmatmul.msk.f32.gmra.mxu3 %vm21_vm1, %v13545_v42  ;;  %v1343_v59 = vadd.f32 %v1313_v7, %v1192_v57  ;;  %v1193_v26 = vadd.f32 %v1165_v47, %v1043_v38  ;;  %11487 = vmatmul.msk.f32.gmra.mxu0 %vm21_vm1, %v13138_v12  ;;  %v13573_v47 = vld [vmem:[#allocation2 + $0x1c8] sm:$0xff] }
 0x1a0   :  { %11506 = vmatmul.msk.f32.gmra.mxu1 %vm21_vm1, %v13548_v55 }
 0x1a2   :  { %v1463_v43 = vpop.f32.mrf.mxu3 }
 0x1a3   :  { %v13566_v63 = vadd.f32 %v1463_v43, %v1343_v59  ;;  %11522 = vmatmul.msk.f32.gmra.mxu2 %vm21_vm1, %v13561_v46  ;;  %v13596_v43 = vld [vmem:[#allocation2 + $0x1c7] sm:$0xff] }
 0x1a4   :  { %v1018_v36 = vpop.f32.mrf.mxu0 }
 0x1a5   :  { %v1044_v12 = vadd.f32 %v1018_v36, %v13296_v50  ;;  %v1171_v0 = vpop.f32.mrf.mxu1  ;;  %v13587_v50 = vld [vmem:[#allocation2 + $0x1b1] sm:$0xff] }
 0x1a6   :  { %v1316_v34 = vpop.f32.mrf.mxu2 }
 0x1a7   :  { %11540 = vmatmul.msk.f32.gmra.mxu3 %vm21_vm1, %v13570_v18  ;;  %v1344_v11 = vadd.f32 %v1316_v34, %v1193_v26  ;;  %v1194_v57 = vadd.f32 %v1168_v49, %v1044_v12  ;;  %11488 = vmatmul.msk.f32.gmra.mxu0 %vm21_vm1, %v13152_v15 }
 0x1a8   :  { %11507 = vmatmul.msk.f32.gmra.mxu1 %vm21_vm1, %v13573_v47 }
 0x1aa   :  { %v1466_v23 = vpop.f32.mrf.mxu3 }
 0x1ab   :  { %v13583_v38 = vadd.f32 %v1466_v23, %v1344_v11  ;;  %11523 = vmatmul.msk.f32.gmra.mxu2 %vm21_vm1, %v13579_v45  ;;  %v13609_v11 = vld [vmem:[#allocation2 + $0x1e8] sm:$0xff] }
 0x1ac   :  { %v1021_v7 = vpop.f32.mrf.mxu0 }
 0x1ad   :  { %v1045_v13 = vadd.f32 %v1021_v7, %v13319_v35  ;;  %v1174_v49 = vpop.f32.mrf.mxu1  ;;  %v13604_v35 = vld [vmem:[#allocation2 + $0x1c9] sm:$0xff] }
 0x1ae   :  { %v1319_v15 = vpop.f32.mrf.mxu2 }
 0x1af   :  { %11541 = vmatmul.msk.f32.gmra.mxu3 %vm21_vm1, %v13587_v50  ;;  %v1345_v59 = vadd.f32 %v1319_v15, %v1194_v57  ;;  %v1195_v26 = vadd.f32 %v1171_v0, %v1045_v13  ;;  %11489 = vmatmul.msk.f32.gmra.mxu0 %vm21_vm1, %v13300_v52  ;;  %v11618_v13 = vld [vmem:[%s17703_s1 + $0x1c] sm:$0x7]  ;;  %v13627_v15 = vld [vmem:[#allocation2 + $0x1cf] sm:$0xff] }
 0x1b0   :  { %11508 = vmatmul.msk.f32.gmra.mxu1 %vm21_vm1, %v13590_v61  ;;  %11619 = vmatpush.msk.msra.mxu0 %vm414_vm0, %v11618_v13 }
 0x1b2   :  { %v1469_v36 = vpop.f32.mrf.mxu3 }
 0x1b3   :  { %v13600_v12 = vadd.f32 %v1469_v36, %v1345_v59  ;;  %11524 = vmatmul.msk.f32.gmra.mxu2 %vm21_vm1, %v13596_v43  ;;  %v13652_v36 = vld [vmem:[#allocation2 + $0x1d1] sm:$0xff] }
 0x1b4   :  { %v1024_v34 = vpop.f32.mrf.mxu0 }
 0x1b5   :  { %v1046_v52 = vadd.f32 %v1024_v34, %v13335_v24  ;;  %v1177_v0 = vpop.f32.mrf.mxu1  ;;  %v11654_v24 = vld [vmem:[%s17703_s1 + $0x4] sm:$0x7] }
 0x1b6   :  { %v1322_v57 = vpop.f32.mrf.mxu2  ;;  %11655 = vmatpush.msk.msra.mxu2 %vm414_vm0, %v11654_v24 }
 0x1b7   :  { %11542 = vmatmul.msk.f32.gmra.mxu3 %vm21_vm1, %v13604_v35  ;;  %v1346_v23 = vadd.f32 %v1322_v57, %v1195_v26  ;;  %v1196_v7 = vadd.f32 %v1174_v49, %v1046_v52  ;;  %11490 = vmatmul.msk.f32.gmra.mxu0 %vm21_vm1, %v13327_v19  ;;  %v3078_v19 = vld [vmem:[%s17703_s1] sm:$0x7] }
 0x1b8   :  { %11509 = vmatmul.msk.f32.gmra.mxu1 %vm21_vm1, %v13609_v11  ;;  %11672 = vmatpush.msk.msra.mxu3 %vm414_vm0, %v3078_v19  ;;  %v11636_v26 = vld [vmem:[%s17703_s1 + $0x20] sm:$0x7] }
 0x1b9   :  { %11637 = vmatpush.msk.msra.mxu1 %vm414_vm0, %v11636_v26 }
 0x1ba   :  { %v1472_v49 = vpop.f32.mrf.mxu3 }
 0x1bb   :  { %v13643_v59 = vadd.f32 %v1472_v49, %v1346_v23  ;;  %11525 = vmatmul.msk.f32.gmra.mxu2 %vm21_vm1, %v13627_v15  ;;  %v13658_v23 = vld [vmem:[#allocation2 + $0x1f0] sm:$0xff] }
 0x1bc   :  { %v1027_v34 = vpop.f32.mrf.mxu0 }
 0x1bd   :  { %v1047_v52 = vadd.f32 %v1027_v34, %v13350_v2  ;;  %v1180_v57 = vpop.f32.mrf.mxu1  ;;  %v13670_v2 = vld [vmem:[#allocation2 + $0x1e7] sm:$0xff] }
 0x1be   :  { %v1325_v24 = vpop.f32.mrf.mxu2 }
 0x1bf   :  { %11543 = vmatmul.msk.f32.gmra.mxu3 %vm21_vm1, %v13652_v36  ;;  %v1347_v13 = vadd.f32 %v1325_v24, %v1196_v7  ;;  %v1197_v19 = vadd.f32 %v1177_v0, %v1047_v52  ;;  %11491 = vmatmul.msk.f32.gmra.mxu0 %vm21_vm1, %v13404_v1  ;;  %v13686_v7 = vld [vmem:[#allocation2 + $0x1e9] sm:$0xff] }
 0x1c0   :  { %11510 = vmatmul.msk.f32.gmra.mxu1 %vm21_vm1, %v13658_v23 }
 0x1c2   :  { %v1475_v49 = vpop.f32.mrf.mxu3 }
 0x1c3   :  { %v13680_v0 = vadd.f32 %v1475_v49, %v1347_v13  ;;  %11526 = vmatmul.msk.f32.gmra.mxu2 %vm21_vm1, %v13670_v2 }
 0x1c4   :  { %v1030_v26 = vpop.f32.mrf.mxu0 }
 0x1c5   :  { %17726 = vst [vmem:[#allocation7_spill] sm:$0xff] %v13680_v0  ;;  %v1048_v34 = vadd.f32 %v1030_v26, %v13370_v3  ;;  %v1803_v52 = vpop.f32.mrf.mxu1  ;;  %v13701_v3 = vld [vmem:[#allocation2 + $0x1ef] sm:$0xff] }
 0x1c6   :  { %v1328_v24 = vpop.f32.mrf.mxu2 }
 0x1c7   :  { %11544 = vmatmul.msk.f32.gmra.mxu3 %vm21_vm1, %v13686_v7  ;;  %v1348_v13 = vadd.f32 %v1328_v24, %v1197_v19  ;;  %v1198_v49 = vadd.f32 %v1180_v57, %v1048_v34  ;;  %11492 = vmatmul.msk.f32.gmra.mxu0 %vm21_vm1, %v13419_v5  ;;  %v13718_v19 = vld [vmem:[%s17706_s4] ss:$0 sm:$0xff] }
 0x1c8   :  { %11566 = vmatmul.msk.f32.vlgmr.msrb.gmra.mxu1 %vm21_vm1, %v13339_v25  ;;  %v13722_v25 = vld [vmem:[#allocation2 + $0x1f1] sm:$0xff] }
 0x1ca   :  { %v1478_v26 = vpop.f32.mrf.mxu3 }
 0x1cb   :  { %v13711_v57 = vadd.f32 %v1478_v26, %v1348_v13  ;;  %11527 = vmatmul.msk.f32.gmra.mxu2 %vm21_vm1, %v13701_v3 }
 0x1cc   :  { %v1586_v34 = vpop.f32.mrf.mxu0 }
 0x1cd   :  { %17727 = vst [vmem:[#allocation8_spill] sm:$0xff] %v13711_v57  ;;  %v1634_v24 = vadd.f32 %v1586_v34, %v13381_v39  ;;  %v1806_v13 = vpop.f32.mrf.mxu1 }
 0x1ce   :  { %v1331_v26 = vpop.f32.mrf.mxu2 }
 0x1cf   :  { %11545 = vmatmul.msk.f32.gmra.mxu3 %vm21_vm1, %v13722_v25  ;;  %v1349_v57 = vadd.f32 %v1331_v26, %v1198_v49  ;;  %v1651_v0 = vadd.f32 %v13718_v19, %v1634_v24  ;;  %11548 = vmatmul.msk.f32.vlgmr.msrb.gmra.mxu0 %vm21_vm1, %v13331_v62 }
 0x1d0   :  { %11567 = vmatmul.msk.f32.gmra.mxu1 %vm21_vm1, %v13354_v44 }
 0x1d1   :  { %v1667_v39 = vmax.f32 %v1651_v0, 0.0 }
 0x1d2   :  { %v1481_v34 = vpop.f32.mrf.mxu3 }
 0x1d3   :  { %v13746_v49 = vadd.f32 %v1481_v34, %v1349_v57  ;;  %1684 = vst.msk [vmem:[#allocation3 + $0x28] sm:$0xff] %vm109_vm4, %v1667_v39  ;;  %11584 = vmatmul.msk.f32.vlgmr.msrb.gmra.mxu2 %vm21_vm1, %v13404_v1 }
 0x1d4   :  { %v1589_v62 = vpop.f32.mrf.mxu0 }
 0x1d5   :  { %v1635_v44 = vadd.f32 %v1589_v62, %v13400_v48  ;;  %v1809_v0 = vpop.f32.mrf.mxu1 }
 0x1d6   :  { %v1919_v24 = vpop.f32.mrf.mxu2 }
 0x1d7   :  { %11602 = vmatmul.msk.f32.vlgmr.msrb.gmra.mxu3 %vm21_vm1, %v13435_v21  ;;  %v1920_v57 = vadd.f32 %v1919_v24, %v1803_v52  ;;  %v1652_v1 = vadd.f32 %v13718_v19, %v1635_v44  ;;  %11549 = vmatmul.msk.f32.gmra.mxu0 %vm21_vm1, %v13344_v30 }
 0x1d8   :  { %11568 = vmatmul.msk.f32.gmra.mxu1 %vm21_vm1, %v13407_v41 }
 0x1d9   :  { %v1668_v48 = vmax.f32 %v1652_v1, 0.0 }
 0x1da   :  { %v2052_v26 = vpop.f32.mrf.mxu3 }
 0x1db   :  { %v13773_v52 = vadd.f32 %v2052_v26, %v1920_v57  ;;  %1685 = vst.msk [vmem:[#allocation3 + $0x30] sm:$0xff] %vm109_vm4, %v1668_v48  ;;  %11585 = vmatmul.msk.f32.gmra.mxu2 %vm21_vm1, %v13419_v5 }
 0x1dc   :  { %v1592_v30 = vpop.f32.mrf.mxu0 }
 0x1dd   :  { %v1636_v41 = vadd.f32 %v1592_v30, %v13415_v54  ;;  %v1812_v39 = vpop.f32.mrf.mxu1 }
 0x1de   :  { %v1922_v34 = vpop.f32.mrf.mxu2 }
 0x1df   :  { %11603 = vmatmul.msk.f32.gmra.mxu3 %vm21_vm1, %v13453_v22  ;;  %v1923_v62 = vadd.f32 %v1922_v34, %v1806_v13  ;;  %v1653_v5 = vadd.f32 %v13718_v19, %v1636_v41  ;;  %11550 = vmatmul.msk.f32.gmra.mxu0 %vm21_vm1, %v13435_v21 }
 0x1e0   :  { %11569 = vmatmul.msk.f32.gmra.mxu1 %vm21_vm1, %v13422_v20 }
 0x1e1   :  { %v1669_v54 = vmax.f32 %v1653_v5, 0.0 }
 0x1e2   :  { %v2055_v44 = vpop.f32.mrf.mxu3 }
 0x1e3   :  { %v13800_v13 = vadd.f32 %v2055_v44, %v1923_v62  ;;  %1686 = vst.msk [vmem:[#allocation3 + $0x48] sm:$0xff] %vm109_vm4, %v1669_v54  ;;  %11586 = vmatmul.msk.f32.gmra.mxu2 %vm21_vm1, %v13444_v8 }
 0x1e4   :  { %v1595_v21 = vpop.f32.mrf.mxu0 }
 0x1e5   :  { %v1637_v20 = vadd.f32 %v1595_v21, %v13440_v58  ;;  %v1815_v24 = vpop.f32.mrf.mxu1 }
 0x1e6   :  { %v1925_v57 = vpop.f32.mrf.mxu2 }
 0x1e7   :  { %11604 = vmatmul.msk.f32.gmra.mxu3 %vm21_vm1, %v13477_v40  ;;  %v1926_v1 = vadd.f32 %v1925_v57, %v1809_v0  ;;  %v1654_v8 = vadd.f32 %v13718_v19, %v1637_v20  ;;  %11551 = vmatmul.msk.f32.gmra.mxu0 %vm21_vm1, %v13453_v22 }
 0x1e8   :  { %11570 = vmatmul.msk.f32.gmra.mxu1 %vm21_vm1, %v13447_v16 }
 0x1e9   :  { %v1670_v58 = vmax.f32 %v1654_v8, 0.0 }
 0x1ea   :  { %v2058_v48 = vpop.f32.mrf.mxu3 }
 0x1eb   :  { %v13827_v0 = vadd.f32 %v2058_v48, %v1926_v1  ;;  %1687 = vst.msk [vmem:[#allocation3 + $0x50] sm:$0xff] %vm109_vm4, %v1670_v58  ;;  %11587 = vmatmul.msk.f32.gmra.mxu2 %vm21_vm1, %v13461_v28 }
 0x1ec   :  { %v1598_v22 = vpop.f32.mrf.mxu0 }
 0x1ed   :  { %v1638_v16 = vadd.f32 %v1598_v22, %v13457_v37  ;;  %v1818_v26 = vpop.f32.mrf.mxu1 }
 0x1ee   :  { %v1928_v30 = vpop.f32.mrf.mxu2 }
 0x1ef   :  { %11605 = vmatmul.msk.f32.gmra.mxu3 %vm21_vm1, %v13495_v14  ;;  %v1929_v41 = vadd.f32 %v1928_v30, %v1812_v39  ;;  %v1655_v28 = vadd.f32 %v13718_v19, %v1638_v16  ;;  %11552 = vmatmul.msk.f32.gmra.mxu0 %vm21_vm1, %v13477_v40 }
 0x1f0   :  { %11571 = vmatmul.msk.f32.gmra.mxu1 %vm21_vm1, %v13464_v27 }
 0x1f1   :  { %v1671_v37 = vmax.f32 %v1655_v28, 0.0 }
 0x1f2   :  { %v2061_v34 = vpop.f32.mrf.mxu3 }
 0x1f3   :  { %v13854_v39 = vadd.f32 %v2061_v34, %v1929_v41  ;;  %1688 = vst.msk [vmem:[#allocation3 + $0x68] sm:$0xff] %vm109_vm4, %v1671_v37  ;;  %11588 = vmatmul.msk.f32.gmra.mxu2 %vm21_vm1, %v13486_v9 }
 0x1f4   :  { %v1601_v40 = vpop.f32.mrf.mxu0 }
 0x1f5   :  { %v1639_v27 = vadd.f32 %v1601_v40, %v13482_v51  ;;  %v1821_v62 = vpop.f32.mrf.mxu1 }
 0x1f6   :  { %v1931_v5 = vpop.f32.mrf.mxu2 }
 0x1f7   :  { %11606 = vmatmul.msk.f32.gmra.mxu3 %vm21_vm1, %v13519_v6  ;;  %v1932_v54 = vadd.f32 %v1931_v5, %v1815_v24  ;;  %v1656_v9 = vadd.f32 %v13718_v19, %v1639_v27  ;;  %11553 = vmatmul.msk.f32.gmra.mxu0 %vm21_vm1, %v13495_v14 }
 0x1f8   :  { %11572 = vmatmul.msk.f32.gmra.mxu1 %vm21_vm1, %v13489_v10 }
 0x1f9   :  { %v1672_v51 = vmax.f32 %v1656_v9, 0.0 }
 0x1fa   :  { %v2064_v44 = vpop.f32.mrf.mxu3 }
 0x1fb   :  { %v13881_v21 = vadd.f32 %v2064_v44, %v1932_v54  ;;  %1689 = vst.msk [vmem:[#allocation3 + $0x70] sm:$0xff] %vm109_vm4, %v1672_v51  ;;  %11589 = vmatmul.msk.f32.gmra.mxu2 %vm21_vm1, %v13503_v56 }
 0x1fc   :  { %v1604_v14 = vpop.f32.mrf.mxu0 }
 0x1fd   :  { %v1640_v10 = vadd.f32 %v1604_v14, %v13499_v33  ;;  %v1824_v20 = vpop.f32.mrf.mxu1 }
 0x1fe   :  { %v1934_v24 = vpop.f32.mrf.mxu2 }
 0x1ff   :  { %11607 = vmatmul.msk.f32.gmra.mxu3 %vm21_vm1, %v13537_v17  ;;  %v1935_v57 = vadd.f32 %v1934_v24, %v1818_v26  ;;  %v1657_v56 = vadd.f32 %v13718_v19, %v1640_v10  ;;  %11554 = vmatmul.msk.f32.gmra.mxu0 %vm21_vm1, %v13519_v6 }
 0x200   :  { %11573 = vmatmul.msk.f32.gmra.mxu1 %vm21_vm1, %v13506_v29 }
 0x201   :  { %v1673_v33 = vmax.f32 %v1657_v56, 0.0 }
 0x202   :  { %v2067_v1 = vpop.f32.mrf.mxu3 }
 0x203   :  { %v13908_v8 = vadd.f32 %v2067_v1, %v1935_v57  ;;  %1690 = vst.msk [vmem:[#allocation3 + $0x88] sm:$0xff] %vm109_vm4, %v1673_v33  ;;  %11590 = vmatmul.msk.f32.gmra.mxu2 %vm21_vm1, %v13528_v32 }
 0x204   :  { %v1607_v6 = vpop.f32.mrf.mxu0 }
 0x205   :  { %v1641_v29 = vadd.f32 %v1607_v6, %v13524_v53  ;;  %v1827_v58 = vpop.f32.mrf.mxu1 }
 0x206   :  { %v1937_v48 = vpop.f32.mrf.mxu2 }
 0x207   :  { %11608 = vmatmul.msk.f32.gmra.mxu3 %vm21_vm1, %v13561_v46  ;;  %v1938_v22 = vadd.f32 %v1937_v48, %v1821_v62  ;;  %v1658_v32 = vadd.f32 %v13718_v19, %v1641_v29  ;;  %11555 = vmatmul.msk.f32.gmra.mxu0 %vm21_vm1, %v13537_v17  ;;  %v227_v17 = vld [vmem:[%s17702_s0 + $0xf0] sm:$0xff] }
 0x208   :  { %11574 = vmatmul.msk.f32.gmra.mxu1 %vm21_vm1, %v13531_v31  ;;  %292 = vst.msk [vmem:[#allocation2 + $0x208] sm:$0xff] %vm21_vm1, %v227_v17 }
 0x209   :  { %v1674_v53 = vmax.f32 %v1658_v32, 0.0 }
 0x20a   :  { %v2070_v16 = vpop.f32.mrf.mxu3 }
 0x20b   :  { %v13927_v26 = vadd.f32 %v2070_v16, %v1938_v22  ;;  %1691 = vst.msk [vmem:[#allocation3 + $0x90] sm:$0xff] %vm109_vm4, %v1674_v53  ;;  %11591 = vmatmul.msk.f32.gmra.mxu2 %vm21_vm1, %v13545_v42 }
 0x20c   :  { %v1610_v30 = vpop.f32.mrf.mxu0 }
 0x20d   :  { %v1642_v41 = vadd.f32 %v1610_v30, %v13541_v60  ;;  %v1830_v28 = vpop.f32.mrf.mxu1  ;;  %v17728_v30 = vld [vmem:[#allocation7_spill] sm:$0xff] }
 0x20e   :  { %v1940_v37 = vpop.f32.mrf.mxu2 }
 0x20f   :  { %11609 = vmatmul.msk.f32.gmra.mxu3 %vm21_vm1, %v13579_v45  ;;  %v1941_v31 = vadd.f32 %v1940_v37, %v1824_v20  ;;  %v1659_v34 = vadd.f32 %v13718_v19, %v1642_v41  ;;  %11556 = vmatmul.msk.f32.gmra.mxu0 %vm21_vm1, %v13561_v46  ;;  %v228_v46 = vld [vmem:[%s17702_s0 + $0xf8] sm:$0xff]  ;;  %v14006_v37 = vld [vmem:[#allocation2 + $0x208] sm:$0xff] }
 0x210   :  { %11575 = vmatmul.msk.f32.gmra.mxu1 %vm21_vm1, %v13548_v55  ;;  %293 = vst.msk [vmem:[#allocation2 + $0x210] sm:$0xff] %vm21_vm1, %v228_v46 }
 0x211   :  { %v1675_v60 = vmax.f32 %v1659_v34, 0.0  ;;  %v11743_v34 = vld [vmem:[%s17703_s1 + $0x14] sm:$0x7] }
 0x212   :  { %v2073_v42 = vpop.f32.mrf.mxu3  ;;  %11744 = vmatpush.msk.msrb.mxu3 %vm414_vm0, %v11743_v34 }
 0x213   :  { %v13944_v40 = vadd.f32 %v2073_v42, %v1941_v31  ;;  %1692 = vst.msk [vmem:[#allocation3 + $0xa8] sm:$0xff] %vm109_vm4, %v1675_v60  ;;  %11592 = vmatmul.msk.f32.gmra.mxu2 %vm21_vm1, %v13570_v18  ;;  %v11689_v31 = vld [vmem:[%s17703_s1 + $0x8] sm:$0x7] }
 0x214   :  { %v1613_v27 = vpop.f32.mrf.mxu0  ;;  %11690 = vmatpush.msk.msrb.mxu0 %vm414_vm0, %v11689_v31  ;;  %v2865_v31 = vld [vmem:[#allocation2 + $0x169] sm:$0xff] }
 0x215   :  { %v1643_v62 = vadd.f32 %v1613_v27, %v13566_v63  ;;  %v1833_v5 = vpop.f32.mrf.mxu1  ;;  %v11707_v27 = vld [vmem:[%s17703_s1 + $0xc] sm:$0x7] }
 0x216   :  { %v1943_v54 = vpop.f32.mrf.mxu2  ;;  %11708 = vmatpush.msk.msrb.mxu1 %vm414_vm0, %v11707_v27 }
 0x217   :  { %11610 = vmatmul.msk.f32.gmra.mxu3 %vm21_vm1, %v13596_v43  ;;  %v1944_v55 = vadd.f32 %v1943_v54, %v1827_v58  ;;  %v1660_v9 = vadd.f32 %v13718_v19, %v1643_v62  ;;  %11557 = vmatmul.msk.f32.gmra.mxu0 %vm21_vm1, %v13579_v45  ;;  %v2578_v62 = vld [vmem:[#allocation2 + $0x20f] sm:$0xff] }
 0x218   :  { %11576 = vmatmul.msk.f32.gmra.mxu1 %vm21_vm1, %v13573_v47  ;;  %v17729_v54 = vld [vmem:[#allocation8_spill] sm:$0xff] }
 0x219   :  { %v1676_v63 = vmax.f32 %v1660_v9, 0.0  ;;  %v14036_v9 = vld [vmem:[#allocation2 + $0x210] sm:$0xff] }
 0x21a   :  { %v2076_v18 = vpop.f32.mrf.mxu3 }
 0x21b   :  { %v13961_v51 = vadd.f32 %v2076_v18, %v1944_v55  ;;  %1693 = vst.msk [vmem:[#allocation3 + $0xb0] sm:$0xff] %vm109_vm4, %v1676_v63  ;;  %11593 = vmatmul.msk.f32.gmra.mxu2 %vm21_vm1, %v13587_v50  ;;  %v229_v18 = vld [vmem:[%s17702_s0 + $0x100] sm:$0xff] }
 0x21c   :  { %v1616_v44 = vpop.f32.mrf.mxu0  ;;  %294 = vst.msk [vmem:[#allocation2 + $0x268] sm:$0xff] %vm21_vm1, %v229_v18 }
 0x21d   :  { %v1644_v14 = vadd.f32 %v1616_v44, %v13583_v38  ;;  %v1836_v10 = vpop.f32.mrf.mxu1 }
 0x21e   :  { %v1946_v20 = vpop.f32.mrf.mxu2 }
 0x21f   :  { %11611 = vmatmul.msk.f32.gmra.mxu3 %vm21_vm1, %v13627_v15  ;;  %v1947_v45 = vadd.f32 %v1946_v20, %v1830_v28  ;;  %v1661_v47 = vadd.f32 %v13718_v19, %v1644_v14  ;;  %11558 = vmatmul.msk.f32.gmra.mxu0 %vm21_vm1, %v13596_v43  ;;  %v14045_v14 = vld [vmem:[#allocation2 + $0x209] sm:$0xff] }
 0x220   :  { %11577 = vmatmul.msk.f32.gmra.mxu1 %vm21_vm1, %v13590_v61 }
 0x221   :  { %v1677_v24 = vmax.f32 %v1661_v47, 0.0  ;;  %v2579_v47 = vld [vmem:[#allocation2 + $0x227] sm:$0xff] }
 0x222   :  { %v2079_v57 = vpop.f32.mrf.mxu3 }
 0x223   :  { %v13974_v50 = vadd.f32 %v2079_v57, %v1947_v45  ;;  %1694 = vst.msk [vmem:[#allocation3 + $0xc8] sm:$0xff] %vm109_vm4, %v1677_v24  ;;  %11594 = vmatmul.msk.f32.gmra.mxu2 %vm21_vm1, %v13604_v35 }
 0x224   :  { %v1619_v38 = vpop.f32.mrf.mxu0 }
 0x225   :  { %v1645_v56 = vadd.f32 %v1619_v38, %v13600_v12  ;;  %v1839_v33 = vpop.f32.mrf.mxu1 }
 0x226   :  { %v1949_v1 = vpop.f32.mrf.mxu2 }
 0x227   :  { %11612 = vmatmul.msk.f32.gmra.mxu3 %vm21_vm1, %v13670_v2  ;;  %v1950_v43 = vadd.f32 %v1949_v1, %v1833_v5  ;;  %v1662_v61 = vadd.f32 %v13718_v19, %v1645_v56  ;;  %11559 = vmatmul.msk.f32.gmra.mxu0 %vm21_vm1, %v13627_v15  ;;  %v2863_v56 = vld [vmem:[#allocation2 + $0x149] sm:$0xff] }
 0x228   :  { %11578 = vmatmul.msk.f32.gmra.mxu1 %vm21_vm1, %v13609_v11  ;;  %v230_v1 = vld [vmem:[%s17702_s0 + $0x108] sm:$0xff] }
 0x229   :  { %v1678_v6 = vmax.f32 %v1662_v61, 0.0  ;;  %295 = vst.msk [vmem:[#allocation2 + $0x270] sm:$0xff] %vm21_vm1, %v230_v1 }
 0x22a   :  { %v2082_v29 = vpop.f32.mrf.mxu3 }
 0x22b   :  { %v13987_v35 = vadd.f32 %v2082_v29, %v1950_v43  ;;  %1695 = vst.msk [vmem:[#allocation3 + $0xd0] sm:$0xff] %vm109_vm4, %v1678_v6  ;;  %11595 = vmatmul.msk.f32.gmra.mxu2 %vm21_vm1, %v13652_v36  ;;  %v14062_v6 = vld [vmem:[#allocation2 + $0x211] sm:$0xff] }
 0x22c   :  { %v1622_v12 = vpop.f32.mrf.mxu0 }
 0x22d   :  { %v1646_v58 = vadd.f32 %v1622_v12, %v13643_v59  ;;  %v1842_v48 = vpop.f32.mrf.mxu1  ;;  %v2577_v59 = vld [vmem:[#allocation2 + $0x207] sm:$0xff] }
 0x22e   :  { %v1952_v22 = vpop.f32.mrf.mxu2 }
 0x22f   :  { %11613 = vmatmul.msk.f32.gmra.mxu3 %vm21_vm1, %v13701_v3  ;;  %v1953_v15 = vadd.f32 %v1952_v22, %v1836_v10  ;;  %v1663_v11 = vadd.f32 %v13718_v19, %v1646_v58  ;;  %11560 = vmatmul.msk.f32.gmra.mxu0 %vm21_vm1, %v13670_v2  ;;  %v2580_v58 = vld [vmem:[#allocation2 + $0x22f] sm:$0xff] }
 0x230   :  { %11579 = vmatmul.msk.f32.gmra.mxu1 %vm21_vm1, %v13658_v23 }
 0x231   :  { %v1679_v32 = vmax.f32 %v1663_v11, 0.0  ;;  %v2864_v11 = vld [vmem:[#allocation2 + $0x151] sm:$0xff] }
 0x232   :  { %v2085_v53 = vpop.f32.mrf.mxu3 }
 0x233   :  { %v14000_v36 = vadd.f32 %v2085_v53, %v1953_v15  ;;  %1696 = vst.msk [vmem:[#allocation3 + $0xe8] sm:$0xff] %vm109_vm4, %v1679_v32  ;;  %11596 = vmatmul.msk.f32.gmra.mxu2 %vm21_vm1, %v13686_v7  ;;  %v11725_v7 = vld [vmem:[%s17703_s1 + $0x10] sm:$0x7] }
 0x234   :  { %v1625_v16 = vpop.f32.mrf.mxu0  ;;  %11726 = vmatpush.msk.msrb.mxu2 %vm414_vm0, %v11725_v7  ;;  %v231_v53 = vld [vmem:[%s17702_s0 + $0x110] sm:$0xff] }
 0x235   :  { %v1647_v41 = vadd.f32 %v1625_v16, %v17728_v30  ;;  %v1845_v28 = vpop.f32.mrf.mxu1  ;;  %296 = vst.msk [vmem:[#allocation2 + $0x288] sm:$0xff] %vm21_vm1, %v231_v53  ;;  %v3079_v30 = vld [vmem:[#allocation2 + $0x248] sm:$0xff] }
 0x236   :  { %v1955_v2 = vpop.f32.mrf.mxu2 }
 0x237   :  { %11614 = vmatmul.msk.f32.gmra.mxu3 %vm21_vm1, %v2577_v59  ;;  %v1956_v23 = vadd.f32 %v1955_v2, %v1839_v33  ;;  %v1664_v17 = vadd.f32 %v13718_v19, %v1647_v41  ;;  %11561 = vmatmul.msk.f32.gmra.mxu0 %vm21_vm1, %v13701_v3 }
 0x238   :  { %11580 = vmatmul.msk.f32.gmra.mxu1 %vm21_vm1, %v14006_v37 }
 0x239   :  { %v1680_v60 = vmax.f32 %v1664_v17, 0.0 }
 0x23a   :  { %v2088_v3 = vpop.f32.mrf.mxu3 }
 0x23b   :  { %v14026_v42 = vadd.f32 %v2088_v3, %v1956_v23  ;;  %1697 = vst.msk [vmem:[#allocation3 + $0xf0] sm:$0xff] %vm109_vm4, %v1680_v60  ;;  %11597 = vmatmul.msk.f32.gmra.mxu2 %vm21_vm1, %v13722_v25  ;;  %v2715_v23 = vld [vmem:[#allocation2 + $0x150] sm:$0xff]  ;;  %v232_v60 = vld [vmem:[%s17702_s0 + $0x118] sm:$0xff] }
 0x23c   :  { %v1628_v5 = vpop.f32.mrf.mxu0  ;;  %297 = vst.msk [vmem:[#allocation2 + $0x290] sm:$0xff] %vm21_vm1, %v232_v60 }
 0x23d   :  { %v1648_v46 = vadd.f32 %v1628_v5, %v17729_v54  ;;  %v1848_v55 = vpop.f32.mrf.mxu1  ;;  %v3063_v54 = vld [vmem:[#allocation2 + $0x24f] sm:$0xff] }
 0x23e   :  { %v1958_v63 = vpop.f32.mrf.mxu2 }
 0x23f   :  { %11615 = vmatmul.msk.f32.gmra.mxu3 %vm21_vm1, %v2578_v62  ;;  %v1959_v25 = vadd.f32 %v1958_v63, %v1842_v48  ;;  %v1665_v44 = vadd.f32 %v13718_v19, %v1648_v46  ;;  %11562 = vmatmul.msk.f32.gmra.mxu0 %vm21_vm1, %v2577_v59 }
 0x240   :  { %11581 = vmatmul.msk.f32.gmra.mxu1 %vm21_vm1, %v14036_v9 }
 0x241   :  { %v1681_v10 = vmax.f32 %v1665_v44, 0.0 }
 0x242   :  { %v2091_v20 = vpop.f32.mrf.mxu3 }
 0x243   :  { %v14049_v45 = vadd.f32 %v2091_v20, %v1959_v25  ;;  %1698 = vst.msk [vmem:[#allocation3 + $0x108] sm:$0xff] %vm109_vm4, %v1681_v10  ;;  %11598 = vmatmul.msk.f32.gmra.mxu2 %vm21_vm1, %v14045_v14  ;;  %v2866_v25 = vld [vmem:[#allocation2 + $0x171] sm:$0xff]  ;;  %v233_v10 = vld [vmem:[%s17702_s0 + $0x120] sm:$0xff] }
 0x244   :  { %v1631_v24 = vpop.f32.mrf.mxu0  ;;  %298 = vst.msk [vmem:[#allocation2 + $0x2a8] sm:$0xff] %vm21_vm1, %v233_v10 }
 0x245   :  { %v1649_v57 = vadd.f32 %v1631_v24, %v13746_v49  ;;  %v2351_v38 = vpop.f32.mrf.mxu1  ;;  %v14099_v24 = vld [vmem:[#allocation2 + $0x268] sm:$0xff] }
 0x246   :  { %v1961_v33 = vpop.f32.mrf.mxu2 }
 0x247   :  { %11616 = vmatmul.msk.f32.gmra.mxu3 %vm21_vm1, %v2579_v47  ;;  %v1962_v43 = vadd.f32 %v1961_v33, %v1845_v28  ;;  %v1666_v61 = vadd.f32 %v13718_v19, %v1649_v57  ;;  %11563 = vmatmul.msk.f32.gmra.mxu0 %vm21_vm1, %v2578_v62  ;;  %v2714_v19 = vld [vmem:[#allocation2 + $0x148] sm:$0xff]  ;;  %v3080_v62 = vld [vmem:[#allocation2 + $0x250] sm:$0xff] }
 0x248   :  { %11638 = vmatmul.msk.f32.vlgmr.msra.gmra.mxu1 %vm21_vm1, %v2863_v56  ;;  %v3062_v28 = vld [vmem:[#allocation2 + $0x247] sm:$0xff]  ;;  %v2717_v33 = vld [vmem:[#allocation2 + $0x170] sm:$0xff] }
 0x249   :  { %v1682_v49 = vmax.f32 %v1666_v61, 0.0  ;;  %v2867_v61 = vld [vmem:[#allocation2 + $0x189] sm:$0xff] }
 0x24a   :  { %v2094_v29 = vpop.f32.mrf.mxu3 }
 0x24b   :  { %v14065_v12 = vadd.f32 %v2094_v29, %v1962_v43  ;;  %1699 = vst.msk [vmem:[#allocation3 + $0x110] sm:$0xff] %vm109_vm4, %v1682_v49  ;;  %11599 = vmatmul.msk.f32.gmra.mxu2 %vm21_vm1, %v14062_v6  ;;  %v234_v29 = vld [vmem:[%s17702_s0 + $0x128] sm:$0xff] }
 0x24c   :  { %v2202_v48 = vpop.f32.mrf.mxu0  ;;  %299 = vst.msk [vmem:[#allocation2 + $0x2b0] sm:$0xff] %vm21_vm1, %v234_v29 }
 0x24d   :  { %v2250_v22 = vadd.f32 %v2202_v48, %v13773_v52  ;;  %v2354_v15 = vpop.f32.mrf.mxu1 }
 0x24e   :  { %v1964_v32 = vpop.f32.mrf.mxu2 }
 0x24f   :  { %11617 = vmatmul.msk.f32.gmra.mxu3 %vm21_vm1, %v2580_v58  ;;  %v1965_v59 = vadd.f32 %v1964_v32, %v1848_v55  ;;  %v2399_v16 = vadd.f32 %v2351_v38, %v2250_v22  ;;  %11620 = vmatmul.msk.f32.vlgmr.msra.gmra.mxu0 %vm21_vm1, %v2714_v19  ;;  %v2716_v55 = vld [vmem:[#allocation2 + $0x168] sm:$0xff]  ;;  %v14116_v19 = vld [vmem:[#allocation2 + $0x270] sm:$0xff] }
 0x250   :  { %11639 = vmatmul.msk.f32.gmra.mxu1 %vm21_vm1, %v2864_v11  ;;  %v14106_v38 = vld [vmem:[#allocation2 + $0x267] sm:$0xff] }
 0x251   :  { %v2718_v32 = vld [vmem:[#allocation2 + $0x188] sm:$0xff] }
 0x252   :  { %v2097_v41 = vpop.f32.mrf.mxu3 }
 0x253   :  { %v14078_v52 = vadd.f32 %v2097_v41, %v1965_v59  ;;  %11656 = vmatmul.msk.f32.vlgmr.msra.gmra.mxu2 %vm21_vm1, %v3079_v30  ;;  %v235_v41 = vld [vmem:[%s17702_s0 + $0x130] sm:$0xff] }
 0x254   :  { %v2205_v2 = vpop.f32.mrf.mxu0  ;;  %300 = vst.msk [vmem:[#allocation2 + $0x2c8] sm:$0xff] %vm21_vm1, %v235_v41 }
 0x255   :  { %v2251_v17 = vadd.f32 %v2205_v2, %v13800_v13  ;;  %v2357_v7 = vpop.f32.mrf.mxu1 }
 0x256   :  { %v2500_v34 = vpop.f32.mrf.mxu2 }
 0x257   :  { %11673 = vmatmul.msk.f32.vlgmr.msra.gmra.mxu3 %vm21_vm1, %v3062_v28  ;;  %v2548_v3 = vadd.f32 %v2500_v34, %v2399_v16  ;;  %v2400_v27 = vadd.f32 %v2354_v15, %v2251_v17  ;;  %11621 = vmatmul.msk.f32.gmra.mxu0 %vm21_vm1, %v2715_v23  ;;  %v14123_v15 = vld [vmem:[#allocation2 + $0x26f] sm:$0xff] }
 0x258   :  { %11640 = vmatmul.msk.f32.gmra.mxu1 %vm21_vm1, %v2865_v31  ;;  %v2868_v16 = vld [vmem:[#allocation2 + $0x191] sm:$0xff]  ;;  %v14133_v23 = vld [vmem:[#allocation2 + $0x288] sm:$0xff] }
 0x259   :  { %v2719_v34 = vld [vmem:[#allocation2 + $0x190] sm:$0xff] }
 0x25a   :  { %v2650_v5 = vpop.f32.mrf.mxu3 }
 0x25b   :  { %v14089_v13 = vadd.f32 %v2650_v5, %v2548_v3  ;;  %11657 = vmatmul.msk.f32.gmra.mxu2 %vm21_vm1, %v3080_v62  ;;  %v236_v5 = vld [vmem:[%s17702_s0 + $0x138] sm:$0xff] }
 0x25c   :  { %v2208_v46 = vpop.f32.mrf.mxu0  ;;  %301 = vst.msk [vmem:[#allocation2 + $0x2d0] sm:$0xff] %vm21_vm1, %v236_v5 }
 0x25d   :  { %v2252_v63 = vadd.f32 %v2208_v46, %v13827_v0  ;;  %v2360_v18 = vpop.f32.mrf.mxu1 }
 0x25e   :  { %v2503_v44 = vpop.f32.mrf.mxu2 }
 0x25f   :  { %11674 = vmatmul.msk.f32.gmra.mxu3 %vm21_vm1, %v3063_v54  ;;  %v2549_v20 = vadd.f32 %v2503_v44, %v2400_v27  ;;  %v2401_v47 = vadd.f32 %v2357_v7, %v2252_v63  ;;  %11622 = vmatmul.msk.f32.gmra.mxu0 %vm21_vm1, %v2716_v55  ;;  %v14140_v7 = vld [vmem:[#allocation2 + $0x287] sm:$0xff]  ;;  %v14150_v55 = vld [vmem:[#allocation2 + $0x290] sm:$0xff] }
 0x260   :  { %11641 = vmatmul.msk.f32.gmra.mxu1 %vm21_vm1, %v2866_v25  ;;  %v2869_v27 = vld [vmem:[#allocation2 + $0x1a9] sm:$0xff] }
 0x261   :  { %v2720_v44 = vld [vmem:[#allocation2 + $0x1a8] sm:$0xff] }
 0x262   :  { %v2653_v0 = vpop.f32.mrf.mxu3 }
 0x263   :  { %v14102_v57 = vadd.f32 %v2653_v0, %v2549_v20  ;;  %11658 = vmatmul.msk.f32.gmra.mxu2 %vm21_vm1, %v14099_v24 }
 0x264   :  { %v2211_v56 = vpop.f32.mrf.mxu0 }
 0x265   :  { %v2253_v1 = vadd.f32 %v2211_v56, %v13854_v39  ;;  %v2363_v43 = vpop.f32.mrf.mxu1  ;;  %v237_v56 = vld [vmem:[%s17702_s0 + $0x140] sm:$0xff] }
 0x266   :  { %v2506_v49 = vpop.f32.mrf.mxu2  ;;  %302 = vst.msk [vmem:[#allocation2 + $0x2e8] sm:$0xff] %vm21_vm1, %v237_v56  ;;  %v240_v56 = vld [vmem:[%s17702_s0 + $0x158] sm:$0xff] }
 0x267   :  { %11675 = vmatmul.msk.f32.gmra.mxu3 %vm21_vm1, %v14106_v38  ;;  %v2550_v58 = vadd.f32 %v2506_v49, %v2401_v47  ;;  %v2402_v48 = vadd.f32 %v2360_v18, %v2253_v1  ;;  %11623 = vmatmul.msk.f32.gmra.mxu0 %vm21_vm1, %v2717_v33  ;;  %v14157_v18 = vld [vmem:[#allocation2 + $0x28f] sm:$0xff]  ;;  %v14174_v49 = vld [vmem:[#allocation2 + $0x2a7] sm:$0xff]  ;;  %305 = vst.msk [vmem:[#allocation2 + $0x310] sm:$0xff] %vm21_vm1, %v240_v56 }
 0x268   :  { %11642 = vmatmul.msk.f32.gmra.mxu1 %vm21_vm1, %v2867_v61  ;;  %v2870_v47 = vld [vmem:[#allocation2 + $0x1b1] sm:$0xff] }
 0x26a   :  { %v2656_v39 = vpop.f32.mrf.mxu3 }
 0x26b   :  { %v14119_v22 = vadd.f32 %v2656_v39, %v2550_v58  ;;  %11659 = vmatmul.msk.f32.gmra.mxu2 %vm21_vm1, %v14116_v19  ;;  %v2721_v58 = vld [vmem:[#allocation2 + $0x1b0] sm:$0xff] }
 0x26c   :  { %v2214_v11 = vpop.f32.mrf.mxu0 }
 0x26d   :  { %v2254_v53 = vadd.f32 %v2214_v11, %v13881_v21  ;;  %v2366_v59 = vpop.f32.mrf.mxu1  ;;  %v2871_v11 = vld [vmem:[#allocation2 + $0x1c9] sm:$0xff] }
 0x26e   :  { %v2509_v30 = vpop.f32.mrf.mxu2 }
 0x26f   :  { %11676 = vmatmul.msk.f32.gmra.mxu3 %vm21_vm1, %v14123_v15  ;;  %v2551_v28 = vadd.f32 %v2509_v30, %v2402_v48  ;;  %v2403_v2 = vadd.f32 %v2363_v43, %v2254_v53  ;;  %11624 = vmatmul.msk.f32.gmra.mxu0 %vm21_vm1, %v2718_v32  ;;  %v14167_v43 = vld [vmem:[#allocation2 + $0x2a8] sm:$0xff]  ;;  %v14184_v30 = vld [vmem:[#allocation2 + $0x2b0] sm:$0xff] }
 0x270   :  { %11643 = vmatmul.msk.f32.gmra.mxu1 %vm21_vm1, %v2868_v16  ;;  %v238_v53 = vld [vmem:[%s17702_s0 + $0x148] sm:$0xff] }
 0x271   :  { %303 = vst.msk [vmem:[#allocation2 + $0x2f0] sm:$0xff] %vm21_vm1, %v238_v53  ;;  %v2874_v53 = vld [vmem:[#allocation2 + $0x1f1] sm:$0xff] }
 0x272   :  { %v2659_v21 = vpop.f32.mrf.mxu3 }
 0x273   :  { %v14136_v17 = vadd.f32 %v2659_v21, %v2551_v28  ;;  %11660 = vmatmul.msk.f32.gmra.mxu2 %vm21_vm1, %v14133_v23  ;;  %v14191_v28 = vld [vmem:[#allocation2 + $0x2af] sm:$0xff] }
 0x274   :  { %v2217_v31 = vpop.f32.mrf.mxu0  ;;  %v2722_v21 = vld [vmem:[#allocation2 + $0x1c8] sm:$0xff] }
 0x275   :  { %v2255_v60 = vadd.f32 %v2217_v31, %v13908_v8  ;;  %v2369_v3 = vpop.f32.mrf.mxu1 }
 0x276   :  { %v2512_v62 = vpop.f32.mrf.mxu2 }
 0x277   :  { %11677 = vmatmul.msk.f32.gmra.mxu3 %vm21_vm1, %v14140_v7  ;;  %v2552_v54 = vadd.f32 %v2512_v62, %v2403_v2  ;;  %v2404_v46 = vadd.f32 %v2366_v59, %v2255_v60  ;;  %11625 = vmatmul.msk.f32.gmra.mxu0 %vm21_vm1, %v2719_v34  ;;  %v2872_v60 = vld [vmem:[#allocation2 + $0x1d1] sm:$0xff] }
 0x278   :  { %11644 = vmatmul.msk.f32.gmra.mxu1 %vm21_vm1, %v2869_v27  ;;  %v239_v27 = vld [vmem:[%s17702_s0 + $0x150] sm:$0xff] }
 0x279   :  { %304 = vst.msk [vmem:[#allocation2 + $0x308] sm:$0xff] %vm21_vm1, %v239_v27 }
 0x27a   :  { %v2662_v8 = vpop.f32.mrf.mxu3 }
 0x27b   :  { %v14153_v63 = vadd.f32 %v2662_v8, %v2552_v54  ;;  %11661 = vmatmul.msk.f32.gmra.mxu2 %vm21_vm1, %v14150_v55  ;;  %v14201_v54 = vld [vmem:[#allocation2 + $0x2c8] sm:$0xff] }
 0x27c   :  { %v2220_v25 = vpop.f32.mrf.mxu0  ;;  %v14208_v8 = vld [vmem:[#allocation2 + $0x2c7] sm:$0xff] }
 0x27d   :  { %v2256_v10 = vadd.f32 %v2220_v25, %v13927_v26  ;;  %v2372_v20 = vpop.f32.mrf.mxu1 }
 0x27e   :  { %v2515_v0 = vpop.f32.mrf.mxu2 }
 0x27f   :  { %11678 = vmatmul.msk.f32.gmra.mxu3 %vm21_vm1, %v14157_v18  ;;  %v2553_v33 = vadd.f32 %v2515_v0, %v2404_v46  ;;  %v2405_v1 = vadd.f32 %v2369_v3, %v2256_v10  ;;  %11626 = vmatmul.msk.f32.gmra.mxu0 %vm21_vm1, %v2720_v44  ;;  %v2723_v44 = vld [vmem:[#allocation2 + $0x1d0] sm:$0xff] }
 0x280   :  { %11645 = vmatmul.msk.f32.gmra.mxu1 %vm21_vm1, %v2870_v47  ;;  %v2873_v47 = vld [vmem:[#allocation2 + $0x1e9] sm:$0xff] }
 0x282   :  { %v2665_v26 = vpop.f32.mrf.mxu3 }
 0x283   :  { %v14170_v61 = vadd.f32 %v2665_v26, %v2553_v33  ;;  %11662 = vmatmul.msk.f32.gmra.mxu2 %vm21_vm1, %v14167_v43  ;;  %v14218_v26 = vld [vmem:[#allocation2 + $0x2d0] sm:$0xff] }
 0x284   :  { %v2223_v29 = vpop.f32.mrf.mxu0 }
 0x285   :  { %v2257_v48 = vadd.f32 %v2223_v29, %v13944_v40  ;;  %v2375_v39 = vpop.f32.mrf.mxu1 }
 0x286   :  { %v2518_v32 = vpop.f32.mrf.mxu2 }
 0x287   :  { %11679 = vmatmul.msk.f32.gmra.mxu3 %vm21_vm1, %v14174_v49  ;;  %v2554_v59 = vadd.f32 %v2518_v32, %v2405_v1  ;;  %v2406_v16 = vadd.f32 %v2372_v20, %v2257_v48  ;;  %11627 = vmatmul.msk.f32.gmra.mxu0 %vm21_vm1, %v2721_v58  ;;  %v14225_v58 = vld [vmem:[#allocation2 + $0x2cf] sm:$0xff] }
 0x288   :  { %11646 = vmatmul.msk.f32.gmra.mxu1 %vm21_vm1, %v2871_v11 }
 0x28a   :  { %v2668_v40 = vpop.f32.mrf.mxu3 }
 0x28b   :  { %v14187_v41 = vadd.f32 %v2668_v40, %v2554_v59  ;;  %11663 = vmatmul.msk.f32.gmra.mxu2 %vm21_vm1, %v14184_v30 }
 0x28c   :  { %v2226_v2 = vpop.f32.mrf.mxu0 }
 0x28d   :  { %v2258_v31 = vadd.f32 %v2226_v2, %v13961_v51  ;;  %v2378_v34 = vpop.f32.mrf.mxu1 }
 0x28e   :  { %v2521_v3 = vpop.f32.mrf.mxu2 }
 0x28f   :  { %11680 = vmatmul.msk.f32.gmra.mxu3 %vm21_vm1, %v14191_v28  ;;  %v2555_v62 = vadd.f32 %v2521_v3, %v2406_v16  ;;  %v2407_v5 = vadd.f32 %v2375_v39, %v2258_v31  ;;  %11628 = vmatmul.msk.f32.gmra.mxu0 %vm21_vm1, %v2722_v21  ;;  %v2724_v39 = vld [vmem:[#allocation2 + $0x1e8] sm:$0xff]  ;;  %v241_v16 = vld [vmem:[%s17702_s0 + $0x160] sm:$0xff]  ;;  %v2725_v3 = vld [vmem:[#allocation2 + $0x1f0] sm:$0xff] }
 0x290   :  { %11647 = vmatmul.msk.f32.gmra.mxu1 %vm21_vm1, %v2872_v60  ;;  %306 = vst.msk [vmem:[#allocation2 + $0x328] sm:$0xff] %vm21_vm1, %v241_v16  ;;  %v14235_v21 = vld [vmem:[#allocation2 + $0x2e8] sm:$0xff] }
 0x291   :  { %v2877_v16 = vld [vmem:[#allocation2 + $0x229] sm:$0xff] }
 0x292   :  { %v2671_v51 = vpop.f32.mrf.mxu3 }
 0x293   :  { %v14204_v46 = vadd.f32 %v2671_v51, %v2555_v62  ;;  %11664 = vmatmul.msk.f32.gmra.mxu2 %vm21_vm1, %v14201_v54  ;;  %v242_v51 = vld [vmem:[%s17702_s0 + $0x168] sm:$0xff] }
 0x294   :  { %v2229_v25 = vpop.f32.mrf.mxu0  ;;  %307 = vst.msk [vmem:[#allocation2 + $0x330] sm:$0xff] %vm21_vm1, %v242_v51  ;;  %v2728_v51 = vld [vmem:[#allocation2 + $0x228] sm:$0xff] }
 0x295   :  { %v2259_v10 = vadd.f32 %v2229_v25, %v13974_v50  ;;  %v2381_v20 = vpop.f32.mrf.mxu1 }
 0x296   :  { %v2524_v0 = vpop.f32.mrf.mxu2 }
 0x297   :  { %11681 = vmatmul.msk.f32.gmra.mxu3 %vm21_vm1, %v14208_v8  ;;  %v2556_v33 = vadd.f32 %v2524_v0, %v2407_v5  ;;  %v2408_v1 = vadd.f32 %v2378_v34, %v2259_v10  ;;  %11629 = vmatmul.msk.f32.gmra.mxu0 %vm21_vm1, %v2723_v44  ;;  %v14242_v34 = vld [vmem:[#allocation2 + $0x2e7] sm:$0xff]  ;;  %v14252_v10 = vld [vmem:[#allocation2 + $0x2f0] sm:$0xff] }
 0x298   :  { %11648 = vmatmul.msk.f32.gmra.mxu1 %vm21_vm1, %v2873_v47  ;;  %v14260_v47 = vld [vmem:[#allocation2 + $0x2ef] sm:$0xff] }
 0x29a   :  { %v2674_v50 = vpop.f32.mrf.mxu3 }
 0x29b   :  { %v14221_v29 = vadd.f32 %v2674_v50, %v2556_v33  ;;  %11665 = vmatmul.msk.f32.gmra.mxu2 %vm21_vm1, %v14218_v26 }
 0x29c   :  { %v2232_v48 = vpop.f32.mrf.mxu0 }
 0x29d   :  { %v2260_v11 = vadd.f32 %v2232_v48, %v13987_v35  ;;  %v2384_v32 = vpop.f32.mrf.mxu1 }
 0x29e   :  { %v2527_v59 = vpop.f32.mrf.mxu2 }
 0x29f   :  { %11682 = vmatmul.msk.f32.gmra.mxu3 %vm21_vm1, %v14225_v58  ;;  %v2557_v40 = vadd.f32 %v2527_v59, %v2408_v1  ;;  %v2409_v2 = vadd.f32 %v2381_v20, %v2260_v11  ;;  %11630 = vmatmul.msk.f32.gmra.mxu0 %vm21_vm1, %v2724_v39 }
 0x2a0   :  { %11649 = vmatmul.msk.f32.gmra.mxu1 %vm21_vm1, %v2874_v53 }
 0x2a2   :  { %v2677_v35 = vpop.f32.mrf.mxu3 }
 0x2a3   :  { %v14238_v31 = vadd.f32 %v2677_v35, %v2557_v40  ;;  %11666 = vmatmul.msk.f32.gmra.mxu2 %vm21_vm1, %v14235_v21  ;;  %v11761_v35 = vld [vmem:[%s17703_s1 + $0x18] sm:$0x7] }
 0x2a4   :  { %v2235_v60 = vpop.f32.mrf.mxu0  ;;  %11762 = vmatpush.msk.msra.mxu0 %vm414_vm0, %v11761_v35 }
 0x2a5   :  { %v2261_v27 = vadd.f32 %v2235_v60, %v14000_v36  ;;  %v2387_v62 = vpop.f32.mrf.mxu1  ;;  %v14291_v60 = vld [vmem:[#allocation2 + $0x310] sm:$0xff] }
 0x2a6   :  { %v2530_v5 = vpop.f32.mrf.mxu2 }
 0x2a7   :  { %11683 = vmatmul.msk.f32.gmra.mxu3 %vm21_vm1, %v14242_v34  ;;  %v2558_v25 = vadd.f32 %v2530_v5, %v2409_v2  ;;  %v2410_v44 = vadd.f32 %v2384_v32, %v2261_v27  ;;  %11631 = vmatmul.msk.f32.gmra.mxu0 %vm21_vm1, %v2725_v3  ;;  %v11779_v27 = vld [vmem:[%s17703_s1 + $0x1c] sm:$0x7] }
 0x2a8   :  { %11650 = vmatmul.msk.f32.gmra.mxu1 %vm21_vm1, %v14045_v14  ;;  %v14267_v14 = vld [vmem:[#allocation2 + $0x308] sm:$0xff] }
 0x2a9   :  { %11780 = vmatpush.msk.msra.mxu1 %vm414_vm0, %v11779_v27 }
 0x2aa   :  { %v2680_v36 = vpop.f32.mrf.mxu3 }
 0x2ab   :  { %v14256_v20 = vadd.f32 %v2680_v36, %v2558_v25  ;;  %11667 = vmatmul.msk.f32.gmra.mxu2 %vm21_vm1, %v14252_v10  ;;  %v2878_v36 = vld [vmem:[#allocation2 + $0x231] sm:$0xff] }
 0x2ac   :  { %v2238_v0 = vpop.f32.mrf.mxu0 }
 0x2ad   :  { %v2262_v56 = vadd.f32 %v2238_v0, %v14026_v42  ;;  %v2390_v33 = vpop.f32.mrf.mxu1  ;;  %v14275_v42 = vld [vmem:[#allocation2 + $0x307] sm:$0xff] }
 0x2ae   :  { %v2533_v1 = vpop.f32.mrf.mxu2 }
 0x2af   :  { %11684 = vmatmul.msk.f32.gmra.mxu3 %vm21_vm1, %v14260_v47  ;;  %v2559_v50 = vadd.f32 %v2533_v1, %v2410_v44  ;;  %v2411_v48 = vadd.f32 %v2387_v62, %v2262_v56  ;;  %11632 = vmatmul.msk.f32.gmra.mxu0 %vm21_vm1, %v14006_v37  ;;  %v14304_v62 = vld [vmem:[#allocation2 + $0x30f] sm:$0xff] }
 0x2b0   :  { %11651 = vmatmul.msk.f32.gmra.mxu1 %vm21_vm1, %v14062_v6  ;;  %v11797_v6 = vld [vmem:[%s17703_s1 + $0x20] sm:$0x7]  ;;  %v14311_v1 = vld [vmem:[#allocation2 + $0x328] sm:$0xff] }
 0x2b1   :  { %11798 = vmatpush.msk.msra.mxu2 %vm414_vm0, %v11797_v6 }
 0x2b2   :  { %v2683_v39 = vpop.f32.mrf.mxu3 }
 0x2b3   :  { %v14271_v11 = vadd.f32 %v2683_v39, %v2559_v50  ;;  %11668 = vmatmul.msk.f32.gmra.mxu2 %vm21_vm1, %v14267_v14 }
 0x2b4   :  { %v2241_v32 = vpop.f32.mrf.mxu0 }
 0x2b5   :  { %v2263_v53 = vadd.f32 %v2241_v32, %v14049_v45  ;;  %v2393_v59 = vpop.f32.mrf.mxu1  ;;  %v11815_v45 = vld [vmem:[%s17703_s1 + $0x4] sm:$0x7]  ;;  %v2729_v32 = vld [vmem:[#allocation2 + $0x230] sm:$0xff] }
 0x2b6   :  { %v2536_v40 = vpop.f32.mrf.mxu2  ;;  %11816 = vmatpush.msk.msra.mxu3 %vm414_vm0, %v11815_v45 }
 0x2b7   :  { %11685 = vmatmul.msk.f32.gmra.mxu3 %vm21_vm1, %v14275_v42  ;;  %v2560_v37 = vadd.f32 %v2536_v40, %v2411_v48  ;;  %v2412_v2 = vadd.f32 %v2390_v33, %v2263_v53  ;;  %11633 = vmatmul.msk.f32.gmra.mxu0 %vm21_vm1, %v14036_v9 }
 0x2b8   :  { %11652 = vmatmul.msk.f32.gmra.mxu1 %vm21_vm1, %v2877_v16 }
 0x2ba   :  { %v2686_v9 = vpop.f32.mrf.mxu3 }
 0x2bb   :  { %v14297_v3 = vadd.f32 %v2686_v9, %v2560_v37  ;;  %11669 = vmatmul.msk.f32.gmra.mxu2 %vm21_vm1, %v14291_v60  ;;  %v3328_v9 = vld [vmem:[#allocation2 + $0x249] sm:$0xff] }
 0x2bc   :  { %v2244_v5 = vpop.f32.mrf.mxu0 }
 0x2bd   :  { %v2264_v25 = vadd.f32 %v2244_v5, %v14065_v12  ;;  %v2396_v44 = vpop.f32.mrf.mxu1  ;;  %v14318_v12 = vld [vmem:[#allocation2 + $0x327] sm:$0xff] }
 0x2be   :  { %v2539_v0 = vpop.f32.mrf.mxu2 }
 0x2bf   :  { %11686 = vmatmul.msk.f32.gmra.mxu3 %vm21_vm1, %v14304_v62  ;;  %v2561_v56 = vadd.f32 %v2539_v0, %v2412_v2  ;;  %v2413_v33 = vadd.f32 %v2393_v59, %v2264_v25  ;;  %11634 = vmatmul.msk.f32.gmra.mxu0 %vm21_vm1, %v2728_v51  ;;  %v14324_v2 = vld [vmem:[#allocation2 + $0x330] sm:$0xff] }
 0x2c0   :  { %11653 = vmatmul.msk.f32.gmra.mxu1 %vm21_vm1, %v2878_v36 }
 0x2c2   :  { %v2689_v50 = vpop.f32.mrf.mxu3 }
 0x2c3   :  { %v14314_v48 = vadd.f32 %v2689_v50, %v2561_v56  ;;  %11670 = vmatmul.msk.f32.gmra.mxu2 %vm21_vm1, %v14311_v1 }
 0x2c4   :  { %v2247_v39 = vpop.f32.mrf.mxu0 }
 0x2c5   :  { %v2265_v53 = vadd.f32 %v2247_v39, %v14078_v52  ;;  %v2948_v16 = vpop.f32.mrf.mxu1  ;;  %v14332_v52 = vld [vmem:[#allocation2 + $0x32f] sm:$0xff] }
 0x2c6   :  { %v2542_v59 = vpop.f32.mrf.mxu2  ;;  %v3329_v39 = vld [vmem:[#allocation2 + $0x251] sm:$0xff] }
 0x2c7   :  { %11687 = vmatmul.msk.f32.gmra.mxu3 %vm21_vm1, %v14318_v12  ;;  %v2562_v40 = vadd.f32 %v2542_v59, %v2413_v33  ;;  %v2414_v37 = vadd.f32 %v2396_v44, %v2265_v53  ;;  %11635 = vmatmul.msk.f32.gmra.mxu0 %vm21_vm1, %v2729_v32  ;;  %v3776_v33 = vld [vmem:[#allocation2 + $0x269] sm:$0xff] }
 0x2c8   :  { %11709 = vmatmul.msk.f32.vlgmr.msrb.gmra.mxu1 %vm21_vm1, %v14106_v38  ;;  %v14343_v38 = vld [vmem:[%s17706_s4] ss:$0 sm:$0xff] }
 0x2ca   :  { %v2692_v6 = vpop.f32.mrf.mxu3 }
 0x2cb   :  { %v14328_v35 = vadd.f32 %v2692_v6, %v2562_v40  ;;  %11671 = vmatmul.msk.f32.gmra.mxu2 %vm21_vm1, %v14324_v2 }
 0x2cc   :  { %v2799_v45 = vpop.f32.mrf.mxu0 }
 0x2cd   :  { %v2847_v27 = vadd.f32 %v2799_v45, %v14089_v13  ;;  %v2951_v5 = vpop.f32.mrf.mxu1 }
 0x2ce   :  { %v2545_v51 = vpop.f32.mrf.mxu2 }
 0x2cf   :  { %11688 = vmatmul.msk.f32.gmra.mxu3 %vm21_vm1, %v14332_v52  ;;  %v2563_v25 = vadd.f32 %v2545_v51, %v2414_v37  ;;  %v2996_v44 = vadd.f32 %v2948_v16, %v2847_v27  ;;  %11691 = vmatmul.msk.f32.vlgmr.msrb.gmra.mxu0 %vm21_vm1, %v3328_v9 }
 0x2d0   :  { %11710 = vmatmul.msk.f32.gmra.mxu1 %vm21_vm1, %v14123_v15 }
 0x2d1   :  { %v3012_v36 = vadd.f32 %v14343_v38, %v2996_v44 }
 0x2d2   :  { %v2695_v13 = vpop.f32.mrf.mxu3 }
 0x2d3   :  { %v14346_v0 = vadd.f32 %v2695_v13, %v2563_v25  ;;  %v3028_v56 = vmax.f32 %v3012_v36, 0.0  ;;  %11727 = vmatmul.msk.f32.vlgmr.msrb.gmra.mxu2 %vm21_vm1, %v14099_v24 }
 0x2d4   :  { %v2802_v50 = vpop.f32.mrf.mxu0 }
 0x2d5   :  { %3045 = vst.msk [vmem:[#allocation3 + $0x128] sm:$0xff] %vm109_vm4, %v3028_v56  ;;  %v2848_v15 = vadd.f32 %v2802_v50, %v14102_v57  ;;  %v2954_v32 = vpop.f32.mrf.mxu1  ;;  %v3777_v57 = vld [vmem:[#allocation2 + $0x271] sm:$0xff] }
 0x2d6   :  { %v3164_v53 = vpop.f32.mrf.mxu2 }
 0x2d7   :  { %11745 = vmatmul.msk.f32.vlgmr.msrb.gmra.mxu3 %vm21_vm1, %v3776_v33  ;;  %v2997_v16 = vadd.f32 %v2951_v5, %v2848_v15  ;;  %11692 = vmatmul.msk.f32.gmra.mxu0 %vm21_vm1, %v3329_v39 }
 0x2d8   :  { %11711 = vmatmul.msk.f32.gmra.mxu1 %vm21_vm1, %v14140_v7 }
 0x2d9   :  { %v3013_v59 = vadd.f32 %v14343_v38, %v2997_v16 }
 0x2da   :  { %v3280_v24 = vpop.f32.mrf.mxu3 }
 0x2db   :  { %v14357_v40 = vadd.f32 %v3280_v24, %v3164_v53  ;;  %v3029_v37 = vmax.f32 %v3013_v59, 0.0  ;;  %11728 = vmatmul.msk.f32.gmra.mxu2 %vm21_vm1, %v14116_v19 }
 0x2dc   :  { %v2805_v6 = vpop.f32.mrf.mxu0 }
 0x2dd   :  { %3046 = vst.msk [vmem:[#allocation3 + $0x130] sm:$0xff] %vm109_vm4, %v3029_v37  ;;  %v2849_v45 = vadd.f32 %v2805_v6, %v14119_v22  ;;  %v2957_v9 = vpop.f32.mrf.mxu1  ;;  %v14372_v22 = vld [vmem:[#allocation2 + $0x289] sm:$0xff] }
 0x2de   :  { %v3167_v27 = vpop.f32.mrf.mxu2 }
 0x2df   :  { %11746 = vmatmul.msk.f32.gmra.mxu3 %vm21_vm1, %v3777_v57  ;;  %v2998_v5 = vadd.f32 %v2954_v32, %v2849_v45  ;;  %11693 = vmatmul.msk.f32.gmra.mxu0 %vm21_vm1, %v3776_v33 }
 0x2e0   :  { %11712 = vmatmul.msk.f32.gmra.mxu1 %vm21_vm1, %v14157_v18 }
 0x2e1   :  { %v3014_v51 = vadd.f32 %v14343_v38, %v2998_v5 }
 0x2e2   :  { %v3283_v25 = vpop.f32.mrf.mxu3 }
 0x2e3   :  { %v14368_v19 = vadd.f32 %v3283_v25, %v3167_v27  ;;  %v3030_v44 = vmax.f32 %v3014_v51, 0.0  ;;  %11729 = vmatmul.msk.f32.gmra.mxu2 %vm21_vm1, %v14133_v23 }
 0x2e4   :  { %v2808_v36 = vpop.f32.mrf.mxu0 }
 0x2e5   :  { %3047 = vst.msk [vmem:[#allocation3 + $0x148] sm:$0xff] %vm109_vm4, %v3030_v44  ;;  %v2850_v13 = vadd.f32 %v2808_v36, %v14136_v17  ;;  %v2960_v56 = vpop.f32.mrf.mxu1  ;;  %v14386_v17 = vld [vmem:[#allocation2 + $0x291] sm:$0xff] }
 0x2e6   :  { %v3170_v33 = vpop.f32.mrf.mxu2 }
 0x2e7   :  { %11747 = vmatmul.msk.f32.gmra.mxu3 %vm21_vm1, %v14372_v22  ;;  %v2999_v18 = vadd.f32 %v2957_v9, %v2850_v13  ;;  %11694 = vmatmul.msk.f32.gmra.mxu0 %vm21_vm1, %v3777_v57 }
 0x2e8   :  { %11713 = vmatmul.msk.f32.gmra.mxu1 %vm21_vm1, %v14174_v49 }
 0x2e9   :  { %v3015_v23 = vadd.f32 %v14343_v38, %v2999_v18 }
 0x2ea   :  { %v3286_v50 = vpop.f32.mrf.mxu3 }
 0x2eb   :  { %v14382_v39 = vadd.f32 %v3286_v50, %v3170_v33  ;;  %v3031_v15 = vmax.f32 %v3015_v23, 0.0  ;;  %11730 = vmatmul.msk.f32.gmra.mxu2 %vm21_vm1, %v14150_v55 }
 0x2ec   :  { %v2811_v32 = vpop.f32.mrf.mxu0 }
 0x2ed   :  { %3048 = vst.msk [vmem:[#allocation3 + $0x150] sm:$0xff] %vm109_vm4, %v3031_v15  ;;  %v2851_v53 = vadd.f32 %v2811_v32, %v14153_v63  ;;  %v2963_v16 = vpop.f32.mrf.mxu1  ;;  %v14401_v63 = vld [vmem:[#allocation2 + $0x2a9] sm:$0xff] }
 0x2ee   :  { %v3173_v59 = vpop.f32.mrf.mxu2 }
 0x2ef   :  { %11748 = vmatmul.msk.f32.gmra.mxu3 %vm21_vm1, %v14386_v17  ;;  %v3000_v49 = vadd.f32 %v2960_v56, %v2851_v53  ;;  %11695 = vmatmul.msk.f32.gmra.mxu0 %vm21_vm1, %v14372_v22 }
 0x2f0   :  { %11714 = vmatmul.msk.f32.gmra.mxu1 %vm21_vm1, %v14191_v28 }
 0x2f1   :  { %v3016_v55 = vadd.f32 %v14343_v38, %v3000_v49 }
 0x2f2   :  { %v3289_v24 = vpop.f32.mrf.mxu3 }
 0x2f3   :  { %v14397_v37 = vadd.f32 %v3289_v24, %v3173_v59  ;;  %v3032_v57 = vmax.f32 %v3016_v55, 0.0  ;;  %11731 = vmatmul.msk.f32.gmra.mxu2 %vm21_vm1, %v14167_v43 }
 0x2f4   :  { %v2814_v6 = vpop.f32.mrf.mxu0 }
 0x2f5   :  { %3049 = vst.msk [vmem:[#allocation3 + $0x168] sm:$0xff] %vm109_vm4, %v3032_v57  ;;  %v2852_v45 = vadd.f32 %v2814_v6, %v14170_v61  ;;  %v2966_v9 = vpop.f32.mrf.mxu1  ;;  %v14416_v61 = vld [vmem:[#allocation2 + $0x2b1] sm:$0xff] }
 0x2f6   :  { %v3176_v27 = vpop.f32.mrf.mxu2 }
 0x2f7   :  { %11749 = vmatmul.msk.f32.gmra.mxu3 %vm21_vm1, %v14401_v63  ;;  %v3001_v28 = vadd.f32 %v2963_v16, %v2852_v45  ;;  %11696 = vmatmul.msk.f32.gmra.mxu0 %vm21_vm1, %v14386_v17 }
 0x2f8   :  { %11715 = vmatmul.msk.f32.gmra.mxu1 %vm21_vm1, %v14208_v8 }
 0x2f9   :  { %v3017_v43 = vadd.f32 %v14343_v38, %v3001_v28 }
 0x2fa   :  { %v3292_v5 = vpop.f32.mrf.mxu3 }
 0x2fb   :  { %v14412_v51 = vadd.f32 %v3292_v5, %v3176_v27  ;;  %v3033_v25 = vmax.f32 %v3017_v43, 0.0  ;;  %11732 = vmatmul.msk.f32.gmra.mxu2 %vm21_vm1, %v14184_v30 }
 0x2fc   :  { %v2817_v44 = vpop.f32.mrf.mxu0 }
 0x2fd   :  { %3050 = vst.msk [vmem:[#allocation3 + $0x170] sm:$0xff] %vm109_vm4, %v3033_v25  ;;  %v2853_v36 = vadd.f32 %v2817_v44, %v14187_v41  ;;  %v2969_v13 = vpop.f32.mrf.mxu1  ;;  %v14431_v41 = vld [vmem:[#allocation2 + $0x2c9] sm:$0xff] }
 0x2fe   :  { %v3179_v56 = vpop.f32.mrf.mxu2 }
 0x2ff   :  { %11750 = vmatmul.msk.f32.gmra.mxu3 %vm21_vm1, %v14416_v61  ;;  %v3002_v8 = vadd.f32 %v2966_v9, %v2853_v36  ;;  %11697 = vmatmul.msk.f32.gmra.mxu0 %vm21_vm1, %v14401_v63 }
 0x300   :  { %11716 = vmatmul.msk.f32.gmra.mxu1 %vm21_vm1, %v14225_v58 }
 0x301   :  { %v3018_v30 = vadd.f32 %v14343_v38, %v3002_v8 }
 0x302   :  { %v3295_v33 = vpop.f32.mrf.mxu3 }
 0x303   :  { %v14427_v18 = vadd.f32 %v3295_v33, %v3179_v56  ;;  %v3034_v23 = vmax.f32 %v3018_v30, 0.0  ;;  %11733 = vmatmul.msk.f32.gmra.mxu2 %vm21_vm1, %v14201_v54 }
 0x304   :  { %v2820_v50 = vpop.f32.mrf.mxu0 }
 0x305   :  { %3051 = vst.msk [vmem:[#allocation3 + $0x188] sm:$0xff] %vm109_vm4, %v3034_v23  ;;  %v2854_v15 = vadd.f32 %v2820_v50, %v14204_v46  ;;  %v2972_v32 = vpop.f32.mrf.mxu1  ;;  %v14446_v46 = vld [vmem:[#allocation2 + $0x2d1] sm:$0xff] }
 0x306   :  { %v3182_v53 = vpop.f32.mrf.mxu2  ;;  %v244_v23 = vld [vmem:[%s17702_s0 + $0x178] sm:$0xff] }
 0x307   :  { %11751 = vmatmul.msk.f32.gmra.mxu3 %vm21_vm1, %v14431_v41  ;;  %v3003_v58 = vadd.f32 %v2969_v13, %v2854_v15  ;;  %11698 = vmatmul.msk.f32.gmra.mxu0 %vm21_vm1, %v14416_v61  ;;  %309 = vst.msk [vmem:[#allocation2 + $0x350] sm:$0xff] %vm21_vm1, %v244_v23  ;;  %v14561_v23 = vld [vmem:[#allocation2 + $0x331] sm:$0xff] }
 0x308   :  { %11717 = vmatmul.msk.f32.gmra.mxu1 %vm21_vm1, %v14242_v34 }
 0x309   :  { %v3019_v54 = vadd.f32 %v14343_v38, %v3003_v58 }
 0x30a   :  { %v3298_v16 = vpop.f32.mrf.mxu3 }
 0x30b   :  { %v14442_v59 = vadd.f32 %v3298_v16, %v3182_v53  ;;  %v3035_v49 = vmax.f32 %v3019_v54, 0.0  ;;  %11734 = vmatmul.msk.f32.gmra.mxu2 %vm21_vm1, %v14218_v26  ;;  %v14499_v53 = vld [vmem:[#allocation2 + $0x309] sm:$0xff] }
 0x30c   :  { %v2823_v55 = vpop.f32.mrf.mxu0 }
 0x30d   :  { %3052 = vst.msk [vmem:[#allocation3 + $0x190] sm:$0xff] %vm109_vm4, %v3035_v49  ;;  %v2855_v24 = vadd.f32 %v2823_v55, %v14221_v29  ;;  %v2975_v57 = vpop.f32.mrf.mxu1  ;;  %v14461_v29 = vld [vmem:[#allocation2 + $0x2e9] sm:$0xff] }
 0x30e   :  { %v3185_v6 = vpop.f32.mrf.mxu2 }
 0x30f   :  { %11752 = vmatmul.msk.f32.gmra.mxu3 %vm21_vm1, %v14446_v46  ;;  %v3004_v34 = vadd.f32 %v2972_v32, %v2855_v24  ;;  %11699 = vmatmul.msk.f32.gmra.mxu0 %vm21_vm1, %v14431_v41 }
 0x310   :  { %11718 = vmatmul.msk.f32.gmra.mxu1 %vm21_vm1, %v14260_v47 }
 0x311   :  { %v3020_v26 = vadd.f32 %v14343_v38, %v3004_v34 }
 0x312   :  { %v3301_v45 = vpop.f32.mrf.mxu3 }
 0x313   :  { %v14457_v9 = vadd.f32 %v3301_v45, %v3185_v6  ;;  %v3036_v27 = vmax.f32 %v3020_v26, 0.0  ;;  %11735 = vmatmul.msk.f32.gmra.mxu2 %vm21_vm1, %v14235_v21 }
 0x314   :  { %v2826_v28 = vpop.f32.mrf.mxu0 }
 0x315   :  { %3053 = vst.msk [vmem:[#allocation3 + $0x1a8] sm:$0xff] %vm109_vm4, %v3036_v27  ;;  %v2856_v43 = vadd.f32 %v2826_v28, %v14238_v31  ;;  %v2978_v5 = vpop.f32.mrf.mxu1  ;;  %v14476_v31 = vld [vmem:[#allocation2 + $0x2f1] sm:$0xff] }
 0x316   :  { %v3188_v25 = vpop.f32.mrf.mxu2 }
 0x317   :  { %11753 = vmatmul.msk.f32.gmra.mxu3 %vm21_vm1, %v14461_v29  ;;  %v3005_v47 = vadd.f32 %v2975_v57, %v2856_v43  ;;  %11700 = vmatmul.msk.f32.gmra.mxu0 %vm21_vm1, %v14446_v46 }
 0x318   :  { %11719 = vmatmul.msk.f32.gmra.mxu1 %vm21_vm1, %v14275_v42  ;;  %v243_v42 = vld [vmem:[%s17702_s0 + $0x170] sm:$0xff] }
 0x319   :  { %v3021_v21 = vadd.f32 %v14343_v38, %v3005_v47  ;;  %308 = vst.msk [vmem:[#allocation2 + $0x348] sm:$0xff] %vm21_vm1, %v243_v42  ;;  %v11850_v42 = vld [vmem:[%s17703_s1 + $0x8] sm:$0x7] }
 0x31a   :  { %v3304_v44 = vpop.f32.mrf.mxu3  ;;  %11851 = vmatpush.msk.msrb.mxu1 %vm414_vm0, %v11850_v42  ;;  %v3927_v42 = vld [vmem:[#allocation2 + $0x28f] sm:$0xff] }
 0x31b   :  { %v14472_v36 = vadd.f32 %v3304_v44, %v3188_v25  ;;  %v3037_v13 = vmax.f32 %v3021_v21, 0.0  ;;  %11736 = vmatmul.msk.f32.gmra.mxu2 %vm21_vm1, %v14252_v10 }
 0x31c   :  { %v2829_v56 = vpop.f32.mrf.mxu0 }
 0x31d   :  { %3054 = vst.msk [vmem:[#allocation3 + $0x1b0] sm:$0xff] %vm109_vm4, %v3037_v13  ;;  %v2857_v8 = vadd.f32 %v2829_v56, %v14256_v20  ;;  %v2981_v30 = vpop.f32.mrf.mxu1  ;;  %v4439_v13 = vld [vmem:[%s17703_s1] sm:$0x7] }
 0x31e   :  { %v3191_v33 = vpop.f32.mrf.mxu2  ;;  %11833 = vmatpush.msk.msrb.mxu0 %vm414_vm0, %v4439_v13  ;;  %v4076_v13 = vld [vmem:[#allocation2 + $0x290] sm:$0xff] }
 0x31f   :  { %11754 = vmatmul.msk.f32.gmra.mxu3 %vm21_vm1, %v14476_v31  ;;  %v3006_v10 = vadd.f32 %v2978_v5, %v2857_v8  ;;  %11701 = vmatmul.msk.f32.gmra.mxu0 %vm21_vm1, %v14461_v29 }
 0x320   :  { %11720 = vmatmul.msk.f32.gmra.mxu1 %vm21_vm1, %v14304_v62  ;;  %v14533_v21 = vld [vmem:[#allocation2 + $0x347] sm:$0xff] }
 0x321   :  { %v3022_v20 = vadd.f32 %v14343_v38, %v3006_v10 }
 0x322   :  { %v3307_v50 = vpop.f32.mrf.mxu3 }
 0x323   :  { %v14495_v15 = vadd.f32 %v3307_v50, %v3191_v33  ;;  %v3038_v32 = vmax.f32 %v3022_v20, 0.0  ;;  %11737 = vmatmul.msk.f32.gmra.mxu2 %vm21_vm1, %v14267_v14 }
 0x324   :  { %v2832_v58 = vpop.f32.mrf.mxu0 }
 0x325   :  { %3055 = vst.msk [vmem:[#allocation3 + $0x1c8] sm:$0xff] %vm109_vm4, %v3038_v32  ;;  %v2858_v54 = vadd.f32 %v2832_v58, %v14271_v11  ;;  %v2984_v16 = vpop.f32.mrf.mxu1  ;;  %v14514_v11 = vld [vmem:[#allocation2 + $0x311] sm:$0xff] }
 0x326   :  { %v3194_v62 = vpop.f32.mrf.mxu2  ;;  %v14566_v32 = vld [vmem:[#allocation2 + $0x34f] sm:$0xff] }
 0x327   :  { %11755 = vmatmul.msk.f32.gmra.mxu3 %vm21_vm1, %v14499_v53  ;;  %v3007_v49 = vadd.f32 %v2981_v30, %v2858_v54  ;;  %11702 = vmatmul.msk.f32.gmra.mxu0 %vm21_vm1, %v14476_v31 }
 0x328   :  { %11721 = vmatmul.msk.f32.gmra.mxu1 %vm21_vm1, %v14318_v12 }
 0x329   :  { %v3023_v14 = vadd.f32 %v14343_v38, %v3007_v49 }
 0x32a   :  { %v3310_v55 = vpop.f32.mrf.mxu3 }
 0x32b   :  { %v14510_v24 = vadd.f32 %v3310_v55, %v3194_v62  ;;  %v3039_v57 = vmax.f32 %v3023_v14, 0.0  ;;  %11738 = vmatmul.msk.f32.gmra.mxu2 %vm21_vm1, %v14291_v60  ;;  %v14585_v55 = vld [vmem:[#allocation2 + $0x349] sm:$0xff] }
 0x32c   :  { %v2835_v6 = vpop.f32.mrf.mxu0 }
 0x32d   :  { %3056 = vst.msk [vmem:[#allocation3 + $0x1d0] sm:$0xff] %vm109_vm4, %v3039_v57  ;;  %v2859_v34 = vadd.f32 %v2835_v6, %v14297_v3  ;;  %v2987_v26 = vpop.f32.mrf.mxu1  ;;  %v14529_v3 = vld [vmem:[#allocation2 + $0x329] sm:$0xff] }
 0x32e   :  { %v3197_v45 = vpop.f32.mrf.mxu2 }
 0x32f   :  { %11756 = vmatmul.msk.f32.gmra.mxu3 %vm21_vm1, %v14514_v11  ;;  %v3008_v12 = vadd.f32 %v2984_v16, %v2859_v34  ;;  %11703 = vmatmul.msk.f32.gmra.mxu0 %vm21_vm1, %v14499_v53  ;;  %v14576_v16 = vld [vmem:[#allocation2 + $0x348] sm:$0xff] }
 0x330   :  { %11722 = vmatmul.msk.f32.gmra.mxu1 %vm21_vm1, %v14332_v52 }
 0x331   :  { %v3024_v60 = vadd.f32 %v14343_v38, %v3008_v12  ;;  %v246_v12 = vld [vmem:[%s17702_s0 + $0x188] sm:$0xff] }
 0x332   :  { %v3313_v27 = vpop.f32.mrf.mxu3  ;;  %311 = vst.msk [vmem:[#allocation2 + $0x370] sm:$0xff] %vm21_vm1, %v246_v12 }
 0x333   :  { %v14525_v28 = vadd.f32 %v3313_v27, %v3197_v45  ;;  %v3040_v43 = vmax.f32 %v3024_v60, 0.0  ;;  %11739 = vmatmul.msk.f32.gmra.mxu2 %vm21_vm1, %v14311_v1  ;;  %v11868_v1 = vld [vmem:[%s17703_s1 + $0xc] sm:$0x7]  ;;  %v14597_v27 = vld [vmem:[#allocation2 + $0x350] sm:$0xff] }
 0x334   :  { %v2838_v5 = vpop.f32.mrf.mxu0  ;;  %11869 = vmatpush.msk.msrb.mxu2 %vm414_vm0, %v11868_v1 }
 0x335   :  { %3057 = vst.msk [vmem:[#allocation3 + $0x1e8] sm:$0xff] %vm109_vm4, %v3040_v43  ;;  %v2860_v25 = vadd.f32 %v2838_v5, %v14314_v48  ;;  %v2990_v47 = vpop.f32.mrf.mxu1  ;;  %v11886_v48 = vld [vmem:[%s17703_s1 + $0x10] sm:$0x7] }
 0x336   :  { %v3200_v52 = vpop.f32.mrf.mxu2  ;;  %11887 = vmatpush.msk.msrb.mxu3 %vm414_vm0, %v11886_v48 }
 0x337   :  { %11757 = vmatmul.msk.f32.gmra.mxu3 %vm21_vm1, %v14529_v3  ;;  %v3009_v44 = vadd.f32 %v2987_v26, %v2860_v25  ;;  %11704 = vmatmul.msk.f32.gmra.mxu0 %vm21_vm1, %v14514_v11  ;;  %v4075_v26 = vld [vmem:[#allocation2 + $0x288] sm:$0xff] }
 0x338   :  { %11723 = vmatmul.msk.f32.gmra.mxu1 %vm21_vm1, %v14533_v21 }
 0x339   :  { %v3025_v56 = vadd.f32 %v14343_v38, %v3009_v44 }
 0x33a   :  { %v3316_v8 = vpop.f32.mrf.mxu3 }
 0x33b   :  { %v14554_v30 = vadd.f32 %v3316_v8, %v3200_v52  ;;  %v3041_v33 = vmax.f32 %v3025_v56, 0.0  ;;  %11740 = vmatmul.msk.f32.gmra.mxu2 %vm21_vm1, %v14324_v2  ;;  %v245_v2 = vld [vmem:[%s17702_s0 + $0x180] sm:$0xff] }
 0x33c   :  { %v2841_v10 = vpop.f32.mrf.mxu0  ;;  %310 = vst.msk [vmem:[#allocation2 + $0x368] sm:$0xff] %vm21_vm1, %v245_v2 }
 0x33d   :  { %3058 = vst.msk [vmem:[#allocation3 + $0x1f0] sm:$0xff] %vm109_vm4, %v3041_v33  ;;  %v2861_v20 = vadd.f32 %v2841_v10, %v14328_v35  ;;  %v2993_v50 = vpop.f32.mrf.mxu1 }
 0x33e   :  { %v3203_v58 = vpop.f32.mrf.mxu2 }
 0x33f   :  { %11758 = vmatmul.msk.f32.gmra.mxu3 %vm21_vm1, %v14561_v23  ;;  %v3010_v54 = vadd.f32 %v2990_v47, %v2861_v20  ;;  %11705 = vmatmul.msk.f32.gmra.mxu0 %vm21_vm1, %v14529_v3  ;;  %v14605_v47 = vld [vmem:[#allocation2 + $0x351] sm:$0xff] }
 0x340   :  { %11724 = vmatmul.msk.f32.gmra.mxu1 %vm21_vm1, %v14566_v32 }
 0x341   :  { %v3026_v35 = vadd.f32 %v14343_v38, %v3010_v54 }
 0x342   :  { %v3319_v62 = vpop.f32.mrf.mxu3 }
 0x343   :  { %v14581_v49 = vadd.f32 %v3319_v62, %v3203_v58  ;;  %v3042_v14 = vmax.f32 %v3026_v35, 0.0  ;;  %11741 = vmatmul.msk.f32.gmra.mxu2 %vm21_vm1, %v14576_v16  ;;  %v3928_v62 = vld [vmem:[#allocation2 + $0x2a7] sm:$0xff] }
 0x344   :  { %v2844_v57 = vpop.f32.mrf.mxu0 }
 0x345   :  { %3059 = vst.msk [vmem:[#allocation3 + $0x208] sm:$0xff] %vm109_vm4, %v3042_v14  ;;  %v2862_v6 = vadd.f32 %v2844_v57, %v14346_v0  ;;  %v3563_v34 = vpop.f32.mrf.mxu1 }
 0x346   :  { %v3206_v45 = vpop.f32.mrf.mxu2 }
 0x347   :  { %11759 = vmatmul.msk.f32.gmra.mxu3 %vm21_vm1, %v14585_v55  ;;  %v3011_v60 = vadd.f32 %v2993_v50, %v2862_v6  ;;  %11706 = vmatmul.msk.f32.gmra.mxu0 %vm21_vm1, %v14561_v23  ;;  %v4077_v50 = vld [vmem:[#allocation2 + $0x2a8] sm:$0xff]  ;;  %v4078_v6 = vld [vmem:[#allocation2 + $0x2b0] sm:$0xff] }
 0x348   :  { %11781 = vmatmul.msk.f32.vlgmr.msra.gmra.mxu1 %vm21_vm1, %v4075_v26  ;;  %v249_v26 = vld [vmem:[%s17702_s0 + $0x1a0] sm:$0xff] }
 0x349   :  { %v3027_v0 = vadd.f32 %v14343_v38, %v3011_v60  ;;  %v247_v38 = vld [vmem:[%s17702_s0 + $0x190] sm:$0xff]  ;;  %314 = vst.msk [vmem:[#allocation2 + $0x3a8] sm:$0xff] %vm21_vm1, %v249_v26  ;;  %v14648_v60 = vld [vmem:[#allocation2 + $0x368] sm:$0xff] }
 0x34a   :  { %v3322_v43 = vpop.f32.mrf.mxu3  ;;  %312 = vst.msk [vmem:[#allocation2 + $0x388] sm:$0xff] %vm21_vm1, %v247_v38 }
 0x34b   :  { %v14601_v5 = vadd.f32 %v3322_v43, %v3206_v45  ;;  %v3043_v25 = vmax.f32 %v3027_v0, 0.0  ;;  %11742 = vmatmul.msk.f32.gmra.mxu2 %vm21_vm1, %v14597_v27  ;;  %v3929_v43 = vld [vmem:[#allocation2 + $0x2af] sm:$0xff] }
 0x34c   :  { %v3413_v52 = vpop.f32.mrf.mxu0 }
 0x34d   :  { %3060 = vst.msk [vmem:[#allocation3 + $0x210] sm:$0xff] %vm109_vm4, %v3043_v25  ;;  %v3461_v44 = vadd.f32 %v3413_v52, %v14357_v40  ;;  %v3566_v1 = vpop.f32.mrf.mxu1 }
 0x34e   :  { %v3209_v48 = vpop.f32.mrf.mxu2 }
 0x34f   :  { %11760 = vmatmul.msk.f32.gmra.mxu3 %vm21_vm1, %v14605_v47  ;;  %v3611_v56 = vadd.f32 %v3563_v34, %v3461_v44  ;;  %11763 = vmatmul.msk.f32.vlgmr.msra.gmra.mxu0 %vm21_vm1, %v14140_v7  ;;  %v248_v7 = vld [vmem:[%s17702_s0 + $0x198] sm:$0xff]  ;;  %v4079_v44 = vld [vmem:[#allocation2 + $0x2c8] sm:$0xff] }
 0x350   :  { %11782 = vmatmul.msk.f32.gmra.mxu1 %vm21_vm1, %v4076_v13  ;;  %313 = vst.msk [vmem:[#allocation2 + $0x390] sm:$0xff] %vm21_vm1, %v248_v7  ;;  %v250_v13 = vld [vmem:[%s17702_s0 + $0x1a8] sm:$0xff] }
 0x351   :  { %315 = vst.msk [vmem:[#allocation2 + $0x3b0] sm:$0xff] %vm21_vm1, %v250_v13 }
 0x352   :  { %v3325_v8 = vpop.f32.mrf.mxu3 }
 0x353   :  { %v14618_v40 = vadd.f32 %v3325_v8, %v3209_v48  ;;  %11799 = vmatmul.msk.f32.vlgmr.msra.gmra.mxu2 %vm21_vm1, %v14372_v22 }
 0x354   :  { %v3416_v33 = vpop.f32.mrf.mxu0 }
 0x355   :  { %v3462_v10 = vadd.f32 %v3416_v33, %v14368_v19  ;;  %v3569_v20 = vpop.f32.mrf.mxu1  ;;  %v3930_v33 = vld [vmem:[#allocation2 + $0x2c7] sm:$0xff] }
 0x356   :  { %v3712_v58 = vpop.f32.mrf.mxu2 }
 0x357   :  { %11817 = vmatmul.msk.f32.vlgmr.msra.gmra.mxu3 %vm21_vm1, %v14576_v16  ;;  %v3760_v2 = vadd.f32 %v3712_v58, %v3611_v56  ;;  %v3612_v54 = vadd.f32 %v3566_v1, %v3462_v10  ;;  %11764 = vmatmul.msk.f32.gmra.mxu0 %vm21_vm1, %v3927_v42  ;;  %v14663_v56 = vld [vmem:[#allocation2 + $0x370] sm:$0xff] }
 0x358   :  { %11783 = vmatmul.msk.f32.gmra.mxu1 %vm21_vm1, %v4077_v50  ;;  %v251_v58 = vld [vmem:[%s17702_s0 + $0x1b0] sm:$0xff] }
 0x359   :  { %316 = vst.msk [vmem:[#allocation2 + $0x3c8] sm:$0xff] %vm21_vm1, %v251_v58 }
 0x35a   :  { %v3861_v22 = vpop.f32.mrf.mxu3 }
 0x35b   :  { %v14631_v19 = vadd.f32 %v3861_v22, %v3760_v2  ;;  %11800 = vmatmul.msk.f32.gmra.mxu2 %vm21_vm1, %v14386_v17 }
 0x35c   :  { %v3419_v35 = vpop.f32.mrf.mxu0 }
 0x35d   :  { %v3463_v14 = vadd.f32 %v3419_v35, %v14382_v39  ;;  %v3572_v57 = vpop.f32.mrf.mxu1  ;;  %v3931_v35 = vld [vmem:[#allocation2 + $0x2cf] sm:$0xff] }
 0x35e   :  { %v3715_v34 = vpop.f32.mrf.mxu2 }
 0x35f   :  { %11818 = vmatmul.msk.f32.gmra.mxu3 %vm21_vm1, %v14597_v27  ;;  %v3761_v45 = vadd.f32 %v3715_v34, %v3612_v54  ;;  %v3613_v12 = vadd.f32 %v3569_v20, %v3463_v14  ;;  %11765 = vmatmul.msk.f32.gmra.mxu0 %vm21_vm1, %v3928_v62  ;;  %v4080_v20 = vld [vmem:[#allocation2 + $0x2d0] sm:$0xff]  ;;  %v14678_v54 = vld [vmem:[#allocation2 + $0x388] sm:$0xff]  ;;  %v252_v34 = vld [vmem:[%s17702_s0 + $0x1b8] sm:$0xff] }
 0x360   :  { %11784 = vmatmul.msk.f32.gmra.mxu1 %vm21_vm1, %v4078_v6  ;;  %317 = vst.msk [vmem:[#allocation2 + $0x3d0] sm:$0xff] %vm21_vm1, %v252_v34 }
 0x362   :  { %v3864_v17 = vpop.f32.mrf.mxu3 }
 0x363   :  { %v14644_v39 = vadd.f32 %v3864_v17, %v3761_v45  ;;  %11801 = vmatmul.msk.f32.gmra.mxu2 %vm21_vm1, %v14401_v63 }
 0x364   :  { %v3422_v0 = vpop.f32.mrf.mxu0 }
 0x365   :  { %v3464_v25 = vadd.f32 %v3422_v0, %v14397_v37  ;;  %v3575_v52 = vpop.f32.mrf.mxu1  ;;  %v3932_v0 = vld [vmem:[#allocation2 + $0x2e7] sm:$0xff] }
 0x366   :  { %v3718_v1 = vpop.f32.mrf.mxu2 }
 0x367   :  { %11819 = vmatmul.msk.f32.gmra.mxu3 %vm21_vm1, %v14648_v60  ;;  %v3762_v48 = vadd.f32 %v3718_v1, %v3613_v12  ;;  %v3614_v38 = vadd.f32 %v3572_v57, %v3464_v25  ;;  %11766 = vmatmul.msk.f32.gmra.mxu0 %vm21_vm1, %v3929_v43  ;;  %v4081_v57 = vld [vmem:[#allocation2 + $0x2e8] sm:$0xff]  ;;  %v14693_v12 = vld [vmem:[#allocation2 + $0x390] sm:$0xff]  ;;  %v253_v1 = vld [vmem:[%s17702_s0 + $0x1c0] sm:$0xff] }
 0x368   :  { %11785 = vmatmul.msk.f32.gmra.mxu1 %vm21_vm1, %v4079_v44  ;;  %318 = vst.msk [vmem:[#allocation2 + $0x3e8] sm:$0xff] %vm21_vm1, %v253_v1 }
 0x36a   :  { %v3867_v63 = vpop.f32.mrf.mxu3 }
 0x36b   :  { %v14659_v37 = vadd.f32 %v3867_v63, %v3762_v48  ;;  %11802 = vmatmul.msk.f32.gmra.mxu2 %vm21_vm1, %v14416_v61 }
 0x36c   :  { %v3425_v8 = vpop.f32.mrf.mxu0 }
 0x36d   :  { %v3465_v42 = vadd.f32 %v3425_v8, %v14412_v51  ;;  %v3578_v10 = vpop.f32.mrf.mxu1  ;;  %v3933_v8 = vld [vmem:[#allocation2 + $0x2ef] sm:$0xff] }
 0x36e   :  { %v3721_v50 = vpop.f32.mrf.mxu2 }
 0x36f   :  { %11820 = vmatmul.msk.f32.gmra.mxu3 %vm21_vm1, %v14663_v56  ;;  %v3763_v7 = vadd.f32 %v3721_v50, %v3614_v38  ;;  %v3615_v2 = vadd.f32 %v3575_v52, %v3465_v42  ;;  %11767 = vmatmul.msk.f32.gmra.mxu0 %vm21_vm1, %v3930_v33  ;;  %v4082_v52 = vld [vmem:[#allocation2 + $0x2f0] sm:$0xff]  ;;  %v14708_v38 = vld [vmem:[#allocation2 + $0x3a8] sm:$0xff] }
 0x370   :  { %11786 = vmatmul.msk.f32.gmra.mxu1 %vm21_vm1, %v4080_v20  ;;  %v254_v50 = vld [vmem:[%s17702_s0 + $0x1c8] sm:$0xff] }
 0x371   :  { %319 = vst.msk [vmem:[#allocation2 + $0x3f0] sm:$0xff] %vm21_vm1, %v254_v50 }
 0x372   :  { %v3870_v61 = vpop.f32.mrf.mxu3 }
 0x373   :  { %v14674_v51 = vadd.f32 %v3870_v61, %v3763_v7  ;;  %11803 = vmatmul.msk.f32.gmra.mxu2 %vm21_vm1, %v14431_v41 }
 0x374   :  { %v3428_v22 = vpop.f32.mrf.mxu0 }
 0x375   :  { %v3466_v62 = vadd.f32 %v3428_v22, %v14427_v18  ;;  %v3581_v14 = vpop.f32.mrf.mxu1  ;;  %v3934_v22 = vld [vmem:[#allocation2 + $0x307] sm:$0xff] }
 0x376   :  { %v3724_v6 = vpop.f32.mrf.mxu2 }
 0x377   :  { %11821 = vmatmul.msk.f32.gmra.mxu3 %vm21_vm1, %v14678_v54  ;;  %v3764_v26 = vadd.f32 %v3724_v6, %v3615_v2  ;;  %v3616_v45 = vadd.f32 %v3578_v10, %v3466_v62  ;;  %11768 = vmatmul.msk.f32.gmra.mxu0 %vm21_vm1, %v3931_v35  ;;  %v4083_v10 = vld [vmem:[#allocation2 + $0x308] sm:$0xff]  ;;  %v14723_v2 = vld [vmem:[#allocation2 + $0x3b0] sm:$0xff] }
 0x378   :  { %11787 = vmatmul.msk.f32.gmra.mxu1 %vm21_vm1, %v4081_v57  ;;  %v255_v6 = vld [vmem:[%s17702_s0 + $0x1d0] sm:$0xff] }
 0x379   :  { %320 = vst.msk [vmem:[#allocation2 + $0x408] sm:$0xff] %vm21_vm1, %v255_v6 }
 0x37a   :  { %v3873_v41 = vpop.f32.mrf.mxu3 }
 0x37b   :  { %v14689_v18 = vadd.f32 %v3873_v41, %v3764_v26  ;;  %11804 = vmatmul.msk.f32.gmra.mxu2 %vm21_vm1, %v14446_v46 }
 0x37c   :  { %v3431_v17 = vpop.f32.mrf.mxu0 }
 0x37d   :  { %v3467_v43 = vadd.f32 %v3431_v17, %v14442_v59  ;;  %v3584_v25 = vpop.f32.mrf.mxu1  ;;  %v3935_v17 = vld [vmem:[#allocation2 + $0x30f] sm:$0xff] }
 0x37e   :  { %v3727_v44 = vpop.f32.mrf.mxu2 }
 0x37f   :  { %11822 = vmatmul.msk.f32.gmra.mxu3 %vm21_vm1, %v14693_v12  ;;  %v3765_v13 = vadd.f32 %v3727_v44, %v3616_v45  ;;  %v3617_v48 = vadd.f32 %v3581_v14, %v3467_v43  ;;  %11769 = vmatmul.msk.f32.gmra.mxu0 %vm21_vm1, %v3932_v0  ;;  %v4084_v14 = vld [vmem:[#allocation2 + $0x310] sm:$0xff]  ;;  %v14738_v45 = vld [vmem:[#allocation2 + $0x3c8] sm:$0xff]  ;;  %v256_v44 = vld [vmem:[%s17702_s0 + $0x1d8] sm:$0xff] }
 0x380   :  { %11788 = vmatmul.msk.f32.gmra.mxu1 %vm21_vm1, %v4082_v52  ;;  %321 = vst.msk [vmem:[#allocation2 + $0x410] sm:$0xff] %vm21_vm1, %v256_v44 }
 0x382   :  { %v3876_v46 = vpop.f32.mrf.mxu3 }
 0x383   :  { %v14704_v59 = vadd.f32 %v3876_v46, %v3765_v13  ;;  %11805 = vmatmul.msk.f32.gmra.mxu2 %vm21_vm1, %v14461_v29 }
 0x384   :  { %v3434_v63 = vpop.f32.mrf.mxu0 }
 0x385   :  { %v3468_v33 = vadd.f32 %v3434_v63, %v14457_v9  ;;  %v3587_v42 = vpop.f32.mrf.mxu1  ;;  %v3936_v63 = vld [vmem:[#allocation2 + $0x327] sm:$0xff] }
 0x386   :  { %v3730_v20 = vpop.f32.mrf.mxu2 }
 0x387   :  { %11823 = vmatmul.msk.f32.gmra.mxu3 %vm21_vm1, %v14708_v38  ;;  %v3766_v58 = vadd.f32 %v3730_v20, %v3617_v48  ;;  %v3618_v7 = vadd.f32 %v3584_v25, %v3468_v33  ;;  %11770 = vmatmul.msk.f32.gmra.mxu0 %vm21_vm1, %v3933_v8  ;;  %v4085_v25 = vld [vmem:[#allocation2 + $0x328] sm:$0xff]  ;;  %v14753_v48 = vld [vmem:[#allocation2 + $0x3d0] sm:$0xff]  ;;  %v257_v20 = vld [vmem:[%s17702_s0 + $0x1e0] sm:$0xff] }
 0x388   :  { %11789 = vmatmul.msk.f32.gmra.mxu1 %vm21_vm1, %v4083_v10  ;;  %322 = vst.msk [vmem:[#allocation2 + $0x428] sm:$0xff] %vm21_vm1, %v257_v20 }
 0x38a   :  { %v3879_v29 = vpop.f32.mrf.mxu3 }
 0x38b   :  { %v14719_v9 = vadd.f32 %v3879_v29, %v3766_v58  ;;  %11806 = vmatmul.msk.f32.gmra.mxu2 %vm21_vm1, %v14476_v31 }
 0x38c   :  { %v3437_v61 = vpop.f32.mrf.mxu0 }
 0x38d   :  { %v3469_v35 = vadd.f32 %v3437_v61, %v14472_v36  ;;  %v3590_v62 = vpop.f32.mrf.mxu1  ;;  %v3937_v61 = vld [vmem:[#allocation2 + $0x32f] sm:$0xff] }
 0x38e   :  { %v3733_v57 = vpop.f32.mrf.mxu2 }
 0x38f   :  { %11824 = vmatmul.msk.f32.gmra.mxu3 %vm21_vm1, %v14723_v2  ;;  %v3767_v34 = vadd.f32 %v3733_v57, %v3618_v7  ;;  %v3619_v26 = vadd.f32 %v3587_v42, %v3469_v35  ;;  %11771 = vmatmul.msk.f32.gmra.mxu0 %vm21_vm1, %v3934_v22  ;;  %v4086_v42 = vld [vmem:[#allocation2 + $0x330] sm:$0xff]  ;;  %v14768_v7 = vld [vmem:[#allocation2 + $0x3e8] sm:$0xff] }
 0x390   :  { %11790 = vmatmul.msk.f32.gmra.mxu1 %vm21_vm1, %v4084_v14  ;;  %v258_v14 = vld [vmem:[%s17702_s0 + $0x1e8] sm:$0xff] }
 0x391   :  { %323 = vst.msk [vmem:[#allocation2 + $0x430] sm:$0xff] %vm21_vm1, %v258_v14 }
 0x392   :  { %v3882_v31 = vpop.f32.mrf.mxu3 }
 0x393   :  { %v14734_v36 = vadd.f32 %v3882_v31, %v3767_v34  ;;  %11807 = vmatmul.msk.f32.gmra.mxu2 %vm21_vm1, %v14499_v53  ;;  %v14784_v34 = vld [vmem:[#allocation2 + $0x3f0] sm:$0xff] }
 0x394   :  { %v3440_v41 = vpop.f32.mrf.mxu0 }
 0x395   :  { %v3470_v0 = vadd.f32 %v3440_v41, %v14495_v15  ;;  %v3593_v43 = vpop.f32.mrf.mxu1 }
 0x396   :  { %v3736_v52 = vpop.f32.mrf.mxu2 }
 0x397   :  { %11825 = vmatmul.msk.f32.gmra.mxu3 %vm21_vm1, %v14738_v45  ;;  %v3768_v1 = vadd.f32 %v3736_v52, %v3619_v26  ;;  %v3620_v13 = vadd.f32 %v3590_v62, %v3470_v0  ;;  %11772 = vmatmul.msk.f32.gmra.mxu0 %vm21_vm1, %v3935_v17 }
 0x398   :  { %11791 = vmatmul.msk.f32.gmra.mxu1 %vm21_vm1, %v4085_v25 }
 0x39a   :  { %v3885_v53 = vpop.f32.mrf.mxu3 }
 0x39b   :  { %v14749_v15 = vadd.f32 %v3885_v53, %v3768_v1  ;;  %11808 = vmatmul.msk.f32.gmra.mxu2 %vm21_vm1, %v14514_v11 }
 0x39c   :  { %v3443_v46 = vpop.f32.mrf.mxu0 }
 0x39d   :  { %v3471_v8 = vadd.f32 %v3443_v46, %v14510_v24  ;;  %v3596_v33 = vpop.f32.mrf.mxu1  ;;  %v11904_v46 = vld [vmem:[%s17703_s1 + $0x14] sm:$0x7] }
 0x39e   :  { %v3739_v10 = vpop.f32.mrf.mxu2  ;;  %11905 = vmatpush.msk.msra.mxu0 %vm414_vm0, %v11904_v46 }
 0x39f   :  { %11826 = vmatmul.msk.f32.gmra.mxu3 %vm21_vm1, %v14753_v48  ;;  %v3769_v50 = vadd.f32 %v3739_v10, %v3620_v13  ;;  %v3621_v58 = vadd.f32 %v3593_v43, %v3471_v8  ;;  %11773 = vmatmul.msk.f32.gmra.mxu0 %vm21_vm1, %v3936_v63  ;;  %v14824_v10 = vld [vmem:[#allocation2 + $0x367] sm:$0xff] }
 0x3a0   :  { %11792 = vmatmul.msk.f32.gmra.mxu1 %vm21_vm1, %v4086_v42 }
 0x3a2   :  { %v3888_v11 = vpop.f32.mrf.mxu3 }
 0x3a3   :  { %v14764_v24 = vadd.f32 %v3888_v11, %v3769_v50  ;;  %11809 = vmatmul.msk.f32.gmra.mxu2 %vm21_vm1, %v14529_v3 }
 0x3a4   :  { %v3446_v29 = vpop.f32.mrf.mxu0 }
 0x3a5   :  { %v3472_v22 = vadd.f32 %v3446_v29, %v14525_v28  ;;  %v3599_v35 = vpop.f32.mrf.mxu1 }
 0x3a6   :  { %v3742_v62 = vpop.f32.mrf.mxu2 }
 0x3a7   :  { %11827 = vmatmul.msk.f32.gmra.mxu3 %vm21_vm1, %v14768_v7  ;;  %v3770_v57 = vadd.f32 %v3742_v62, %v3621_v58  ;;  %v3622_v6 = vadd.f32 %v3596_v33, %v3472_v22  ;;  %11774 = vmatmul.msk.f32.gmra.mxu0 %vm21_vm1, %v3937_v61  ;;  %v14822_v33 = vld [vmem:[#allocation2 + $0x410] sm:$0xff]  ;;  %v11922_v58 = vld [vmem:[%s17703_s1 + $0x18] sm:$0x7]  ;;  %v14843_v62 = vld [vmem:[#allocation2 + $0x428] sm:$0xff] }
 0x3a8   :  { %11793 = vmatmul.msk.f32.gmra.mxu1 %vm21_vm1, %v14576_v16  ;;  %v14835_v22 = vld [vmem:[#allocation2 + $0x369] sm:$0xff] }
 0x3a9   :  { %11923 = vmatpush.msk.msra.mxu1 %vm414_vm0, %v11922_v58 }
 0x3aa   :  { %v3891_v3 = vpop.f32.mrf.mxu3 }
 0x3ab   :  { %v14780_v28 = vadd.f32 %v3891_v3, %v3770_v57  ;;  %11810 = vmatmul.msk.f32.gmra.mxu2 %vm21_vm1, %v14561_v23  ;;  %v3941_v57 = vld [vmem:[#allocation2 + $0x36f] sm:$0xff] }
 0x3ac   :  { %v3449_v26 = vpop.f32.mrf.mxu0 }
 0x3ad   :  { %v3473_v31 = vadd.f32 %v3449_v26, %v14554_v30  ;;  %v3602_v41 = vpop.f32.mrf.mxu1  ;;  %v14797_v30 = vld [vmem:[#allocation2 + $0x408] sm:$0xff] }
 0x3ae   :  { %v3745_v17 = vpop.f32.mrf.mxu2 }
 0x3af   :  { %11828 = vmatmul.msk.f32.gmra.mxu3 %vm21_vm1, %v14784_v34  ;;  %v3771_v0 = vadd.f32 %v3745_v17, %v3622_v6  ;;  %v3623_v43 = vadd.f32 %v3599_v35, %v3473_v31  ;;  %11775 = vmatmul.msk.f32.gmra.mxu0 %vm21_vm1, %v14533_v21  ;;  %v14849_v17 = vld [vmem:[#allocation2 + $0x371] sm:$0xff] }
 0x3b0   :  { %11794 = vmatmul.msk.f32.gmra.mxu1 %vm21_vm1, %v14597_v27  ;;  %v11940_v27 = vld [vmem:[%s17703_s1 + $0x1c] sm:$0x7] }
 0x3b1   :  { %11941 = vmatpush.msk.msra.mxu2 %vm414_vm0, %v11940_v27 }
 0x3b2   :  { %v3894_v16 = vpop.f32.mrf.mxu3 }
 0x3b3   :  { %v14793_v23 = vadd.f32 %v3894_v16, %v3771_v0  ;;  %11811 = vmatmul.msk.f32.gmra.mxu2 %vm21_vm1, %v14585_v55 }
 0x3b4   :  { %v3452_v25 = vpop.f32.mrf.mxu0 }
 0x3b5   :  { %v3474_v52 = vadd.f32 %v3452_v25, %v14581_v49  ;;  %v3605_v44 = vpop.f32.mrf.mxu1  ;;  %v11958_v49 = vld [vmem:[%s17703_s1 + $0x20] sm:$0x7] }
 0x3b6   :  { %v3748_v1 = vpop.f32.mrf.mxu2  ;;  %11959 = vmatpush.msk.msra.mxu3 %vm414_vm0, %v11958_v49 }
 0x3b7   :  { %11829 = vmatmul.msk.f32.gmra.mxu3 %vm21_vm1, %v14797_v30  ;;  %v3772_v13 = vadd.f32 %v3748_v1, %v3623_v43  ;;  %v3624_v53 = vadd.f32 %v3602_v41, %v3474_v52  ;;  %11776 = vmatmul.msk.f32.gmra.mxu0 %vm21_vm1, %v14566_v32 }
 0x3b8   :  { %11795 = vmatmul.msk.f32.gmra.mxu1 %vm21_vm1, %v14648_v60 }
 0x3ba   :  { %v3897_v63 = vpop.f32.mrf.mxu3 }
 0x3bb   :  { %v14818_v8 = vadd.f32 %v3897_v63, %v3772_v13  ;;  %11812 = vmatmul.msk.f32.gmra.mxu2 %vm21_vm1, %v14605_v47 }
 0x3bc   :  { %v3455_v42 = vpop.f32.mrf.mxu0 }
 0x3bd   :  { %v3475_v20 = vadd.f32 %v3455_v42, %v14601_v5  ;;  %v3608_v50 = vpop.f32.mrf.mxu1 }
 0x3be   :  { %v3751_v11 = vpop.f32.mrf.mxu2 }
 0x3bf   :  { %11830 = vmatmul.msk.f32.gmra.mxu3 %vm21_vm1, %v14822_v33  ;;  %v3773_v29 = vadd.f32 %v3751_v11, %v3624_v53  ;;  %v3625_v61 = vadd.f32 %v3605_v44, %v3475_v20  ;;  %11777 = vmatmul.msk.f32.gmra.mxu0 %vm21_vm1, %v14824_v10 }
 0x3c0   :  { %11796 = vmatmul.msk.f32.gmra.mxu1 %vm21_vm1, %v14663_v56 }
 0x3c2   :  { %v3900_v5 = vpop.f32.mrf.mxu3 }
 0x3c3   :  { %v14839_v35 = vadd.f32 %v3900_v5, %v3773_v29  ;;  %11813 = vmatmul.msk.f32.gmra.mxu2 %vm21_vm1, %v14835_v22  ;;  %v14891_v29 = vld [vmem:[#allocation2 + $0x387] sm:$0xff] }
 0x3c4   :  { %v3458_v14 = vpop.f32.mrf.mxu0 }
 0x3c5   :  { %v3476_v6 = vadd.f32 %v3458_v14, %v14618_v40  ;;  %v4160_v3 = vpop.f32.mrf.mxu1  ;;  %v14857_v40 = vld [vmem:[#allocation2 + $0x430] sm:$0xff] }
 0x3c6   :  { %v3754_v26 = vpop.f32.mrf.mxu2 }
 0x3c7   :  { %11831 = vmatmul.msk.f32.gmra.mxu3 %vm21_vm1, %v14843_v62  ;;  %v3774_v31 = vadd.f32 %v3754_v26, %v3625_v61  ;;  %v3626_v41 = vadd.f32 %v3608_v50, %v3476_v6  ;;  %11778 = vmatmul.msk.f32.gmra.mxu0 %vm21_vm1, %v3941_v57 }
 0x3c8   :  { %11852 = vmatmul.msk.f32.vlgmr.msrb.gmra.mxu1 %vm21_vm1, %v14585_v55 }
 0x3ca   :  { %v3903_v0 = vpop.f32.mrf.mxu3 }
 0x3cb   :  { %v14853_v43 = vadd.f32 %v3903_v0, %v3774_v31  ;;  %11814 = vmatmul.msk.f32.gmra.mxu2 %vm21_vm1, %v14849_v17 }
 0x3cc   :  { %v4011_v16 = vpop.f32.mrf.mxu0 }
 0x3cd   :  { %v4163_v25 = vpop.f32.mrf.mxu1  ;;  %v4059_v55 = vadd.f32 %v4011_v16, %v14631_v19 }
 0x3ce   :  { %v3757_v52 = vpop.f32.mrf.mxu2 }
 0x3cf   :  { %11832 = vmatmul.msk.f32.gmra.mxu3 %vm21_vm1, %v14857_v40  ;;  %v3775_v44 = vadd.f32 %v3757_v52, %v3626_v41  ;;  %11834 = vmatmul.msk.f32.vlgmr.msrb.gmra.mxu0 %vm21_vm1, %v14533_v21  ;;  %v4208_v27 = vadd.f32 %v4160_v3, %v4059_v55  ;;  %v14879_v21 = vld [vmem:[%s17706_s4] ss:$0 sm:$0xff]  ;;  %v14902_v3 = vld [vmem:[#allocation2 + $0x389] sm:$0xff]  ;;  %v14918_v55 = vld [vmem:[#allocation2 + $0x391] sm:$0xff] }
 0x3d0   :  { %11853 = vmatmul.msk.f32.gmra.mxu1 %vm21_vm1, %v14605_v47 }
 0x3d2   :  { %v3906_v1 = vpop.f32.mrf.mxu3 }
 0x3d3   :  { %v14866_v13 = vadd.f32 %v3906_v1, %v3775_v44  ;;  %11870 = vmatmul.msk.f32.vlgmr.msrb.gmra.mxu2 %vm21_vm1, %v14824_v10 }
 0x3d4   :  { %v4014_v53 = vpop.f32.mrf.mxu0 }
 0x3d5   :  { %v4166_v46 = vpop.f32.mrf.mxu1  ;;  %v4060_v19 = vadd.f32 %v4014_v53, %v14644_v39 }
 0x3d6   :  { %v4309_v49 = vpop.f32.mrf.mxu2 }
 0x3d7   :  { %11888 = vmatmul.msk.f32.vlgmr.msrb.gmra.mxu3 %vm21_vm1, %v14648_v60  ;;  %v4357_v63 = vadd.f32 %v4309_v49, %v4208_v27  ;;  %11835 = vmatmul.msk.f32.gmra.mxu0 %vm21_vm1, %v14566_v32  ;;  %v4209_v32 = vadd.f32 %v4163_v25, %v4060_v19 }
 0x3d8   :  { %11854 = vmatmul.msk.f32.gmra.mxu1 %vm21_vm1, %v14835_v22 }
 0x3d9   :  { %v4373_v47 = vadd.f32 %v14879_v21, %v4357_v63 }
 0x3da   :  { %v14883_v42 = vpop.f32.mrf.mxu3 }
 0x3db   :  { %v4389_v20 = vmax.f32 %v4373_v47, 0.0  ;;  %11871 = vmatmul.msk.f32.gmra.mxu2 %vm21_vm1, %v3941_v57 }
 0x3dc   :  { %v4017_v60 = vpop.f32.mrf.mxu0 }
 0x3dd   :  { %4406 = vst.msk [vmem:[#allocation3 + $0x268] sm:$0xff] %vm109_vm4, %v4389_v20  ;;  %v4169_v50 = vpop.f32.mrf.mxu1  ;;  %v4061_v61 = vadd.f32 %v4017_v60, %v14659_v37  ;;  %v14907_v37 = vld [vmem:[#allocation2 + $0x38f] sm:$0xff] }
 0x3de   :  { %v4312_v58 = vpop.f32.mrf.mxu2  ;;  %v14935_v20 = vld [vmem:[#allocation2 + $0x3a9] sm:$0xff] }
 0x3df   :  { %11889 = vmatmul.msk.f32.gmra.mxu3 %vm21_vm1, %v14663_v56  ;;  %v4358_v11 = vadd.f32 %v4312_v58, %v4209_v32  ;;  %11836 = vmatmul.msk.f32.gmra.mxu0 %vm21_vm1, %v14824_v10  ;;  %v4210_v6 = vadd.f32 %v4166_v46, %v4061_v61 }
 0x3e0   :  { %11855 = vmatmul.msk.f32.gmra.mxu1 %vm21_vm1, %v14849_v17 }
 0x3e1   :  { %v4374_v39 = vadd.f32 %v14879_v21, %v4358_v11 }
 0x3e2   :  { %v14897_v5 = vpop.f32.mrf.mxu3 }
 0x3e3   :  { %v4390_v14 = vmax.f32 %v4374_v39, 0.0  ;;  %11872 = vmatmul.msk.f32.gmra.mxu2 %vm21_vm1, %v14891_v29 }
 0x3e4   :  { %v4020_v56 = vpop.f32.mrf.mxu0 }
 0x3e5   :  { %4407 = vst.msk [vmem:[#allocation3 + $0x270] sm:$0xff] %vm109_vm4, %v4390_v14  ;;  %v4172_v10 = vpop.f32.mrf.mxu1  ;;  %v4062_v0 = vadd.f32 %v4020_v56, %v14674_v51  ;;  %v14924_v51 = vld [vmem:[#allocation2 + $0x3a7] sm:$0xff]  ;;  %v14952_v56 = vld [vmem:[#allocation2 + $0x3b1] sm:$0xff] }
 0x3e6   :  { %v4315_v26 = vpop.f32.mrf.mxu2 }
 0x3e7   :  { %11890 = vmatmul.msk.f32.gmra.mxu3 %vm21_vm1, %v14678_v54  ;;  %v4359_v31 = vadd.f32 %v4315_v26, %v4210_v6  ;;  %11837 = vmatmul.msk.f32.gmra.mxu0 %vm21_vm1, %v3941_v57  ;;  %v4211_v44 = vadd.f32 %v4169_v50, %v4062_v0 }
 0x3e8   :  { %11856 = vmatmul.msk.f32.gmra.mxu1 %vm21_vm1, %v14902_v3 }
 0x3e9   :  { %v4375_v41 = vadd.f32 %v14879_v21, %v4359_v31 }
 0x3ea   :  { %v14913_v16 = vpop.f32.mrf.mxu3 }
 0x3eb   :  { %v4391_v25 = vmax.f32 %v4375_v41, 0.0  ;;  %11873 = vmatmul.msk.f32.gmra.mxu2 %vm21_vm1, %v14907_v37 }
 0x3ec   :  { %v4023_v52 = vpop.f32.mrf.mxu0 }
 0x3ed   :  { %4408 = vst.msk [vmem:[#allocation3 + $0x288] sm:$0xff] %vm109_vm4, %v4391_v25  ;;  %v4175_v57 = vpop.f32.mrf.mxu1  ;;  %v4063_v46 = vadd.f32 %v4023_v52, %v14689_v18  ;;  %v14941_v18 = vld [vmem:[#allocation2 + $0x3af] sm:$0xff] }
 0x3ee   :  { %v4318_v1 = vpop.f32.mrf.mxu2 }
 0x3ef   :  { %11891 = vmatmul.msk.f32.gmra.mxu3 %vm21_vm1, %v14693_v12  ;;  %v4360_v53 = vadd.f32 %v4318_v1, %v4211_v44  ;;  %11838 = vmatmul.msk.f32.gmra.mxu0 %vm21_vm1, %v14891_v29  ;;  %v4212_v47 = vadd.f32 %v4172_v10, %v4063_v46  ;;  %v14969_v44 = vld [vmem:[#allocation2 + $0x3c9] sm:$0xff] }
 0x3f0   :  { %11857 = vmatmul.msk.f32.gmra.mxu1 %vm21_vm1, %v14918_v55 }
 0x3f1   :  { %v4376_v27 = vadd.f32 %v14879_v21, %v4360_v53 }
 0x3f2   :  { %v14930_v49 = vpop.f32.mrf.mxu3 }
 0x3f3   :  { %v4392_v63 = vmax.f32 %v4376_v27, 0.0  ;;  %11874 = vmatmul.msk.f32.gmra.mxu2 %vm21_vm1, %v14924_v51 }
 0x3f4   :  { %v4026_v12 = vpop.f32.mrf.mxu0 }
 0x3f5   :  { %4409 = vst.msk [vmem:[#allocation3 + $0x290] sm:$0xff] %vm109_vm4, %v4392_v63  ;;  %v4178_v19 = vpop.f32.mrf.mxu1  ;;  %v4064_v58 = vadd.f32 %v4026_v12, %v14704_v59  ;;  %v14958_v59 = vld [vmem:[#allocation2 + $0x3c7] sm:$0xff] }
 0x3f6   :  { %v4321_v60 = vpop.f32.mrf.mxu2 }
 0x3f7   :  { %11892 = vmatmul.msk.f32.gmra.mxu3 %vm21_vm1, %v14708_v38  ;;  %v4361_v32 = vadd.f32 %v4321_v60, %v4212_v47  ;;  %11839 = vmatmul.msk.f32.gmra.mxu0 %vm21_vm1, %v14907_v37  ;;  %v4213_v61 = vadd.f32 %v4175_v57, %v4064_v58  ;;  %v14986_v60 = vld [vmem:[#allocation2 + $0x3d1] sm:$0xff] }
 0x3f8   :  { %11858 = vmatmul.msk.f32.gmra.mxu1 %vm21_vm1, %v14935_v20 }
 0x3f9   :  { %v4377_v50 = vadd.f32 %v14879_v21, %v4361_v32 }
 0x3fa   :  { %v14947_v11 = vpop.f32.mrf.mxu3 }
 0x3fb   :  { %v4393_v39 = vmax.f32 %v4377_v50, 0.0  ;;  %11875 = vmatmul.msk.f32.gmra.mxu2 %vm21_vm1, %v14941_v18 }
 0x3fc   :  { %v4029_v38 = vpop.f32.mrf.mxu0 }
 0x3fd   :  { %4410 = vst.msk [vmem:[#allocation3 + $0x2a8] sm:$0xff] %vm109_vm4, %v4393_v39  ;;  %v4181_v14 = vpop.f32.mrf.mxu1  ;;  %v4065_v31 = vadd.f32 %v4029_v38, %v14719_v9  ;;  %v14975_v9 = vld [vmem:[#allocation2 + $0x3cf] sm:$0xff] }
 0x3fe   :  { %v4324_v6 = vpop.f32.mrf.mxu2 }
 0x3ff   :  { %11893 = vmatmul.msk.f32.gmra.mxu3 %vm21_vm1, %v14723_v2  ;;  %v4362_v10 = vadd.f32 %v4324_v6, %v4213_v61  ;;  %11840 = vmatmul.msk.f32.gmra.mxu0 %vm21_vm1, %v14924_v51  ;;  %v4214_v25 = vadd.f32 %v4178_v19, %v4065_v31 }
 0x400   :  { %11859 = vmatmul.msk.f32.gmra.mxu1 %vm21_vm1, %v14952_v56 }
 0x401   :  { %v4378_v26 = vadd.f32 %v14879_v21, %v4362_v10 }
 0x402   :  { %v14964_v41 = vpop.f32.mrf.mxu3 }
 0x403   :  { %v4394_v0 = vmax.f32 %v4378_v26, 0.0  ;;  %11876 = vmatmul.msk.f32.gmra.mxu2 %vm21_vm1, %v14958_v59  ;;  %v15003_v26 = vld [vmem:[#allocation2 + $0x3e9] sm:$0xff] }
 0x404   :  { %v4032_v2 = vpop.f32.mrf.mxu0 }
 0x405   :  { %4411 = vst.msk [vmem:[#allocation3 + $0x2b0] sm:$0xff] %vm109_vm4, %v4394_v0  ;;  %v4184_v52 = vpop.f32.mrf.mxu1  ;;  %v4066_v27 = vadd.f32 %v4032_v2, %v14734_v36  ;;  %v14992_v36 = vld [vmem:[#allocation2 + $0x3e7] sm:$0xff] }
 0x406   :  { %v4327_v57 = vpop.f32.mrf.mxu2 }
 0x407   :  { %11894 = vmatmul.msk.f32.gmra.mxu3 %vm21_vm1, %v14738_v45  ;;  %v4363_v1 = vadd.f32 %v4327_v57, %v4214_v25  ;;  %11841 = vmatmul.msk.f32.gmra.mxu0 %vm21_vm1, %v14941_v18  ;;  %v4215_v47 = vadd.f32 %v4181_v14, %v4066_v27 }
 0x408   :  { %11860 = vmatmul.msk.f32.gmra.mxu1 %vm21_vm1, %v14969_v44 }
 0x409   :  { %v4379_v53 = vadd.f32 %v14879_v21, %v4363_v1 }
 0x40a   :  { %v14981_v46 = vpop.f32.mrf.mxu3 }
 0x40b   :  { %v4395_v63 = vmax.f32 %v4379_v53, 0.0  ;;  %11877 = vmatmul.msk.f32.gmra.mxu2 %vm21_vm1, %v14975_v9 }
 0x40c   :  { %v4035_v12 = vpop.f32.mrf.mxu0 }
 0x40d   :  { %4412 = vst.msk [vmem:[#allocation3 + $0x2c8] sm:$0xff] %vm109_vm4, %v4395_v63  ;;  %v4187_v19 = vpop.f32.mrf.mxu1  ;;  %v4067_v39 = vadd.f32 %v4035_v12, %v14749_v15  ;;  %v15009_v15 = vld [vmem:[#allocation2 + $0x3ef] sm:$0xff] }
 0x40e   :  { %v4330_v32 = vpop.f32.mrf.mxu2  ;;  %v15020_v63 = vld [vmem:[#allocation2 + $0x3f1] sm:$0xff] }
 0x40f   :  { %11895 = vmatmul.msk.f32.gmra.mxu3 %vm21_vm1, %v14753_v48  ;;  %v4364_v50 = vadd.f32 %v4330_v32, %v4215_v47  ;;  %11842 = vmatmul.msk.f32.gmra.mxu0 %vm21_vm1, %v14958_v59  ;;  %v4216_v6 = vadd.f32 %v4184_v52, %v4067_v39  ;;  %v259_v47 = vld [vmem:[%s17702_s0 + $0x1f0] sm:$0xff]  ;;  %v15030_v32 = vld [vmem:[#allocation2 + $0x407] sm:$0xff] }
 0x410   :  { %11861 = vmatmul.msk.f32.gmra.mxu1 %vm21_vm1, %v14986_v60  ;;  %324 = vst.msk [vmem:[#allocation2 + $0x448] sm:$0xff] %vm21_vm1, %v259_v47 }
 0x411   :  { %v4380_v58 = vadd.f32 %v14879_v21, %v4364_v50 }
 0x412   :  { %v14998_v38 = vpop.f32.mrf.mxu3 }
 0x413   :  { %v4396_v61 = vmax.f32 %v4380_v58, 0.0  ;;  %11878 = vmatmul.msk.f32.gmra.mxu2 %vm21_vm1, %v14992_v36 }
 0x414   :  { %v4038_v14 = vpop.f32.mrf.mxu0 }
 0x415   :  { %4413 = vst.msk [vmem:[#allocation3 + $0x2d0] sm:$0xff] %vm109_vm4, %v4396_v61  ;;  %v4190_v10 = vpop.f32.mrf.mxu1  ;;  %v4068_v25 = vadd.f32 %v4038_v14, %v14764_v24 }
 0x416   :  { %v4333_v31 = vpop.f32.mrf.mxu2 }
 0x417   :  { %11896 = vmatmul.msk.f32.gmra.mxu3 %vm21_vm1, %v14768_v7  ;;  %v4365_v0 = vadd.f32 %v4333_v31, %v4216_v6  ;;  %11843 = vmatmul.msk.f32.gmra.mxu0 %vm21_vm1, %v14975_v9  ;;  %v4217_v53 = vadd.f32 %v4187_v19, %v4068_v25  ;;  %v15041_v31 = vld [vmem:[#allocation2 + $0x409] sm:$0xff] }
 0x418   :  { %11862 = vmatmul.msk.f32.gmra.mxu1 %vm21_vm1, %v15003_v26  ;;  %v15051_v25 = vld [vmem:[#allocation2 + $0x40f] sm:$0xff]  ;;  %v15123_v4 = vld [vmem:[#allocation2 + $0x447] sm:$0xff] }
 0x419   :  { %v4381_v2 = vadd.f32 %v14879_v21, %v4365_v0 }
 0x41a   :  { %v15015_v52 = vpop.f32.mrf.mxu3 }
 0x41b   :  { %v4397_v57 = vmax.f32 %v4381_v2, 0.0  ;;  %11879 = vmatmul.msk.f32.gmra.mxu2 %vm21_vm1, %v15009_v15  ;;  %v260_v2 = vld [vmem:[%s17702_s0 + $0x1f8] sm:$0xff] }
 0x41c   :  { %v4041_v1 = vpop.f32.mrf.mxu0  ;;  %325 = vst.msk [vmem:[#allocation2 + $0x450] sm:$0xff] %vm21_vm1, %v260_v2 }
 0x41d   :  { %4414 = vst.msk [vmem:[#allocation3 + $0x2e8] sm:$0xff] %vm109_vm4, %v4397_v57  ;;  %v4193_v27 = vpop.f32.mrf.mxu1  ;;  %v4069_v50 = vadd.f32 %v4041_v1, %v14780_v28 }
 0x41e   :  { %v4336_v12 = vpop.f32.mrf.mxu2 }
 0x41f   :  { %11897 = vmatmul.msk.f32.gmra.mxu3 %vm21_vm1, %v14784_v34  ;;  %v4366_v24 = vadd.f32 %v4336_v12, %v4217_v53  ;;  %11844 = vmatmul.msk.f32.gmra.mxu0 %vm21_vm1, %v14992_v36  ;;  %v4218_v14 = vadd.f32 %v4190_v10, %v4069_v50 }
 0x420   :  { %11863 = vmatmul.msk.f32.gmra.mxu1 %vm21_vm1, %v15020_v63 }
 0x421   :  { %v4382_v19 = vadd.f32 %v14879_v21, %v4366_v24 }
 0x422   :  { %v15036_v58 = vpop.f32.mrf.mxu3 }
 0x423   :  { %v4398_v39 = vmax.f32 %v4382_v19, 0.0  ;;  %11880 = vmatmul.msk.f32.gmra.mxu2 %vm21_vm1, %v15030_v32  ;;  %v15062_v19 = vld [vmem:[#allocation2 + $0x411] sm:$0xff] }
 0x424   :  { %v4044_v61 = vpop.f32.mrf.mxu0 }
 0x425   :  { %4415 = vst.msk [vmem:[#allocation3 + $0x2f0] sm:$0xff] %vm109_vm4, %v4398_v39  ;;  %v4196_v6 = vpop.f32.mrf.mxu1  ;;  %v4070_v57 = vadd.f32 %v4044_v61, %v14793_v23  ;;  %v15068_v23 = vld [vmem:[#allocation2 + $0x427] sm:$0xff] }
 0x426   :  { %v4339_v0 = vpop.f32.mrf.mxu2 }
 0x427   :  { %11898 = vmatmul.msk.f32.gmra.mxu3 %vm21_vm1, %v14797_v30  ;;  %v4367_v28 = vadd.f32 %v4339_v0, %v4218_v14  ;;  %11845 = vmatmul.msk.f32.gmra.mxu0 %vm21_vm1, %v15009_v15  ;;  %v4219_v47 = vadd.f32 %v4193_v27, %v4070_v57  ;;  %v15079_v57 = vld [vmem:[#allocation2 + $0x429] sm:$0xff] }
 0x428   :  { %11864 = vmatmul.msk.f32.gmra.mxu1 %vm21_vm1, %v15041_v31 }
 0x429   :  { %v4383_v10 = vadd.f32 %v14879_v21, %v4367_v28 }
 0x42a   :  { %v15057_v1 = vpop.f32.mrf.mxu3 }
 0x42b   :  { %v4399_v53 = vmax.f32 %v4383_v10, 0.0  ;;  %11881 = vmatmul.msk.f32.gmra.mxu2 %vm21_vm1, %v15051_v25 }
 0x42c   :  { %v4047_v12 = vpop.f32.mrf.mxu0 }
 0x42d   :  { %4416 = vst.msk [vmem:[#allocation3 + $0x308] sm:$0xff] %vm109_vm4, %v4399_v53  ;;  %v4199_v24 = vpop.f32.mrf.mxu1  ;;  %v4071_v27 = vadd.f32 %v4047_v12, %v14818_v8  ;;  %v15088_v8 = vld [vmem:[%s17704_s2 + $0x28] sm:$0xff]  ;;  %v12029_v12 = vld [vmem:[%s17704_s2 + $0x38] sm:$0xff] }
 0x42e   :  { %v4342_v50 = vpop.f32.mrf.mxu2  ;;  %17730 = vst [vmem:[#allocation7_spill] sm:$0xff] %v15088_v8  ;;  %6127 = vmatpush.msrb.mxu2 %v15088_v8  ;;  %6275 = vmatpush.msrb.mxu3 %v12029_v12  ;;  %v15133_v8 = vld [vmem:[#allocation2 + $0x448] sm:$0xff] }
 0x42f   :  { %11899 = vmatmul.msk.f32.gmra.mxu3 %vm21_vm1, %v14822_v33  ;;  %v4368_v39 = vadd.f32 %v4342_v50, %v4219_v47  ;;  %11846 = vmatmul.msk.f32.gmra.mxu0 %vm21_vm1, %v15030_v32  ;;  %v4220_v28 = vadd.f32 %v4196_v6, %v4071_v27  ;;  %v15093_v6 = vld [vmem:[%s17704_s2 + $0x18] sm:$0xff]  ;;  %v15098_v50 = vld [vmem:[#allocation2 + $0x42f] sm:$0xff]  ;;  %17735 = vst [vmem:[#allocation12_spill] sm:$0xff] %v15133_v8 }
 0x430   :  { %11865 = vmatmul.msk.f32.gmra.mxu1 %vm21_vm1, %v15062_v19  ;;  %17731 = vst [vmem:[#allocation8_spill] sm:$0xff] %v15093_v6  ;;  %5882 = vmatpush.msrb.mxu0 %v15093_v6 }
 0x431   :  { %v4384_v61 = vadd.f32 %v14879_v21, %v4368_v39 }
 0x432   :  { %v15074_v14 = vpop.f32.mrf.mxu3 }
 0x433   :  { %v4400_v0 = vmax.f32 %v4384_v61, 0.0  ;;  %11882 = vmatmul.msk.f32.gmra.mxu2 %vm21_vm1, %v15068_v23 }
 0x434   :  { %v4050_v2 = vpop.f32.mrf.mxu0 }
 0x435   :  { %4417 = vst.msk [vmem:[#allocation3 + $0x310] sm:$0xff] %vm109_vm4, %v4400_v0  ;;  %v4202_v10 = vpop.f32.mrf.mxu1  ;;  %v4072_v61 = vadd.f32 %v4050_v2, %v14839_v35 }
 0x436   :  { %v4345_v53 = vpop.f32.mrf.mxu2 }
 0x437   :  { %11900 = vmatmul.msk.f32.gmra.mxu3 %vm21_vm1, %v14843_v62  ;;  %v4369_v47 = vadd.f32 %v4345_v53, %v4220_v28  ;;  %11847 = vmatmul.msk.f32.gmra.mxu0 %vm21_vm1, %v15051_v25  ;;  %v15113_v28 = vld [vmem:[%s17704_s2 + $0x8] sm:$0xff]  ;;  %v4221_v35 = vadd.f32 %v4199_v24, %v4072_v61 }
 0x438   :  { %11866 = vmatmul.msk.f32.gmra.mxu1 %vm21_vm1, %v15079_v57  ;;  %17733 = vst [vmem:[#allocation10_spill] sm:$0xff] %v15113_v28 }
 0x439   :  { %v4385_v39 = vadd.f32 %v14879_v21, %v4369_v47  ;;  %5995 = vmatpush.msrb.mxu1 %v15113_v28  ;;  %v15117_v47 = vld [vmem:[#allocation2 + $0x431] sm:$0xff] }
 0x43a   :  { %v15106_v27 = vpop.f32.mrf.mxu3 }
 0x43b   :  { %17732 = vst [vmem:[#allocation9_spill] sm:$0xff] %v15106_v27  ;;  %v4401_v0 = vmax.f32 %v4385_v39, 0.0  ;;  %11883 = vmatmul.msk.f32.gmra.mxu2 %vm21_vm1, %v15098_v50 }
 0x43c   :  { %v4053_v53 = vpop.f32.mrf.mxu0 }
 0x43d   :  { %4418 = vst.msk [vmem:[#allocation3 + $0x328] sm:$0xff] %vm109_vm4, %v4401_v0  ;;  %v4205_v2 = vpop.f32.mrf.mxu1  ;;  %v4073_v24 = vadd.f32 %v4053_v53, %v14853_v43  ;;  %v15140_v43 = vld [vmem:[#allocation2 + $0x44f] sm:$0xff] }
 0x43e   :  { %v4348_v12 = vpop.f32.mrf.mxu2 }
 0x43f   :  { %11901 = vmatmul.msk.f32.gmra.mxu3 %vm21_vm1, %v14857_v40  ;;  %v4370_v39 = vadd.f32 %v4348_v12, %v4221_v35  ;;  %11848 = vmatmul.msk.f32.gmra.mxu0 %vm21_vm1, %v15068_v23  ;;  %v4222_v12 = vadd.f32 %v4202_v10, %v4073_v24  ;;  %v15150_v24 = vld [vmem:[#allocation2 + $0x450] sm:$0xff] }
 0x440   :  { %11867 = vmatmul.msk.f32.gmra.mxu1 %vm21_vm1, %v15117_v47 }
 0x441   :  { %v4386_v6 = vadd.f32 %v14879_v21, %v4370_v39 }
 0x442   :  { %v15129_v61 = vpop.f32.mrf.mxu3 }
 0x443   :  { %17734 = vst [vmem:[#allocation11_spill] sm:$0xff] %v15129_v61  ;;  %v4402_v0 = vmax.f32 %v4386_v6, 0.0  ;;  %11884 = vmatmul.msk.f32.gmra.mxu2 %vm21_vm1, %v15123_v4 }
 0x444   :  { %v4056_v35 = vpop.f32.mrf.mxu0 }
 0x445   :  { %4419 = vst.msk [vmem:[#allocation3 + $0x330] sm:$0xff] %vm109_vm4, %v4402_v0  ;;  %v4774_v28 = vpop.f32.mrf.mxu1  ;;  %v4074_v53 = vadd.f32 %v4056_v35, %v14866_v13 }
 0x446   :  { %v4351_v27 = vpop.f32.mrf.mxu2 }
 0x447   :  { %11902 = vmatmul.msk.f32.gmra.mxu3 %vm21_vm1, %v15133_v8  ;;  %v4371_v39 = vadd.f32 %v4351_v27, %v4222_v12  ;;  %11849 = vmatmul.msk.f32.gmra.mxu0 %vm21_vm1, %v15098_v50  ;;  %v4223_v12 = vadd.f32 %v4205_v2, %v4074_v53 }
 0x448   :  { %11924 = vmatmul.msk.f32.vlgmr.msra.gmra.mxu1 %vm21_vm1, %v14891_v29 }
 0x449   :  { %v4387_v6 = vadd.f32 %v14879_v21, %v4371_v39 }
 0x44a   :  { %v15146_v0 = vpop.f32.mrf.mxu3 }
 0x44b   :  { %v4403_v10 = vmax.f32 %v4387_v6, 0.0  ;;  %11885 = vmatmul.msk.f32.gmra.mxu2 %vm21_vm1, %v15140_v43 }
 0x44c   :  { %v4641_v27 = vpop.f32.mrf.mxu0 }
 0x44d   :  { %4420 = vst.msk [vmem:[#allocation3 + $0x348] sm:$0xff] %vm109_vm4, %v4403_v10  ;;  %v4777_v61 = vpop.f32.mrf.mxu1  ;;  %v4642_v35 = vadd.f32 %v4641_v27, %v14883_v42  ;;  %v5437_v42 = vld [vmem:[#allocation2 + $0x390] sm:$0xff] }
 0x44e   :  { %v4354_v8 = vpop.f32.mrf.mxu2 }
 0x44f   :  { %11903 = vmatmul.msk.f32.gmra.mxu3 %vm21_vm1, %v15150_v24  ;;  %v4372_v29 = vadd.f32 %v4354_v8, %v4223_v12  ;;  %11906 = vmatmul.msk.f32.vlgmr.msra.gmra.mxu0 %vm21_vm1, %v14835_v22  ;;  %v4822_v8 = vadd.f32 %v4774_v28, %v4642_v35 }
 0x450   :  { %11925 = vmatmul.msk.f32.gmra.mxu1 %vm21_vm1, %v14907_v37 }
 0x451   :  { %v4388_v13 = vadd.f32 %v14879_v21, %v4372_v29 }
 0x452   :  { %v15161_v39 = vpop.f32.mrf.mxu3 }
 0x453   :  { %v4404_v6 = vmax.f32 %v4388_v13, 0.0  ;;  %11942 = vmatmul.msk.f32.vlgmr.msra.gmra.mxu2 %vm21_vm1, %v14678_v54 }
 0x454   :  { %v4644_v2 = vpop.f32.mrf.mxu0 }
 0x455   :  { %4421 = vst.msk [vmem:[#allocation3 + $0x350] sm:$0xff] %vm109_vm4, %v4404_v6  ;;  %v4780_v53 = vpop.f32.mrf.mxu1  ;;  %v4645_v37 = vadd.f32 %v4644_v2, %v14897_v5 }
 0x456   :  { %v4924_v10 = vpop.f32.mrf.mxu2 }
 0x457   :  { %11960 = vmatmul.msk.f32.vlgmr.msra.gmra.mxu3 %vm21_vm1, %v14902_v3  ;;  %v4972_v22 = vadd.f32 %v4924_v10, %v4822_v8  ;;  %11907 = vmatmul.msk.f32.gmra.mxu0 %vm21_vm1, %v14849_v17  ;;  %v4823_v12 = vadd.f32 %v4777_v61, %v4645_v37  ;;  %v5438_v17 = vld [vmem:[#allocation2 + $0x3a8] sm:$0xff] }
 0x458   :  { %11926 = vmatmul.msk.f32.gmra.mxu1 %vm21_vm1, %v14924_v51 }
 0x45a   :  { %v5073_v54 = vpop.f32.mrf.mxu3 }
 0x45b   :  { %v15173_v27 = vadd.f32 %v5073_v54, %v4972_v22  ;;  %11943 = vmatmul.msk.f32.gmra.mxu2 %vm21_vm1, %v5437_v42 }
 0x45c   :  { %v4647_v28 = vpop.f32.mrf.mxu0 }
 0x45d   :  { %v4783_v29 = vpop.f32.mrf.mxu1  ;;  %v4648_v5 = vadd.f32 %v4647_v28, %v14913_v16 }
 0x45e   :  { %v4927_v13 = vpop.f32.mrf.mxu2 }
 0x45f   :  { %11961 = vmatmul.msk.f32.gmra.mxu3 %vm21_vm1, %v14918_v55  ;;  %v4973_v35 = vadd.f32 %v4927_v13, %v4823_v12  ;;  %11908 = vmatmul.msk.f32.gmra.mxu0 %vm21_vm1, %v14902_v3  ;;  %v4824_v2 = vadd.f32 %v4780_v53, %v4648_v5  ;;  %v5439_v3 = vld [vmem:[#allocation2 + $0x3b0] sm:$0xff] }
 0x460   :  { %11927 = vmatmul.msk.f32.gmra.mxu1 %vm21_vm1, %v14941_v18 }
 0x462   :  { %v5076_v51 = vpop.f32.mrf.mxu3 }
 0x463   :  { %v15183_v6 = vadd.f32 %v5076_v51, %v4973_v35  ;;  %11944 = vmatmul.msk.f32.gmra.mxu2 %vm21_vm1, %v5438_v17 }
 0x464   :  { %v4650_v61 = vpop.f32.mrf.mxu0 }
 0x465   :  { %v4786_v8 = vpop.f32.mrf.mxu1  ;;  %v4651_v16 = vadd.f32 %v4650_v61, %v14930_v49  ;;  %v15236_v61 = vld [vmem:[%s17704_s2] sm:$0xff] }
 0x466   :  { %v4930_v10 = vpop.f32.mrf.mxu2  ;;  %5996 = vmatpush.msrb.mxu1 %v15236_v61 }
 0x467   :  { %11962 = vmatmul.msk.f32.gmra.mxu3 %vm21_vm1, %v14935_v20  ;;  %v4974_v22 = vadd.f32 %v4930_v10, %v4824_v2  ;;  %11909 = vmatmul.msk.f32.gmra.mxu0 %vm21_vm1, %v14918_v55  ;;  %v4825_v37 = vadd.f32 %v4783_v29, %v4651_v16 }
 0x468   :  { %11928 = vmatmul.msk.f32.gmra.mxu1 %vm21_vm1, %v14958_v59 }
 0x46a   :  { %v5079_v18 = vpop.f32.mrf.mxu3 }
 0x46b   :  { %v15193_v42 = vadd.f32 %v5079_v18, %v4974_v22  ;;  %11945 = vmatmul.msk.f32.gmra.mxu2 %vm21_vm1, %v5439_v3 }
 0x46c   :  { %v4653_v53 = vpop.f32.mrf.mxu0 }
 0x46d   :  { %v4789_v54 = vpop.f32.mrf.mxu1  ;;  %v4654_v55 = vadd.f32 %v4653_v53, %v14947_v11  ;;  %v12028_v11 = vld [vmem:[%s17704_s2 + $0x30] sm:$0xff] }
 0x46e   :  { %v4933_v28 = vpop.f32.mrf.mxu2  ;;  %6276 = vmatpush.msrb.mxu3 %v12028_v11 }
 0x46f   :  { %11963 = vmatmul.msk.f32.gmra.mxu3 %vm21_vm1, %v14952_v56  ;;  %v4975_v12 = vadd.f32 %v4933_v28, %v4825_v37  ;;  %11910 = vmatmul.msk.f32.gmra.mxu0 %vm21_vm1, %v14935_v20  ;;  %v4826_v13 = vadd.f32 %v4786_v8, %v4654_v55  ;;  %v15214_v20 = vld [vmem:[%s17704_s2 + $0x20] sm:$0xff] }
 0x470   :  { %11929 = vmatmul.msk.f32.gmra.mxu1 %vm21_vm1, %v14975_v9  ;;  %6128 = vmatpush.msrb.mxu2 %v15214_v20 }
 0x472   :  { %v5082_v49 = vpop.f32.mrf.mxu3 }
 0x473   :  { %v15203_v59 = vadd.f32 %v5082_v49, %v4975_v12  ;;  %11946 = vmatmul.msk.f32.gmra.mxu2 %vm21_vm1, %v14738_v45  ;;  %v15219_v45 = vld [vmem:[%s17704_s2 + $0x10] sm:$0xff] }
 0x474   :  { %v4656_v29 = vpop.f32.mrf.mxu0  ;;  %5883 = vmatpush.msrb.mxu0 %v15219_v45 }
 0x475   :  { %v4792_v35 = vpop.f32.mrf.mxu1 }
 0x476   :  { %v4936_v17 = vpop.f32.mrf.mxu2 }
 0x477   :  { %11964 = vmatmul.msk.f32.gmra.mxu3 %vm21_vm1, %v14969_v44  ;;  %v4976_v5 = vadd.f32 %v4936_v17, %v4826_v13  ;;  %11911 = vmatmul.msk.f32.gmra.mxu0 %vm21_vm1, %v14952_v56  ;;  %v4657_v56 = vadd.f32 %v4656_v29, %v14964_v41 }
 0x478   :  { %11930 = vmatmul.msk.f32.gmra.mxu1 %vm21_vm1, %v14992_v36 }
 0x479   :  { %v4827_v36 = vadd.f32 %v4789_v54, %v4657_v56 }
 0x47a   :  { %v5085_v9 = vpop.f32.mrf.mxu3 }
 0x47b   :  { %v15229_v51 = vadd.f32 %v5085_v9, %v4976_v5  ;;  %11947 = vmatmul.msk.f32.gmra.mxu2 %vm21_vm1, %v14753_v48 }
 0x47c   :  { %v4659_v2 = vpop.f32.mrf.mxu0 }
 0x47d   :  { %v4795_v8 = vpop.f32.mrf.mxu1  ;;  %v4660_v48 = vadd.f32 %v4659_v2, %v14981_v46 }
 0x47e   :  { %v4939_v41 = vpop.f32.mrf.mxu2 }
 0x47f   :  { %11965 = vmatmul.msk.f32.gmra.mxu3 %vm21_vm1, %v14986_v60  ;;  %v4977_v10 = vadd.f32 %v4939_v41, %v4827_v36  ;;  %11912 = vmatmul.msk.f32.gmra.mxu0 %vm21_vm1, %v14969_v44  ;;  %v4828_v18 = vadd.f32 %v4792_v35, %v4660_v48 }
 0x480   :  { %11931 = vmatmul.msk.f32.gmra.mxu1 %vm21_vm1, %v15009_v15 }
 0x482   :  { %v5088_v22 = vpop.f32.mrf.mxu3 }
 0x483   :  { %v15246_v3 = vadd.f32 %v5088_v22, %v4977_v10  ;;  %11948 = vmatmul.msk.f32.gmra.mxu2 %vm21_vm1, %v14768_v7 }
 0x484   :  { %v4662_v16 = vpop.f32.mrf.mxu0 }
 0x485   :  { %v4798_v53 = vpop.f32.mrf.mxu1  ;;  %v4663_v44 = vadd.f32 %v4662_v16, %v14998_v38 }
 0x486   :  { %v4942_v37 = vpop.f32.mrf.mxu2 }
 0x487   :  { %11966 = vmatmul.msk.f32.gmra.mxu3 %vm21_vm1, %v15003_v26  ;;  %v4978_v54 = vadd.f32 %v4942_v37, %v4828_v18  ;;  %11913 = vmatmul.msk.f32.gmra.mxu0 %vm21_vm1, %v14986_v60  ;;  %v4829_v28 = vadd.f32 %v4795_v8, %v4663_v44 }
 0x488   :  { %11932 = vmatmul.msk.f32.gmra.mxu1 %vm21_vm1, %v15030_v32 }
 0x48a   :  { %v5091_v46 = vpop.f32.mrf.mxu3 }
 0x48b   :  { %v15257_v15 = vadd.f32 %v5091_v46, %v4978_v54  ;;  %11949 = vmatmul.msk.f32.gmra.mxu2 %vm21_vm1, %v14784_v34  ;;  %v5301_v46 = vld [vmem:[#allocation2 + $0x467] sm:$0xff] }
 0x48c   :  { %v4665_v7 = vpop.f32.mrf.mxu0 }
 0x48d   :  { %v4801_v12 = vpop.f32.mrf.mxu1  ;;  %v4666_v60 = vadd.f32 %v4665_v7, %v15015_v52 }
 0x48e   :  { %v4945_v55 = vpop.f32.mrf.mxu2 }
 0x48f   :  { %11967 = vmatmul.msk.f32.gmra.mxu3 %vm21_vm1, %v15020_v63  ;;  %v4979_v49 = vadd.f32 %v4945_v55, %v4829_v28  ;;  %11914 = vmatmul.msk.f32.gmra.mxu0 %vm21_vm1, %v15003_v26  ;;  %v4830_v29 = vadd.f32 %v4798_v53, %v4666_v60  ;;  %v5597_v53 = vld [vmem:[#allocation2 + $0x449] sm:$0xff]  ;;  %v17738_v28 = vmov 0.0  }
 0x490   :  { %11933 = vmatmul.msk.f32.gmra.mxu1 %vm21_vm1, %v15051_v25  ;;  %113 = vst.msk [vmem:[#allocation3 + $0x17] sm:$0x3] %vm112_vm6, %v17738_v28  ;;  %v17739_v55 = vld [vmem:[#allocation11_spill] sm:$0xff] }
 0x491   :  { %116 = vst.msk [vmem:[#allocation3 + $0x257] sm:$0x3] %vm112_vm6, %v17738_v28 }
 0x492   :  { %v5094_v38 = vpop.f32.mrf.mxu3  ;;  %120 = vst.msk [vmem:[#allocation3 + $0x237] sm:$0x3] %vm112_vm6, %v17738_v28 }
 0x493   :  { %v15268_v32 = vadd.f32 %v5094_v38, %v4979_v49  ;;  %11950 = vmatmul.msk.f32.gmra.mxu2 %vm21_vm1, %v14797_v30  ;;  %123 = vst.msk [vmem:[#allocation3 + $0x477] sm:$0x3] %vm112_vm6, %v17738_v28 }
 0x494   :  { %v4668_v34 = vpop.f32.mrf.mxu0  ;;  %161 = vst.msk [vmem:[#allocation3 + $0x18] sm:$0x1] %vm124_vm5, %v17738_v28 }
 0x495   :  { %v4804_v13 = vpop.f32.mrf.mxu1  ;;  %v4669_v26 = vadd.f32 %v4668_v34, %v15036_v58  ;;  %178 = vst.msk [vmem:[#allocation3 + $0x238] sm:$0x1] %vm124_vm5, %v17738_v28  ;;  %v5598_v34 = vld [vmem:[#allocation2 + $0x451] sm:$0xff] }
 0x496   :  { %v4948_v35 = vpop.f32.mrf.mxu2  ;;  %179 = vst.msk [vmem:[#allocation3 + $0x258] sm:$0x1] %vm124_vm5, %v17738_v28 }
 0x497   :  { %11968 = vmatmul.msk.f32.gmra.mxu3 %vm21_vm1, %v15041_v31  ;;  %v4980_v17 = vadd.f32 %v4948_v35, %v4830_v29  ;;  %11915 = vmatmul.msk.f32.gmra.mxu0 %vm21_vm1, %v15020_v63  ;;  %v4831_v5 = vadd.f32 %v4801_v12, %v4669_v26  ;;  %v15329_v12 = vld [vmem:[%s17704_s2 + $0x48] sm:$0xff]  ;;  %196 = vst.msk [vmem:[#allocation3 + $0x478] sm:$0x1] %vm124_vm5, %v17738_v28 }
 0x498   :  { %11934 = vmatmul.msk.f32.gmra.mxu1 %vm21_vm1, %v15068_v23  ;;  %6423 = vmatpush.msra.mxu0 %v15329_v12  ;;  %v6194_v28 = vld [vmem:[#allocation3 + $0x27] sm:$0xff] }
 0x49a   :  { %v5097_v52 = vpop.f32.mrf.mxu3 }
 0x49b   :  { %v15279_v25 = vadd.f32 %v5097_v52, %v4980_v17  ;;  %11951 = vmatmul.msk.f32.gmra.mxu2 %vm21_vm1, %v14822_v33  ;;  %v5302_v17 = vld [vmem:[#allocation2 + $0x46f] sm:$0xff] }
 0x49c   :  { %v4671_v30 = vpop.f32.mrf.mxu0 }
 0x49d   :  { %v4807_v11 = vpop.f32.mrf.mxu1  ;;  %v4672_v63 = vadd.f32 %v4671_v30, %v15057_v1 }
 0x49e   :  { %v4951_v56 = vpop.f32.mrf.mxu2 }
 0x49f   :  { %11969 = vmatmul.msk.f32.gmra.mxu3 %vm21_vm1, %v15062_v19  ;;  %v4981_v9 = vadd.f32 %v4951_v56, %v4831_v5  ;;  %11916 = vmatmul.msk.f32.gmra.mxu0 %vm21_vm1, %v15041_v31  ;;  %v4832_v2 = vadd.f32 %v4804_v13, %v4672_v63  ;;  %v15363_v5 = vld [vmem:[%s17704_s2 + $0x58] sm:$0xff] }
 0x4a0   :  { %11935 = vmatmul.msk.f32.gmra.mxu1 %vm21_vm1, %v15098_v50 }
 0x4a1   :  { %6571 = vmatpush.msra.mxu1 %v15363_v5 }
 0x4a2   :  { %v5100_v58 = vpop.f32.mrf.mxu3 }
 0x4a3   :  { %v15290_v23 = vadd.f32 %v5100_v58, %v4981_v9  ;;  %11952 = vmatmul.msk.f32.gmra.mxu2 %vm21_vm1, %v14843_v62  ;;  %v5599_v9 = vld [vmem:[#allocation2 + $0x469] sm:$0xff] }
 0x4a4   :  { %v4674_v33 = vpop.f32.mrf.mxu0 }
 0x4a5   :  { %v4810_v36 = vpop.f32.mrf.mxu1  ;;  %v4675_v31 = vadd.f32 %v4674_v33, %v15074_v14 }
 0x4a6   :  { %v4954_v8 = vpop.f32.mrf.mxu2 }
 0x4a7   :  { %11970 = vmatmul.msk.f32.gmra.mxu3 %vm21_vm1, %v15079_v57  ;;  %v4982_v41 = vadd.f32 %v4954_v8, %v4832_v2  ;;  %11917 = vmatmul.msk.f32.gmra.mxu0 %vm21_vm1, %v15062_v19  ;;  %v4833_v10 = vadd.f32 %v4807_v11, %v4675_v31  ;;  %v5783_v2 = vld [vmem:[#allocation3 + $0x7] sm:$0xff]  ;;  %v5451_v8 = vld [vmem:[#allocation2 + $0x470] sm:$0xff] }
 0x4a8   :  { %11936 = vmatmul.msk.f32.gmra.mxu1 %vm21_vm1, %v15123_v4  ;;  %v17736_v4 = vld [vmem:[#allocation9_spill] sm:$0xff] }
 0x4aa   :  { %v5103_v1 = vpop.f32.mrf.mxu3 }
 0x4ab   :  { %v15301_v50 = vadd.f32 %v5103_v1, %v4982_v41  ;;  %11953 = vmatmul.msk.f32.gmra.mxu2 %vm21_vm1, %v14857_v40  ;;  %v17737_v40 = vld [vmem:[#allocation12_spill] sm:$0xff] }
 0x4ac   :  { %v4677_v62 = vpop.f32.mrf.mxu0 }
 0x4ad   :  { %v4813_v48 = vpop.f32.mrf.mxu1  ;;  %v4678_v19 = vadd.f32 %v4677_v62, %v17736_v4  ;;  %v5600_v62 = vld [vmem:[#allocation2 + $0x471] sm:$0xff] }
 0x4ae   :  { %v4957_v22 = vpop.f32.mrf.mxu2  ;;  %v5784_v4 = vld [vmem:[#allocation3 + $0xf] sm:$0xff] }
 0x4af   :  { %11971 = vmatmul.msk.f32.gmra.mxu3 %vm21_vm1, %v15117_v47  ;;  %v4983_v16 = vadd.f32 %v4957_v22, %v4833_v10  ;;  %11918 = vmatmul.msk.f32.gmra.mxu0 %vm21_vm1, %v15079_v57  ;;  %v4834_v54 = vadd.f32 %v4810_v36, %v4678_v19 }
 0x4b0   :  { %11937 = vmatmul.msk.f32.gmra.mxu1 %vm21_vm1, %v15140_v43  ;;  %v15324_v43 = vld [vmem:[%s17704_s2 + $0x68] sm:$0xff] }
 0x4b1   :  { %6720 = vmatpush.msra.mxu2 %v15324_v43 }
 0x4b2   :  { %v5106_v14 = vpop.f32.mrf.mxu3 }
 0x4b3   :  { %v15312_v18 = vadd.f32 %v5106_v14, %v4983_v16  ;;  %11954 = vmatmul.msk.f32.gmra.mxu2 %vm21_vm1, %v17737_v40  ;;  %v6046_v40 = vld [vmem:[#allocation3 + $0x9] sm:$0xff] }
 0x4b4   :  { %v4680_v37 = vpop.f32.mrf.mxu0 }
 0x4b5   :  { %v4816_v44 = vpop.f32.mrf.mxu1  ;;  %v4681_v49 = vadd.f32 %v4680_v37, %v17739_v55  ;;  %v6047_v55 = vld [vmem:[#allocation3 + $0x11] sm:$0xff] }
 0x4b6   :  { %v4960_v7 = vpop.f32.mrf.mxu2 }
 0x4b7   :  { %11972 = vmatmul.msk.f32.gmra.mxu3 %vm21_vm1, %v5597_v53  ;;  %v4984_v57 = vadd.f32 %v4960_v7, %v4834_v54  ;;  %11919 = vmatmul.msk.f32.gmra.mxu0 %vm21_vm1, %v15117_v47  ;;  %v12101_v47 = vld [vmem:[%s17704_s2 + $0x78] sm:$0xff]  ;;  %v4835_v13 = vadd.f32 %v4813_v48, %v4681_v49  ;;  %v5801_v48 = vld [vmem:[#allocation3 + $0x8] sm:$0xff] }
 0x4b8   :  { %11938 = vmatmul.msk.f32.gmra.mxu1 %vm21_vm1, %v5301_v46  ;;  %6868 = vmatpush.msra.mxu3 %v12101_v47 }
 0x4ba   :  { %v5109_v60 = vpop.f32.mrf.mxu3 }
 0x4bb   :  { %v15346_v38 = vadd.f32 %v5109_v60, %v4984_v57  ;;  %11955 = vmatmul.msk.f32.gmra.mxu2 %vm21_vm1, %v15150_v24  ;;  %v5450_v24 = vld [vmem:[#allocation2 + $0x468] sm:$0xff] }
 0x4bc   :  { %v4683_v29 = vpop.f32.mrf.mxu0 }
 0x4bd   :  { %v4819_v35 = vpop.f32.mrf.mxu1  ;;  %v4684_v30 = vadd.f32 %v4683_v29, %v15146_v0 }
 0x4be   :  { %v4963_v26 = vpop.f32.mrf.mxu2 }
 0x4bf   :  { %11973 = vmatmul.msk.f32.gmra.mxu3 %vm21_vm1, %v5598_v34  ;;  %v4985_v52 = vadd.f32 %v4963_v26, %v4835_v13  ;;  %11920 = vmatmul.msk.f32.gmra.mxu0 %vm21_vm1, %v5597_v53  ;;  %v4836_v58 = vadd.f32 %v4816_v44, %v4684_v30  ;;  %v5802_v44 = vld [vmem:[#allocation3 + $0x10] sm:$0xff] }
 0x4c0   :  { %11939 = vmatmul.msk.f32.gmra.mxu1 %vm21_vm1, %v5302_v17  ;;  %v6195_v17 = vld [vmem:[#allocation3 + $0x2f] sm:$0xff] }
 0x4c2   :  { %v5112_v11 = vpop.f32.mrf.mxu3 }
 0x4c3   :  { %v15366_v56 = vadd.f32 %v5112_v11, %v4985_v52  ;;  %11956 = vmatmul.msk.f32.gmra.mxu2 %vm21_vm1, %v5450_v24  ;;  %v15389_v52 = vld [vmem:[#allocation3 + $0x28] sm:$0xff] }
 0x4c4   :  { %v4686_v63 = vpop.f32.mrf.mxu0  ;;  %v15397_v11 = vld [vmem:[#allocation3 + $0x29] sm:$0xff] }
 0x4c5   :  { %v5372_v33 = vpop.f32.mrf.mxu1  ;;  %v4687_v41 = vadd.f32 %v4686_v63, %v15161_v39 }
 0x4c6   :  { %v4966_v36 = vpop.f32.mrf.mxu2 }
 0x4c7   :  { %11974 = vmatmul.msk.f32.gmra.mxu3 %vm21_vm1, %v5599_v9  ;;  %v4986_v0 = vadd.f32 %v4966_v36, %v4836_v58  ;;  %11921 = vmatmul.msk.f32.gmra.mxu0 %vm21_vm1, %v5598_v34  ;;  %v4837_v22 = vadd.f32 %v4819_v35, %v4687_v41  ;;  %v15404_v58 = vld [vmem:[%s17706_s4] ss:$0 sm:$0xff] }
 0x4c8   :  { %11994 = vmatmul.msk.f32.vlgmr.msrb.gmra.mxu1 %vm109_vm4, %v5783_v2 }
 0x4ca   :  { %v5115_v31 = vpop.f32.mrf.mxu3 }
 0x4cb   :  { %v15373_v1 = vadd.f32 %v5115_v31, %v4986_v0  ;;  %11957 = vmatmul.msk.f32.gmra.mxu2 %vm21_vm1, %v5451_v8  ;;  %v15407_v0 = vld [vmem:[#allocation3 + $0x47] sm:$0xff]  ;;  %v15409_v8 = vld [vmem:[#allocation3 + $0x30] sm:$0xff] }
 0x4cc   :  { %v5222_v10 = vpop.f32.mrf.mxu0 }
 0x4cd   :  { %v5375_v16 = vpop.f32.mrf.mxu1  ;;  %v5270_v39 = vadd.f32 %v5222_v10, %v15173_v27 }
 0x4ce   :  { %v4969_v19 = vpop.f32.mrf.mxu2 }
 0x4cf   :  { %11975 = vmatmul.msk.f32.gmra.mxu3 %vm21_vm1, %v5600_v62  ;;  %v4987_v14 = vadd.f32 %v4969_v19, %v4837_v22  ;;  %11978 = vmatmul.msk.f32.vlgmr.msrb.gmra.mxu0 %vm109_vm4, %v5801_v48  ;;  %v5420_v46 = vadd.f32 %v5372_v33, %v5270_v39  ;;  %v15419_v48 = vld [vmem:[#allocation3 + $0x31] sm:$0xff] }
 0x4d0   :  { %11995 = vmatmul.msk.f32.gmra.mxu1 %vm109_vm4, %v5784_v4 }
 0x4d2   :  { %v5118_v53 = vpop.f32.mrf.mxu3 }
 0x4d3   :  { %v15380_v37 = vadd.f32 %v5118_v53, %v4987_v14  ;;  %12012 = vmatmul.msk.f32.vlgmr.msrb.gmra.mxu2 %vm109_vm4, %v6046_v40  ;;  %v15424_v40 = vld [vmem:[#allocation3 + $0x4f] sm:$0xff] }
 0x4d4   :  { %v5225_v54 = vpop.f32.mrf.mxu0  ;;  %v15426_v53 = vld [vmem:[#allocation3 + $0x48] sm:$0xff] }
 0x4d5   :  { %v5378_v7 = vpop.f32.mrf.mxu1  ;;  %v5271_v27 = vadd.f32 %v5225_v54, %v15183_v6 }
 0x4d6   :  { %v5521_v57 = vpop.f32.mrf.mxu2 }
 0x4d7   :  { %12030 = vmatmul.msk.f32.vlgmr.msrb.gmra.mxu3 %vm109_vm4, %v6194_v28  ;;  %v5569_v47 = vadd.f32 %v5521_v57, %v5420_v46  ;;  %11979 = vmatmul.msk.f32.gmra.mxu0 %vm109_vm4, %v5802_v44  ;;  %v5421_v13 = vadd.f32 %v5375_v16, %v5271_v27 }
 0x4d8   :  { %11996 = vmatmul.msk.f32.gmra.mxu1 %vm109_vm4, %v6194_v28 }
 0x4da   :  { %v5670_v49 = vpop.f32.mrf.mxu3 }
 0x4db   :  { %v5718_v60 = vadd.f32 %v5670_v49, %v5569_v47  ;;  %12013 = vmatmul.msk.f32.gmra.mxu2 %vm109_vm4, %v6047_v55  ;;  %v15441_v49 = vld [vmem:[#allocation3 + $0x67] sm:$0xff] }
 0x4dc   :  { %v5228_v34 = vpop.f32.mrf.mxu0 }
 0x4dd   :  { %v5734_v29 = vadd.f32 %v14879_v21, %v5718_v60  ;;  %v5381_v35 = vpop.f32.mrf.mxu1  ;;  %v5272_v6 = vadd.f32 %v5228_v34, %v15193_v42  ;;  %v15443_v34 = vld [vmem:[#allocation3 + $0x50] sm:$0xff] }
 0x4de   :  { %v5524_v26 = vpop.f32.mrf.mxu2 }
 0x4df   :  { %v5750_v24 = vmax.f32 %v5734_v29, 0.0  ;;  %12031 = vmatmul.msk.f32.gmra.mxu3 %vm109_vm4, %v6195_v17  ;;  %v5570_v30 = vadd.f32 %v5524_v26, %v5421_v13  ;;  %11980 = vmatmul.msk.f32.gmra.mxu0 %vm109_vm4, %v15389_v52  ;;  %v5422_v2 = vadd.f32 %v5378_v7, %v5272_v6  ;;  %v15436_v7 = vld [vmem:[#allocation3 + $0x49] sm:$0xff] }
 0x4e0   :  { %11997 = vmatmul.msk.f32.gmra.mxu1 %vm109_vm4, %v6195_v17  ;;  %v15461_v17 = vld [vmem:[%s17704_s2 + $0x40] sm:$0xff]  ;;  %v15466_v26 = vld [vmem:[%s17704_s2 + $0x70] sm:$0xff] }
 0x4e1   :  { %5767 = vst.msk [vmem:[#allocation3 + $0x368] sm:$0xff] %vm109_vm4, %v5750_v24  ;;  %6424 = vmatpush.msra.mxu0 %v15461_v17  ;;  %6869 = vmatpush.msra.mxu3 %v15466_v26 }
 0x4e2   :  { %v5673_v21 = vpop.f32.mrf.mxu3 }
 0x4e3   :  { %v5719_v9 = vadd.f32 %v5673_v21, %v5570_v30  ;;  %12014 = vmatmul.msk.f32.gmra.mxu2 %vm109_vm4, %v15397_v11  ;;  %v15468_v30 = vld [vmem:[#allocation3 + $0x51] sm:$0xff]  ;;  %v17740_v21 = vld [vmem:[#allocation10_spill] sm:$0xff] }
 0x4e4   :  { %v5231_v63 = vpop.f32.mrf.mxu0 }
 0x4e5   :  { %v5735_v33 = vadd.f32 %v15404_v58, %v5719_v9  ;;  %v5384_v36 = vpop.f32.mrf.mxu1  ;;  %v5273_v62 = vadd.f32 %v5231_v63, %v15203_v59  ;;  %v17741_v9 = vld [vmem:[#allocation7_spill] sm:$0xff] }
 0x4e6   :  { %v5527_v42 = vpop.f32.mrf.mxu2  ;;  %7492 = vmatpush.msrb.mxu3 %v17741_v9 }
 0x4e7   :  { %v5751_v41 = vmax.f32 %v5735_v33, 0.0  ;;  %12032 = vmatmul.msk.f32.gmra.mxu3 %vm109_vm4, %v15407_v0  ;;  %v5571_v31 = vadd.f32 %v5527_v42, %v5422_v2  ;;  %11981 = vmatmul.msk.f32.gmra.mxu0 %vm109_vm4, %v15409_v8  ;;  %v5423_v19 = vadd.f32 %v5381_v35, %v5273_v62  ;;  %v15456_v35 = vld [vmem:[%s17704_s2 + $0x60] sm:$0xff] }
 0x4e8   :  { %11998 = vmatmul.msk.f32.gmra.mxu1 %vm109_vm4, %v15407_v0  ;;  %6721 = vmatpush.msra.mxu2 %v15456_v35 }
 0x4e9   :  { %5768 = vst.msk [vmem:[#allocation3 + $0x370] sm:$0xff] %vm109_vm4, %v5751_v41  ;;  %v15480_v41 = vld [vmem:[#allocation3 + $0x68] sm:$0xff]  ;;  %7493 = vmatpush.msrb.mxu3 %v15214_v20 }
 0x4ea   :  { %v5676_v10 = vpop.f32.mrf.mxu3  ;;  %7363 = vmatpush.msrb.mxu2 %v17740_v21 }
 0x4eb   :  { %v5720_v22 = vadd.f32 %v5676_v10, %v5571_v31  ;;  %12015 = vmatmul.msk.f32.gmra.mxu2 %vm109_vm4, %v15419_v48 }
 0x4ec   :  { %v5234_v16 = vpop.f32.mrf.mxu0  ;;  %7364 = vmatpush.msrb.mxu2 %v15236_v61  ;;  %v15495_v61 = vld [vmem:[%s17704_s2 + $0x50] sm:$0xff] }
 0x4ed   :  { %v5736_v4 = vadd.f32 %v15404_v58, %v5720_v22  ;;  %v5387_v14 = vpop.f32.mrf.mxu1  ;;  %v5274_v44 = vadd.f32 %v5234_v16, %v15229_v51  ;;  %v15497_v22 = vld [vmem:[#allocation3 + $0x69] sm:$0xff]  ;;  %6572 = vmatpush.msra.mxu1 %v15495_v61 }
 0x4ee   :  { %v5530_v39 = vpop.f32.mrf.mxu2 }
 0x4ef   :  { %v5752_v54 = vmax.f32 %v5736_v4, 0.0  ;;  %12033 = vmatmul.msk.f32.gmra.mxu3 %vm109_vm4, %v15424_v40  ;;  %v5572_v59 = vadd.f32 %v5530_v39, %v5423_v19  ;;  %11982 = vmatmul.msk.f32.gmra.mxu0 %vm109_vm4, %v15426_v53  ;;  %v5424_v55 = vadd.f32 %v5384_v36, %v5274_v44  ;;  %v15478_v36 = vld [vmem:[#allocation3 + $0x6f] sm:$0xff] }
 0x4f0   :  { %11999 = vmatmul.msk.f32.gmra.mxu1 %vm109_vm4, %v15424_v40  ;;  %v17742_v4 = vld [vmem:[#allocation8_spill] sm:$0xff] }
 0x4f1   :  { %5769 = vst.msk [vmem:[#allocation3 + $0x388] sm:$0xff] %vm109_vm4, %v5752_v54  ;;  %7250 = vmatpush.msrb.mxu1 %v17742_v4  ;;  %v15505_v54 = vld [vmem:[#allocation3 + $0x87] sm:$0xff]  ;;  %v15507_v44 = vld [vmem:[#allocation3 + $0x70] sm:$0xff] }
 0x4f2   :  { %v5679_v46 = vpop.f32.mrf.mxu3 }
 0x4f3   :  { %v5721_v28 = vadd.f32 %v5679_v46, %v5572_v59  ;;  %12016 = vmatmul.msk.f32.gmra.mxu2 %vm109_vm4, %v15436_v7  ;;  %7251 = vmatpush.msrb.mxu1 %v15219_v45 }
 0x4f4   :  { %v5237_v57 = vpop.f32.mrf.mxu0 }
 0x4f5   :  { %v5737_v47 = vadd.f32 %v15404_v58, %v5721_v28  ;;  %v5390_v27 = vpop.f32.mrf.mxu1  ;;  %v5275_v13 = vadd.f32 %v5237_v57, %v15246_v3 }
 0x4f6   :  { %v5533_v60 = vpop.f32.mrf.mxu2 }
 0x4f7   :  { %v5753_v29 = vmax.f32 %v5737_v47, 0.0  ;;  %12034 = vmatmul.msk.f32.gmra.mxu3 %vm109_vm4, %v15441_v49  ;;  %v5573_v51 = vadd.f32 %v5533_v60, %v5424_v55  ;;  %11983 = vmatmul.msk.f32.gmra.mxu0 %vm109_vm4, %v15443_v34  ;;  %v5425_v33 = vadd.f32 %v5387_v14, %v5275_v13  ;;  %v15517_v47 = vld [vmem:[#allocation3 + $0x71] sm:$0xff] }
 0x4f8   :  { %12000 = vmatmul.msk.f32.gmra.mxu1 %vm109_vm4, %v15441_v49  ;;  %v15522_v13 = vld [vmem:[#allocation3 + $0x8f] sm:$0xff] }
 0x4f9   :  { %5770 = vst.msk [vmem:[#allocation3 + $0x390] sm:$0xff] %vm109_vm4, %v5753_v29 }
 0x4fa   :  { %v5682_v24 = vpop.f32.mrf.mxu3 }
 0x4fb   :  { %v5722_v3 = vadd.f32 %v5682_v24, %v5573_v51  ;;  %12017 = vmatmul.msk.f32.gmra.mxu2 %vm109_vm4, %v15468_v30 }
 0x4fc   :  { %v5240_v6 = vpop.f32.mrf.mxu0 }
 0x4fd   :  { %v5738_v63 = vadd.f32 %v15404_v58, %v5722_v3  ;;  %v5393_v2 = vpop.f32.mrf.mxu1  ;;  %v5276_v10 = vadd.f32 %v5240_v6, %v15257_v15  ;;  %v15524_v3 = vld [vmem:[#allocation3 + $0x88] sm:$0xff] }
 0x4fe   :  { %v5536_v42 = vpop.f32.mrf.mxu2 }
 0x4ff   :  { %v5754_v31 = vmax.f32 %v5738_v63, 0.0  ;;  %12035 = vmatmul.msk.f32.gmra.mxu3 %vm109_vm4, %v15478_v36  ;;  %v5574_v62 = vadd.f32 %v5536_v42, %v5425_v33  ;;  %11984 = vmatmul.msk.f32.gmra.mxu0 %vm109_vm4, %v15480_v41  ;;  %v5426_v15 = vadd.f32 %v5390_v27, %v5276_v10  ;;  %v15534_v63 = vld [vmem:[#allocation3 + $0x89] sm:$0xff] }
 0x500   :  { %12001 = vmatmul.msk.f32.gmra.mxu1 %vm109_vm4, %v15478_v36  ;;  %v15539_v10 = vld [vmem:[#allocation3 + $0xa7] sm:$0xff] }
 0x501   :  { %5771 = vst.msk [vmem:[#allocation3 + $0x3a8] sm:$0xff] %vm109_vm4, %v5754_v31 }
 0x502   :  { %v5685_v20 = vpop.f32.mrf.mxu3 }
 0x503   :  { %v5723_v16 = vadd.f32 %v5685_v20, %v5574_v62  ;;  %12018 = vmatmul.msk.f32.gmra.mxu2 %vm109_vm4, %v15497_v22 }
 0x504   :  { %v5243_v19 = vpop.f32.mrf.mxu0 }
 0x505   :  { %v5739_v14 = vadd.f32 %v15404_v58, %v5723_v16  ;;  %v5396_v39 = vpop.f32.mrf.mxu1  ;;  %v5277_v45 = vadd.f32 %v5243_v19, %v15268_v32  ;;  %v15541_v16 = vld [vmem:[#allocation3 + $0x90] sm:$0xff] }
 0x506   :  { %v5539_v59 = vpop.f32.mrf.mxu2 }
 0x507   :  { %v5755_v46 = vmax.f32 %v5739_v14, 0.0  ;;  %12036 = vmatmul.msk.f32.gmra.mxu3 %vm109_vm4, %v15505_v54  ;;  %v5575_v28 = vadd.f32 %v5539_v59, %v5426_v15  ;;  %11985 = vmatmul.msk.f32.gmra.mxu0 %vm109_vm4, %v15507_v44  ;;  %v5427_v29 = vadd.f32 %v5393_v2, %v5277_v45  ;;  %v15551_v15 = vld [vmem:[#allocation3 + $0x91] sm:$0xff] }
 0x508   :  { %12002 = vmatmul.msk.f32.gmra.mxu1 %vm109_vm4, %v15505_v54 }
 0x509   :  { %5772 = vst.msk [vmem:[#allocation3 + $0x3b0] sm:$0xff] %vm109_vm4, %v5755_v46 }
 0x50a   :  { %v5688_v57 = vpop.f32.mrf.mxu3 }
 0x50b   :  { %v5724_v55 = vadd.f32 %v5688_v57, %v5575_v28  ;;  %12019 = vmatmul.msk.f32.gmra.mxu2 %vm109_vm4, %v15517_v47  ;;  %v15556_v57 = vld [vmem:[#allocation3 + $0xaf] sm:$0xff] }
 0x50c   :  { %v5246_v27 = vpop.f32.mrf.mxu0 }
 0x50d   :  { %v5740_v60 = vadd.f32 %v15404_v58, %v5724_v55  ;;  %v5399_v51 = vpop.f32.mrf.mxu1  ;;  %v5278_v21 = vadd.f32 %v5246_v27, %v15279_v25  ;;  %v15558_v27 = vld [vmem:[#allocation3 + $0xa8] sm:$0xff] }
 0x50e   :  { %v5542_v24 = vpop.f32.mrf.mxu2 }
 0x50f   :  { %v5756_v6 = vmax.f32 %v5740_v60, 0.0  ;;  %12037 = vmatmul.msk.f32.gmra.mxu3 %vm109_vm4, %v15522_v13  ;;  %v5576_v32 = vadd.f32 %v5542_v24, %v5427_v29  ;;  %11986 = vmatmul.msk.f32.gmra.mxu0 %vm109_vm4, %v15524_v3  ;;  %v5428_v31 = vadd.f32 %v5396_v39, %v5278_v21  ;;  %v15568_v24 = vld [vmem:[#allocation3 + $0xa9] sm:$0xff] }
 0x510   :  { %12003 = vmatmul.msk.f32.gmra.mxu1 %vm109_vm4, %v15522_v13 }
 0x511   :  { %5773 = vst.msk [vmem:[#allocation3 + $0x3c8] sm:$0xff] %vm109_vm4, %v5756_v6 }
 0x512   :  { %v5691_v9 = vpop.f32.mrf.mxu3 }
 0x513   :  { %v5725_v33 = vadd.f32 %v5691_v9, %v5576_v32  ;;  %12020 = vmatmul.msk.f32.gmra.mxu2 %vm109_vm4, %v15534_v63 }
 0x514   :  { %v5249_v2 = vpop.f32.mrf.mxu0 }
 0x515   :  { %v5741_v42 = vadd.f32 %v15404_v58, %v5725_v33  ;;  %v5402_v62 = vpop.f32.mrf.mxu1  ;;  %v5279_v19 = vadd.f32 %v5249_v2, %v15290_v23  ;;  %v15573_v2 = vld [vmem:[#allocation3 + $0xc7] sm:$0xff] }
 0x516   :  { %v5545_v20 = vpop.f32.mrf.mxu2 }
 0x517   :  { %v5757_v4 = vmax.f32 %v5741_v42, 0.0  ;;  %12038 = vmatmul.msk.f32.gmra.mxu3 %vm109_vm4, %v15539_v10  ;;  %v5577_v25 = vadd.f32 %v5545_v20, %v5428_v31  ;;  %11987 = vmatmul.msk.f32.gmra.mxu0 %vm109_vm4, %v15541_v16  ;;  %v5429_v28 = vadd.f32 %v5399_v51, %v5279_v19  ;;  %v15575_v31 = vld [vmem:[#allocation3 + $0xb0] sm:$0xff] }
 0x518   :  { %12004 = vmatmul.msk.f32.gmra.mxu1 %vm109_vm4, %v15539_v10 }
 0x519   :  { %5774 = vst.msk [vmem:[#allocation3 + $0x3d0] sm:$0xff] %vm109_vm4, %v5757_v4 }
 0x51a   :  { %v5694_v14 = vpop.f32.mrf.mxu3 }
 0x51b   :  { %v5726_v39 = vadd.f32 %v5694_v14, %v5577_v25  ;;  %12021 = vmatmul.msk.f32.gmra.mxu2 %vm109_vm4, %v15551_v15  ;;  %v15585_v25 = vld [vmem:[#allocation3 + $0xb1] sm:$0xff] }
 0x51c   :  { %v5252_v59 = vpop.f32.mrf.mxu0 }
 0x51d   :  { %v5742_v46 = vadd.f32 %v15404_v58, %v5726_v39  ;;  %v5405_v45 = vpop.f32.mrf.mxu1  ;;  %v5280_v29 = vadd.f32 %v5252_v59, %v15301_v50 }
 0x51e   :  { %v5548_v55 = vpop.f32.mrf.mxu2 }
 0x51f   :  { %v5758_v60 = vmax.f32 %v5742_v46, 0.0  ;;  %12039 = vmatmul.msk.f32.gmra.mxu3 %vm109_vm4, %v15556_v57  ;;  %v5578_v23 = vadd.f32 %v5548_v55, %v5429_v28  ;;  %11988 = vmatmul.msk.f32.gmra.mxu0 %vm109_vm4, %v15558_v27  ;;  %v5430_v9 = vadd.f32 %v5402_v62, %v5280_v29  ;;  %v15590_v28 = vld [vmem:[#allocation3 + $0xcf] sm:$0xff] }
 0x520   :  { %12005 = vmatmul.msk.f32.gmra.mxu1 %vm109_vm4, %v15556_v57 }
 0x521   :  { %5775 = vst.msk [vmem:[#allocation3 + $0x3e8] sm:$0xff] %vm109_vm4, %v5758_v60  ;;  %v15592_v60 = vld [vmem:[#allocation3 + $0xc8] sm:$0xff] }
 0x522   :  { %v5697_v51 = vpop.f32.mrf.mxu3 }
 0x523   :  { %v5727_v6 = vadd.f32 %v5697_v51, %v5578_v23  ;;  %12022 = vmatmul.msk.f32.gmra.mxu2 %vm109_vm4, %v15568_v24  ;;  %v15602_v51 = vld [vmem:[#allocation3 + $0xc9] sm:$0xff] }
 0x524   :  { %v5255_v32 = vpop.f32.mrf.mxu0 }
 0x525   :  { %v5743_v21 = vadd.f32 %v15404_v58, %v5727_v6  ;;  %v5408_v33 = vpop.f32.mrf.mxu1  ;;  %v5281_v62 = vadd.f32 %v5255_v32, %v15312_v18 }
 0x526   :  { %v5551_v42 = vpop.f32.mrf.mxu2 }
 0x527   :  { %v5759_v20 = vmax.f32 %v5743_v21, 0.0  ;;  %12040 = vmatmul.msk.f32.gmra.mxu3 %vm109_vm4, %v15573_v2  ;;  %v5579_v50 = vadd.f32 %v5551_v42, %v5430_v9  ;;  %11989 = vmatmul.msk.f32.gmra.mxu0 %vm109_vm4, %v15575_v31  ;;  %v5431_v59 = vadd.f32 %v5405_v45, %v5281_v62  ;;  %v15609_v62 = vld [vmem:[#allocation3 + $0xd0] sm:$0xff] }
 0x528   :  { %12006 = vmatmul.msk.f32.gmra.mxu1 %vm109_vm4, %v15573_v2 }
 0x529   :  { %5776 = vst.msk [vmem:[#allocation3 + $0x3f0] sm:$0xff] %vm109_vm4, %v5759_v20  ;;  %v15607_v20 = vld [vmem:[#allocation3 + $0xe7] sm:$0xff] }
 0x52a   :  { %v5700_v4 = vpop.f32.mrf.mxu3 }
 0x52b   :  { %v5728_v19 = vadd.f32 %v5700_v4, %v5579_v50  ;;  %12023 = vmatmul.msk.f32.gmra.mxu2 %vm109_vm4, %v15585_v25 }
 0x52c   :  { %v5258_v14 = vpop.f32.mrf.mxu0 }
 0x52d   :  { %v5744_v39 = vadd.f32 %v15404_v58, %v5728_v19  ;;  %v5411_v46 = vpop.f32.mrf.mxu1  ;;  %v5282_v45 = vadd.f32 %v5258_v14, %v15346_v38  ;;  %v15622_v19 = vld [vmem:[%s17704_s2 + $0x88] sm:$0xff] }
 0x52e   :  { %v5554_v55 = vpop.f32.mrf.mxu2  ;;  %7016 = vmatpush.msrb.mxu0 %v15622_v19 }
 0x52f   :  { %v5760_v23 = vmax.f32 %v5744_v39, 0.0  ;;  %12041 = vmatmul.msk.f32.gmra.mxu3 %vm109_vm4, %v15590_v28  ;;  %v5580_v18 = vadd.f32 %v5554_v55, %v5431_v59  ;;  %11990 = vmatmul.msk.f32.gmra.mxu0 %vm109_vm4, %v15592_v60  ;;  %v5432_v9 = vadd.f32 %v5408_v33, %v5282_v45  ;;  %v15624_v39 = vld [vmem:[#allocation3 + $0xd1] sm:$0xff] }
 0x530   :  { %12007 = vmatmul.msk.f32.gmra.mxu1 %vm109_vm4, %v15590_v28 }
 0x531   :  { %5777 = vst.msk [vmem:[#allocation3 + $0x408] sm:$0xff] %vm109_vm4, %v5760_v23 }
 0x532   :  { %v5703_v29 = vpop.f32.mrf.mxu3 }
 0x533   :  { %v5729_v6 = vadd.f32 %v5703_v29, %v5580_v18  ;;  %12024 = vmatmul.msk.f32.gmra.mxu2 %vm109_vm4, %v15602_v51 }
 0x534   :  { %v5261_v32 = vpop.f32.mrf.mxu0 }
 0x535   :  { %v5745_v21 = vadd.f32 %v15404_v58, %v5729_v6  ;;  %v5414_v42 = vpop.f32.mrf.mxu1  ;;  %v5283_v33 = vadd.f32 %v5261_v32, %v15366_v56  ;;  %v15630_v56 = vld [vmem:[#allocation3 + $0xef] sm:$0xff] }
 0x536   :  { %v5557_v50 = vpop.f32.mrf.mxu2  ;;  %v15632_v6 = vld [vmem:[#allocation3 + $0xe8] sm:$0xff] }
 0x537   :  { %v5761_v4 = vmax.f32 %v5745_v21, 0.0  ;;  %12042 = vmatmul.msk.f32.gmra.mxu3 %vm109_vm4, %v15607_v20  ;;  %v5581_v38 = vadd.f32 %v5557_v50, %v5432_v9  ;;  %11991 = vmatmul.msk.f32.gmra.mxu0 %vm109_vm4, %v15609_v62  ;;  %v5433_v18 = vadd.f32 %v5411_v46, %v5283_v33  ;;  %v15642_v50 = vld [vmem:[#allocation3 + $0xe9] sm:$0xff] }
 0x538   :  { %12008 = vmatmul.msk.f32.gmra.mxu1 %vm109_vm4, %v15607_v20 }
 0x539   :  { %5778 = vst.msk [vmem:[#allocation3 + $0x410] sm:$0xff] %vm109_vm4, %v5761_v4 }
 0x53a   :  { %v5706_v14 = vpop.f32.mrf.mxu3 }
 0x53b   :  { %v5730_v59 = vadd.f32 %v5706_v14, %v5581_v38  ;;  %12025 = vmatmul.msk.f32.gmra.mxu2 %vm109_vm4, %v15624_v39 }
 0x53c   :  { %v5264_v55 = vpop.f32.mrf.mxu0 }
 0x53d   :  { %v5746_v23 = vadd.f32 %v15404_v58, %v5730_v59  ;;  %v5417_v45 = vpop.f32.mrf.mxu1  ;;  %v5284_v46 = vadd.f32 %v5264_v55, %v15373_v1 }
 0x53e   :  { %v5560_v29 = vpop.f32.mrf.mxu2 }
 0x53f   :  { %v5762_v32 = vmax.f32 %v5746_v23, 0.0  ;;  %12043 = vmatmul.msk.f32.gmra.mxu3 %vm109_vm4, %v15630_v56  ;;  %v5582_v21 = vadd.f32 %v5560_v29, %v5433_v18  ;;  %11992 = vmatmul.msk.f32.gmra.mxu0 %vm109_vm4, %v15632_v6  ;;  %v5434_v14 = vadd.f32 %v5414_v42, %v5284_v46  ;;  %v15647_v23 = vld [vmem:[#allocation3 + $0x107] sm:$0xff]  ;;  %v15649_v29 = vld [vmem:[#allocation3 + $0xf0] sm:$0xff] }
 0x540   :  { %12009 = vmatmul.msk.f32.gmra.mxu1 %vm109_vm4, %v15630_v56 }
 0x541   :  { %5779 = vst.msk [vmem:[#allocation3 + $0x428] sm:$0xff] %vm109_vm4, %v5762_v32 }
 0x542   :  { %v5709_v9 = vpop.f32.mrf.mxu3 }
 0x543   :  { %v5731_v4 = vadd.f32 %v5709_v9, %v5582_v21  ;;  %12026 = vmatmul.msk.f32.gmra.mxu2 %vm109_vm4, %v15642_v50  ;;  %v15660_v21 = vld [vmem:[#allocation3 + $0xf1] sm:$0xff] }
 0x544   :  { %v5267_v38 = vpop.f32.mrf.mxu0 }
 0x545   :  { %v5747_v33 = vadd.f32 %v15404_v58, %v5731_v4  ;;  %v5998_v59 = vpop.f32.mrf.mxu1  ;;  %v5285_v42 = vadd.f32 %v5267_v38, %v15380_v37 }
 0x546   :  { %v5563_v18 = vpop.f32.mrf.mxu2 }
 0x547   :  { %v5763_v32 = vmax.f32 %v5747_v33, 0.0  ;;  %12044 = vmatmul.msk.f32.gmra.mxu3 %vm109_vm4, %v15647_v23  ;;  %v5583_v1 = vadd.f32 %v5563_v18, %v5434_v14  ;;  %11993 = vmatmul.msk.f32.gmra.mxu0 %vm109_vm4, %v15649_v29  ;;  %v5435_v33 = vadd.f32 %v5417_v45, %v5285_v42  ;;  %v15666_v14 = vld [vmem:[#allocation3 + $0x10f] sm:$0xff] }
 0x548   :  { %12066 = vmatmul.msk.f32.vlgmr.msra.gmra.mxu1 %vm109_vm4, %v15397_v11 }
 0x549   :  { %5780 = vst.msk [vmem:[#allocation3 + $0x430] sm:$0xff] %vm109_vm4, %v5763_v32  ;;  %7782 = vmatpush.msra.mxu1 %v15329_v12 }
 0x54a   :  { %v5712_v55 = vpop.f32.mrf.mxu3 }
 0x54b   :  { %v5732_v46 = vadd.f32 %v5712_v55, %v5583_v1  ;;  %12027 = vmatmul.msk.f32.gmra.mxu2 %vm109_vm4, %v15660_v21  ;;  %7783 = vmatpush.msra.mxu1 %v15461_v17 }
 0x54c   :  { %v5885_v9 = vpop.f32.mrf.mxu0 }
 0x54d   :  { %v5748_v4 = vadd.f32 %v15404_v58, %v5732_v46  ;;  %v6001_v11 = vpop.f32.mrf.mxu1  ;;  %v5999_v1 = vadd.f32 %v5998_v59, %v5885_v9 }
 0x54e   :  { %v5566_v18 = vpop.f32.mrf.mxu2 }
 0x54f   :  { %v5764_v37 = vmax.f32 %v5748_v4, 0.0  ;;  %12045 = vmatmul.msk.f32.gmra.mxu3 %vm109_vm4, %v15666_v14  ;;  %v5584_v12 = vadd.f32 %v5566_v18, %v5435_v33  ;;  %12048 = vmatmul.msk.f32.vlgmr.msra.gmra.mxu0 %vm109_vm4, %v15389_v52 }
 0x550   :  { %12067 = vmatmul.msk.f32.gmra.mxu1 %vm109_vm4, %v15419_v48 }
 0x551   :  { %5781 = vst.msk [vmem:[#allocation3 + $0x448] sm:$0xff] %vm109_vm4, %v5764_v37 }
 0x552   :  { %v5715_v17 = vpop.f32.mrf.mxu3 }
 0x553   :  { %v5733_v38 = vadd.f32 %v5715_v17, %v5584_v12  ;;  %12084 = vmatmul.msk.f32.vlgmr.msra.gmra.mxu2 %vm109_vm4, %v15407_v0 }
 0x554   :  { %v5888_v45 = vpop.f32.mrf.mxu0  ;;  %7927 = vmatpush.msra.mxu2 %v15363_v5 }
 0x555   :  { %v5749_v32 = vadd.f32 %v15404_v58, %v5733_v38  ;;  %v6004_v42 = vpop.f32.mrf.mxu1 }
 0x556   :  { %v6130_v55 = vpop.f32.mrf.mxu2  ;;  %7928 = vmatpush.msra.mxu2 %v15495_v61  ;;  %v6002_v61 = vadd.f32 %v6001_v11, %v5888_v45 }
 0x557   :  { %v5765_v52 = vmax.f32 %v5749_v32, 0.0  ;;  %12102 = vmatmul.msk.f32.vlgmr.msra.gmra.mxu3 %vm109_vm4, %v15426_v53  ;;  %v6178_v48 = vadd.f32 %v6130_v55, %v5999_v1  ;;  %12049 = vmatmul.msk.f32.gmra.mxu0 %vm109_vm4, %v15409_v8 }
 0x558   :  { %12068 = vmatmul.msk.f32.gmra.mxu1 %vm109_vm4, %v15436_v7  ;;  %8073 = vmatpush.msra.mxu3 %v15324_v43 }
 0x559   :  { %5782 = vst.msk [vmem:[#allocation3 + $0x450] sm:$0xff] %vm109_vm4, %v5765_v52 }
 0x55a   :  { %v6278_v5 = vpop.f32.mrf.mxu3  ;;  %8074 = vmatpush.msra.mxu3 %v15456_v35 }
 0x55b   :  { %v15689_v58 = vadd.f32 %v6278_v5, %v6178_v48  ;;  %12085 = vmatmul.msk.f32.gmra.mxu2 %vm109_vm4, %v15424_v40 }
 0x55c   :  { %v5891_v0 = vpop.f32.mrf.mxu0 }
 0x55d   :  { %v6007_v59 = vpop.f32.mrf.mxu1  ;;  %v6005_v9 = vadd.f32 %v6004_v42, %v5891_v0 }
 0x55e   :  { %v6133_v46 = vpop.f32.mrf.mxu2 }
 0x55f   :  { %12103 = vmatmul.msk.f32.gmra.mxu3 %vm109_vm4, %v15443_v34  ;;  %v6179_v8 = vadd.f32 %v6133_v46, %v6002_v61  ;;  %12050 = vmatmul.msk.f32.gmra.mxu0 %vm109_vm4, %v15426_v53 }
 0x560   :  { %12069 = vmatmul.msk.f32.gmra.mxu1 %vm109_vm4, %v15468_v30 }
 0x562   :  { %v6281_v43 = vpop.f32.mrf.mxu3 }
 0x563   :  { %v15699_v35 = vadd.f32 %v6281_v43, %v6179_v8  ;;  %12086 = vmatmul.msk.f32.gmra.mxu2 %vm109_vm4, %v15441_v49 }
 0x564   :  { %v5894_v40 = vpop.f32.mrf.mxu0 }
 0x565   :  { %v6010_v4 = vpop.f32.mrf.mxu1  ;;  %v6008_v37 = vadd.f32 %v6007_v59, %v5894_v40 }
 0x566   :  { %v6136_v33 = vpop.f32.mrf.mxu2 }
 0x567   :  { %12104 = vmatmul.msk.f32.gmra.mxu3 %vm109_vm4, %v15480_v41  ;;  %v6180_v11 = vadd.f32 %v6136_v33, %v6005_v9  ;;  %12051 = vmatmul.msk.f32.gmra.mxu0 %vm109_vm4, %v15443_v34 }
 0x568   :  { %12070 = vmatmul.msk.f32.gmra.mxu1 %vm109_vm4, %v15497_v22 }
 0x56a   :  { %v6284_v53 = vpop.f32.mrf.mxu3 }
 0x56b   :  { %v15709_v18 = vadd.f32 %v6284_v53, %v6180_v11  ;;  %12087 = vmatmul.msk.f32.gmra.mxu2 %vm109_vm4, %v15478_v36 }
 0x56c   :  { %v5897_v49 = vpop.f32.mrf.mxu0 }
 0x56d   :  { %v6013_v12 = vpop.f32.mrf.mxu1  ;;  %v6011_v32 = vadd.f32 %v6010_v4, %v5897_v49 }
 0x56e   :  { %v6139_v17 = vpop.f32.mrf.mxu2 }
 0x56f   :  { %12105 = vmatmul.msk.f32.gmra.mxu3 %vm109_vm4, %v15507_v44  ;;  %v6181_v38 = vadd.f32 %v6139_v17, %v6008_v37  ;;  %12052 = vmatmul.msk.f32.gmra.mxu0 %vm109_vm4, %v15480_v41  ;;  %v15730_v41 = vld [vmem:[%s17704_s2 + $0x80] sm:$0xff] }
 0x570   :  { %12071 = vmatmul.msk.f32.gmra.mxu1 %vm109_vm4, %v15517_v47  ;;  %7017 = vmatpush.msrb.mxu0 %v15730_v41 }
 0x572   :  { %v6287_v34 = vpop.f32.mrf.mxu3 }
 0x573   :  { %v15719_v45 = vadd.f32 %v6287_v34, %v6181_v38  ;;  %12088 = vmatmul.msk.f32.gmra.mxu2 %vm109_vm4, %v15505_v54  ;;  %v15738_v54 = vld [vmem:[%s17704_s2 + $0x38] sm:$0xff] }
 0x574   :  { %v5900_v36 = vpop.f32.mrf.mxu0  ;;  %7637 = vmatpush.msra.mxu0 %v15738_v54 }
 0x575   :  { %v6016_v1 = vpop.f32.mrf.mxu1  ;;  %v6014_v0 = vadd.f32 %v6013_v12, %v5900_v36 }
 0x576   :  { %v6142_v42 = vpop.f32.mrf.mxu2 }
 0x577   :  { %12106 = vmatmul.msk.f32.gmra.mxu3 %vm109_vm4, %v15524_v3  ;;  %v6182_v55 = vadd.f32 %v6142_v42, %v6011_v32  ;;  %12053 = vmatmul.msk.f32.gmra.mxu0 %vm109_vm4, %v15507_v44  ;;  %v15748_v44 = vld [vmem:[%s17704_s2 + $0x30] sm:$0xff] }
 0x578   :  { %12072 = vmatmul.msk.f32.gmra.mxu1 %vm109_vm4, %v15534_v63  ;;  %7638 = vmatpush.msra.mxu0 %v15748_v44 }
 0x57a   :  { %v6290_v52 = vpop.f32.mrf.mxu3 }
 0x57b   :  { %v15741_v48 = vadd.f32 %v6290_v52, %v6182_v55  ;;  %12089 = vmatmul.msk.f32.gmra.mxu2 %vm109_vm4, %v15522_v13 }
 0x57c   :  { %v5903_v5 = vpop.f32.mrf.mxu0 }
 0x57d   :  { %v6019_v61 = vpop.f32.mrf.mxu1  ;;  %v6017_v40 = vadd.f32 %v6016_v1, %v5903_v5 }
 0x57e   :  { %v6145_v59 = vpop.f32.mrf.mxu2 }
 0x57f   :  { %12107 = vmatmul.msk.f32.gmra.mxu3 %vm109_vm4, %v15541_v16  ;;  %v6183_v46 = vadd.f32 %v6145_v59, %v6014_v0  ;;  %12054 = vmatmul.msk.f32.gmra.mxu0 %vm109_vm4, %v15524_v3 }
 0x580   :  { %12073 = vmatmul.msk.f32.gmra.mxu1 %vm109_vm4, %v15551_v15 }
 0x582   :  { %v6293_v13 = vpop.f32.mrf.mxu3 }
 0x583   :  { %v15757_v8 = vadd.f32 %v6293_v13, %v6183_v46  ;;  %12090 = vmatmul.msk.f32.gmra.mxu2 %vm109_vm4, %v15539_v10 }
 0x584   :  { %v5906_v43 = vpop.f32.mrf.mxu0 }
 0x585   :  { %v6022_v9 = vpop.f32.mrf.mxu1  ;;  %v6020_v53 = vadd.f32 %v6019_v61, %v5906_v43 }
 0x586   :  { %v6148_v4 = vpop.f32.mrf.mxu2 }
 0x587   :  { %12108 = vmatmul.msk.f32.gmra.mxu3 %vm109_vm4, %v15558_v27  ;;  %v6184_v33 = vadd.f32 %v6148_v4, %v6017_v40  ;;  %12055 = vmatmul.msk.f32.gmra.mxu0 %vm109_vm4, %v15541_v16 }
 0x588   :  { %12074 = vmatmul.msk.f32.gmra.mxu1 %vm109_vm4, %v15568_v24 }
 0x58a   :  { %v6296_v3 = vpop.f32.mrf.mxu3 }
 0x58b   :  { %v15767_v11 = vadd.f32 %v6296_v3, %v6184_v33  ;;  %12091 = vmatmul.msk.f32.gmra.mxu2 %vm109_vm4, %v15556_v57 }
 0x58c   :  { %v5909_v10 = vpop.f32.mrf.mxu0 }
 0x58d   :  { %v6025_v49 = vpop.f32.mrf.mxu1  ;;  %v6023_v38 = vadd.f32 %v6022_v9, %v5909_v10 }
 0x58e   :  { %v6151_v37 = vpop.f32.mrf.mxu2 }
 0x58f   :  { %12109 = vmatmul.msk.f32.gmra.mxu3 %vm109_vm4, %v15575_v31  ;;  %v6185_v12 = vadd.f32 %v6151_v37, %v6020_v53  ;;  %12056 = vmatmul.msk.f32.gmra.mxu0 %vm109_vm4, %v15558_v27 }
 0x590   :  { %12075 = vmatmul.msk.f32.gmra.mxu1 %vm109_vm4, %v15585_v25 }
 0x592   :  { %v6299_v16 = vpop.f32.mrf.mxu3 }
 0x593   :  { %v15777_v17 = vadd.f32 %v6299_v16, %v6185_v12  ;;  %12092 = vmatmul.msk.f32.gmra.mxu2 %vm109_vm4, %v15573_v2 }
 0x594   :  { %v5912_v57 = vpop.f32.mrf.mxu0 }
 0x595   :  { %v6028_v34 = vpop.f32.mrf.mxu1  ;;  %v6026_v42 = vadd.f32 %v6025_v49, %v5912_v57  ;;  %v6799_v49 = vld [vmem:[#allocation3 + $0x108] sm:$0xff] }
 0x596   :  { %v6154_v36 = vpop.f32.mrf.mxu2 }
 0x597   :  { %12110 = vmatmul.msk.f32.gmra.mxu3 %vm109_vm4, %v15592_v60  ;;  %v6186_v32 = vadd.f32 %v6154_v36, %v6023_v38  ;;  %12057 = vmatmul.msk.f32.gmra.mxu0 %vm109_vm4, %v15575_v31 }
 0x598   :  { %12076 = vmatmul.msk.f32.gmra.mxu1 %vm109_vm4, %v15602_v51 }
 0x59a   :  { %v6302_v27 = vpop.f32.mrf.mxu3 }
 0x59b   :  { %v15787_v1 = vadd.f32 %v6302_v27, %v6186_v32  ;;  %12093 = vmatmul.msk.f32.gmra.mxu2 %vm109_vm4, %v15590_v28  ;;  %v6800_v32 = vld [vmem:[#allocation3 + $0x110] sm:$0xff] }
 0x59c   :  { %v5915_v2 = vpop.f32.mrf.mxu0 }
 0x59d   :  { %v6031_v55 = vpop.f32.mrf.mxu1  ;;  %v6029_v61 = vadd.f32 %v6028_v34, %v5915_v2 }
 0x59e   :  { %v6157_v52 = vpop.f32.mrf.mxu2 }
 0x59f   :  { %12111 = vmatmul.msk.f32.gmra.mxu3 %vm109_vm4, %v15609_v62  ;;  %v6187_v5 = vadd.f32 %v6157_v52, %v6026_v42  ;;  %12058 = vmatmul.msk.f32.gmra.mxu0 %vm109_vm4, %v15592_v60 }
 0x5a0   :  { %12077 = vmatmul.msk.f32.gmra.mxu1 %vm109_vm4, %v15624_v39 }
 0x5a2   :  { %v6305_v31 = vpop.f32.mrf.mxu3 }
 0x5a3   :  { %v15797_v0 = vadd.f32 %v6305_v31, %v6187_v5  ;;  %12094 = vmatmul.msk.f32.gmra.mxu2 %vm109_vm4, %v15607_v20 }
 0x5a4   :  { %v5918_v28 = vpop.f32.mrf.mxu0 }
 0x5a5   :  { %v6034_v59 = vpop.f32.mrf.mxu1  ;;  %v6032_v40 = vadd.f32 %v6031_v55, %v5918_v28  ;;  %v15838_v55 = vld [vmem:[#allocation3 + $0x127] sm:$0xff] }
 0x5a6   :  { %v6160_v46 = vpop.f32.mrf.mxu2 }
 0x5a7   :  { %12112 = vmatmul.msk.f32.gmra.mxu3 %vm109_vm4, %v15632_v6  ;;  %v6188_v13 = vadd.f32 %v6160_v46, %v6029_v61  ;;  %12059 = vmatmul.msk.f32.gmra.mxu0 %vm109_vm4, %v15609_v62  ;;  %v15844_v61 = vld [vmem:[#allocation3 + $0x128] sm:$0xff] }
 0x5a8   :  { %12078 = vmatmul.msk.f32.gmra.mxu1 %vm109_vm4, %v15642_v50 }
 0x5aa   :  { %v6308_v60 = vpop.f32.mrf.mxu3 }
 0x5ab   :  { %v15807_v43 = vadd.f32 %v6308_v60, %v6188_v13  ;;  %12095 = vmatmul.msk.f32.gmra.mxu2 %vm109_vm4, %v15630_v56  ;;  %v15851_v60 = vld [vmem:[#allocation3 + $0x12f] sm:$0xff] }
 0x5ac   :  { %v5921_v20 = vpop.f32.mrf.mxu0 }
 0x5ad   :  { %v6037_v9 = vpop.f32.mrf.mxu1  ;;  %v6035_v10 = vadd.f32 %v6034_v59, %v5921_v20 }
 0x5ae   :  { %v6163_v4 = vpop.f32.mrf.mxu2 }
 0x5af   :  { %12113 = vmatmul.msk.f32.gmra.mxu3 %vm109_vm4, %v15649_v29  ;;  %v6189_v33 = vadd.f32 %v6163_v4, %v6032_v40  ;;  %12060 = vmatmul.msk.f32.gmra.mxu0 %vm109_vm4, %v15632_v6  ;;  %v15824_v6 = vld [vmem:[#allocation3 + $0x109] sm:$0xff] }
 0x5b0   :  { %12079 = vmatmul.msk.f32.gmra.mxu1 %vm109_vm4, %v15660_v21 }
 0x5b2   :  { %v6311_v62 = vpop.f32.mrf.mxu3 }
 0x5b3   :  { %v15817_v3 = vadd.f32 %v6311_v62, %v6189_v33  ;;  %12096 = vmatmul.msk.f32.gmra.mxu2 %vm109_vm4, %v15647_v23  ;;  %v15859_v62 = vld [vmem:[#allocation3 + $0x130] sm:$0xff] }
 0x5b4   :  { %v5924_v56 = vpop.f32.mrf.mxu0 }
 0x5b5   :  { %v6040_v53 = vpop.f32.mrf.mxu1  ;;  %v6038_v34 = vadd.f32 %v6037_v9, %v5924_v56 }
 0x5b6   :  { %v6166_v37 = vpop.f32.mrf.mxu2 }
 0x5b7   :  { %12114 = vmatmul.msk.f32.gmra.mxu3 %vm109_vm4, %v6799_v49  ;;  %v6190_v12 = vadd.f32 %v6166_v37, %v6035_v10  ;;  %12061 = vmatmul.msk.f32.gmra.mxu0 %vm109_vm4, %v15649_v29  ;;  %v15834_v29 = vld [vmem:[#allocation3 + $0x111] sm:$0xff] }
 0x5b8   :  { %12080 = vmatmul.msk.f32.gmra.mxu1 %vm109_vm4, %v15824_v6 }
 0x5ba   :  { %v6314_v16 = vpop.f32.mrf.mxu3 }
 0x5bb   :  { %v15828_v57 = vadd.f32 %v6314_v16, %v6190_v12  ;;  %12097 = vmatmul.msk.f32.gmra.mxu2 %vm109_vm4, %v15666_v14 }
 0x5bc   :  { %v5927_v38 = vpop.f32.mrf.mxu0 }
 0x5bd   :  { %v6043_v36 = vpop.f32.mrf.mxu1  ;;  %v6041_v31 = vadd.f32 %v6040_v53, %v5927_v38  ;;  %v15884_v38 = vld [vmem:[%s17704_s2 + $0x10] sm:$0xff] }
 0x5be   :  { %v6169_v27 = vpop.f32.mrf.mxu2  ;;  %17744 = vst [vmem:[#allocation12_spill] sm:$0xff] %v15884_v38 }
 0x5bf   :  { %12115 = vmatmul.msk.f32.gmra.mxu3 %vm109_vm4, %v6800_v32  ;;  %v6191_v2 = vadd.f32 %v6169_v27, %v6038_v34  ;;  %12062 = vmatmul.msk.f32.gmra.mxu0 %vm109_vm4, %v6799_v49 }
 0x5c0   :  { %12081 = vmatmul.msk.f32.gmra.mxu1 %vm109_vm4, %v15834_v29 }
 0x5c2   :  { %v6317_v42 = vpop.f32.mrf.mxu3 }
 0x5c3   :  { %v15840_v52 = vadd.f32 %v6317_v42, %v6191_v2  ;;  %12098 = vmatmul.msk.f32.gmra.mxu2 %vm109_vm4, %v15838_v55 }
 0x5c4   :  { %v5930_v5 = vpop.f32.mrf.mxu0 }
 0x5c5   :  { %v6574_v28 = vpop.f32.mrf.mxu1  ;;  %v6044_v9 = vadd.f32 %v6043_v36, %v5930_v5  ;;  %v12590_v36 = vld [vmem:[%s17704_s2] sm:$0xff] }
 0x5c6   :  { %v6172_v59 = vpop.f32.mrf.mxu2 }
 0x5c7   :  { %12116 = vmatmul.msk.f32.gmra.mxu3 %vm109_vm4, %v15844_v61  ;;  %v6192_v46 = vadd.f32 %v6172_v59, %v6041_v31  ;;  %12063 = vmatmul.msk.f32.gmra.mxu0 %vm109_vm4, %v6800_v32 }
 0x5c8   :  { %12136 = vmatmul.msk.f32.vlgmr.msrb.gmra.mxu1 %vm109_vm4, %v6799_v49 }
 0x5c9   :  { %8363 = vmatpush.msrb.mxu1 %v15622_v19 }
 0x5ca   :  { %v6320_v13 = vpop.f32.mrf.mxu3 }
 0x5cb   :  { %v15853_v20 = vadd.f32 %v6320_v13, %v6192_v46  ;;  %12099 = vmatmul.msk.f32.gmra.mxu2 %vm109_vm4, %v15851_v60  ;;  %8364 = vmatpush.msrb.mxu1 %v15730_v41  ;;  %v15869_v41 = vld [vmem:[%s17704_s2 + $0x78] sm:$0xff]  ;;  %v15915_v13 = vld [vmem:[#allocation3 + $0x129] sm:$0xff] }
 0x5cc   :  { %v6426_v40 = vpop.f32.mrf.mxu0  ;;  %17743 = vst [vmem:[#allocation9_spill] sm:$0xff] %v15869_v41 }
 0x5cd   :  { %v6474_v4 = vadd.f32 %v6426_v40, %v15689_v58  ;;  %v6577_v33 = vpop.f32.mrf.mxu1 }
 0x5ce   :  { %v6175_v56 = vpop.f32.mrf.mxu2 }
 0x5cf   :  { %12117 = vmatmul.msk.f32.gmra.mxu3 %vm109_vm4, %v15859_v62  ;;  %v6193_v19 = vadd.f32 %v6175_v56, %v6044_v9  ;;  %v6622_v10 = vadd.f32 %v6574_v28, %v6474_v4  ;;  %12120 = vmatmul.msk.f32.vlgmr.msrb.gmra.mxu0 %vm109_vm4, %v15436_v7  ;;  %v12587_v7 = vld [vmem:[%s17704_s2 + $0x18] sm:$0xff]  ;;  %v15921_v4 = vld [vmem:[#allocation3 + $0x148] sm:$0xff] }
 0x5d0   :  { %12137 = vmatmul.msk.f32.gmra.mxu1 %vm109_vm4, %v6800_v32  ;;  %8218 = vmatpush.msrb.mxu0 %v15869_v41  ;;  %17745 = vst [vmem:[#allocation11_spill] sm:$0xff] %v15921_v4 }
 0x5d2   :  { %v6323_v58 = vpop.f32.mrf.mxu3  ;;  %8219 = vmatpush.msrb.mxu0 %v15466_v26 }
 0x5d3   :  { %v15873_v53 = vadd.f32 %v6323_v58, %v6193_v19  ;;  %12152 = vmatmul.msk.f32.vlgmr.msrb.gmra.mxu2 %vm109_vm4, %v15647_v23  ;;  %v15930_v58 = vld [vmem:[#allocation3 + $0x131] sm:$0xff] }
 0x5d4   :  { %v6429_v49 = vpop.f32.mrf.mxu0  ;;  %8595 = vmatpush.msrb.mxu2 %v12587_v7 }
 0x5d5   :  { %v6475_v37 = vadd.f32 %v6429_v49, %v15699_v35  ;;  %v6580_v12 = vpop.f32.mrf.mxu1  ;;  %v12589_v35 = vld [vmem:[%s17704_s2 + $0x8] sm:$0xff] }
 0x5d6   :  { %v6723_v16 = vpop.f32.mrf.mxu2  ;;  %8596 = vmatpush.msrb.mxu2 %v15884_v38  ;;  %v16093_v38 = vld [vmem:[#allocation3 + $0x1cf] sm:$0xff] }
 0x5d7   :  { %12168 = vmatmul.msk.f32.vlgmr.msrb.gmra.mxu3 %vm109_vm4, %v15824_v6  ;;  %v6771_v26 = vadd.f32 %v6723_v16, %v6622_v10  ;;  %v6623_v23 = vadd.f32 %v6577_v33, %v6475_v37  ;;  %12121 = vmatmul.msk.f32.gmra.mxu0 %vm109_vm4, %v15468_v30  ;;  %v15936_v37 = vld [vmem:[#allocation3 + $0x150] sm:$0xff]  ;;  %v15940_v16 = vld [vmem:[#allocation3 + $0x147] sm:$0xff] }
 0x5d8   :  { %12138 = vmatmul.msk.f32.gmra.mxu1 %vm109_vm4, %v15844_v61  ;;  %8708 = vmatpush.msrb.mxu3 %v12589_v35 }
 0x5da   :  { %v6871_v34 = vpop.f32.mrf.mxu3  ;;  %8709 = vmatpush.msrb.mxu3 %v12590_v36 }
 0x5db   :  { %v15899_v32 = vadd.f32 %v6871_v34, %v6771_v26  ;;  %12153 = vmatmul.msk.f32.gmra.mxu2 %vm109_vm4, %v15666_v14  ;;  %v15947_v34 = vld [vmem:[#allocation3 + $0x149] sm:$0xff] }
 0x5dc   :  { %v6432_v30 = vpop.f32.mrf.mxu0 }
 0x5dd   :  { %v6476_v27 = vadd.f32 %v6432_v30, %v15709_v18  ;;  %v6583_v2 = vpop.f32.mrf.mxu1 }
 0x5de   :  { %v6726_v42 = vpop.f32.mrf.mxu2 }
 0x5df   :  { %12169 = vmatmul.msk.f32.gmra.mxu3 %vm109_vm4, %v15834_v29  ;;  %v6772_v5 = vadd.f32 %v6726_v42, %v6623_v23  ;;  %v6624_v31 = vadd.f32 %v6580_v12, %v6476_v27  ;;  %12122 = vmatmul.msk.f32.gmra.mxu0 %vm109_vm4, %v15497_v22  ;;  %v15953_v27 = vld [vmem:[#allocation3 + $0x168] sm:$0xff] }
 0x5e0   :  { %12139 = vmatmul.msk.f32.gmra.mxu1 %vm109_vm4, %v15859_v62  ;;  %v15957_v42 = vld [vmem:[#allocation3 + $0x14f] sm:$0xff] }
 0x5e2   :  { %v6874_v28 = vpop.f32.mrf.mxu3 }
 0x5e3   :  { %v15910_v59 = vadd.f32 %v6874_v28, %v6772_v5  ;;  %12154 = vmatmul.msk.f32.gmra.mxu2 %vm109_vm4, %v15838_v55 }
 0x5e4   :  { %v6435_v14 = vpop.f32.mrf.mxu0 }
 0x5e5   :  { %v6477_v18 = vadd.f32 %v6435_v14, %v15719_v45  ;;  %v6586_v46 = vpop.f32.mrf.mxu1  ;;  %v15964_v14 = vld [vmem:[#allocation3 + $0x151] sm:$0xff] }
 0x5e6   :  { %v6729_v40 = vpop.f32.mrf.mxu2 }
 0x5e7   :  { %12170 = vmatmul.msk.f32.gmra.mxu3 %vm109_vm4, %v15915_v13  ;;  %v6773_v22 = vadd.f32 %v6729_v40, %v6624_v31  ;;  %v6625_v9 = vadd.f32 %v6583_v2, %v6477_v18  ;;  %12123 = vmatmul.msk.f32.gmra.mxu0 %vm109_vm4, %v15517_v47  ;;  %v15970_v40 = vld [vmem:[#allocation3 + $0x170] sm:$0xff] }
 0x5e8   :  { %12140 = vmatmul.msk.f32.gmra.mxu1 %vm109_vm4, %v15921_v4 }
 0x5ea   :  { %v6877_v33 = vpop.f32.mrf.mxu3 }
 0x5eb   :  { %v15925_v56 = vadd.f32 %v6877_v33, %v6773_v22  ;;  %12155 = vmatmul.msk.f32.gmra.mxu2 %vm109_vm4, %v15851_v60 }
 0x5ec   :  { %v6438_v45 = vpop.f32.mrf.mxu0 }
 0x5ed   :  { %v6478_v19 = vadd.f32 %v6438_v45, %v15741_v48  ;;  %v6589_v10 = vpop.f32.mrf.mxu1 }
 0x5ee   :  { %v6732_v49 = vpop.f32.mrf.mxu2 }
 0x5ef   :  { %12171 = vmatmul.msk.f32.gmra.mxu3 %vm109_vm4, %v15930_v58  ;;  %v6774_v47 = vadd.f32 %v6732_v49, %v6625_v9  ;;  %v6626_v7 = vadd.f32 %v6586_v46, %v6478_v19  ;;  %12124 = vmatmul.msk.f32.gmra.mxu0 %vm109_vm4, %v15534_v63  ;;  %v15974_v9 = vld [vmem:[#allocation3 + $0x167] sm:$0xff] }
 0x5f0   :  { %12141 = vmatmul.msk.f32.gmra.mxu1 %vm109_vm4, %v15936_v37 }
 0x5f2   :  { %v6880_v12 = vpop.f32.mrf.mxu3 }
 0x5f3   :  { %v15942_v48 = vadd.f32 %v6880_v12, %v6774_v47  ;;  %12156 = vmatmul.msk.f32.gmra.mxu2 %vm109_vm4, %v15940_v16 }
 0x5f4   :  { %v6441_v26 = vpop.f32.mrf.mxu0 }
 0x5f5   :  { %v6479_v23 = vadd.f32 %v6441_v26, %v15757_v8  ;;  %v6592_v35 = vpop.f32.mrf.mxu1  ;;  %v15991_v26 = vld [vmem:[#allocation3 + $0x16f] sm:$0xff] }
 0x5f6   :  { %v6735_v63 = vpop.f32.mrf.mxu2 }
 0x5f7   :  { %12172 = vmatmul.msk.f32.gmra.mxu3 %vm109_vm4, %v15947_v34  ;;  %v6775_v36 = vadd.f32 %v6735_v63, %v6626_v7  ;;  %v6627_v30 = vadd.f32 %v6589_v10, %v6479_v23  ;;  %12125 = vmatmul.msk.f32.gmra.mxu0 %vm109_vm4, %v15551_v15  ;;  %v15981_v10 = vld [vmem:[#allocation3 + $0x169] sm:$0xff] }
 0x5f8   :  { %12142 = vmatmul.msk.f32.gmra.mxu1 %vm109_vm4, %v15953_v27  ;;  %v15987_v7 = vld [vmem:[#allocation3 + $0x188] sm:$0xff] }
 0x5fa   :  { %v6883_v2 = vpop.f32.mrf.mxu3 }
 0x5fb   :  { %v15959_v8 = vadd.f32 %v6883_v2, %v6775_v36  ;;  %12157 = vmatmul.msk.f32.gmra.mxu2 %vm109_vm4, %v15957_v42  ;;  %v15998_v36 = vld [vmem:[#allocation3 + $0x171] sm:$0xff] }
 0x5fc   :  { %v6444_v5 = vpop.f32.mrf.mxu0 }
 0x5fd   :  { %v6480_v31 = vadd.f32 %v6444_v5, %v15767_v11  ;;  %v6595_v28 = vpop.f32.mrf.mxu1  ;;  %v16004_v5 = vld [vmem:[#allocation3 + $0x190] sm:$0xff] }
 0x5fe   :  { %v6738_v15 = vpop.f32.mrf.mxu2 }
 0x5ff   :  { %12173 = vmatmul.msk.f32.gmra.mxu3 %vm109_vm4, %v15964_v14  ;;  %v6776_v18 = vadd.f32 %v6738_v15, %v6627_v30  ;;  %v6628_v46 = vadd.f32 %v6592_v35, %v6480_v31  ;;  %12126 = vmatmul.msk.f32.gmra.mxu0 %vm109_vm4, %v15568_v24 }
 0x600   :  { %12143 = vmatmul.msk.f32.gmra.mxu1 %vm109_vm4, %v15970_v40 }
 0x602   :  { %v6886_v22 = vpop.f32.mrf.mxu3 }
 0x603   :  { %v15976_v11 = vadd.f32 %v6886_v22, %v6776_v18  ;;  %12158 = vmatmul.msk.f32.gmra.mxu2 %vm109_vm4, %v15974_v9  ;;  %v16015_v22 = vld [vmem:[#allocation3 + $0x189] sm:$0xff] }
 0x604   :  { %v6447_v33 = vpop.f32.mrf.mxu0 }
 0x605   :  { %v6481_v45 = vadd.f32 %v6447_v33, %v15777_v17  ;;  %v6598_v19 = vpop.f32.mrf.mxu1 }
 0x606   :  { %v6741_v24 = vpop.f32.mrf.mxu2 }
 0x607   :  { %12174 = vmatmul.msk.f32.gmra.mxu3 %vm109_vm4, %v15981_v10  ;;  %v6777_v49 = vadd.f32 %v6741_v24, %v6628_v46  ;;  %v6629_v47 = vadd.f32 %v6595_v28, %v6481_v45  ;;  %12127 = vmatmul.msk.f32.gmra.mxu0 %vm109_vm4, %v15585_v25  ;;  %v16008_v28 = vld [vmem:[#allocation3 + $0x187] sm:$0xff] }
 0x608   :  { %12144 = vmatmul.msk.f32.gmra.mxu1 %vm109_vm4, %v15987_v7 }
 0x60a   :  { %v6889_v12 = vpop.f32.mrf.mxu3 }
 0x60b   :  { %v15993_v17 = vadd.f32 %v6889_v12, %v6777_v49  ;;  %12159 = vmatmul.msk.f32.gmra.mxu2 %vm109_vm4, %v15991_v26  ;;  %v16025_v49 = vld [vmem:[#allocation3 + $0x18f] sm:$0xff] }
 0x60c   :  { %v6450_v23 = vpop.f32.mrf.mxu0 }
 0x60d   :  { %v6482_v35 = vadd.f32 %v6450_v23, %v15787_v1  ;;  %v6601_v63 = vpop.f32.mrf.mxu1 }
 0x60e   :  { %v6744_v25 = vpop.f32.mrf.mxu2 }
 0x60f   :  { %12175 = vmatmul.msk.f32.gmra.mxu3 %vm109_vm4, %v15998_v36  ;;  %v6778_v30 = vadd.f32 %v6744_v25, %v6629_v47  ;;  %v6630_v2 = vadd.f32 %v6598_v19, %v6482_v35  ;;  %12128 = vmatmul.msk.f32.gmra.mxu0 %vm109_vm4, %v15602_v51  ;;  %v16021_v19 = vld [vmem:[#allocation3 + $0x1a8] sm:$0xff]  ;;  %v16032_v35 = vld [vmem:[#allocation3 + $0x191] sm:$0xff] }
 0x610   :  { %12145 = vmatmul.msk.f32.gmra.mxu1 %vm109_vm4, %v16004_v5 }
 0x612   :  { %v6892_v31 = vpop.f32.mrf.mxu3 }
 0x613   :  { %v16010_v1 = vadd.f32 %v6892_v31, %v6778_v30  ;;  %12160 = vmatmul.msk.f32.gmra.mxu2 %vm109_vm4, %v16008_v28  ;;  %v16038_v30 = vld [vmem:[#allocation3 + $0x1b0] sm:$0xff]  ;;  %v16042_v31 = vld [vmem:[#allocation3 + $0x1a7] sm:$0xff] }
 0x614   :  { %v6453_v15 = vpop.f32.mrf.mxu0 }
 0x615   :  { %v6483_v18 = vadd.f32 %v6453_v15, %v15797_v0  ;;  %v6604_v46 = vpop.f32.mrf.mxu1 }
 0x616   :  { %v6747_v51 = vpop.f32.mrf.mxu2 }
 0x617   :  { %12176 = vmatmul.msk.f32.gmra.mxu3 %vm109_vm4, %v16015_v22  ;;  %v6779_v33 = vadd.f32 %v6747_v51, %v6630_v2  ;;  %v6631_v45 = vadd.f32 %v6601_v63, %v6483_v18  ;;  %12129 = vmatmul.msk.f32.gmra.mxu0 %vm109_vm4, %v15624_v39  ;;  %v16049_v51 = vld [vmem:[#allocation3 + $0x1a9] sm:$0xff] }
 0x618   :  { %12146 = vmatmul.msk.f32.gmra.mxu1 %vm109_vm4, %v16021_v19 }
 0x61a   :  { %v6895_v24 = vpop.f32.mrf.mxu3 }
 0x61b   :  { %v16027_v0 = vadd.f32 %v6895_v24, %v6779_v33  ;;  %12161 = vmatmul.msk.f32.gmra.mxu2 %vm109_vm4, %v16025_v49  ;;  %v16055_v24 = vld [vmem:[#allocation3 + $0x1c8] sm:$0xff] }
 0x61c   :  { %v6456_v47 = vpop.f32.mrf.mxu0 }
 0x61d   :  { %v6484_v12 = vadd.f32 %v6456_v47, %v15807_v43  ;;  %v6607_v23 = vpop.f32.mrf.mxu1 }
 0x61e   :  { %v6750_v39 = vpop.f32.mrf.mxu2 }
 0x61f   :  { %12177 = vmatmul.msk.f32.gmra.mxu3 %vm109_vm4, %v16032_v35  ;;  %v6780_v63 = vadd.f32 %v6750_v39, %v6631_v45  ;;  %v6632_v25 = vadd.f32 %v6604_v46, %v6484_v12  ;;  %12130 = vmatmul.msk.f32.gmra.mxu0 %vm109_vm4, %v15642_v50  ;;  %v16059_v12 = vld [vmem:[#allocation3 + $0x1af] sm:$0xff] }
 0x620   :  { %12147 = vmatmul.msk.f32.gmra.mxu1 %vm109_vm4, %v16038_v30 }
 0x622   :  { %v6898_v2 = vpop.f32.mrf.mxu3 }
 0x623   :  { %v16044_v43 = vadd.f32 %v6898_v2, %v6780_v63  ;;  %12162 = vmatmul.msk.f32.gmra.mxu2 %vm109_vm4, %v16042_v31 }
 0x624   :  { %v6459_v15 = vpop.f32.mrf.mxu0 }
 0x625   :  { %v6485_v18 = vadd.f32 %v6459_v15, %v15817_v3  ;;  %v6610_v46 = vpop.f32.mrf.mxu1 }
 0x626   :  { %v6753_v50 = vpop.f32.mrf.mxu2 }
 0x627   :  { %12178 = vmatmul.msk.f32.gmra.mxu3 %vm109_vm4, %v16049_v51  ;;  %v6781_v33 = vadd.f32 %v6753_v50, %v6632_v25  ;;  %v6633_v45 = vadd.f32 %v6607_v23, %v6485_v18  ;;  %12131 = vmatmul.msk.f32.gmra.mxu0 %vm109_vm4, %v15660_v21  ;;  %v16066_v25 = vld [vmem:[#allocation3 + $0x1b1] sm:$0xff] }
 0x628   :  { %12148 = vmatmul.msk.f32.gmra.mxu1 %vm109_vm4, %v16055_v24  ;;  %v16072_v18 = vld [vmem:[#allocation3 + $0x1d0] sm:$0xff] }
 0x62a   :  { %v6901_v47 = vpop.f32.mrf.mxu3 }
 0x62b   :  { %v16061_v3 = vadd.f32 %v6901_v47, %v6781_v33  ;;  %12163 = vmatmul.msk.f32.gmra.mxu2 %vm109_vm4, %v16059_v12  ;;  %v16076_v33 = vld [vmem:[#allocation3 + $0x1c7] sm:$0xff] }
 0x62c   :  { %v6462_v39 = vpop.f32.mrf.mxu0 }
 0x62d   :  { %v6486_v63 = vadd.f32 %v6462_v39, %v15828_v57  ;;  %v6613_v23 = vpop.f32.mrf.mxu1  ;;  %v16083_v39 = vld [vmem:[#allocation3 + $0x1c9] sm:$0xff] }
 0x62e   :  { %v6756_v21 = vpop.f32.mrf.mxu2 }
 0x62f   :  { %12179 = vmatmul.msk.f32.gmra.mxu3 %vm109_vm4, %v16066_v25  ;;  %v6782_v2 = vadd.f32 %v6756_v21, %v6633_v45  ;;  %v6634_v15 = vadd.f32 %v6610_v46, %v6486_v63  ;;  %12132 = vmatmul.msk.f32.gmra.mxu0 %vm109_vm4, %v15824_v6 }
 0x630   :  { %12149 = vmatmul.msk.f32.gmra.mxu1 %vm109_vm4, %v16072_v18 }
 0x632   :  { %v6904_v50 = vpop.f32.mrf.mxu3 }
 0x633   :  { %v16078_v57 = vadd.f32 %v6904_v50, %v6782_v2  ;;  %12164 = vmatmul.msk.f32.gmra.mxu2 %vm109_vm4, %v16076_v33  ;;  %v16089_v2 = vld [vmem:[#allocation3 + $0x1e8] sm:$0xff] }
 0x634   :  { %v6465_v47 = vpop.f32.mrf.mxu0 }
 0x635   :  { %v6487_v45 = vadd.f32 %v6465_v47, %v15840_v52  ;;  %v6616_v46 = vpop.f32.mrf.mxu1 }
 0x636   :  { %v6759_v6 = vpop.f32.mrf.mxu2 }
 0x637   :  { %12180 = vmatmul.msk.f32.gmra.mxu3 %vm109_vm4, %v16083_v39  ;;  %v6783_v63 = vadd.f32 %v6759_v6, %v6634_v15  ;;  %v6635_v21 = vadd.f32 %v6613_v23, %v6487_v45  ;;  %12133 = vmatmul.msk.f32.gmra.mxu0 %vm109_vm4, %v15834_v29  ;;  %v16100_v45 = vld [vmem:[#allocation3 + $0x1d1] sm:$0xff] }
 0x638   :  { %12150 = vmatmul.msk.f32.gmra.mxu1 %vm109_vm4, %v16089_v2  ;;  %17747 = vst [vmem:[#allocation7_spill] sm:$0xff] %v16100_v45 }
 0x63a   :  { %v6907_v50 = vpop.f32.mrf.mxu3 }
 0x63b   :  { %v16095_v52 = vadd.f32 %v6907_v50, %v6783_v63  ;;  %12165 = vmatmul.msk.f32.gmra.mxu2 %vm109_vm4, %v16093_v38  ;;  %v16106_v63 = vld [vmem:[#allocation3 + $0x1f0] sm:$0xff] }
 0x63c   :  { %v6468_v47 = vpop.f32.mrf.mxu0  ;;  %17748 = vst [vmem:[#allocation8_spill] sm:$0xff] %v16106_v63 }
 0x63d   :  { %17746 = vst [vmem:[#allocation10_spill] sm:$0xff] %v16095_v52  ;;  %v6488_v15 = vadd.f32 %v6468_v47, %v15853_v20  ;;  %v6619_v23 = vpop.f32.mrf.mxu1  ;;  %v16110_v52 = vld [vmem:[#allocation3 + $0x1e7] sm:$0xff] }
 0x63e   :  { %v6762_v29 = vpop.f32.mrf.mxu2 }
 0x63f   :  { %12181 = vmatmul.msk.f32.gmra.mxu3 %vm109_vm4, %v16100_v45  ;;  %v6784_v6 = vadd.f32 %v6762_v29, %v6635_v21  ;;  %v6636_v41 = vadd.f32 %v6616_v46, %v6488_v15  ;;  %12134 = vmatmul.msk.f32.gmra.mxu0 %vm109_vm4, %v15915_v13  ;;  %v16117_v15 = vld [vmem:[#allocation3 + $0x1e9] sm:$0xff] }
 0x640   :  { %12151 = vmatmul.msk.f32.gmra.mxu1 %vm109_vm4, %v16106_v63 }
 0x642   :  { %v6910_v50 = vpop.f32.mrf.mxu3 }
 0x643   :  { %v16112_v20 = vadd.f32 %v6910_v50, %v6784_v6  ;;  %12166 = vmatmul.msk.f32.gmra.mxu2 %vm109_vm4, %v16110_v52  ;;  %v16126_v50 = vld [vmem:[#allocation3 + $0x1ef] sm:$0xff] }
 0x644   :  { %v6471_v47 = vpop.f32.mrf.mxu0 }
 0x645   :  { %v6489_v21 = vadd.f32 %v6471_v47, %v15873_v53  ;;  %v7253_v46 = vpop.f32.mrf.mxu1  ;;  %v16133_v47 = vld [vmem:[#allocation3 + $0x1f1] sm:$0xff] }
 0x646   :  { %v6765_v29 = vpop.f32.mrf.mxu2 }
 0x647   :  { %12182 = vmatmul.msk.f32.gmra.mxu3 %vm109_vm4, %v16117_v15  ;;  %v6785_v45 = vadd.f32 %v6765_v29, %v6636_v41  ;;  %v6637_v63 = vadd.f32 %v6619_v23, %v6489_v21  ;;  %12135 = vmatmul.msk.f32.gmra.mxu0 %vm109_vm4, %v15930_v58 }
 0x648   :  { %12200 = vmatmul.msk.f32.vlgmr.msra.gmra.mxu1 %vm109_vm4, %v15844_v61 }
 0x649   :  { %8982 = vmatpush.msra.mxu1 %v15738_v54 }
 0x64a   :  { %v6913_v6 = vpop.f32.mrf.mxu3 }
 0x64b   :  { %v16128_v53 = vadd.f32 %v6913_v6, %v6785_v45  ;;  %12167 = vmatmul.msk.f32.gmra.mxu2 %vm109_vm4, %v16126_v50  ;;  %8983 = vmatpush.msra.mxu1 %v15748_v44  ;;  %v16141_v45 = vld [vmem:[%s17706_s4 + $0x1] ss:$0 sm:$0xff]  ;;  %v16150_v44 = vld [vmem:[%s17704_s2 + $0x28] sm:$0xff] }
 0x64c   :  { %v7019_v41 = vpop.f32.mrf.mxu0  ;;  %17749 = vst [vmem:[#allocation13_spill] sm:$0xff] %v16150_v44  ;;  %v12593_v6 = vld [vmem:[%s17704_s2 + $0x48] sm:$0xff] }
 0x64d   :  { %v7256_v23 = vpop.f32.mrf.mxu1  ;;  %v7067_v54 = vadd.f32 %v7019_v41, %v15899_v32  ;;  %v16156_v32 = vld [vmem:[%s17704_s2 + $0x20] sm:$0xff] }
 0x64e   :  { %v6768_v21 = vpop.f32.mrf.mxu2  ;;  %17750 = vst [vmem:[#allocation14_spill] sm:$0xff] %v16156_v32 }
 0x64f   :  { %12183 = vmatmul.msk.f32.gmra.mxu3 %vm109_vm4, %v16133_v47  ;;  %v6786_v61 = vadd.f32 %v6768_v21, %v6637_v63  ;;  %12184 = vmatmul.msk.f32.vlgmr.msra.gmra.mxu0 %vm109_vm4, %v15838_v55  ;;  %v7084_v55 = vadd.f32 %v16141_v45, %v7067_v54 }
 0x650   :  { %12201 = vmatmul.msk.f32.gmra.mxu1 %vm109_vm4, %v15859_v62  ;;  %8837 = vmatpush.msra.mxu0 %v16150_v44 }
 0x652   :  { %v6916_v63 = vpop.f32.mrf.mxu3  ;;  %8838 = vmatpush.msra.mxu0 %v16156_v32 }
 0x653   :  { %v16159_v29 = vadd.f32 %v6916_v63, %v6786_v61  ;;  %12216 = vmatmul.msk.f32.vlgmr.msra.gmra.mxu2 %vm109_vm4, %v15915_v13  ;;  %v12594_v61 = vld [vmem:[%s17704_s2 + $0x40] sm:$0xff]  ;;  %v7100_v63 = vmax.f32 %v7084_v55, 0.0 }
 0x654   :  { %v7022_v62 = vpop.f32.mrf.mxu0  ;;  %9127 = vmatpush.msra.mxu2 %v12593_v6 }
 0x655   :  { %v7068_v41 = vadd.f32 %v7022_v62, %v15910_v59  ;;  %v7259_v21 = vpop.f32.mrf.mxu1  ;;  %v12595_v59 = vld [vmem:[%s17704_s2 + $0x58] sm:$0xff] }
 0x656   :  { %v7366_v44 = vpop.f32.mrf.mxu2  ;;  %9128 = vmatpush.msra.mxu2 %v12594_v61 }
 0x657   :  { %12232 = vmatmul.msk.f32.vlgmr.msra.gmra.mxu3 %vm109_vm4, %v15940_v16  ;;  %v7367_v13 = vadd.f32 %v7366_v44, %v7253_v46  ;;  %v7085_v54 = vadd.f32 %v16141_v45, %v7068_v41  ;;  %12185 = vmatmul.msk.f32.gmra.mxu0 %vm109_vm4, %v15851_v60  ;;  %v12596_v46 = vld [vmem:[%s17704_s2 + $0x50] sm:$0xff]  ;;  %v7117_v44 = vsel %vm7116_vm7, %v7100_v63, 0.0 }
 0x658   :  { %12202 = vmatmul.msk.f32.gmra.mxu1 %vm109_vm4, %v15921_v4  ;;  %9272 = vmatpush.msra.mxu3 %v12595_v59 }
 0x659   :  { %v7101_v62 = vmax.f32 %v7085_v54, 0.0 }
 0x65a   :  { %v7495_v55 = vpop.f32.mrf.mxu3  ;;  %9273 = vmatpush.msra.mxu3 %v12596_v46 }
 0x65b   :  { %v16185_v6 = vadd.f32 %v7495_v55, %v7367_v13  ;;  %v7118_v60 = vsel %vm7116_vm7, %v7101_v62, 0.0  ;;  %12217 = vmatmul.msk.f32.gmra.mxu2 %vm109_vm4, %v15930_v58 }
 0x65c   :  { %v7119_v41 = vadd.f32 %v7118_v60, %v7117_v44  ;;  %v7025_v61 = vpop.f32.mrf.mxu0 }
 0x65d   :  { %v7069_v59 = vadd.f32 %v7025_v61, %v15925_v56  ;;  %v7262_v54 = vpop.f32.mrf.mxu1 }
 0x65e   :  { %v7369_v32 = vpop.f32.mrf.mxu2 }
 0x65f   :  { %12233 = vmatmul.msk.f32.gmra.mxu3 %vm109_vm4, %v15957_v42  ;;  %v7370_v4 = vadd.f32 %v7369_v32, %v7256_v23  ;;  %v7086_v46 = vadd.f32 %v16141_v45, %v7069_v59  ;;  %12186 = vmatmul.msk.f32.gmra.mxu0 %vm109_vm4, %v15940_v16 }
 0x660   :  { %12203 = vmatmul.msk.f32.gmra.mxu1 %vm109_vm4, %v15936_v37 }
 0x661   :  { %v7102_v63 = vmax.f32 %v7086_v46, 0.0 }
 0x662   :  { %v7498_v58 = vpop.f32.mrf.mxu3 }
 0x663   :  { %v16198_v13 = vadd.f32 %v7498_v58, %v7370_v4  ;;  %v7120_v56 = vsel %vm7116_vm7, %v7102_v63, 0.0  ;;  %12218 = vmatmul.msk.f32.gmra.mxu2 %vm109_vm4, %v15947_v34 }
 0x664   :  { %v7121_v62 = vadd.f32 %v7120_v56, %v7119_v41  ;;  %v7028_v55 = vpop.f32.mrf.mxu0 }
 0x665   :  { %v7070_v23 = vadd.f32 %v7028_v55, %v15942_v48  ;;  %v7265_v32 = vpop.f32.mrf.mxu1 }
 0x666   :  { %v7372_v44 = vpop.f32.mrf.mxu2 }
 0x667   :  { %12234 = vmatmul.msk.f32.gmra.mxu3 %vm109_vm4, %v15974_v9  ;;  %v7373_v16 = vadd.f32 %v7372_v44, %v7259_v21  ;;  %v7087_v37 = vadd.f32 %v16141_v45, %v7070_v23  ;;  %12187 = vmatmul.msk.f32.gmra.mxu0 %vm109_vm4, %v15957_v42 }
 0x668   :  { %12204 = vmatmul.msk.f32.gmra.mxu1 %vm109_vm4, %v15953_v27 }
 0x669   :  { %v7103_v4 = vmax.f32 %v7087_v37, 0.0 }
 0x66a   :  { %v7501_v34 = vpop.f32.mrf.mxu3 }
 0x66b   :  { %v16211_v60 = vadd.f32 %v7501_v34, %v7373_v16  ;;  %v7122_v48 = vsel %vm7116_vm7, %v7103_v4, 0.0  ;;  %12219 = vmatmul.msk.f32.gmra.mxu2 %vm109_vm4, %v15964_v14 }
 0x66c   :  { %v7123_v41 = vadd.f32 %v7122_v48, %v7121_v62  ;;  %v7031_v61 = vpop.f32.mrf.mxu0 }
 0x66d   :  { %v7071_v21 = vadd.f32 %v7031_v61, %v15959_v8  ;;  %v7268_v59 = vpop.f32.mrf.mxu1 }
 0x66e   :  { %v7375_v46 = vpop.f32.mrf.mxu2 }
 0x66f   :  { %12235 = vmatmul.msk.f32.gmra.mxu3 %vm109_vm4, %v15991_v26  ;;  %v7376_v42 = vadd.f32 %v7375_v46, %v7262_v54  ;;  %v7088_v27 = vadd.f32 %v16141_v45, %v7071_v21  ;;  %12188 = vmatmul.msk.f32.gmra.mxu0 %vm109_vm4, %v15974_v9 }
 0x670   :  { %12205 = vmatmul.msk.f32.gmra.mxu1 %vm109_vm4, %v15970_v40 }
 0x671   :  { %v7104_v63 = vmax.f32 %v7088_v27, 0.0 }
 0x672   :  { %v7504_v14 = vpop.f32.mrf.mxu3 }
 0x673   :  { %v16224_v58 = vadd.f32 %v7504_v14, %v7376_v42  ;;  %v7124_v8 = vsel %vm7116_vm7, %v7104_v63, 0.0  ;;  %12220 = vmatmul.msk.f32.gmra.mxu2 %vm109_vm4, %v15981_v10 }
 0x674   :  { %v7125_v56 = vadd.f32 %v7124_v8, %v7123_v41  ;;  %v7034_v62 = vpop.f32.mrf.mxu0 }
 0x675   :  { %v7072_v54 = vadd.f32 %v7034_v62, %v15976_v11  ;;  %v7271_v55 = vpop.f32.mrf.mxu1 }
 0x676   :  { %v7378_v23 = vpop.f32.mrf.mxu2 }
 0x677   :  { %12236 = vmatmul.msk.f32.gmra.mxu3 %vm109_vm4, %v16008_v28  ;;  %v7379_v9 = vadd.f32 %v7378_v23, %v7265_v32  ;;  %v7089_v40 = vadd.f32 %v16141_v45, %v7072_v54  ;;  %12189 = vmatmul.msk.f32.gmra.mxu0 %vm109_vm4, %v15991_v26 }
 0x678   :  { %12206 = vmatmul.msk.f32.gmra.mxu1 %vm109_vm4, %v15987_v7 }
 0x679   :  { %v7105_v44 = vmax.f32 %v7089_v40, 0.0 }
 0x67a   :  { %v7507_v10 = vpop.f32.mrf.mxu3 }
 0x67b   :  { %v16237_v16 = vadd.f32 %v7507_v10, %v7379_v9  ;;  %v7126_v11 = vsel %vm7116_vm7, %v7105_v44, 0.0  ;;  %12221 = vmatmul.msk.f32.gmra.mxu2 %vm109_vm4, %v15998_v36 }
 0x67c   :  { %v7127_v37 = vadd.f32 %v7126_v11, %v7125_v56  ;;  %v7037_v4 = vpop.f32.mrf.mxu0 }
 0x67d   :  { %v7073_v32 = vadd.f32 %v7037_v4, %v15993_v17  ;;  %v7274_v34 = vpop.f32.mrf.mxu1 }
 0x67e   :  { %v7381_v48 = vpop.f32.mrf.mxu2 }
 0x67f   :  { %12237 = vmatmul.msk.f32.gmra.mxu3 %vm109_vm4, %v16025_v49  ;;  %v7382_v26 = vadd.f32 %v7381_v48, %v7268_v59  ;;  %v7090_v7 = vadd.f32 %v16141_v45, %v7073_v32  ;;  %12190 = vmatmul.msk.f32.gmra.mxu0 %vm109_vm4, %v16008_v28 }
 0x680   :  { %12207 = vmatmul.msk.f32.gmra.mxu1 %vm109_vm4, %v16004_v5 }
 0x681   :  { %v7106_v41 = vmax.f32 %v7090_v7, 0.0 }
 0x682   :  { %v7510_v36 = vpop.f32.mrf.mxu3 }
 0x683   :  { %v16250_v61 = vadd.f32 %v7510_v36, %v7382_v26  ;;  %v7128_v17 = vsel %vm7116_vm7, %v7106_v41, 0.0  ;;  %12222 = vmatmul.msk.f32.gmra.mxu2 %vm109_vm4, %v16015_v22 }
 0x684   :  { %v7129_v21 = vadd.f32 %v7128_v17, %v7127_v37  ;;  %v7040_v46 = vpop.f32.mrf.mxu0 }
 0x685   :  { %v7074_v59 = vadd.f32 %v7040_v46, %v16010_v1  ;;  %v7277_v42 = vpop.f32.mrf.mxu1 }
 0x686   :  { %v7384_v27 = vpop.f32.mrf.mxu2 }
 0x687   :  { %12238 = vmatmul.msk.f32.gmra.mxu3 %vm109_vm4, %v16042_v31  ;;  %v7385_v28 = vadd.f32 %v7384_v27, %v7271_v55  ;;  %v7091_v63 = vadd.f32 %v16141_v45, %v7074_v59  ;;  %12191 = vmatmul.msk.f32.gmra.mxu0 %vm109_vm4, %v16025_v49 }
 0x688   :  { %12208 = vmatmul.msk.f32.gmra.mxu1 %vm109_vm4, %v16021_v19 }
 0x689   :  { %v7107_v14 = vmax.f32 %v7091_v63, 0.0 }
 0x68a   :  { %v7513_v22 = vpop.f32.mrf.mxu3 }
 0x68b   :  { %v16263_v8 = vadd.f32 %v7513_v22, %v7385_v28  ;;  %v7130_v1 = vsel %vm7116_vm7, %v7107_v14, 0.0  ;;  %12223 = vmatmul.msk.f32.gmra.mxu2 %vm109_vm4, %v16032_v35 }
 0x68c   :  { %v7131_v56 = vadd.f32 %v7130_v1, %v7129_v21  ;;  %v7043_v62 = vpop.f32.mrf.mxu0 }
 0x68d   :  { %v7075_v54 = vadd.f32 %v7043_v62, %v16027_v0  ;;  %v7280_v55 = vpop.f32.mrf.mxu1  ;;  %v17751_v62 = vld [vmem:[#allocation7_spill] sm:$0xff] }
 0x68e   :  { %v7387_v23 = vpop.f32.mrf.mxu2 }
 0x68f   :  { %12239 = vmatmul.msk.f32.gmra.mxu3 %vm109_vm4, %v16059_v12  ;;  %v7388_v49 = vadd.f32 %v7387_v23, %v7274_v34  ;;  %v7092_v9 = vadd.f32 %v16141_v45, %v7075_v54  ;;  %12192 = vmatmul.msk.f32.gmra.mxu0 %vm109_vm4, %v16042_v31  ;;  %v17752_v23 = vld [vmem:[#allocation10_spill] sm:$0xff] }
 0x690   :  { %12209 = vmatmul.msk.f32.gmra.mxu1 %vm109_vm4, %v16038_v30 }
 0x691   :  { %v7108_v40 = vmax.f32 %v7092_v9, 0.0 }
 0x692   :  { %v7516_v35 = vpop.f32.mrf.mxu3 }
 0x693   :  { %v16276_v44 = vadd.f32 %v7516_v35, %v7388_v49  ;;  %v7132_v0 = vsel %vm7116_vm7, %v7108_v40, 0.0  ;;  %12224 = vmatmul.msk.f32.gmra.mxu2 %vm109_vm4, %v16049_v51  ;;  %v17753_v35 = vld [vmem:[#allocation8_spill] sm:$0xff] }
 0x694   :  { %v7133_v10 = vadd.f32 %v7132_v0, %v7131_v56  ;;  %v7046_v11 = vpop.f32.mrf.mxu0 }
 0x695   :  { %v7076_v37 = vadd.f32 %v7046_v11, %v16044_v43  ;;  %v7283_v4 = vpop.f32.mrf.mxu1 }
 0x696   :  { %v7390_v32 = vpop.f32.mrf.mxu2 }
 0x697   :  { %12240 = vmatmul.msk.f32.gmra.mxu3 %vm109_vm4, %v16076_v33  ;;  %v7391_v31 = vadd.f32 %v7390_v32, %v7277_v42  ;;  %v7093_v34 = vadd.f32 %v16141_v45, %v7076_v37  ;;  %12193 = vmatmul.msk.f32.gmra.mxu0 %vm109_vm4, %v16059_v12 }
 0x698   :  { %12210 = vmatmul.msk.f32.gmra.mxu1 %vm109_vm4, %v16055_v24 }
 0x699   :  { %v7109_v48 = vmax.f32 %v7093_v34, 0.0 }
 0x69a   :  { %v7519_v51 = vpop.f32.mrf.mxu3 }
 0x69b   :  { %v16289_v26 = vadd.f32 %v7519_v51, %v7391_v31  ;;  %v7134_v43 = vsel %vm7116_vm7, %v7109_v48, 0.0  ;;  %12225 = vmatmul.msk.f32.gmra.mxu2 %vm109_vm4, %v16066_v25  ;;  %v8007_v48 = vld [vmem:[#allocation3 + $0x207] sm:$0xff] }
 0x69c   :  { %v7135_v7 = vadd.f32 %v7134_v43, %v7133_v10  ;;  %v7049_v41 = vpop.f32.mrf.mxu0 }
 0x69d   :  { %v7077_v36 = vadd.f32 %v7049_v41, %v16061_v3  ;;  %v7286_v17 = vpop.f32.mrf.mxu1 }
 0x69e   :  { %v7393_v21 = vpop.f32.mrf.mxu2 }
 0x69f   :  { %12241 = vmatmul.msk.f32.gmra.mxu3 %vm109_vm4, %v16093_v38  ;;  %v7394_v12 = vadd.f32 %v7393_v21, %v7280_v55  ;;  %v7094_v46 = vadd.f32 %v16141_v45, %v7077_v36  ;;  %12194 = vmatmul.msk.f32.gmra.mxu0 %vm109_vm4, %v16076_v33 }
 0x6a0   :  { %12211 = vmatmul.msk.f32.gmra.mxu1 %vm109_vm4, %v16072_v18 }
 0x6a1   :  { %v7110_v59 = vmax.f32 %v7094_v46, 0.0 }
 0x6a2   :  { %v7522_v25 = vpop.f32.mrf.mxu3 }
 0x6a3   :  { %v16302_v42 = vadd.f32 %v7522_v25, %v7394_v12  ;;  %v7136_v3 = vsel %vm7116_vm7, %v7110_v59, 0.0  ;;  %12226 = vmatmul.msk.f32.gmra.mxu2 %vm109_vm4, %v16083_v39 }
 0x6a4   :  { %v7137_v27 = vadd.f32 %v7136_v3, %v7135_v7  ;;  %v7052_v28 = vpop.f32.mrf.mxu0  ;;  %v16338_v7 = vld [vmem:[#allocation3 + $0x208] sm:$0xff] }
 0x6a5   :  { %v7078_v63 = vadd.f32 %v7052_v28, %v16078_v57  ;;  %v7289_v14 = vpop.f32.mrf.mxu1 }
 0x6a6   :  { %v7396_v22 = vpop.f32.mrf.mxu2 }
 0x6a7   :  { %12242 = vmatmul.msk.f32.gmra.mxu3 %vm109_vm4, %v16110_v52  ;;  %v7397_v33 = vadd.f32 %v7396_v22, %v7283_v4  ;;  %v7095_v18 = vadd.f32 %v16141_v45, %v7078_v63  ;;  %12195 = vmatmul.msk.f32.gmra.mxu0 %vm109_vm4, %v16093_v38  ;;  %v16355_v63 = vld [vmem:[#allocation3 + $0x209] sm:$0xff] }
 0x6a8   :  { %12212 = vmatmul.msk.f32.gmra.mxu1 %vm109_vm4, %v16089_v2 }
 0x6a9   :  { %v7111_v1 = vmax.f32 %v7095_v18, 0.0 }
 0x6aa   :  { %v7525_v39 = vpop.f32.mrf.mxu3 }
 0x6ab   :  { %v16315_v56 = vadd.f32 %v7525_v39, %v7397_v33  ;;  %v7138_v57 = vsel %vm7116_vm7, %v7111_v1, 0.0  ;;  %12227 = vmatmul.msk.f32.gmra.mxu2 %vm109_vm4, %v17751_v62  ;;  %v8009_v33 = vld [vmem:[#allocation3 + $0x227] sm:$0xff] }
 0x6ac   :  { %v7139_v54 = vadd.f32 %v7138_v57, %v7137_v27  ;;  %v7055_v55 = vpop.f32.mrf.mxu0  ;;  %v16351_v27 = vld [vmem:[#allocation3 + $0x210] sm:$0xff] }
 0x6ad   :  { %v7079_v49 = vadd.f32 %v7055_v55, %v17752_v23  ;;  %v7292_v9 = vpop.f32.mrf.mxu1  ;;  %v8285_v55 = vld [vmem:[#allocation3 + $0x149] sm:$0xff] }
 0x6ae   :  { %v7399_v40 = vpop.f32.mrf.mxu2 }
 0x6af   :  { %12243 = vmatmul.msk.f32.gmra.mxu3 %vm109_vm4, %v16126_v50  ;;  %v7400_v38 = vadd.f32 %v7399_v40, %v7286_v17  ;;  %v7096_v2 = vadd.f32 %v16141_v45, %v7079_v49  ;;  %12196 = vmatmul.msk.f32.gmra.mxu0 %vm109_vm4, %v16110_v52  ;;  %v17754_v49 = vld [vmem:[#allocation9_spill] sm:$0xff] }
 0x6b0   :  { %12213 = vmatmul.msk.f32.gmra.mxu1 %vm109_vm4, %v17753_v35  ;;  %v16368_v40 = vld [vmem:[#allocation3 + $0x211] sm:$0xff] }
 0x6b1   :  { %v7112_v0 = vmax.f32 %v7096_v2, 0.0  ;;  %v8010_v35 = vld [vmem:[#allocation3 + $0x22f] sm:$0xff] }
 0x6b2   :  { %v7528_v10 = vpop.f32.mrf.mxu3 }
 0x6b3   :  { %v16328_v11 = vadd.f32 %v7528_v10, %v7400_v38  ;;  %v7140_v37 = vsel %vm7116_vm7, %v7112_v0, 0.0  ;;  %12228 = vmatmul.msk.f32.gmra.mxu2 %vm109_vm4, %v16117_v15 }
 0x6b4   :  { %v7141_v4 = vadd.f32 %v7140_v37, %v7139_v54  ;;  %v7058_v32 = vpop.f32.mrf.mxu0 }
 0x6b5   :  { %v7080_v31 = vadd.f32 %v7058_v32, %v16112_v20  ;;  %v7295_v34 = vpop.f32.mrf.mxu1 }
 0x6b6   :  { %v7402_v51 = vpop.f32.mrf.mxu2 }
 0x6b7   :  { %12244 = vmatmul.msk.f32.gmra.mxu3 %vm109_vm4, %v8007_v48  ;;  %v7403_v52 = vadd.f32 %v7402_v51, %v7289_v14  ;;  %v7097_v43 = vadd.f32 %v16141_v45, %v7080_v31  ;;  %12197 = vmatmul.msk.f32.gmra.mxu0 %vm109_vm4, %v16126_v50  ;;  %v8008_v50 = vld [vmem:[#allocation3 + $0x20f] sm:$0xff] }
 0x6b8   :  { %12214 = vmatmul.msk.f32.gmra.mxu1 %vm109_vm4, %v16338_v7  ;;  %v8517_v51 = vld [vmem:[#allocation3 + $0x248] sm:$0xff] }
 0x6b9   :  { %v7113_v15 = vmax.f32 %v7097_v43, 0.0  ;;  %v16394_v43 = vld [vmem:[%s17704_s2 + $0x60] sm:$0xff] }
 0x6ba   :  { %v7531_v41 = vpop.f32.mrf.mxu3 }
 0x6bb   :  { %v16342_v36 = vadd.f32 %v7531_v41, %v7403_v52  ;;  %v7142_v20 = vsel %vm7116_vm7, %v7113_v15, 0.0  ;;  %12229 = vmatmul.msk.f32.gmra.mxu2 %vm109_vm4, %v16133_v47  ;;  %v16388_v52 = vld [vmem:[%s17704_s2 + $0x68] sm:$0xff] }
 0x6bc   :  { %v7143_v17 = vadd.f32 %v7142_v20, %v7141_v4  ;;  %v7061_v21 = vpop.f32.mrf.mxu0  ;;  %v8501_v41 = vld [vmem:[#allocation3 + $0x247] sm:$0xff] }
 0x6bd   :  { %v7081_v12 = vadd.f32 %v7061_v21, %v16128_v53  ;;  %v7298_v46 = vpop.f32.mrf.mxu1 }
 0x6be   :  { %v7405_v59 = vpop.f32.mrf.mxu2 }
 0x6bf   :  { %12245 = vmatmul.msk.f32.gmra.mxu3 %vm109_vm4, %v8008_v50  ;;  %v7406_v25 = vadd.f32 %v7405_v59, %v7292_v9  ;;  %v7098_v3 = vadd.f32 %v16141_v45, %v7081_v12  ;;  %12198 = vmatmul.msk.f32.gmra.mxu0 %vm109_vm4, %v8007_v48  ;;  %v8286_v48 = vld [vmem:[#allocation3 + $0x151] sm:$0xff]  ;;  %v12601_v59 = vld [vmem:[%s17704_s2 + $0x80] sm:$0xff] }
 0x6c0   :  { %12215 = vmatmul.msk.f32.gmra.mxu1 %vm109_vm4, %v16351_v27 }
 0x6c1   :  { %v7114_v47 = vmax.f32 %v7098_v3, 0.0 }
 0x6c2   :  { %v7534_v28 = vpop.f32.mrf.mxu3 }
 0x6c3   :  { %v16357_v53 = vadd.f32 %v7534_v28, %v7406_v25  ;;  %v7144_v14 = vsel %vm7116_vm7, %v7114_v47, 0.0  ;;  %12230 = vmatmul.msk.f32.gmra.mxu2 %vm109_vm4, %v16355_v63  ;;  %v8287_v47 = vld [vmem:[#allocation3 + $0x169] sm:$0xff] }
 0x6c4   :  { %v7145_v22 = vadd.f32 %v7144_v14, %v7143_v17  ;;  %v7064_v18 = vpop.f32.mrf.mxu0  ;;  %v12600_v17 = vld [vmem:[%s17704_s2 + $0x88] sm:$0xff]  ;;  %v8518_v28 = vld [vmem:[#allocation3 + $0x250] sm:$0xff] }
 0x6c5   :  { %v7082_v1 = vadd.f32 %v7064_v18, %v16159_v29  ;;  %v7785_v39 = vpop.f32.mrf.mxu1  ;;  %v8502_v18 = vld [vmem:[#allocation3 + $0x24f] sm:$0xff] }
 0x6c6   :  { %v7408_v57 = vpop.f32.mrf.mxu2 }
 0x6c7   :  { %12246 = vmatmul.msk.f32.gmra.mxu3 %vm109_vm4, %v8009_v33  ;;  %v7409_v62 = vadd.f32 %v7408_v57, %v7295_v34  ;;  %v7099_v54 = vadd.f32 %v16141_v45, %v7082_v1  ;;  %12199 = vmatmul.msk.f32.gmra.mxu0 %vm109_vm4, %v8008_v50  ;;  %v12597_v45 = vld [vmem:[%s17704_s2 + $0x70] sm:$0xff]  ;;  %v17755_v34 = vld [vmem:[#allocation11_spill] sm:$0xff] }
 0x6c8   :  { %12264 = vmatmul.msk.f32.vlgmr.msrb.gmra.mxu1 %vm109_vm4, %v8285_v55  ;;  %v8141_v50 = vld [vmem:[#allocation3 + $0x150] sm:$0xff] }
 0x6c9   :  { %v7115_v23 = vmax.f32 %v7099_v54, 0.0  ;;  %9563 = vmatpush.msrb.mxu1 %v17754_v49  ;;  %v8142_v54 = vld [vmem:[#allocation3 + $0x168] sm:$0xff]  ;;  %v8288_v49 = vld [vmem:[#allocation3 + $0x171] sm:$0xff] }
 0x6ca   :  { %v7537_v9 = vpop.f32.mrf.mxu3 }
 0x6cb   :  { %v16370_v38 = vadd.f32 %v7537_v9, %v7409_v62  ;;  %v7146_v29 = vsel %vm7116_vm7, %v7115_v23, 0.0  ;;  %12231 = vmatmul.msk.f32.gmra.mxu2 %vm109_vm4, %v16368_v40  ;;  %9564 = vmatpush.msrb.mxu1 %v12597_v45 }
 0x6cc   :  { %v16378_v2 = vadd.f32 %v7146_v29, %v7145_v22  ;;  %v7640_v0 = vpop.f32.mrf.mxu0  ;;  %v17756_v22 = vld [vmem:[#allocation12_spill] sm:$0xff] }
 0x6cd   :  { %v7688_v10 = vadd.f32 %v7640_v0, %v16185_v6  ;;  %v7788_v37 = vpop.f32.mrf.mxu1  ;;  %v16421_v29 = vld [vmem:[#allocation3 + $0x268] sm:$0xff] }
 0x6ce   :  { %v7411_v4 = vpop.f32.mrf.mxu2 }
 0x6cf   :  { %12247 = vmatmul.msk.f32.gmra.mxu3 %vm109_vm4, %v8010_v35  ;;  %v7412_v32 = vadd.f32 %v7411_v4, %v7298_v46  ;;  %v7833_v31 = vadd.f32 %v7785_v39, %v7688_v10  ;;  %12248 = vmatmul.msk.f32.vlgmr.msrb.gmra.mxu0 %vm109_vm4, %v17755_v34  ;;  %v16428_v10 = vld [vmem:[#allocation3 + $0x267] sm:$0xff]  ;;  %v8143_v4 = vld [vmem:[#allocation3 + $0x170] sm:$0xff] }
 0x6d0   :  { %12265 = vmatmul.msk.f32.gmra.mxu1 %vm109_vm4, %v8286_v48  ;;  %9418 = vmatpush.msrb.mxu0 %v16388_v52  ;;  %v8289_v34 = vld [vmem:[#allocation3 + $0x189] sm:$0xff] }
 0x6d2   :  { %v7540_v6 = vpop.f32.mrf.mxu3  ;;  %9419 = vmatpush.msrb.mxu0 %v16394_v43 }
 0x6d3   :  { %v16397_v15 = vadd.f32 %v7540_v6, %v7412_v32  ;;  %12280 = vmatmul.msk.f32.vlgmr.msrb.gmra.mxu2 %vm109_vm4, %v8517_v51  ;;  %v16434_v51 = vld [vmem:[#allocation3 + $0x270] sm:$0xff] }
 0x6d4   :  { %v7643_v20 = vpop.f32.mrf.mxu0  ;;  %9708 = vmatpush.msrb.mxu2 %v12600_v17  ;;  %v16441_v17 = vld [vmem:[#allocation3 + $0x26f] sm:$0xff] }
 0x6d5   :  { %v7689_v21 = vadd.f32 %v7643_v20, %v16198_v13  ;;  %v7791_v12 = vpop.f32.mrf.mxu1  ;;  %v12602_v13 = vld [vmem:[%s17704_s2 + $0x18] sm:$0xff] }
 0x6d6   :  { %v7930_v46 = vpop.f32.mrf.mxu2  ;;  %9709 = vmatpush.msrb.mxu2 %v12601_v59  ;;  %v8290_v59 = vld [vmem:[#allocation3 + $0x191] sm:$0xff] }
 0x6d7   :  { %12296 = vmatmul.msk.f32.vlgmr.msrb.gmra.mxu3 %vm109_vm4, %v8501_v41  ;;  %v7978_v25 = vadd.f32 %v7930_v46, %v7833_v31  ;;  %v7834_v3 = vadd.f32 %v7788_v37, %v7689_v21  ;;  %12249 = vmatmul.msk.f32.gmra.mxu0 %vm109_vm4, %v8141_v50 }
 0x6d8   :  { %12266 = vmatmul.msk.f32.gmra.mxu1 %vm109_vm4, %v8287_v47  ;;  %9940 = vmatpush.msrb.mxu3 %v12602_v13 }
 0x6da   :  { %v8076_v14 = vpop.f32.mrf.mxu3  ;;  %9941 = vmatpush.msrb.mxu3 %v17756_v22 }
 0x6db   :  { %v16414_v33 = vadd.f32 %v8076_v14, %v7978_v25  ;;  %12281 = vmatmul.msk.f32.gmra.mxu2 %vm109_vm4, %v8518_v28  ;;  %v16454_v14 = vld [vmem:[#allocation3 + $0x287] sm:$0xff] }
 0x6dc   :  { %v7646_v1 = vpop.f32.mrf.mxu0 }
 0x6dd   :  { %v7690_v39 = vadd.f32 %v7646_v1, %v16211_v60  ;;  %v7794_v57 = vpop.f32.mrf.mxu1 }
 0x6de   :  { %v7933_v62 = vpop.f32.mrf.mxu2 }
 0x6df   :  { %12297 = vmatmul.msk.f32.gmra.mxu3 %vm109_vm4, %v8502_v18  ;;  %v7979_v55 = vadd.f32 %v7933_v62, %v7834_v3  ;;  %v7835_v23 = vadd.f32 %v7791_v12, %v7690_v39  ;;  %12250 = vmatmul.msk.f32.gmra.mxu0 %vm109_vm4, %v8142_v54  ;;  %v8144_v12 = vld [vmem:[#allocation3 + $0x188] sm:$0xff]  ;;  %v16461_v62 = vld [vmem:[#allocation3 + $0x290] sm:$0xff] }
 0x6e0   :  { %12267 = vmatmul.msk.f32.gmra.mxu1 %vm109_vm4, %v8288_v49  ;;  %v16447_v3 = vld [vmem:[#allocation3 + $0x288] sm:$0xff] }
 0x6e1   :  { %v8291_v39 = vld [vmem:[#allocation3 + $0x1a9] sm:$0xff] }
 0x6e2   :  { %v8079_v9 = vpop.f32.mrf.mxu3  ;;  %v16468_v49 = vld [vmem:[#allocation3 + $0x28f] sm:$0xff] }
 0x6e3   :  { %v16423_v45 = vadd.f32 %v8079_v9, %v7979_v55  ;;  %12282 = vmatmul.msk.f32.gmra.mxu2 %vm109_vm4, %v16421_v29 }
 0x6e4   :  { %v7649_v60 = vpop.f32.mrf.mxu0 }
 0x6e5   :  { %v7691_v35 = vadd.f32 %v7649_v60, %v16224_v58  ;;  %v7797_v0 = vpop.f32.mrf.mxu1 }
 0x6e6   :  { %v7936_v37 = vpop.f32.mrf.mxu2 }
 0x6e7   :  { %12298 = vmatmul.msk.f32.gmra.mxu3 %vm109_vm4, %v16428_v10  ;;  %v7980_v32 = vadd.f32 %v7936_v37, %v7835_v23  ;;  %v7836_v31 = vadd.f32 %v7794_v57, %v7691_v35  ;;  %12251 = vmatmul.msk.f32.gmra.mxu0 %vm109_vm4, %v8143_v4  ;;  %v8292_v35 = vld [vmem:[#allocation3 + $0x1b1] sm:$0xff]  ;;  %v16475_v37 = vld [vmem:[#allocation3 + $0x2a8] sm:$0xff] }
 0x6e8   :  { %12268 = vmatmul.msk.f32.gmra.mxu1 %vm109_vm4, %v8289_v34  ;;  %v16482_v34 = vld [vmem:[#allocation3 + $0x2a7] sm:$0xff] }
 0x6ea   :  { %v8082_v48 = vpop.f32.mrf.mxu3 }
 0x6eb   :  { %v16436_v6 = vadd.f32 %v8082_v48, %v7980_v32  ;;  %12283 = vmatmul.msk.f32.gmra.mxu2 %vm109_vm4, %v16434_v51 }
 0x6ec   :  { %v7652_v58 = vpop.f32.mrf.mxu0 }
 0x6ed   :  { %v7692_v41 = vadd.f32 %v7652_v58, %v16237_v16  ;;  %v7800_v20 = vpop.f32.mrf.mxu1 }
 0x6ee   :  { %v7939_v21 = vpop.f32.mrf.mxu2 }
 0x6ef   :  { %12299 = vmatmul.msk.f32.gmra.mxu3 %vm109_vm4, %v16441_v17  ;;  %v7981_v46 = vadd.f32 %v7939_v21, %v7836_v31  ;;  %v7837_v50 = vadd.f32 %v7797_v0, %v7692_v41  ;;  %12252 = vmatmul.msk.f32.gmra.mxu0 %vm109_vm4, %v8144_v12  ;;  %v8293_v41 = vld [vmem:[#allocation3 + $0x1c9] sm:$0xff] }
 0x6f0   :  { %12269 = vmatmul.msk.f32.gmra.mxu1 %vm109_vm4, %v8290_v59  ;;  %v16489_v21 = vld [vmem:[#allocation3 + $0x2b0] sm:$0xff] }
 0x6f1   :  { %v16496_v59 = vld [vmem:[#allocation3 + $0x2af] sm:$0xff] }
 0x6f2   :  { %v8085_v25 = vpop.f32.mrf.mxu3 }
 0x6f3   :  { %v16449_v47 = vadd.f32 %v8085_v25, %v7981_v46  ;;  %12284 = vmatmul.msk.f32.gmra.mxu2 %vm109_vm4, %v16447_v3 }
 0x6f4   :  { %v7655_v16 = vpop.f32.mrf.mxu0 }
 0x6f5   :  { %v7693_v28 = vadd.f32 %v7655_v16, %v16250_v61  ;;  %v7803_v13 = vpop.f32.mrf.mxu1 }
 0x6f6   :  { %v7942_v22 = vpop.f32.mrf.mxu2 }
 0x6f7   :  { %12300 = vmatmul.msk.f32.gmra.mxu3 %vm109_vm4, %v16454_v14  ;;  %v7982_v18 = vadd.f32 %v7942_v22, %v7837_v50  ;;  %v7838_v1 = vadd.f32 %v7800_v20, %v7693_v28  ;;  %12253 = vmatmul.msk.f32.gmra.mxu0 %vm109_vm4, %v16004_v5  ;;  %v8294_v28 = vld [vmem:[#allocation3 + $0x1d1] sm:$0xff]  ;;  %v16503_v22 = vld [vmem:[#allocation3 + $0x2c8] sm:$0xff] }
 0x6f8   :  { %12270 = vmatmul.msk.f32.gmra.mxu1 %vm109_vm4, %v8291_v39 }
 0x6fa   :  { %v8088_v57 = vpop.f32.mrf.mxu3 }
 0x6fb   :  { %v16463_v54 = vadd.f32 %v8088_v57, %v7982_v18  ;;  %12285 = vmatmul.msk.f32.gmra.mxu2 %vm109_vm4, %v16461_v62  ;;  %v16510_v57 = vld [vmem:[#allocation3 + $0x2c7] sm:$0xff] }
 0x6fc   :  { %v7658_v61 = vpop.f32.mrf.mxu0 }
 0x6fd   :  { %v7694_v55 = vadd.f32 %v7658_v61, %v16263_v8  ;;  %v7806_v23 = vpop.f32.mrf.mxu1 }
 0x6fe   :  { %v7945_v9 = vpop.f32.mrf.mxu2 }
 0x6ff   :  { %12301 = vmatmul.msk.f32.gmra.mxu3 %vm109_vm4, %v16468_v49  ;;  %v7983_v5 = vadd.f32 %v7945_v9, %v7838_v1  ;;  %v7839_v60 = vadd.f32 %v7803_v13, %v7694_v55  ;;  %12254 = vmatmul.msk.f32.gmra.mxu0 %vm109_vm4, %v16021_v19  ;;  %v8149_v55 = vld [vmem:[#allocation3 + $0x1d0] sm:$0xff] }
 0x700   :  { %12271 = vmatmul.msk.f32.gmra.mxu1 %vm109_vm4, %v8292_v35  ;;  %v8295_v9 = vld [vmem:[#allocation3 + $0x1e9] sm:$0xff] }
 0x702   :  { %v8091_v0 = vpop.f32.mrf.mxu3 }
 0x703   :  { %v16477_v4 = vadd.f32 %v8091_v0, %v7983_v5  ;;  %12286 = vmatmul.msk.f32.gmra.mxu2 %vm109_vm4, %v16475_v37 }
 0x704   :  { %v7661_v8 = vpop.f32.mrf.mxu0 }
 0x705   :  { %v7695_v32 = vadd.f32 %v7661_v8, %v16276_v44  ;;  %v7809_v31 = vpop.f32.mrf.mxu1 }
 0x706   :  { %v7948_v48 = vpop.f32.mrf.mxu2 }
 0x707   :  { %12302 = vmatmul.msk.f32.gmra.mxu3 %vm109_vm4, %v16482_v34  ;;  %v7984_v19 = vadd.f32 %v7948_v48, %v7839_v60  ;;  %v7840_v58 = vadd.f32 %v7806_v23, %v7695_v32  ;;  %12255 = vmatmul.msk.f32.gmra.mxu0 %vm109_vm4, %v16038_v30  ;;  %v16516_v60 = vld [vmem:[#allocation3 + $0x2d0] sm:$0xff]  ;;  %v8150_v48 = vld [vmem:[#allocation3 + $0x1e8] sm:$0xff] }
 0x708   :  { %12272 = vmatmul.msk.f32.gmra.mxu1 %vm109_vm4, %v8293_v41  ;;  %v16523_v32 = vld [vmem:[#allocation3 + $0x2cf] sm:$0xff] }
 0x709   :  { %v8296_v41 = vld [vmem:[#allocation3 + $0x1f1] sm:$0xff] }
 0x70a   :  { %v8094_v20 = vpop.f32.mrf.mxu3 }
 0x70b   :  { %v16491_v12 = vadd.f32 %v8094_v20, %v7984_v19  ;;  %12287 = vmatmul.msk.f32.gmra.mxu2 %vm109_vm4, %v16489_v21 }
 0x70c   :  { %v7664_v44 = vpop.f32.mrf.mxu0 }
 0x70d   :  { %v7696_v46 = vadd.f32 %v7664_v44, %v16289_v26  ;;  %v7812_v50 = vpop.f32.mrf.mxu1  ;;  %v16529_v44 = vld [vmem:[#allocation3 + $0x2e8] sm:$0xff] }
 0x70e   :  { %v7951_v25 = vpop.f32.mrf.mxu2 }
 0x70f   :  { %12303 = vmatmul.msk.f32.gmra.mxu3 %vm109_vm4, %v16496_v59  ;;  %v7985_v30 = vadd.f32 %v7951_v25, %v7840_v58  ;;  %v7841_v16 = vadd.f32 %v7809_v31, %v7696_v46  ;;  %12256 = vmatmul.msk.f32.gmra.mxu0 %vm109_vm4, %v16055_v24 }
 0x710   :  { %12273 = vmatmul.msk.f32.gmra.mxu1 %vm109_vm4, %v8294_v28  ;;  %v8151_v28 = vld [vmem:[#allocation3 + $0x1f0] sm:$0xff] }
 0x712   :  { %v8097_v13 = vpop.f32.mrf.mxu3 }
 0x713   :  { %v16505_v18 = vadd.f32 %v8097_v13, %v7985_v30  ;;  %12288 = vmatmul.msk.f32.gmra.mxu2 %vm109_vm4, %v16503_v22  ;;  %v16536_v30 = vld [vmem:[#allocation3 + $0x2e7] sm:$0xff] }
 0x714   :  { %v7667_v26 = vpop.f32.mrf.mxu0 }
 0x715   :  { %v7697_v1 = vadd.f32 %v7667_v26, %v16302_v42  ;;  %v7815_v39 = vpop.f32.mrf.mxu1 }
 0x716   :  { %v7954_v61 = vpop.f32.mrf.mxu2 }
 0x717   :  { %12304 = vmatmul.msk.f32.gmra.mxu3 %vm109_vm4, %v16510_v57  ;;  %v7986_v24 = vadd.f32 %v7954_v61, %v7841_v16  ;;  %v7842_v23 = vadd.f32 %v7812_v50, %v7697_v1  ;;  %12257 = vmatmul.msk.f32.gmra.mxu0 %vm109_vm4, %v8149_v55 }
 0x718   :  { %12274 = vmatmul.msk.f32.gmra.mxu1 %vm109_vm4, %v8295_v9 }
 0x71a   :  { %v8100_v5 = vpop.f32.mrf.mxu3 }
 0x71b   :  { %v16518_v35 = vadd.f32 %v8100_v5, %v7986_v24  ;;  %12289 = vmatmul.msk.f32.gmra.mxu2 %vm109_vm4, %v16516_v60 }
 0x71c   :  { %v7670_v42 = vpop.f32.mrf.mxu0 }
 0x71d   :  { %v7698_v0 = vadd.f32 %v7670_v42, %v16315_v56  ;;  %v7818_v8 = vpop.f32.mrf.mxu1 }
 0x71e   :  { %v7957_v31 = vpop.f32.mrf.mxu2 }
 0x71f   :  { %12305 = vmatmul.msk.f32.gmra.mxu3 %vm109_vm4, %v16523_v32  ;;  %v7987_v19 = vadd.f32 %v7957_v31, %v7842_v23  ;;  %v7843_v58 = vadd.f32 %v7815_v39, %v7698_v0  ;;  %12258 = vmatmul.msk.f32.gmra.mxu0 %vm109_vm4, %v8150_v48  ;;  %v16543_v39 = vld [vmem:[#allocation3 + $0x2f0] sm:$0xff]  ;;  %v16558_v0 = vld [vmem:[#allocation3 + $0x308] sm:$0xff] }
 0x720   :  { %12275 = vmatmul.msk.f32.gmra.mxu1 %vm109_vm4, %v8296_v41  ;;  %v16550_v23 = vld [vmem:[#allocation3 + $0x2ef] sm:$0xff] }
 0x722   :  { %v8103_v20 = vpop.f32.mrf.mxu3 }
 0x723   :  { %v16531_v46 = vadd.f32 %v8103_v20, %v7987_v19  ;;  %12290 = vmatmul.msk.f32.gmra.mxu2 %vm109_vm4, %v16529_v44  ;;  %v8299_v19 = vld [vmem:[#allocation3 + $0x229] sm:$0xff] }
 0x724   :  { %v7673_v56 = vpop.f32.mrf.mxu0 }
 0x725   :  { %v7699_v50 = vadd.f32 %v7673_v56, %v16328_v11  ;;  %v7821_v25 = vpop.f32.mrf.mxu1  ;;  %v16572_v56 = vld [vmem:[#allocation3 + $0x310] sm:$0xff] }
 0x726   :  { %v7960_v16 = vpop.f32.mrf.mxu2 }
 0x727   :  { %12306 = vmatmul.msk.f32.gmra.mxu3 %vm109_vm4, %v16536_v30  ;;  %v7988_v13 = vadd.f32 %v7960_v16, %v7843_v58  ;;  %v7844_v26 = vadd.f32 %v7818_v8, %v7699_v50  ;;  %12259 = vmatmul.msk.f32.gmra.mxu0 %vm109_vm4, %v8151_v28  ;;  %v16565_v58 = vld [vmem:[#allocation3 + $0x307] sm:$0xff] }
 0x728   :  { %12276 = vmatmul.msk.f32.gmra.mxu1 %vm109_vm4, %v16355_v63 }
 0x72a   :  { %v8106_v1 = vpop.f32.mrf.mxu3 }
 0x72b   :  { %v16545_v61 = vadd.f32 %v8106_v1, %v7988_v13  ;;  %12291 = vmatmul.msk.f32.gmra.mxu2 %vm109_vm4, %v16543_v39  ;;  %v8300_v13 = vld [vmem:[#allocation3 + $0x231] sm:$0xff] }
 0x72c   :  { %v7676_v11 = vpop.f32.mrf.mxu0 }
 0x72d   :  { %v7700_v55 = vadd.f32 %v7676_v11, %v16342_v36  ;;  %v7824_v24 = vpop.f32.mrf.mxu1 }
 0x72e   :  { %v7963_v9 = vpop.f32.mrf.mxu2 }
 0x72f   :  { %12307 = vmatmul.msk.f32.gmra.mxu3 %vm109_vm4, %v16550_v23  ;;  %v7989_v5 = vadd.f32 %v7963_v9, %v7844_v26  ;;  %v7845_v63 = vadd.f32 %v7821_v25, %v7700_v55  ;;  %12260 = vmatmul.msk.f32.gmra.mxu0 %vm109_vm4, %v16338_v7  ;;  %v8154_v25 = vld [vmem:[#allocation3 + $0x228] sm:$0xff] }
 0x730   :  { %12277 = vmatmul.msk.f32.gmra.mxu1 %vm109_vm4, %v16368_v40  ;;  %v16579_v26 = vld [vmem:[#allocation3 + $0x30f] sm:$0xff] }
 0x732   :  { %v8109_v42 = vpop.f32.mrf.mxu3 }
 0x733   :  { %v16560_v8 = vadd.f32 %v8109_v42, %v7989_v5  ;;  %12292 = vmatmul.msk.f32.gmra.mxu2 %vm109_vm4, %v16558_v0  ;;  %v8155_v5 = vld [vmem:[#allocation3 + $0x230] sm:$0xff] }
 0x734   :  { %v7679_v36 = vpop.f32.mrf.mxu0 }
 0x735   :  { %v7701_v31 = vadd.f32 %v7679_v36, %v16357_v53  ;;  %v7827_v48 = vpop.f32.mrf.mxu1  ;;  %v16592_v36 = vld [vmem:[#allocation3 + $0x327] sm:$0xff] }
 0x736   :  { %v7966_v41 = vpop.f32.mrf.mxu2 }
 0x737   :  { %12308 = vmatmul.msk.f32.gmra.mxu3 %vm109_vm4, %v16565_v58  ;;  %v7990_v7 = vadd.f32 %v7966_v41, %v7845_v63  ;;  %v7846_v40 = vadd.f32 %v7824_v24, %v7701_v31  ;;  %12261 = vmatmul.msk.f32.gmra.mxu0 %vm109_vm4, %v16351_v27  ;;  %v16585_v24 = vld [vmem:[#allocation3 + $0x328] sm:$0xff]  ;;  %v17757_v41 = vld [vmem:[#allocation13_spill] sm:$0xff] }
 0x738   :  { %12278 = vmatmul.msk.f32.gmra.mxu1 %vm109_vm4, %v8299_v19 }
 0x73a   :  { %v8112_v20 = vpop.f32.mrf.mxu3 }
 0x73b   :  { %v16574_v50 = vadd.f32 %v8112_v20, %v7990_v7  ;;  %12293 = vmatmul.msk.f32.gmra.mxu2 %vm109_vm4, %v16572_v56  ;;  %v17758_v20 = vld [vmem:[#allocation14_spill] sm:$0xff] }
 0x73c   :  { %v7682_v53 = vpop.f32.mrf.mxu0 }
 0x73d   :  { %v7702_v16 = vadd.f32 %v7682_v53, %v16370_v38  ;;  %v7830_v28 = vpop.f32.mrf.mxu1 }
 0x73e   :  { %v7969_v1 = vpop.f32.mrf.mxu2 }
 0x73f   :  { %12309 = vmatmul.msk.f32.gmra.mxu3 %vm109_vm4, %v16579_v26  ;;  %v7991_v27 = vadd.f32 %v7969_v1, %v7846_v40  ;;  %v7847_v11 = vadd.f32 %v7827_v48, %v7702_v16  ;;  %12262 = vmatmul.msk.f32.gmra.mxu0 %vm109_vm4, %v8154_v25  ;;  %v16600_v40 = vld [vmem:[#allocation3 + $0x330] sm:$0xff] }
 0x740   :  { %12279 = vmatmul.msk.f32.gmra.mxu1 %vm109_vm4, %v8300_v13  ;;  %v8759_v25 = vld [vmem:[#allocation3 + $0x249] sm:$0xff] }
 0x741   :  { %v16608_v13 = vld [vmem:[#allocation3 + $0x32f] sm:$0xff] }
 0x742   :  { %v8115_v55 = vpop.f32.mrf.mxu3 }
 0x743   :  { %v16587_v9 = vadd.f32 %v8115_v55, %v7991_v27  ;;  %12294 = vmatmul.msk.f32.gmra.mxu2 %vm109_vm4, %v16585_v24  ;;  %v12604_v55 = vld [vmem:[%s17704_s2] sm:$0xff] }
 0x744   :  { %v7685_v38 = vpop.f32.mrf.mxu0 }
 0x745   :  { %v7703_v63 = vadd.f32 %v7685_v38, %v16397_v15  ;;  %v8366_v42 = vpop.f32.mrf.mxu1 }
 0x746   :  { %v7972_v31 = vpop.f32.mrf.mxu2 }
 0x747   :  { %12310 = vmatmul.msk.f32.gmra.mxu3 %vm109_vm4, %v16592_v36  ;;  %v7992_v48 = vadd.f32 %v7972_v31, %v7847_v11  ;;  %v7848_v19 = vadd.f32 %v7830_v28, %v7703_v63  ;;  %12263 = vmatmul.msk.f32.gmra.mxu0 %vm109_vm4, %v8155_v5  ;;  %v12603_v11 = vld [vmem:[%s17704_s2 + $0x8] sm:$0xff]  ;;  %v8760_v63 = vld [vmem:[#allocation3 + $0x251] sm:$0xff] }
 0x748   :  { %12328 = vmatmul.msk.f32.vlgmr.msra.gmra.mxu1 %vm109_vm4, %v16428_v10 }
 0x749   :  { %10182 = vmatpush.msra.mxu1 %v17757_v41  ;;  %v9194_v41 = vld [vmem:[#allocation3 + $0x269] sm:$0xff] }
 0x74a   :  { %v8118_v7 = vpop.f32.mrf.mxu3 }
 0x74b   :  { %v16602_v15 = vadd.f32 %v8118_v7, %v7992_v48  ;;  %12295 = vmatmul.msk.f32.gmra.mxu2 %vm109_vm4, %v16600_v40  ;;  %10183 = vmatpush.msra.mxu1 %v17758_v20 }
 0x74c   :  { %v8221_v53 = vpop.f32.mrf.mxu0 }
 0x74d   :  { %v8269_v16 = vadd.f32 %v8221_v53, %v16414_v33  ;;  %v8369_v28 = vpop.f32.mrf.mxu1 }
 0x74e   :  { %v7975_v10 = vpop.f32.mrf.mxu2 }
 0x74f   :  { %12311 = vmatmul.msk.f32.gmra.mxu3 %vm109_vm4, %v16608_v13  ;;  %v7993_v1 = vadd.f32 %v7975_v10, %v7848_v19  ;;  %v8414_v27 = vadd.f32 %v8366_v42, %v8269_v16  ;;  %12312 = vmatmul.msk.f32.vlgmr.msra.gmra.mxu0 %vm109_vm4, %v8759_v25  ;;  %v16631_v42 = vld [vmem:[%s17706_s4 + $0x1] ss:$0 sm:$0xff] }
 0x750   :  { %12329 = vmatmul.msk.f32.gmra.mxu1 %vm109_vm4, %v16441_v17  ;;  %10053 = vmatpush.msra.mxu0 %v12603_v11  ;;  %v12605_v17 = vld [vmem:[%s17704_s2 + $0x38] sm:$0xff]  ;;  %v12609_v10 = vld [vmem:[%s17704_s2 + $0x40] sm:$0xff] }
 0x751   :  { %v8430_v31 = vadd.f32 %v16631_v42, %v8414_v27 }
 0x752   :  { %v8121_v33 = vpop.f32.mrf.mxu3  ;;  %10054 = vmatpush.msra.mxu0 %v12604_v55 }
 0x753   :  { %v16621_v38 = vadd.f32 %v8121_v33, %v7993_v1  ;;  %12344 = vmatmul.msk.f32.vlgmr.msra.gmra.mxu2 %vm109_vm4, %v16421_v29  ;;  %v12607_v29 = vld [vmem:[%s17704_s2 + $0x30] sm:$0xff]  ;;  %v8446_v53 = vmax.f32 %v8430_v31, 0.0 }
 0x754   :  { %v8224_v5 = vpop.f32.mrf.mxu0  ;;  %10327 = vmatpush.msra.mxu2 %v12605_v17  ;;  %v9195_v17 = vld [vmem:[#allocation3 + $0x271] sm:$0xff] }
 0x755   :  { %v8270_v48 = vadd.f32 %v8224_v5, %v16423_v45  ;;  %v8372_v19 = vpop.f32.mrf.mxu1  ;;  %v12608_v45 = vld [vmem:[%s17704_s2 + $0x48] sm:$0xff]  ;;  %v8462_v11 = vsel %vm7116_vm7, %v8446_v53, 0.0 }
 0x756   :  { %v8598_v7 = vpop.f32.mrf.mxu2  ;;  %10328 = vmatpush.msra.mxu2 %v12607_v29 }
 0x757   :  { %12360 = vmatmul.msk.f32.vlgmr.msra.gmra.mxu3 %vm109_vm4, %v9194_v41  ;;  %v8415_v20 = vadd.f32 %v8369_v28, %v8270_v48  ;;  %12313 = vmatmul.msk.f32.gmra.mxu0 %vm109_vm4, %v8760_v63 }
 0x758   :  { %12330 = vmatmul.msk.f32.gmra.mxu1 %vm109_vm4, %v16454_v14  ;;  %10472 = vmatpush.msra.mxu3 %v12608_v45 }
 0x759   :  { %v8431_v25 = vadd.f32 %v16631_v42, %v8415_v20 }
 0x75a   :  { %v8711_v16 = vpop.f32.mrf.mxu3  ;;  %10473 = vmatpush.msra.mxu3 %v12609_v10 }
 0x75b   :  { %v16649_v28 = vadd.f32 %v8711_v16, %v8598_v7  ;;  %v8447_v1 = vmax.f32 %v8431_v25, 0.0  ;;  %12345 = vmatmul.msk.f32.gmra.mxu2 %vm109_vm4, %v16434_v51 }
 0x75c   :  { %v8227_v27 = vpop.f32.mrf.mxu0 }
 0x75d   :  { %v8463_v33 = vsel %vm7116_vm7, %v8447_v1, 0.0  ;;  %v8271_v55 = vadd.f32 %v8227_v27, %v16436_v6  ;;  %v8375_v5 = vpop.f32.mrf.mxu1 }
 0x75e   :  { %v8464_v63 = vadd.f32 %v8463_v33, %v8462_v11  ;;  %v8601_v31 = vpop.f32.mrf.mxu2 }
 0x75f   :  { %12361 = vmatmul.msk.f32.gmra.mxu3 %vm109_vm4, %v9195_v17  ;;  %v8416_v48 = vadd.f32 %v8372_v19, %v8271_v55  ;;  %12314 = vmatmul.msk.f32.gmra.mxu0 %vm109_vm4, %v9194_v41  ;;  %v16667_v41 = vld [vmem:[#allocation3 + $0x289] sm:$0xff] }
 0x760   :  { %12331 = vmatmul.msk.f32.gmra.mxu1 %vm109_vm4, %v16468_v49 }
 0x761   :  { %v8432_v51 = vadd.f32 %v16631_v42, %v8416_v48 }
 0x762   :  { %v8714_v7 = vpop.f32.mrf.mxu3 }
 0x763   :  { %v16661_v29 = vadd.f32 %v8714_v7, %v8601_v31  ;;  %v8448_v20 = vmax.f32 %v8432_v51, 0.0  ;;  %12346 = vmatmul.msk.f32.gmra.mxu2 %vm109_vm4, %v16447_v3 }
 0x764   :  { %v8230_v6 = vpop.f32.mrf.mxu0 }
 0x765   :  { %v8465_v45 = vsel %vm7116_vm7, %v8448_v20, 0.0  ;;  %v8272_v53 = vadd.f32 %v8230_v6, %v16449_v47  ;;  %v8378_v19 = vpop.f32.mrf.mxu1 }
 0x766   :  { %v8466_v25 = vadd.f32 %v8465_v45, %v8464_v63  ;;  %v8604_v16 = vpop.f32.mrf.mxu2  ;;  %v16681_v63 = vld [vmem:[#allocation3 + $0x291] sm:$0xff] }
 0x767   :  { %12362 = vmatmul.msk.f32.gmra.mxu3 %vm109_vm4, %v16667_v41  ;;  %v8417_v49 = vadd.f32 %v8375_v5, %v8272_v53  ;;  %12315 = vmatmul.msk.f32.gmra.mxu0 %vm109_vm4, %v9195_v17  ;;  %v16696_v53 = vld [vmem:[#allocation3 + $0x2a9] sm:$0xff] }
 0x768   :  { %12332 = vmatmul.msk.f32.gmra.mxu1 %vm109_vm4, %v16482_v34 }
 0x769   :  { %v8433_v3 = vadd.f32 %v16631_v42, %v8417_v49 }
 0x76a   :  { %v8717_v10 = vpop.f32.mrf.mxu3 }
 0x76b   :  { %v16675_v1 = vadd.f32 %v8717_v10, %v8604_v16  ;;  %v8449_v47 = vmax.f32 %v8433_v3, 0.0  ;;  %12347 = vmatmul.msk.f32.gmra.mxu2 %vm109_vm4, %v16461_v62 }
 0x76c   :  { %v8233_v27 = vpop.f32.mrf.mxu0 }
 0x76d   :  { %v8467_v11 = vsel %vm7116_vm7, %v8449_v47, 0.0  ;;  %v8273_v33 = vadd.f32 %v8233_v27, %v16463_v54  ;;  %v8381_v55 = vpop.f32.mrf.mxu1 }
 0x76e   :  { %v8468_v5 = vadd.f32 %v8467_v11, %v8466_v25  ;;  %v8607_v17 = vpop.f32.mrf.mxu2  ;;  %v16711_v11 = vld [vmem:[#allocation3 + $0x2b1] sm:$0xff] }
 0x76f   :  { %12363 = vmatmul.msk.f32.gmra.mxu3 %vm109_vm4, %v16681_v63  ;;  %v8418_v34 = vadd.f32 %v8378_v19, %v8273_v33  ;;  %12316 = vmatmul.msk.f32.gmra.mxu0 %vm109_vm4, %v16667_v41 }
 0x770   :  { %12333 = vmatmul.msk.f32.gmra.mxu1 %vm109_vm4, %v16496_v59 }
 0x771   :  { %v8434_v62 = vadd.f32 %v16631_v42, %v8418_v34 }
 0x772   :  { %v8720_v31 = vpop.f32.mrf.mxu3 }
 0x773   :  { %v16690_v48 = vadd.f32 %v8720_v31, %v8607_v17  ;;  %v8450_v54 = vmax.f32 %v8434_v62, 0.0  ;;  %12348 = vmatmul.msk.f32.gmra.mxu2 %vm109_vm4, %v16475_v37 }
 0x774   :  { %v8236_v51 = vpop.f32.mrf.mxu0 }
 0x775   :  { %v8469_v7 = vsel %vm7116_vm7, %v8450_v54, 0.0  ;;  %v8274_v20 = vadd.f32 %v8236_v51, %v16477_v4  ;;  %v8384_v6 = vpop.f32.mrf.mxu1  ;;  %v16726_v51 = vld [vmem:[#allocation3 + $0x2c9] sm:$0xff] }
 0x776   :  { %v8470_v45 = vadd.f32 %v8469_v7, %v8468_v5  ;;  %v8610_v19 = vpop.f32.mrf.mxu2 }
 0x777   :  { %12364 = vmatmul.msk.f32.gmra.mxu3 %vm109_vm4, %v16696_v53  ;;  %v8419_v59 = vadd.f32 %v8381_v55, %v8274_v20  ;;  %12317 = vmatmul.msk.f32.gmra.mxu0 %vm109_vm4, %v16681_v63 }
 0x778   :  { %12334 = vmatmul.msk.f32.gmra.mxu1 %vm109_vm4, %v16510_v57 }
 0x779   :  { %v8435_v37 = vadd.f32 %v16631_v42, %v8419_v59 }
 0x77a   :  { %v8723_v25 = vpop.f32.mrf.mxu3 }
 0x77b   :  { %v16705_v16 = vadd.f32 %v8723_v25, %v8610_v19  ;;  %v8451_v4 = vmax.f32 %v8435_v37, 0.0  ;;  %12349 = vmatmul.msk.f32.gmra.mxu2 %vm109_vm4, %v16489_v21 }
 0x77c   :  { %v8239_v49 = vpop.f32.mrf.mxu0 }
 0x77d   :  { %v8471_v3 = vsel %vm7116_vm7, %v8451_v4, 0.0  ;;  %v8275_v10 = vadd.f32 %v8239_v49, %v16491_v12  ;;  %v8387_v47 = vpop.f32.mrf.mxu1  ;;  %v16741_v49 = vld [vmem:[#allocation3 + $0x2d1] sm:$0xff] }
 0x77e   :  { %v8472_v27 = vadd.f32 %v8471_v3, %v8470_v45  ;;  %v8613_v33 = vpop.f32.mrf.mxu2 }
 0x77f   :  { %12365 = vmatmul.msk.f32.gmra.mxu3 %vm109_vm4, %v16711_v11  ;;  %v8420_v57 = vadd.f32 %v8384_v6, %v8275_v10  ;;  %12318 = vmatmul.msk.f32.gmra.mxu0 %vm109_vm4, %v16696_v53 }
 0x780   :  { %12335 = vmatmul.msk.f32.gmra.mxu1 %vm109_vm4, %v16523_v32 }
 0x781   :  { %v8436_v21 = vadd.f32 %v16631_v42, %v8420_v57 }
 0x782   :  { %v8726_v55 = vpop.f32.mrf.mxu3 }
 0x783   :  { %v16720_v5 = vadd.f32 %v8726_v55, %v8613_v33  ;;  %v8452_v12 = vmax.f32 %v8436_v21, 0.0  ;;  %12350 = vmatmul.msk.f32.gmra.mxu2 %vm109_vm4, %v16503_v22 }
 0x784   :  { %v8242_v17 = vpop.f32.mrf.mxu0 }
 0x785   :  { %v8473_v34 = vsel %vm7116_vm7, %v8452_v12, 0.0  ;;  %v8276_v62 = vadd.f32 %v8242_v17, %v16505_v18  ;;  %v8390_v31 = vpop.f32.mrf.mxu1  ;;  %v16756_v17 = vld [vmem:[#allocation3 + $0x2e9] sm:$0xff] }
 0x786   :  { %v8474_v54 = vadd.f32 %v8473_v34, %v8472_v27  ;;  %v8616_v7 = vpop.f32.mrf.mxu2 }
 0x787   :  { %12366 = vmatmul.msk.f32.gmra.mxu3 %vm109_vm4, %v16726_v51  ;;  %v8421_v20 = vadd.f32 %v8387_v47, %v8276_v62  ;;  %12319 = vmatmul.msk.f32.gmra.mxu0 %vm109_vm4, %v16711_v11 }
 0x788   :  { %12336 = vmatmul.msk.f32.gmra.mxu1 %vm109_vm4, %v16536_v30 }
 0x789   :  { %v8437_v22 = vadd.f32 %v16631_v42, %v8421_v20 }
 0x78a   :  { %v8729_v6 = vpop.f32.mrf.mxu3 }
 0x78b   :  { %v16735_v45 = vadd.f32 %v8729_v6, %v8616_v7  ;;  %v8453_v18 = vmax.f32 %v8437_v22, 0.0  ;;  %12351 = vmatmul.msk.f32.gmra.mxu2 %vm109_vm4, %v16516_v60 }
 0x78c   :  { %v8245_v19 = vpop.f32.mrf.mxu0 }
 0x78d   :  { %v8475_v59 = vsel %vm7116_vm7, %v8453_v18, 0.0  ;;  %v8277_v37 = vadd.f32 %v8245_v19, %v16518_v35  ;;  %v8393_v25 = vpop.f32.mrf.mxu1  ;;  %v16771_v19 = vld [vmem:[#allocation3 + $0x2f1] sm:$0xff] }
 0x78e   :  { %v8476_v4 = vadd.f32 %v8475_v59, %v8474_v54  ;;  %v8619_v3 = vpop.f32.mrf.mxu2 }
 0x78f   :  { %12367 = vmatmul.msk.f32.gmra.mxu3 %vm109_vm4, %v16741_v49  ;;  %v8422_v10 = vadd.f32 %v8390_v31, %v8277_v37  ;;  %12320 = vmatmul.msk.f32.gmra.mxu0 %vm109_vm4, %v16726_v51 }
 0x790   :  { %12337 = vmatmul.msk.f32.gmra.mxu1 %vm109_vm4, %v16550_v23 }
 0x791   :  { %v8438_v60 = vadd.f32 %v16631_v42, %v8422_v10 }
 0x792   :  { %v8732_v47 = vpop.f32.mrf.mxu3 }
 0x793   :  { %v16750_v27 = vadd.f32 %v8732_v47, %v8619_v3  ;;  %v8454_v35 = vmax.f32 %v8438_v60, 0.0  ;;  %12352 = vmatmul.msk.f32.gmra.mxu2 %vm109_vm4, %v16529_v44 }
 0x794   :  { %v8248_v33 = vpop.f32.mrf.mxu0 }
 0x795   :  { %v8477_v57 = vsel %vm7116_vm7, %v8454_v35, 0.0  ;;  %v8278_v21 = vadd.f32 %v8248_v33, %v16531_v46  ;;  %v8396_v55 = vpop.f32.mrf.mxu1  ;;  %v16786_v33 = vld [vmem:[#allocation3 + $0x309] sm:$0xff] }
 0x796   :  { %v8478_v12 = vadd.f32 %v8477_v57, %v8476_v4  ;;  %v8622_v34 = vpop.f32.mrf.mxu2 }
 0x797   :  { %12368 = vmatmul.msk.f32.gmra.mxu3 %vm109_vm4, %v16756_v17  ;;  %v8423_v62 = vadd.f32 %v8393_v25, %v8278_v21  ;;  %12321 = vmatmul.msk.f32.gmra.mxu0 %vm109_vm4, %v16741_v49 }
 0x798   :  { %12338 = vmatmul.msk.f32.gmra.mxu1 %vm109_vm4, %v16565_v58 }
 0x799   :  { %v8439_v44 = vadd.f32 %v16631_v42, %v8423_v62 }
 0x79a   :  { %v8735_v31 = vpop.f32.mrf.mxu3 }
 0x79b   :  { %v16765_v54 = vadd.f32 %v8735_v31, %v8622_v34  ;;  %v8455_v46 = vmax.f32 %v8439_v44, 0.0  ;;  %12353 = vmatmul.msk.f32.gmra.mxu2 %vm109_vm4, %v16543_v39 }
 0x79c   :  { %v8251_v7 = vpop.f32.mrf.mxu0 }
 0x79d   :  { %v8479_v20 = vsel %vm7116_vm7, %v8455_v46, 0.0  ;;  %v8279_v22 = vadd.f32 %v8251_v7, %v16545_v61  ;;  %v8399_v6 = vpop.f32.mrf.mxu1  ;;  %v16801_v46 = vld [vmem:[#allocation3 + $0x311] sm:$0xff] }
 0x79e   :  { %v8480_v18 = vadd.f32 %v8479_v20, %v8478_v12  ;;  %v8625_v59 = vpop.f32.mrf.mxu2 }
 0x79f   :  { %12369 = vmatmul.msk.f32.gmra.mxu3 %vm109_vm4, %v16771_v19  ;;  %v8424_v37 = vadd.f32 %v8396_v55, %v8279_v22  ;;  %12322 = vmatmul.msk.f32.gmra.mxu0 %vm109_vm4, %v16756_v17 }
 0x7a0   :  { %12339 = vmatmul.msk.f32.gmra.mxu1 %vm109_vm4, %v16579_v26 }
 0x7a1   :  { %v8440_v39 = vadd.f32 %v16631_v42, %v8424_v37 }
 0x7a2   :  { %v8738_v25 = vpop.f32.mrf.mxu3 }
 0x7a3   :  { %v16780_v4 = vadd.f32 %v8738_v25, %v8625_v59  ;;  %v8456_v61 = vmax.f32 %v8440_v39, 0.0  ;;  %12354 = vmatmul.msk.f32.gmra.mxu2 %vm109_vm4, %v16558_v0  ;;  %v16816_v25 = vld [vmem:[#allocation3 + $0x329] sm:$0xff] }
 0x7a4   :  { %v8254_v3 = vpop.f32.mrf.mxu0 }
 0x7a5   :  { %v8481_v10 = vsel %vm7116_vm7, %v8456_v61, 0.0  ;;  %v8280_v60 = vadd.f32 %v8254_v3, %v16560_v8  ;;  %v8402_v47 = vpop.f32.mrf.mxu1  ;;  %v16822_v3 = vld [vmem:[#allocation3 + $0x347] sm:$0xff] }
 0x7a6   :  { %v8482_v35 = vadd.f32 %v8481_v10, %v8480_v18  ;;  %v8628_v57 = vpop.f32.mrf.mxu2 }
 0x7a7   :  { %12370 = vmatmul.msk.f32.gmra.mxu3 %vm109_vm4, %v16786_v33  ;;  %v8425_v26 = vadd.f32 %v8399_v6, %v8280_v60  ;;  %12323 = vmatmul.msk.f32.gmra.mxu0 %vm109_vm4, %v16771_v19 }
 0x7a8   :  { %12340 = vmatmul.msk.f32.gmra.mxu1 %vm109_vm4, %v16592_v36 }
 0x7a9   :  { %v8441_v0 = vadd.f32 %v16631_v42, %v8425_v26 }
 0x7aa   :  { %v8741_v21 = vpop.f32.mrf.mxu3 }
 0x7ab   :  { %v16795_v55 = vadd.f32 %v8741_v21, %v8628_v57  ;;  %v8457_v8 = vmax.f32 %v8441_v0, 0.0  ;;  %12355 = vmatmul.msk.f32.gmra.mxu2 %vm109_vm4, %v16572_v56  ;;  %v16833_v21 = vld [vmem:[#allocation3 + $0x331] sm:$0xff] }
 0x7ac   :  { %v8257_v12 = vpop.f32.mrf.mxu0 }
 0x7ad   :  { %v8483_v34 = vsel %vm7116_vm7, %v8457_v8, 0.0  ;;  %v8281_v62 = vadd.f32 %v8257_v12, %v16574_v50  ;;  %v8405_v44 = vpop.f32.mrf.mxu1 }
 0x7ae   :  { %v8484_v31 = vadd.f32 %v8483_v34, %v8482_v35  ;;  %v8631_v7 = vpop.f32.mrf.mxu2  ;;  %v16839_v34 = vld [vmem:[#allocation3 + $0x34f] sm:$0xff] }
 0x7af   :  { %12371 = vmatmul.msk.f32.gmra.mxu3 %vm109_vm4, %v16801_v46  ;;  %v8426_v36 = vadd.f32 %v8402_v47, %v8281_v62  ;;  %12324 = vmatmul.msk.f32.gmra.mxu0 %vm109_vm4, %v16786_v33  ;;  %v16844_v62 = vld [vmem:[#allocation3 + $0x348] sm:$0xff] }
 0x7b0   :  { %12341 = vmatmul.msk.f32.gmra.mxu1 %vm109_vm4, %v16608_v13 }
 0x7b1   :  { %v8442_v56 = vadd.f32 %v16631_v42, %v8426_v36 }
 0x7b2   :  { %v8744_v20 = vpop.f32.mrf.mxu3 }
 0x7b3   :  { %v16810_v22 = vadd.f32 %v8744_v20, %v8631_v7  ;;  %v8458_v50 = vmax.f32 %v8442_v56, 0.0  ;;  %12356 = vmatmul.msk.f32.gmra.mxu2 %vm109_vm4, %v16585_v24 }
 0x7b4   :  { %v8260_v6 = vpop.f32.mrf.mxu0 }
 0x7b5   :  { %v8485_v18 = vsel %vm7116_vm7, %v8458_v50, 0.0  ;;  %v8282_v59 = vadd.f32 %v8260_v6, %v16587_v9  ;;  %v8408_v37 = vpop.f32.mrf.mxu1  ;;  %v7148_v50 = vrot.slane %v16378_v2, 4 }
 0x7b6   :  { %v8486_v39 = vadd.f32 %v8485_v18, %v8484_v31  ;;  %v8634_v61 = vpop.f32.mrf.mxu2  ;;  %v16853_v18 = vld [vmem:[#allocation3 + $0x349] sm:$0xff] }
 0x7b7   :  { %12372 = vmatmul.msk.f32.gmra.mxu3 %vm109_vm4, %v16816_v25  ;;  %v8427_v13 = vadd.f32 %v8405_v44, %v8282_v59  ;;  %12325 = vmatmul.msk.f32.gmra.mxu0 %vm109_vm4, %v16801_v46 }
 0x7b8   :  { %12342 = vmatmul.msk.f32.gmra.mxu1 %vm109_vm4, %v16822_v3 }
 0x7b9   :  { %v8443_v24 = vadd.f32 %v16631_v42, %v8427_v13 }
 0x7ba   :  { %v8747_v9 = vpop.f32.mrf.mxu3 }
 0x7bb   :  { %v16827_v10 = vadd.f32 %v8747_v9, %v8634_v61  ;;  %v8459_v60 = vmax.f32 %v8443_v24, 0.0  ;;  %12357 = vmatmul.msk.f32.gmra.mxu2 %vm109_vm4, %v16600_v40  ;;  %v16863_v24 = vld [vmem:[#allocation3 + $0x350] sm:$0xff] }
 0x7bc   :  { %v8263_v47 = vpop.f32.mrf.mxu0 }
 0x7bd   :  { %v8487_v35 = vsel %vm7116_vm7, %v8459_v60, 0.0  ;;  %v8283_v57 = vadd.f32 %v8263_v47, %v16602_v15  ;;  %v8411_v26 = vpop.f32.mrf.mxu1 }
 0x7be   :  { %v8488_v0 = vadd.f32 %v8487_v35, %v8486_v39  ;;  %v8637_v8 = vpop.f32.mrf.mxu2  ;;  %v9485_v39 = vld [vmem:[#allocation3 + $0x288] sm:$0xff] }
 0x7bf   :  { %12373 = vmatmul.msk.f32.gmra.mxu3 %vm109_vm4, %v16833_v21  ;;  %v8428_v12 = vadd.f32 %v8408_v37, %v8283_v57  ;;  %12326 = vmatmul.msk.f32.gmra.mxu0 %vm109_vm4, %v16816_v25 }
 0x7c0   :  { %12343 = vmatmul.msk.f32.gmra.mxu1 %vm109_vm4, %v16839_v34 }
 0x7c1   :  { %v8444_v40 = vadd.f32 %v16631_v42, %v8428_v12  ;;  %v9486_v12 = vld [vmem:[#allocation3 + $0x290] sm:$0xff] }
 0x7c2   :  { %v8750_v15 = vpop.f32.mrf.mxu3 }
 0x7c3   :  { %v16846_v44 = vadd.f32 %v8750_v15, %v8637_v8  ;;  %v8460_v31 = vmax.f32 %v8444_v40, 0.0  ;;  %12358 = vmatmul.msk.f32.gmra.mxu2 %vm109_vm4, %v16844_v62 }
 0x7c4   :  { %v8266_v7 = vpop.f32.mrf.mxu0 }
 0x7c5   :  { %v8489_v36 = vsel %vm7116_vm7, %v8460_v31, 0.0  ;;  %v8284_v56 = vadd.f32 %v8266_v7, %v16621_v38  ;;  %v8985_v20 = vpop.f32.mrf.mxu1  ;;  %v7149_v38 = vadd.f32 %v7148_v50, %v16378_v2  ;;  %v16872_v2 = vld [vmem:[#allocation3 + $0x351] sm:$0xff] }
 0x7c6   :  { %v8490_v6 = vadd.f32 %v8489_v36, %v8488_v0  ;;  %v8640_v59 = vpop.f32.mrf.mxu2  ;;  %v12611_v7 = vld [vmem:[%s17704_s2 + $0x50] sm:$0xff] }
 0x7c7   :  { %12374 = vmatmul.msk.f32.gmra.mxu3 %vm109_vm4, %v16853_v18  ;;  %v8429_v37 = vadd.f32 %v8411_v26, %v8284_v56  ;;  %12327 = vmatmul.msk.f32.gmra.mxu0 %vm109_vm4, %v16833_v21 }
 0x7c8   :  { %12392 = vmatmul.msk.f32.vlgmr.msrb.gmra.mxu1 %vm109_vm4, %v9485_v39 }
 0x7c9   :  { %v8445_v61 = vadd.f32 %v16631_v42, %v8429_v37  ;;  %10763 = vmatpush.msrb.mxu1 %v16388_v52  ;;  %v7150_v52 = vrot.slane %v7149_v38, 2 }
 0x7ca   :  { %v8753_v13 = vpop.f32.mrf.mxu3 }
 0x7cb   :  { %v16865_v9 = vadd.f32 %v8753_v13, %v8640_v59  ;;  %v8461_v60 = vmax.f32 %v8445_v61, 0.0  ;;  %12359 = vmatmul.msk.f32.gmra.mxu2 %vm109_vm4, %v16863_v24  ;;  %10764 = vmatpush.msrb.mxu1 %v16394_v43  ;;  %v7151_v40 = vadd.f32 %v7150_v52, %v7149_v38  ;;  %v9341_v61 = vld [vmem:[#allocation3 + $0x28f] sm:$0xff] }
 0x7cc   :  { %v8840_v47 = vpop.f32.mrf.mxu0  ;;  %v12613_v38 = vld [vmem:[%s17704_s2 + $0x70] sm:$0xff] }
 0x7cd   :  { %v8491_v35 = vsel %vm7116_vm7, %v8461_v60, 0.0  ;;  %v8888_v42 = vadd.f32 %v8840_v47, %v16649_v28  ;;  %v8988_v57 = vpop.f32.mrf.mxu1  ;;  %v12610_v28 = vld [vmem:[%s17704_s2 + $0x58] sm:$0xff]  ;;  %v7152_v59 = vrot.slane %v7151_v40, 1  ;;  %v9487_v60 = vld [vmem:[#allocation3 + $0x2a8] sm:$0xff] }
 0x7ce   :  { %v8492_v26 = vadd.f32 %v8491_v35, %v8490_v6  ;;  %v8643_v0 = vpop.f32.mrf.mxu2 }
 0x7cf   :  { %12375 = vmatmul.msk.f32.gmra.mxu3 %vm109_vm4, %v16872_v2  ;;  %v9033_v8 = vadd.f32 %v8985_v20, %v8888_v42  ;;  %12376 = vmatmul.msk.f32.vlgmr.msrb.gmra.mxu0 %vm109_vm4, %v16454_v14  ;;  %v12612_v20 = vld [vmem:[%s17704_s2 + $0x78] sm:$0xff]  ;;  %v7153_v35 = vadd.f32 %v7152_v59, %v7151_v40  ;;  %v9342_v40 = vld [vmem:[#allocation3 + $0x2a7] sm:$0xff] }
 0x7d0   :  { %v8493_v43 = vrot.slane %v8492_v26, 4  ;;  %12393 = vmatmul.msk.f32.gmra.mxu1 %vm109_vm4, %v9486_v12  ;;  %10617 = vmatpush.msrb.mxu0 %v12610_v28 }
 0x7d2   :  { %v8494_v15 = vadd.f32 %v8493_v43, %v8492_v26  ;;  %v8756_v31 = vpop.f32.mrf.mxu3  ;;  %10618 = vmatpush.msrb.mxu0 %v12611_v7  ;;  %v12615_v26 = vld [vmem:[%s17704_s2 + $0x80] sm:$0xff]  ;;  %v9488_v7 = vld [vmem:[#allocation3 + $0x2b0] sm:$0xff] }
 0x7d3   :  { %v16885_v36 = vadd.f32 %v8756_v31, %v8643_v0  ;;  %12408 = vmatmul.msk.f32.vlgmr.msrb.gmra.mxu2 %vm109_vm4, %v16667_v41 }
 0x7d4   :  { %v8495_v14 = vrot.slane %v8494_v15, 2  ;;  %v8843_v56 = vpop.f32.mrf.mxu0  ;;  %10908 = vmatpush.msrb.mxu2 %v12612_v20 }
 0x7d5   :  { %v8889_v50 = vadd.f32 %v8843_v56, %v16661_v29  ;;  %v8991_v6 = vpop.f32.mrf.mxu1  ;;  %v12614_v29 = vld [vmem:[%s17704_s2 + $0x88] sm:$0xff] }
 0x7d6   :  { %v8496_v37 = vadd.f32 %v8495_v14, %v8494_v15  ;;  %v9130_v39 = vpop.f32.mrf.mxu2  ;;  %10909 = vmatpush.msrb.mxu2 %v12613_v38 }
 0x7d7   :  { %12424 = vmatmul.msk.f32.vlgmr.msrb.gmra.mxu3 %vm109_vm4, %v16844_v62  ;;  %v9178_v41 = vadd.f32 %v9130_v39, %v9033_v8  ;;  %v9034_v13 = vadd.f32 %v8988_v57, %v8889_v50  ;;  %12377 = vmatmul.msk.f32.gmra.mxu0 %vm109_vm4, %v9341_v61  ;;  %v16922_v50 = vld [vmem:[#allocation3 + $0x368] sm:$0xff] }
 0x7d8   :  { %v8497_v47 = vrot.slane %v8496_v37, 1  ;;  %12394 = vmatmul.msk.f32.gmra.mxu1 %vm109_vm4, %v9487_v60  ;;  %11053 = vmatpush.msrb.mxu3 %v12614_v29  ;;  %v9489_v61 = vld [vmem:[#allocation3 + $0x2c8] sm:$0xff]  ;;  %v16933_v60 = vld [vmem:[#allocation3 + $0x370] sm:$0xff] }
 0x7d9   :  { %v9344_v29 = vld [vmem:[#allocation3 + $0x2c7] sm:$0xff] }
 0x7da   :  { %v8498_v42 = vadd.f32 %v8497_v47, %v8496_v37  ;;  %v9275_v52 = vpop.f32.mrf.mxu3  ;;  %11054 = vmatpush.msrb.mxu3 %v12615_v26  ;;  %v9343_v37 = vld [vmem:[#allocation3 + $0x2af] sm:$0xff] }
 0x7db   :  { %v16906_v57 = vadd.f32 %v9275_v52, %v9178_v41  ;;  %12409 = vmatmul.msk.f32.gmra.mxu2 %vm109_vm4, %v16681_v63  ;;  %v9490_v52 = vld [vmem:[#allocation3 + $0x2d0] sm:$0xff] }
 0x7dc   :  { %v8846_v0 = vpop.f32.mrf.mxu0  ;;  %v16910_v8 = vadd.f32 %v8498_v42, %v7153_v35 }
 0x7dd   :  { %v8890_v12 = vadd.f32 %v8846_v0, %v16675_v1  ;;  %v8994_v43 = vpop.f32.mrf.mxu1 }
 0x7de   :  { %17759 = vst [vmem:[#allocation7_spill] sm:$0xff] %v16910_v8  ;;  %v9133_v28 = vpop.f32.mrf.mxu2 }
 0x7df   :  { %12425 = vmatmul.msk.f32.gmra.mxu3 %vm109_vm4, %v16863_v24  ;;  %v9179_v15 = vadd.f32 %v9133_v28, %v9034_v13  ;;  %v9035_v31 = vadd.f32 %v8991_v6, %v8890_v12  ;;  %12378 = vmatmul.msk.f32.gmra.mxu0 %vm109_vm4, %v9342_v40 }
 0x7e0   :  { %12395 = vmatmul.msk.f32.gmra.mxu1 %vm109_vm4, %v9488_v7 }
 0x7e2   :  { %v9278_v14 = vpop.f32.mrf.mxu3 }
 0x7e3   :  { %v16917_v63 = vadd.f32 %v9278_v14, %v9179_v15  ;;  %12410 = vmatmul.msk.f32.gmra.mxu2 %vm109_vm4, %v16696_v53 }
 0x7e4   :  { %v8849_v1 = vpop.f32.mrf.mxu0 }
 0x7e5   :  { %v8891_v56 = vadd.f32 %v8849_v1, %v16690_v48  ;;  %v8997_v20 = vpop.f32.mrf.mxu1 }
 0x7e6   :  { %v9136_v59 = vpop.f32.mrf.mxu2 }
 0x7e7   :  { %12426 = vmatmul.msk.f32.gmra.mxu3 %vm109_vm4, %v16922_v50  ;;  %v9180_v6 = vadd.f32 %v9136_v59, %v9035_v31  ;;  %v9036_v39 = vadd.f32 %v8994_v43, %v8891_v56  ;;  %12379 = vmatmul.msk.f32.gmra.mxu0 %vm109_vm4, %v9343_v37  ;;  %v16944_v43 = vld [vmem:[#allocation3 + $0x388] sm:$0xff]  ;;  %v16956_v56 = vld [vmem:[#allocation3 + $0x390] sm:$0xff] }
 0x7e8   :  { %12396 = vmatmul.msk.f32.gmra.mxu1 %vm109_vm4, %v9489_v61  ;;  %v9491_v31 = vld [vmem:[#allocation3 + $0x2e8] sm:$0xff]  ;;  %v9492_v37 = vld [vmem:[#allocation3 + $0x2f0] sm:$0xff] }
 0x7ea   :  { %v9281_v38 = vpop.f32.mrf.mxu3 }
 0x7eb   :  { %v16928_v53 = vadd.f32 %v9281_v38, %v9180_v6  ;;  %12411 = vmatmul.msk.f32.gmra.mxu2 %vm109_vm4, %v16711_v11  ;;  %v16968_v38 = vld [vmem:[#allocation3 + $0x3a8] sm:$0xff] }
 0x7ec   :  { %v8852_v48 = vpop.f32.mrf.mxu0 }
 0x7ed   :  { %v8892_v41 = vadd.f32 %v8852_v48, %v16705_v16  ;;  %v9000_v13 = vpop.f32.mrf.mxu1 }
 0x7ee   :  { %v9139_v47 = vpop.f32.mrf.mxu2 }
 0x7ef   :  { %12427 = vmatmul.msk.f32.gmra.mxu3 %vm109_vm4, %v16933_v60  ;;  %v9181_v35 = vadd.f32 %v9139_v47, %v9036_v39  ;;  %v9037_v42 = vadd.f32 %v8997_v20, %v8892_v41  ;;  %12380 = vmatmul.msk.f32.gmra.mxu0 %vm109_vm4, %v9344_v29 }
 0x7f0   :  { %12397 = vmatmul.msk.f32.gmra.mxu1 %vm109_vm4, %v9490_v52 }
 0x7f2   :  { %v9284_v26 = vpop.f32.mrf.mxu3 }
 0x7f3   :  { %v16939_v11 = vadd.f32 %v9284_v26, %v9181_v35  ;;  %12412 = vmatmul.msk.f32.gmra.mxu2 %vm109_vm4, %v16726_v51 }
 0x7f4   :  { %v8855_v16 = vpop.f32.mrf.mxu0 }
 0x7f5   :  { %v8893_v0 = vadd.f32 %v8855_v16, %v16720_v5  ;;  %v9003_v12 = vpop.f32.mrf.mxu1  ;;  %v9494_v16 = vld [vmem:[#allocation3 + $0x310] sm:$0xff] }
 0x7f6   :  { %v9142_v28 = vpop.f32.mrf.mxu2 }
 0x7f7   :  { %12428 = vmatmul.msk.f32.gmra.mxu3 %vm109_vm4, %v16944_v43  ;;  %v9182_v40 = vadd.f32 %v9142_v28, %v9037_v42  ;;  %v9038_v15 = vadd.f32 %v9000_v13, %v8893_v0  ;;  %12381 = vmatmul.msk.f32.gmra.mxu0 %vm109_vm4, %v16523_v32  ;;  %v9493_v13 = vld [vmem:[#allocation3 + $0x308] sm:$0xff]  ;;  %v16980_v42 = vld [vmem:[#allocation3 + $0x3b0] sm:$0xff] }
 0x7f8   :  { %12398 = vmatmul.msk.f32.gmra.mxu1 %vm109_vm4, %v9491_v31  ;;  %v9349_v31 = vld [vmem:[#allocation3 + $0x30f] sm:$0xff] }
 0x7fa   :  { %v9287_v7 = vpop.f32.mrf.mxu3 }
 0x7fb   :  { %v16951_v51 = vadd.f32 %v9287_v7, %v9182_v40  ;;  %12413 = vmatmul.msk.f32.gmra.mxu2 %vm109_vm4, %v16741_v49  ;;  %v16992_v40 = vld [vmem:[#allocation3 + $0x3c8] sm:$0xff] }
 0x7fc   :  { %v8858_v5 = vpop.f32.mrf.mxu0 }
 0x7fd   :  { %v8894_v14 = vadd.f32 %v8858_v5, %v16735_v45  ;;  %v9006_v1 = vpop.f32.mrf.mxu1  ;;  %v9495_v5 = vld [vmem:[#allocation3 + $0x328] sm:$0xff] }
 0x7fe   :  { %v9145_v20 = vpop.f32.mrf.mxu2 }
 0x7ff   :  { %12429 = vmatmul.msk.f32.gmra.mxu3 %vm109_vm4, %v16956_v56  ;;  %v9183_v32 = vadd.f32 %v9145_v20, %v9038_v15  ;;  %v9039_v59 = vadd.f32 %v9003_v12, %v8894_v14  ;;  %12382 = vmatmul.msk.f32.gmra.mxu0 %vm109_vm4, %v16536_v30 }
 0x800   :  { %12399 = vmatmul.msk.f32.gmra.mxu1 %vm109_vm4, %v9492_v37  ;;  %v9350_v37 = vld [vmem:[#allocation3 + $0x327] sm:$0xff] }
 0x802   :  { %v9290_v6 = vpop.f32.mrf.mxu3 }
 0x803   :  { %v16963_v49 = vadd.f32 %v9290_v6, %v9183_v32  ;;  %12414 = vmatmul.msk.f32.gmra.mxu2 %vm109_vm4, %v16756_v17  ;;  %v17003_v32 = vld [vmem:[#allocation3 + $0x3d0] sm:$0xff] }
 0x804   :  { %v8861_v45 = vpop.f32.mrf.mxu0 }
 0x805   :  { %v8895_v39 = vadd.f32 %v8861_v45, %v16750_v27  ;;  %v9009_v61 = vpop.f32.mrf.mxu1 }
 0x806   :  { %v9148_v48 = vpop.f32.mrf.mxu2 }
 0x807   :  { %12430 = vmatmul.msk.f32.gmra.mxu3 %vm109_vm4, %v16968_v38  ;;  %v9184_v30 = vadd.f32 %v9148_v48, %v9039_v59  ;;  %v9040_v41 = vadd.f32 %v9006_v1, %v8895_v39  ;;  %12383 = vmatmul.msk.f32.gmra.mxu0 %vm109_vm4, %v16550_v23  ;;  %v9496_v39 = vld [vmem:[#allocation3 + $0x330] sm:$0xff] }
 0x808   :  { %12400 = vmatmul.msk.f32.gmra.mxu1 %vm109_vm4, %v9493_v13 }
 0x80a   :  { %v9293_v47 = vpop.f32.mrf.mxu3 }
 0x80b   :  { %v16975_v17 = vadd.f32 %v9293_v47, %v9184_v30  ;;  %12415 = vmatmul.msk.f32.gmra.mxu2 %vm109_vm4, %v16771_v19  ;;  %v9351_v47 = vld [vmem:[#allocation3 + $0x32f] sm:$0xff] }
 0x80c   :  { %v8864_v27 = vpop.f32.mrf.mxu0 }
 0x80d   :  { %v8896_v29 = vadd.f32 %v8864_v27, %v16765_v54  ;;  %v9012_v35 = vpop.f32.mrf.mxu1 }
 0x80e   :  { %v9151_v52 = vpop.f32.mrf.mxu2 }
 0x80f   :  { %12431 = vmatmul.msk.f32.gmra.mxu3 %vm109_vm4, %v16980_v42  ;;  %v9185_v23 = vadd.f32 %v9151_v52, %v9040_v41  ;;  %v9041_v26 = vadd.f32 %v9009_v61, %v8896_v29  ;;  %12384 = vmatmul.msk.f32.gmra.mxu0 %vm109_vm4, %v16565_v58  ;;  %v17014_v41 = vld [vmem:[#allocation3 + $0x3e8] sm:$0xff] }
 0x810   :  { %12401 = vmatmul.msk.f32.gmra.mxu1 %vm109_vm4, %v9494_v16 }
 0x812   :  { %v9296_v0 = vpop.f32.mrf.mxu3 }
 0x813   :  { %v16987_v19 = vadd.f32 %v9296_v0, %v9185_v23  ;;  %12416 = vmatmul.msk.f32.gmra.mxu2 %vm109_vm4, %v16786_v33 }
 0x814   :  { %v8867_v54 = vpop.f32.mrf.mxu0 }
 0x815   :  { %v8897_v12 = vadd.f32 %v8867_v54, %v16780_v4  ;;  %v9015_v28 = vpop.f32.mrf.mxu1 }
 0x816   :  { %v9154_v15 = vpop.f32.mrf.mxu2 }
 0x817   :  { %12432 = vmatmul.msk.f32.gmra.mxu3 %vm109_vm4, %v16992_v40  ;;  %v9186_v58 = vadd.f32 %v9154_v15, %v9041_v26  ;;  %v9042_v7 = vadd.f32 %v9012_v35, %v8897_v12  ;;  %12385 = vmatmul.msk.f32.gmra.mxu0 %vm109_vm4, %v9349_v31  ;;  %v17026_v26 = vld [vmem:[#allocation3 + $0x3f0] sm:$0xff]  ;;  %v17039_v15 = vld [vmem:[#allocation3 + $0x408] sm:$0xff] }
 0x818   :  { %12402 = vmatmul.msk.f32.gmra.mxu1 %vm109_vm4, %v9495_v5 }
 0x81a   :  { %v9299_v14 = vpop.f32.mrf.mxu3 }
 0x81b   :  { %v16998_v33 = vadd.f32 %v9299_v14, %v9186_v58  ;;  %12417 = vmatmul.msk.f32.gmra.mxu2 %vm109_vm4, %v16801_v46 }
 0x81c   :  { %v8870_v4 = vpop.f32.mrf.mxu0 }
 0x81d   :  { %v8898_v1 = vadd.f32 %v8870_v4, %v16795_v55  ;;  %v9018_v20 = vpop.f32.mrf.mxu1 }
 0x81e   :  { %v9157_v59 = vpop.f32.mrf.mxu2 }
 0x81f   :  { %12433 = vmatmul.msk.f32.gmra.mxu3 %vm109_vm4, %v17003_v32  ;;  %v9187_v6 = vadd.f32 %v9157_v59, %v9042_v7  ;;  %v9043_v45 = vadd.f32 %v9015_v28, %v8898_v1  ;;  %12386 = vmatmul.msk.f32.gmra.mxu0 %vm109_vm4, %v9350_v37  ;;  %v17052_v1 = vld [vmem:[#allocation3 + $0x410] sm:$0xff]  ;;  %v9354_v59 = vld [vmem:[#allocation3 + $0x367] sm:$0xff] }
 0x820   :  { %12403 = vmatmul.msk.f32.gmra.mxu1 %vm109_vm4, %v9496_v39  ;;  %v17059_v39 = vld [vmem:[#allocation3 + $0x369] sm:$0xff] }
 0x822   :  { %v9302_v61 = vpop.f32.mrf.mxu3 }
 0x823   :  { %v17009_v46 = vadd.f32 %v9302_v61, %v9187_v6  ;;  %12418 = vmatmul.msk.f32.gmra.mxu2 %vm109_vm4, %v16816_v25 }
 0x824   :  { %v8873_v55 = vpop.f32.mrf.mxu0 }
 0x825   :  { %v8899_v48 = vadd.f32 %v8873_v55, %v16810_v22  ;;  %v9021_v30 = vpop.f32.mrf.mxu1 }
 0x826   :  { %v9160_v13 = vpop.f32.mrf.mxu2 }
 0x827   :  { %12434 = vmatmul.msk.f32.gmra.mxu3 %vm109_vm4, %v17014_v41  ;;  %v9188_v27 = vadd.f32 %v9160_v13, %v9043_v45  ;;  %v9044_v29 = vadd.f32 %v9018_v20, %v8899_v48  ;;  %12387 = vmatmul.msk.f32.gmra.mxu0 %vm109_vm4, %v9351_v47  ;;  %v9355_v47 = vld [vmem:[#allocation3 + $0x36f] sm:$0xff] }
 0x828   :  { %12404 = vmatmul.msk.f32.gmra.mxu1 %vm109_vm4, %v16844_v62 }
 0x82a   :  { %v9305_v35 = vpop.f32.mrf.mxu3 }
 0x82b   :  { %v17021_v25 = vadd.f32 %v9305_v35, %v9188_v27  ;;  %12419 = vmatmul.msk.f32.gmra.mxu2 %vm109_vm4, %v16833_v21 }
 0x82c   :  { %v8876_v22 = vpop.f32.mrf.mxu0 }
 0x82d   :  { %v8900_v52 = vadd.f32 %v8876_v22, %v16827_v10  ;;  %v9024_v23 = vpop.f32.mrf.mxu1  ;;  %v17073_v22 = vld [vmem:[#allocation3 + $0x371] sm:$0xff] }
 0x82e   :  { %v9163_v16 = vpop.f32.mrf.mxu2 }
 0x82f   :  { %12435 = vmatmul.msk.f32.gmra.mxu3 %vm109_vm4, %v17026_v26  ;;  %v9189_v0 = vadd.f32 %v9163_v16, %v9044_v29  ;;  %v9045_v54 = vadd.f32 %v9021_v30, %v8900_v52  ;;  %12388 = vmatmul.msk.f32.gmra.mxu0 %vm109_vm4, %v16822_v3  ;;  %v17066_v30 = vld [vmem:[#allocation3 + $0x428] sm:$0xff] }
 0x830   :  { %12405 = vmatmul.msk.f32.gmra.mxu1 %vm109_vm4, %v16863_v24 }
 0x832   :  { %v9308_v62 = vpop.f32.mrf.mxu3 }
 0x833   :  { %v17034_v21 = vadd.f32 %v9308_v62, %v9189_v0  ;;  %12420 = vmatmul.msk.f32.gmra.mxu2 %vm109_vm4, %v16853_v18  ;;  %v17080_v0 = vld [vmem:[#allocation3 + $0x430] sm:$0xff] }
 0x834   :  { %v8879_v10 = vpop.f32.mrf.mxu0 }
 0x835   :  { %v8901_v12 = vadd.f32 %v8879_v10, %v16846_v44  ;;  %v9027_v28 = vpop.f32.mrf.mxu1 }
 0x836   :  { %v9166_v31 = vpop.f32.mrf.mxu2 }
 0x837   :  { %12436 = vmatmul.msk.f32.gmra.mxu3 %vm109_vm4, %v17039_v15  ;;  %v9190_v58 = vadd.f32 %v9166_v31, %v9045_v54  ;;  %v9046_v7 = vadd.f32 %v9024_v23, %v8901_v12  ;;  %12389 = vmatmul.msk.f32.gmra.mxu0 %vm109_vm4, %v16839_v34 }
 0x838   :  { %12406 = vmatmul.msk.f32.gmra.mxu1 %vm109_vm4, %v16922_v50 }
 0x83a   :  { %v9311_v24 = vpop.f32.mrf.mxu3 }
 0x83b   :  { %v17047_v5 = vadd.f32 %v9311_v24, %v9190_v58  ;;  %12421 = vmatmul.msk.f32.gmra.mxu2 %vm109_vm4, %v16872_v2 }
 0x83c   :  { %v8882_v44 = vpop.f32.mrf.mxu0 }
 0x83d   :  { %v8902_v14 = vadd.f32 %v8882_v44, %v16865_v9  ;;  %v9030_v4 = vpop.f32.mrf.mxu1 }
 0x83e   :  { %v9169_v20 = vpop.f32.mrf.mxu2 }
 0x83f   :  { %12437 = vmatmul.msk.f32.gmra.mxu3 %vm109_vm4, %v17052_v1  ;;  %v9191_v37 = vadd.f32 %v9169_v20, %v9046_v7  ;;  %v9047_v6 = vadd.f32 %v9027_v28, %v8902_v14  ;;  %12390 = vmatmul.msk.f32.gmra.mxu0 %vm109_vm4, %v9354_v59 }
 0x840   :  { %12407 = vmatmul.msk.f32.gmra.mxu1 %vm109_vm4, %v16933_v60 }
 0x842   :  { %v9314_v45 = vpop.f32.mrf.mxu3 }
 0x843   :  { %v17061_v61 = vadd.f32 %v9314_v45, %v9191_v37  ;;  %12422 = vmatmul.msk.f32.gmra.mxu2 %vm109_vm4, %v17059_v39 }
 0x844   :  { %v8885_v9 = vpop.f32.mrf.mxu0 }
 0x845   :  { %v8903_v55 = vadd.f32 %v8885_v9, %v16885_v36  ;;  %v9566_v48 = vpop.f32.mrf.mxu1  ;;  %v17116_v9 = vld [vmem:[#allocation3 + $0x387] sm:$0xff] }
 0x846   :  { %v9172_v13 = vpop.f32.mrf.mxu2 }
 0x847   :  { %12438 = vmatmul.msk.f32.gmra.mxu3 %vm109_vm4, %v17066_v30  ;;  %v9192_v27 = vadd.f32 %v9172_v13, %v9047_v6  ;;  %v9048_v29 = vadd.f32 %v9030_v4, %v8903_v55  ;;  %12391 = vmatmul.msk.f32.gmra.mxu0 %vm109_vm4, %v9355_v47 }
 0x848   :  { %12456 = vmatmul.msk.f32.vlgmr.msra.gmra.mxu1 %vm109_vm4, %v16853_v18 }
 0x84a   :  { %v9317_v35 = vpop.f32.mrf.mxu3 }
 0x84b   :  { %v17075_v52 = vadd.f32 %v9317_v35, %v9192_v27  ;;  %12423 = vmatmul.msk.f32.gmra.mxu2 %vm109_vm4, %v17073_v22 }
 0x84c   :  { %v9421_v36 = vpop.f32.mrf.mxu0 }
 0x84d   :  { %v9469_v23 = vadd.f32 %v9421_v36, %v16906_v57  ;;  %v9569_v16 = vpop.f32.mrf.mxu1 }
 0x84e   :  { %v9175_v54 = vpop.f32.mrf.mxu2 }
 0x84f   :  { %12439 = vmatmul.msk.f32.gmra.mxu3 %vm109_vm4, %v17080_v0  ;;  %v9193_v62 = vadd.f32 %v9175_v54, %v9048_v29  ;;  %v9614_v18 = vadd.f32 %v9566_v48, %v9469_v23  ;;  %12440 = vmatmul.msk.f32.vlgmr.msra.gmra.mxu0 %vm109_vm4, %v16822_v3  ;;  %v17126_v23 = vld [vmem:[#allocation3 + $0x389] sm:$0xff] }
 0x850   :  { %12457 = vmatmul.msk.f32.gmra.mxu1 %vm109_vm4, %v16872_v2 }
 0x852   :  { %v9320_v10 = vpop.f32.mrf.mxu3 }
 0x853   :  { %v17088_v12 = vadd.f32 %v9320_v10, %v9193_v62  ;;  %12472 = vmatmul.msk.f32.vlgmr.msra.gmra.mxu2 %vm109_vm4, %v9354_v59 }
 0x854   :  { %v9424_v57 = vpop.f32.mrf.mxu0 }
 0x855   :  { %v9470_v28 = vadd.f32 %v9424_v57, %v16917_v63  ;;  %v9572_v31 = vpop.f32.mrf.mxu1  ;;  %v17104_v63 = vld [vmem:[%s17706_s4 + $0x1] ss:$0 sm:$0xff] }
 0x856   :  { %v9711_v58 = vpop.f32.mrf.mxu2 }
 0x857   :  { %12488 = vmatmul.msk.f32.vlgmr.msra.gmra.mxu3 %vm109_vm4, %v16922_v50  ;;  %v9759_v7 = vadd.f32 %v9711_v58, %v9614_v18  ;;  %v9615_v24 = vadd.f32 %v9569_v16, %v9470_v28  ;;  %12441 = vmatmul.msk.f32.gmra.mxu0 %vm109_vm4, %v16839_v34 }
 0x858   :  { %12458 = vmatmul.msk.f32.gmra.mxu1 %vm109_vm4, %v17059_v39 }
 0x859   :  { %v9775_v50 = vadd.f32 %v17104_v63, %v9759_v7 }
 0x85a   :  { %v17098_v3 = vpop.f32.mrf.mxu3 }
 0x85b   :  { %12473 = vmatmul.msk.f32.gmra.mxu2 %vm109_vm4, %v9355_v47  ;;  %v9791_v37 = vmax.f32 %v9775_v50, 0.0 }
 0x85c   :  { %v9427_v2 = vpop.f32.mrf.mxu0 }
 0x85d   :  { %v9471_v44 = vadd.f32 %v9427_v2, %v16928_v53  ;;  %v9575_v14 = vpop.f32.mrf.mxu1 }
 0x85e   :  { %v9714_v4 = vpop.f32.mrf.mxu2 }
 0x85f   :  { %12489 = vmatmul.msk.f32.gmra.mxu3 %vm109_vm4, %v16933_v60  ;;  %v9760_v34 = vadd.f32 %v9714_v4, %v9615_v24  ;;  %v9616_v20 = vadd.f32 %v9572_v31, %v9471_v44  ;;  %12442 = vmatmul.msk.f32.gmra.mxu0 %vm109_vm4, %v9354_v59  ;;  %v9807_v60 = vsel %vm7116_vm7, %v9791_v37, 0.0  ;;  %v17143_v24 = vld [vmem:[#allocation3 + $0x391] sm:$0xff] }
 0x860   :  { %12459 = vmatmul.msk.f32.gmra.mxu1 %vm109_vm4, %v17073_v22 }
 0x861   :  { %v9776_v6 = vadd.f32 %v17104_v63, %v9760_v34 }
 0x862   :  { %v17114_v45 = vpop.f32.mrf.mxu3 }
 0x863   :  { %v9792_v53 = vmax.f32 %v9776_v6, 0.0  ;;  %12474 = vmatmul.msk.f32.gmra.mxu2 %vm109_vm4, %v17116_v9 }
 0x864   :  { %v9430_v55 = vpop.f32.mrf.mxu0 }
 0x865   :  { %v9808_v48 = vsel %vm7116_vm7, %v9792_v53, 0.0  ;;  %v9472_v59 = vadd.f32 %v9430_v55, %v16939_v11  ;;  %v9578_v13 = vpop.f32.mrf.mxu1  ;;  %v17133_v11 = vld [vmem:[#allocation3 + $0x38f] sm:$0xff] }
 0x866   :  { %v9809_v27 = vadd.f32 %v9808_v48, %v9807_v60  ;;  %v9717_v29 = vpop.f32.mrf.mxu2  ;;  %v17160_v60 = vld [vmem:[#allocation3 + $0x3a9] sm:$0xff] }
 0x867   :  { %12490 = vmatmul.msk.f32.gmra.mxu3 %vm109_vm4, %v16944_v43  ;;  %v9761_v35 = vadd.f32 %v9717_v29, %v9616_v20  ;;  %v9617_v36 = vadd.f32 %v9575_v14, %v9472_v59  ;;  %12443 = vmatmul.msk.f32.gmra.mxu0 %vm109_vm4, %v9355_v47 }
 0x868   :  { %12460 = vmatmul.msk.f32.gmra.mxu1 %vm109_vm4, %v17126_v23 }
 0x869   :  { %v9777_v16 = vadd.f32 %v17104_v63, %v9761_v35 }
 0x86a   :  { %v17131_v54 = vpop.f32.mrf.mxu3 }
 0x86b   :  { %v9793_v62 = vmax.f32 %v9777_v16, 0.0  ;;  %12475 = vmatmul.msk.f32.gmra.mxu2 %vm109_vm4, %v17133_v11 }
 0x86c   :  { %v9433_v18 = vpop.f32.mrf.mxu0 }
 0x86d   :  { %v9810_v10 = vsel %vm7116_vm7, %v9793_v62, 0.0  ;;  %v9473_v47 = vadd.f32 %v9433_v18, %v16951_v51  ;;  %v9581_v57 = vpop.f32.mrf.mxu1  ;;  %v17150_v51 = vld [vmem:[#allocation3 + $0x3a7] sm:$0xff] }
 0x86e   :  { %v9811_v28 = vadd.f32 %v9810_v10, %v9809_v27  ;;  %v9720_v31 = vpop.f32.mrf.mxu2 }
 0x86f   :  { %12491 = vmatmul.msk.f32.gmra.mxu3 %vm109_vm4, %v16956_v56  ;;  %v9762_v58 = vadd.f32 %v9720_v31, %v9617_v36  ;;  %v9618_v7 = vadd.f32 %v9578_v13, %v9473_v47  ;;  %12444 = vmatmul.msk.f32.gmra.mxu0 %vm109_vm4, %v17116_v9  ;;  %v17177_v47 = vld [vmem:[#allocation3 + $0x3b1] sm:$0xff] }
 0x870   :  { %12461 = vmatmul.msk.f32.gmra.mxu1 %vm109_vm4, %v17143_v24 }
 0x871   :  { %v9778_v2 = vadd.f32 %v17104_v63, %v9762_v58 }
 0x872   :  { %v17148_v50 = vpop.f32.mrf.mxu3 }
 0x873   :  { %v9794_v44 = vmax.f32 %v9778_v2, 0.0  ;;  %12476 = vmatmul.msk.f32.gmra.mxu2 %vm109_vm4, %v17150_v51 }
 0x874   :  { %v9436_v14 = vpop.f32.mrf.mxu0 }
 0x875   :  { %v9812_v4 = vsel %vm7116_vm7, %v9794_v44, 0.0  ;;  %v9474_v34 = vadd.f32 %v9436_v14, %v16963_v49  ;;  %v9584_v20 = vpop.f32.mrf.mxu1  ;;  %v17167_v49 = vld [vmem:[#allocation3 + $0x3af] sm:$0xff] }
 0x876   :  { %v9813_v37 = vadd.f32 %v9812_v4, %v9811_v28  ;;  %v9723_v6 = vpop.f32.mrf.mxu2 }
 0x877   :  { %12492 = vmatmul.msk.f32.gmra.mxu3 %vm109_vm4, %v16968_v38  ;;  %v9763_v53 = vadd.f32 %v9723_v6, %v9618_v7  ;;  %v9619_v55 = vadd.f32 %v9581_v57, %v9474_v34  ;;  %12445 = vmatmul.msk.f32.gmra.mxu0 %vm109_vm4, %v17133_v11 }
 0x878   :  { %12462 = vmatmul.msk.f32.gmra.mxu1 %vm109_vm4, %v17160_v60 }
 0x879   :  { %v9779_v48 = vadd.f32 %v17104_v63, %v9763_v53 }
 0x87a   :  { %v17165_v59 = vpop.f32.mrf.mxu3 }
 0x87b   :  { %v9795_v13 = vmax.f32 %v9779_v48, 0.0  ;;  %12477 = vmatmul.msk.f32.gmra.mxu2 %vm109_vm4, %v17167_v49 }
 0x87c   :  { %v9439_v27 = vpop.f32.mrf.mxu0 }
 0x87d   :  { %v9814_v29 = vsel %vm7116_vm7, %v9795_v13, 0.0  ;;  %v9475_v35 = vadd.f32 %v9439_v27, %v16975_v17  ;;  %v9587_v36 = vpop.f32.mrf.mxu1  ;;  %v17184_v17 = vld [vmem:[#allocation3 + $0x3c7] sm:$0xff] }
 0x87e   :  { %v9815_v16 = vadd.f32 %v9814_v29, %v9813_v37  ;;  %v9726_v62 = vpop.f32.mrf.mxu2  ;;  %v17194_v37 = vld [vmem:[#allocation3 + $0x3c9] sm:$0xff] }
 0x87f   :  { %12493 = vmatmul.msk.f32.gmra.mxu3 %vm109_vm4, %v16980_v42  ;;  %v9764_v18 = vadd.f32 %v9726_v62, %v9619_v55  ;;  %v9620_v10 = vadd.f32 %v9584_v20, %v9475_v35  ;;  %12446 = vmatmul.msk.f32.gmra.mxu0 %vm109_vm4, %v17150_v51 }
 0x880   :  { %12463 = vmatmul.msk.f32.gmra.mxu1 %vm109_vm4, %v17177_v47 }
 0x881   :  { %v9780_v57 = vadd.f32 %v17104_v63, %v9764_v18  ;;  %v17211_v18 = vld [vmem:[#allocation3 + $0x3d1] sm:$0xff] }
 0x882   :  { %v17182_v28 = vpop.f32.mrf.mxu3 }
 0x883   :  { %v9796_v31 = vmax.f32 %v9780_v57, 0.0  ;;  %12478 = vmatmul.msk.f32.gmra.mxu2 %vm109_vm4, %v17184_v17 }
 0x884   :  { %v9442_v58 = vpop.f32.mrf.mxu0 }
 0x885   :  { %v9816_v7 = vsel %vm7116_vm7, %v9796_v31, 0.0  ;;  %v9476_v2 = vadd.f32 %v9442_v58, %v16987_v19  ;;  %v9590_v44 = vpop.f32.mrf.mxu1  ;;  %v17201_v19 = vld [vmem:[#allocation3 + $0x3cf] sm:$0xff] }
 0x886   :  { %v9817_v14 = vadd.f32 %v9816_v7, %v9815_v16  ;;  %v9729_v4 = vpop.f32.mrf.mxu2 }
 0x887   :  { %12494 = vmatmul.msk.f32.gmra.mxu3 %vm109_vm4, %v16992_v40  ;;  %v9765_v34 = vadd.f32 %v9729_v4, %v9620_v10  ;;  %v9621_v20 = vadd.f32 %v9587_v36, %v9476_v2  ;;  %12447 = vmatmul.msk.f32.gmra.mxu0 %vm109_vm4, %v17167_v49 }
 0x888   :  { %12464 = vmatmul.msk.f32.gmra.mxu1 %vm109_vm4, %v17194_v37 }
 0x889   :  { %v9781_v6 = vadd.f32 %v17104_v63, %v9765_v34 }
 0x88a   :  { %v17199_v53 = vpop.f32.mrf.mxu3 }
 0x88b   :  { %v9797_v55 = vmax.f32 %v9781_v6, 0.0  ;;  %12479 = vmatmul.msk.f32.gmra.mxu2 %vm109_vm4, %v17201_v19  ;;  %v17228_v6 = vld [vmem:[#allocation3 + $0x3e9] sm:$0xff] }
 0x88c   :  { %v9445_v48 = vpop.f32.mrf.mxu0 }
 0x88d   :  { %v9818_v13 = vsel %vm7116_vm7, %v9797_v55, 0.0  ;;  %v9477_v27 = vadd.f32 %v9445_v48, %v16998_v33  ;;  %v9593_v29 = vpop.f32.mrf.mxu1  ;;  %v17218_v33 = vld [vmem:[#allocation3 + $0x3e7] sm:$0xff] }
 0x88e   :  { %v9819_v35 = vadd.f32 %v9818_v13, %v9817_v14  ;;  %v9732_v36 = vpop.f32.mrf.mxu2 }
 0x88f   :  { %12495 = vmatmul.msk.f32.gmra.mxu3 %vm109_vm4, %v17003_v32  ;;  %v9766_v16 = vadd.f32 %v9732_v36, %v9621_v20  ;;  %v9622_v62 = vadd.f32 %v9590_v44, %v9477_v27  ;;  %12448 = vmatmul.msk.f32.gmra.mxu0 %vm109_vm4, %v17184_v17 }
 0x890   :  { %12465 = vmatmul.msk.f32.gmra.mxu1 %vm109_vm4, %v17211_v18 }
 0x891   :  { %v9782_v10 = vadd.f32 %v17104_v63, %v9766_v16 }
 0x892   :  { %v17216_v57 = vpop.f32.mrf.mxu3 }
 0x893   :  { %v9798_v31 = vmax.f32 %v9782_v10, 0.0  ;;  %12480 = vmatmul.msk.f32.gmra.mxu2 %vm109_vm4, %v17218_v33 }
 0x894   :  { %v9448_v58 = vpop.f32.mrf.mxu0 }
 0x895   :  { %v9820_v7 = vsel %vm7116_vm7, %v9798_v31, 0.0  ;;  %v9478_v2 = vadd.f32 %v9448_v58, %v17009_v46  ;;  %v9596_v44 = vpop.f32.mrf.mxu1  ;;  %v17235_v46 = vld [vmem:[#allocation3 + $0x3ef] sm:$0xff] }
 0x896   :  { %v9821_v14 = vadd.f32 %v9820_v7, %v9819_v35  ;;  %v9735_v4 = vpop.f32.mrf.mxu2  ;;  %v17245_v58 = vld [vmem:[#allocation3 + $0x3f1] sm:$0xff] }
 0x897   :  { %12496 = vmatmul.msk.f32.gmra.mxu3 %vm109_vm4, %v17014_v41  ;;  %v9767_v34 = vadd.f32 %v9735_v4, %v9622_v62  ;;  %v9623_v20 = vadd.f32 %v9593_v29, %v9478_v2  ;;  %12449 = vmatmul.msk.f32.gmra.mxu0 %vm109_vm4, %v17201_v19 }
 0x898   :  { %12466 = vmatmul.msk.f32.gmra.mxu1 %vm109_vm4, %v17228_v6 }
 0x899   :  { %v9783_v55 = vadd.f32 %v17104_v63, %v9767_v34 }
 0x89a   :  { %v17233_v48 = vpop.f32.mrf.mxu3 }
 0x89b   :  { %17760 = vst [vmem:[#allocation10_spill] sm:$0xff] %v17233_v48  ;;  %v9799_v13 = vmax.f32 %v9783_v55, 0.0  ;;  %12481 = vmatmul.msk.f32.gmra.mxu2 %vm109_vm4, %v17235_v46 }
 0x89c   :  { %v9451_v27 = vpop.f32.mrf.mxu0 }
 0x89d   :  { %v9822_v29 = vsel %vm7116_vm7, %v9799_v13, 0.0  ;;  %v9479_v35 = vadd.f32 %v9451_v27, %v17021_v25  ;;  %v9599_v36 = vpop.f32.mrf.mxu1  ;;  %v17252_v25 = vld [vmem:[#allocation3 + $0x407] sm:$0xff] }
 0x89e   :  { %v9823_v16 = vadd.f32 %v9822_v29, %v9821_v14  ;;  %v9738_v62 = vpop.f32.mrf.mxu2 }
 0x89f   :  { %12497 = vmatmul.msk.f32.gmra.mxu3 %vm109_vm4, %v17026_v26  ;;  %v9768_v10 = vadd.f32 %v9738_v62, %v9623_v20  ;;  %v9624_v31 = vadd.f32 %v9596_v44, %v9479_v35  ;;  %12450 = vmatmul.msk.f32.gmra.mxu0 %vm109_vm4, %v17218_v33  ;;  %v17262_v35 = vld [vmem:[#allocation3 + $0x409] sm:$0xff] }
 0x8a0   :  { %12467 = vmatmul.msk.f32.gmra.mxu1 %vm109_vm4, %v17245_v58 }
 0x8a1   :  { %v9784_v7 = vadd.f32 %v17104_v63, %v9768_v10 }
 0x8a2   :  { %v17250_v2 = vpop.f32.mrf.mxu3 }
 0x8a3   :  { %v9800_v14 = vmax.f32 %v9784_v7, 0.0  ;;  %12482 = vmatmul.msk.f32.gmra.mxu2 %vm109_vm4, %v17252_v25 }
 0x8a4   :  { %v9454_v4 = vpop.f32.mrf.mxu0 }
 0x8a5   :  { %v9824_v44 = vsel %vm7116_vm7, %v9800_v14, 0.0  ;;  %v9480_v34 = vadd.f32 %v9454_v4, %v17034_v21  ;;  %v9602_v20 = vpop.f32.mrf.mxu1  ;;  %v17269_v21 = vld [vmem:[#allocation3 + $0x40f] sm:$0xff] }
 0x8a6   :  { %v9825_v55 = vadd.f32 %v9824_v44, %v9823_v16  ;;  %v9741_v13 = vpop.f32.mrf.mxu2 }
 0x8a7   :  { %12498 = vmatmul.msk.f32.gmra.mxu3 %vm109_vm4, %v17039_v15  ;;  %v9769_v27 = vadd.f32 %v9741_v13, %v9624_v31  ;;  %v9625_v29 = vadd.f32 %v9599_v36, %v9480_v34  ;;  %12451 = vmatmul.msk.f32.gmra.mxu0 %vm109_vm4, %v17235_v46 }
 0x8a8   :  { %12468 = vmatmul.msk.f32.gmra.mxu1 %vm109_vm4, %v17262_v35 }
 0x8a9   :  { %v9785_v62 = vadd.f32 %v17104_v63, %v9769_v27  ;;  %v17279_v27 = vld [vmem:[#allocation3 + $0x411] sm:$0xff] }
 0x8aa   :  { %v17267_v10 = vpop.f32.mrf.mxu3 }
 0x8ab   :  { %v9801_v16 = vmax.f32 %v9785_v62, 0.0  ;;  %12483 = vmatmul.msk.f32.gmra.mxu2 %vm109_vm4, %v17269_v21 }
 0x8ac   :  { %v9457_v31 = vpop.f32.mrf.mxu0 }
 0x8ad   :  { %v9826_v36 = vsel %vm7116_vm7, %v9801_v16, 0.0  ;;  %v9481_v7 = vadd.f32 %v9457_v31, %v17047_v5  ;;  %v9605_v14 = vpop.f32.mrf.mxu1  ;;  %v17286_v5 = vld [vmem:[#allocation3 + $0x427] sm:$0xff] }
 0x8ae   :  { %v9827_v4 = vadd.f32 %v9826_v36, %v9825_v55  ;;  %v9744_v44 = vpop.f32.mrf.mxu2 }
 0x8af   :  { %12499 = vmatmul.msk.f32.gmra.mxu3 %vm109_vm4, %v17052_v1  ;;  %v9770_v34 = vadd.f32 %v9744_v44, %v9625_v29  ;;  %v9626_v13 = vadd.f32 %v9602_v20, %v9481_v7  ;;  %12452 = vmatmul.msk.f32.gmra.mxu0 %vm109_vm4, %v17252_v25 }
 0x8b0   :  { %12469 = vmatmul.msk.f32.gmra.mxu1 %vm109_vm4, %v17279_v27 }
 0x8b1   :  { %v9786_v62 = vadd.f32 %v17104_v63, %v9770_v34 }
 0x8b2   :  { %v17284_v16 = vpop.f32.mrf.mxu3 }
 0x8b3   :  { %v9802_v55 = vmax.f32 %v9786_v62, 0.0  ;;  %12484 = vmatmul.msk.f32.gmra.mxu2 %vm109_vm4, %v17286_v5  ;;  %v17296_v62 = vld [vmem:[#allocation3 + $0x429] sm:$0xff] }
 0x8b4   :  { %v9460_v29 = vpop.f32.mrf.mxu0  ;;  %17761 = vst [vmem:[#allocation8_spill] sm:$0xff] %v17296_v62 }
 0x8b5   :  { %v9828_v20 = vsel %vm7116_vm7, %v9802_v55, 0.0  ;;  %v9482_v31 = vadd.f32 %v9460_v29, %v17061_v61  ;;  %v9608_v36 = vpop.f32.mrf.mxu1  ;;  %v17303_v61 = vld [vmem:[#allocation3 + $0x42f] sm:$0xff] }
 0x8b6   :  { %v9829_v7 = vadd.f32 %v9828_v20, %v9827_v4  ;;  %v9747_v44 = vpop.f32.mrf.mxu2 }
 0x8b7   :  { %12500 = vmatmul.msk.f32.gmra.mxu3 %vm109_vm4, %v17066_v30  ;;  %v9771_v34 = vadd.f32 %v9747_v44, %v9626_v13  ;;  %v9627_v8 = vadd.f32 %v9605_v14, %v9482_v31  ;;  %12453 = vmatmul.msk.f32.gmra.mxu0 %vm109_vm4, %v17269_v21 }
 0x8b8   :  { %12470 = vmatmul.msk.f32.gmra.mxu1 %vm109_vm4, %v17296_v62 }
 0x8b9   :  { %v9787_v55 = vadd.f32 %v17104_v63, %v9771_v34 }
 0x8ba   :  { %v17301_v48 = vpop.f32.mrf.mxu3 }
 0x8bb   :  { %17762 = vst [vmem:[#allocation9_spill] sm:$0xff] %v17301_v48  ;;  %v9803_v4 = vmax.f32 %v9787_v55, 0.0  ;;  %12485 = vmatmul.msk.f32.gmra.mxu2 %vm109_vm4, %v17303_v61  ;;  %v17313_v55 = vld [vmem:[#allocation3 + $0x431] sm:$0xff] }
 0x8bc   :  { %v9463_v13 = vpop.f32.mrf.mxu0  ;;  %17763 = vst [vmem:[#allocation11_spill] sm:$0xff] %v17313_v55 }
 0x8bd   :  { %v9830_v14 = vsel %vm7116_vm7, %v9803_v4, 0.0  ;;  %v9483_v29 = vadd.f32 %v9463_v13, %v17075_v52  ;;  %v9611_v20 = vpop.f32.mrf.mxu1  ;;  %v17320_v52 = vld [vmem:[#allocation3 + $0x447] sm:$0xff] }
 0x8be   :  { %v9831_v31 = vadd.f32 %v9830_v14, %v9829_v7  ;;  %v9750_v44 = vpop.f32.mrf.mxu2 }
 0x8bf   :  { %12501 = vmatmul.msk.f32.gmra.mxu3 %vm109_vm4, %v17080_v0  ;;  %v9772_v34 = vadd.f32 %v9750_v44, %v9627_v8  ;;  %v9628_v62 = vadd.f32 %v9608_v36, %v9483_v29  ;;  %12454 = vmatmul.msk.f32.gmra.mxu0 %vm109_vm4, %v17286_v5  ;;  %v17326_v44 = vld [vmem:[#allocation3 + $0x448] sm:$0xff] }
 0x8c0   :  { %12471 = vmatmul.msk.f32.gmra.mxu1 %vm109_vm4, %v17313_v55 }
 0x8c1   :  { %v9788_v4 = vadd.f32 %v17104_v63, %v9772_v34 }
 0x8c2   :  { %v17318_v48 = vpop.f32.mrf.mxu3 }
 0x8c3   :  { %17764 = vst [vmem:[#allocation12_spill] sm:$0xff] %v17318_v48  ;;  %v9804_v7 = vmax.f32 %v9788_v4, 0.0  ;;  %12486 = vmatmul.msk.f32.gmra.mxu2 %vm109_vm4, %v17320_v52 }
 0x8c4   :  { %v9466_v8 = vpop.f32.mrf.mxu0 }
 0x8c5   :  { %v9832_v36 = vsel %vm7116_vm7, %v9804_v7, 0.0  ;;  %v9484_v13 = vadd.f32 %v9466_v8, %v17088_v12  ;;  %v10185_v14 = vpop.f32.mrf.mxu1  ;;  %v17337_v12 = vld [vmem:[#allocation3 + $0x44f] sm:$0xff] }
 0x8c6   :  { %v9833_v29 = vadd.f32 %v9832_v36, %v9831_v31  ;;  %v9753_v55 = vpop.f32.mrf.mxu2  ;;  %v17342_v36 = vld [vmem:[#allocation3 + $0x450] sm:$0xff] }
 0x8c7   :  { %12502 = vmatmul.msk.f32.gmra.mxu3 %vm109_vm4, %v17326_v44  ;;  %v9773_v34 = vadd.f32 %v9753_v55, %v9628_v62  ;;  %v9629_v48 = vadd.f32 %v9611_v20, %v9484_v13  ;;  %12455 = vmatmul.msk.f32.gmra.mxu0 %vm109_vm4, %v17303_v61  ;;  %17766 = vst [vmem:[#allocation14_spill] sm:$0xff] %v17342_v36 }
 0x8c8   :  { %12520 = vmatmul.msk.f32.vlgmr.msrb.gmra.mxu1 %vm109_vm4, %v17116_v9 }
 0x8c9   :  { %v9789_v4 = vadd.f32 %v17104_v63, %v9773_v34 }
 0x8ca   :  { %v17335_v7 = vpop.f32.mrf.mxu3 }
 0x8cb   :  { %17765 = vst [vmem:[#allocation13_spill] sm:$0xff] %v17335_v7  ;;  %v9805_v31 = vmax.f32 %v9789_v4, 0.0  ;;  %12487 = vmatmul.msk.f32.gmra.mxu2 %vm109_vm4, %v17337_v12 }
 0x8cc   :  { %v10056_v8 = vpop.f32.mrf.mxu0 }
 0x8cd   :  { %v9834_v62 = vsel %vm7116_vm7, %v9805_v31, 0.0  ;;  %v10188_v20 = vpop.f32.mrf.mxu1  ;;  %v10057_v4 = vadd.f32 %v10056_v8, %v17098_v3 }
 0x8ce   :  { %v9835_v55 = vadd.f32 %v9834_v62, %v9833_v29  ;;  %v9756_v13 = vpop.f32.mrf.mxu2 }
 0x8cf   :  { %12503 = vmatmul.msk.f32.gmra.mxu3 %vm109_vm4, %v17342_v36  ;;  %v9774_v9 = vadd.f32 %v9756_v13, %v9629_v48  ;;  %12504 = vmatmul.msk.f32.vlgmr.msrb.gmra.mxu0 %vm109_vm4, %v17059_v39  ;;  %v10233_v48 = vadd.f32 %v10185_v14, %v10057_v4 }
 0x8d0   :  { %12521 = vmatmul.msk.f32.gmra.mxu1 %vm109_vm4, %v17133_v11 }
 0x8d1   :  { %v9790_v34 = vadd.f32 %v17104_v63, %v9774_v9 }
 0x8d2   :  { %v17352_v31 = vpop.f32.mrf.mxu3 }
 0x8d3   :  { %v9806_v29 = vmax.f32 %v9790_v34, 0.0  ;;  %12536 = vmatmul.msk.f32.vlgmr.msrb.gmra.mxu2 %vm109_vm4, %v16944_v43 }
 0x8d4   :  { %v10059_v62 = vpop.f32.mrf.mxu0 }
 0x8d5   :  { %v9836_v7 = vsel %vm7116_vm7, %v9806_v29, 0.0  ;;  %v10191_v13 = vpop.f32.mrf.mxu1  ;;  %v10060_v43 = vadd.f32 %v10059_v62, %v17114_v45 }
 0x8d6   :  { %v17357_v36 = vadd.f32 %v9836_v7, %v9835_v55  ;;  %v10330_v39 = vpop.f32.mrf.mxu2 }
 0x8d7   :  { %12552 = vmatmul.msk.f32.vlgmr.msrb.gmra.mxu3 %vm109_vm4, %v17126_v23  ;;  %v10378_v11 = vadd.f32 %v10330_v39, %v10233_v48  ;;  %12505 = vmatmul.msk.f32.gmra.mxu0 %vm109_vm4, %v17073_v22  ;;  %v10234_v7 = vadd.f32 %v10188_v20, %v10060_v43 }
 0x8d8   :  { %12522 = vmatmul.msk.f32.gmra.mxu1 %vm109_vm4, %v17150_v51 }
 0x8da   :  { %v10475_v3 = vpop.f32.mrf.mxu3 }
 0x8db   :  { %v17366_v8 = vadd.f32 %v10475_v3, %v10378_v11  ;;  %12537 = vmatmul.msk.f32.gmra.mxu2 %vm109_vm4, %v16956_v56 }
 0x8dc   :  { %v10062_v14 = vpop.f32.mrf.mxu0 }
 0x8dd   :  { %v10194_v55 = vpop.f32.mrf.mxu1  ;;  %v10063_v22 = vadd.f32 %v10062_v14, %v17131_v54 }
 0x8de   :  { %v10333_v9 = vpop.f32.mrf.mxu2 }
 0x8df   :  { %12553 = vmatmul.msk.f32.gmra.mxu3 %vm109_vm4, %v17143_v24  ;;  %v10379_v34 = vadd.f32 %v10333_v9, %v10234_v7  ;;  %12506 = vmatmul.msk.f32.gmra.mxu0 %vm109_vm4, %v17126_v23  ;;  %v10235_v20 = vadd.f32 %v10191_v13, %v10063_v22 }
 0x8e0   :  { %12523 = vmatmul.msk.f32.gmra.mxu1 %vm109_vm4, %v17167_v49 }
 0x8e2   :  { %v10478_v45 = vpop.f32.mrf.mxu3 }
 0x8e3   :  { %v17377_v51 = vadd.f32 %v10478_v45, %v10379_v34  ;;  %12538 = vmatmul.msk.f32.gmra.mxu2 %vm109_vm4, %v16968_v38 }
 0x8e4   :  { %v10065_v56 = vpop.f32.mrf.mxu0 }
 0x8e5   :  { %v10197_v4 = vpop.f32.mrf.mxu1  ;;  %v10066_v23 = vadd.f32 %v10065_v56, %v17148_v50 }
 0x8e6   :  { %v10336_v29 = vpop.f32.mrf.mxu2 }
 0x8e7   :  { %12554 = vmatmul.msk.f32.gmra.mxu3 %vm109_vm4, %v17160_v60  ;;  %v10380_v62 = vadd.f32 %v10336_v29, %v10235_v20  ;;  %12507 = vmatmul.msk.f32.gmra.mxu0 %vm109_vm4, %v17143_v24  ;;  %v10236_v48 = vadd.f32 %v10194_v55, %v10066_v23 }
 0x8e8   :  { %12524 = vmatmul.msk.f32.gmra.mxu1 %vm109_vm4, %v17184_v17 }
 0x8ea   :  { %v10481_v54 = vpop.f32.mrf.mxu3 }
 0x8eb   :  { %v17388_v49 = vadd.f32 %v10481_v54, %v10380_v62  ;;  %12539 = vmatmul.msk.f32.gmra.mxu2 %vm109_vm4, %v16980_v42 }
 0x8ec   :  { %v10068_v38 = vpop.f32.mrf.mxu0 }
 0x8ed   :  { %v10200_v13 = vpop.f32.mrf.mxu1  ;;  %v10069_v24 = vadd.f32 %v10068_v38, %v17165_v59 }
 0x8ee   :  { %v10339_v39 = vpop.f32.mrf.mxu2 }
 0x8ef   :  { %12555 = vmatmul.msk.f32.gmra.mxu3 %vm109_vm4, %v17177_v47  ;;  %v10381_v11 = vadd.f32 %v10339_v39, %v10236_v48  ;;  %12508 = vmatmul.msk.f32.gmra.mxu0 %vm109_vm4, %v17160_v60  ;;  %v10237_v43 = vadd.f32 %v10197_v4, %v10069_v24 }
 0x8f0   :  { %12525 = vmatmul.msk.f32.gmra.mxu1 %vm109_vm4, %v17201_v19 }
 0x8f2   :  { %v10484_v50 = vpop.f32.mrf.mxu3 }
 0x8f3   :  { %v17399_v17 = vadd.f32 %v10484_v50, %v10381_v11  ;;  %12540 = vmatmul.msk.f32.gmra.mxu2 %vm109_vm4, %v16992_v40 }
 0x8f4   :  { %v10071_v42 = vpop.f32.mrf.mxu0 }
 0x8f5   :  { %v10203_v3 = vpop.f32.mrf.mxu1  ;;  %v10072_v60 = vadd.f32 %v10071_v42, %v17182_v28 }
 0x8f6   :  { %v10342_v14 = vpop.f32.mrf.mxu2 }
 0x8f7   :  { %12556 = vmatmul.msk.f32.gmra.mxu3 %vm109_vm4, %v17194_v37  ;;  %v10382_v7 = vadd.f32 %v10342_v14, %v10237_v43  ;;  %12509 = vmatmul.msk.f32.gmra.mxu0 %vm109_vm4, %v17177_v47  ;;  %v10238_v55 = vadd.f32 %v10200_v13, %v10072_v60  ;;  %v17767_v43 = vld [vmem:[#allocation8_spill] sm:$0xff] }
 0x8f8   :  { %12526 = vmatmul.msk.f32.gmra.mxu1 %vm109_vm4, %v17218_v33 }
 0x8fa   :  { %v10487_v59 = vpop.f32.mrf.mxu3 }
 0x8fb   :  { %v17410_v19 = vadd.f32 %v10487_v59, %v10382_v7  ;;  %12541 = vmatmul.msk.f32.gmra.mxu2 %vm109_vm4, %v17003_v32 }
 0x8fc   :  { %v10074_v40 = vpop.f32.mrf.mxu0 }
 0x8fd   :  { %v10206_v9 = vpop.f32.mrf.mxu1  ;;  %v10075_v47 = vadd.f32 %v10074_v40, %v17199_v53  ;;  %v17769_v40 = vld [vmem:[#allocation11_spill] sm:$0xff] }
 0x8fe   :  { %v10345_v34 = vpop.f32.mrf.mxu2 }
 0x8ff   :  { %12557 = vmatmul.msk.f32.gmra.mxu3 %vm109_vm4, %v17211_v18  ;;  %v10383_v22 = vadd.f32 %v10345_v34, %v10238_v55  ;;  %12510 = vmatmul.msk.f32.gmra.mxu0 %vm109_vm4, %v17194_v37  ;;  %v10239_v45 = vadd.f32 %v10203_v3, %v10075_v47  ;;  %v17770_v34 = vld [vmem:[#allocation12_spill] sm:$0xff] }
 0x900   :  { %12527 = vmatmul.msk.f32.gmra.mxu1 %vm109_vm4, %v17235_v46 }
 0x902   :  { %v10490_v28 = vpop.f32.mrf.mxu3 }
 0x903   :  { %v17421_v33 = vadd.f32 %v10490_v28, %v10383_v22  ;;  %12542 = vmatmul.msk.f32.gmra.mxu2 %vm109_vm4, %v17014_v41  ;;  %v10699_v28 = vld [vmem:[#allocation3 + $0x467] sm:$0xff] }
 0x904   :  { %v10077_v32 = vpop.f32.mrf.mxu0 }
 0x905   :  { %v17425_v56 = vpop.f32.mrf.mxu1  ;;  %v10078_v53 = vadd.f32 %v10077_v32, %v17216_v57  ;;  %v10987_v32 = vld [vmem:[#allocation3 + $0x449] sm:$0xff] }
 0x906   :  { %v10348_v20 = vpop.f32.mrf.mxu2 }
 0x907   :  { %12558 = vmatmul.msk.f32.gmra.mxu3 %vm109_vm4, %v17228_v6  ;;  %v10384_v37 = vadd.f32 %v10348_v20, %v10239_v45  ;;  %12511 = vmatmul.msk.f32.gmra.mxu0 %vm109_vm4, %v17211_v18  ;;  %v10240_v29 = vadd.f32 %v10206_v9, %v10078_v53 }
 0x908   :  { %12528 = vmatmul.msk.f32.gmra.mxu1 %vm109_vm4, %v17252_v25 }
 0x90a   :  { %v10493_v46 = vpop.f32.mrf.mxu3 }
 0x90b   :  { %v17434_v4 = vadd.f32 %v10493_v46, %v10384_v37  ;;  %12543 = vmatmul.msk.f32.gmra.mxu2 %vm109_vm4, %v17026_v26 }
 0x90c   :  { %v17438_v41 = vpop.f32.mrf.mxu0 }
 0x90d   :  { %v10212_v62 = vpop.f32.mrf.mxu1 }
 0x90e   :  { %v10351_v23 = vpop.f32.mrf.mxu2 }
 0x90f   :  { %12559 = vmatmul.msk.f32.gmra.mxu3 %vm109_vm4, %v17245_v58  ;;  %v10385_v18 = vadd.f32 %v10351_v23, %v10240_v29  ;;  %12512 = vmatmul.msk.f32.gmra.mxu0 %vm109_vm4, %v17228_v6  ;;  %v17772_v29 = vld [vmem:[#allocation13_spill] sm:$0xff] }
 0x910   :  { %12529 = vmatmul.msk.f32.gmra.mxu1 %vm109_vm4, %v17269_v21 }
 0x912   :  { %v10496_v57 = vpop.f32.mrf.mxu3 }
 0x913   :  { %v17446_v25 = vadd.f32 %v10496_v57, %v10385_v18  ;;  %12544 = vmatmul.msk.f32.gmra.mxu2 %vm109_vm4, %v17039_v15  ;;  %v10700_v18 = vld [vmem:[#allocation3 + $0x46f] sm:$0xff] }
 0x914   :  { %v10083_v26 = vpop.f32.mrf.mxu0  ;;  %v10988_v57 = vld [vmem:[#allocation3 + $0x451] sm:$0xff] }
 0x915   :  { %v10084_v54 = vadd.f32 %v10083_v26, %v17250_v2  ;;  %v10215_v38 = vpop.f32.mrf.mxu1 }
 0x916   :  { %v17451_v48 = vpop.f32.mrf.mxu2 }
 0x917   :  { %12560 = vmatmul.msk.f32.gmra.mxu3 %vm109_vm4, %v17262_v35  ;;  %v10242_v13 = vadd.f32 %v10212_v62, %v10084_v54  ;;  %12513 = vmatmul.msk.f32.gmra.mxu0 %vm109_vm4, %v17245_v58 }
 0x918   :  { %12530 = vmatmul.msk.f32.gmra.mxu1 %vm109_vm4, %v17286_v5 }
 0x91a   :  { %v17459_v6 = vpop.f32.mrf.mxu3 }
 0x91b   :  { %12545 = vmatmul.msk.f32.gmra.mxu2 %vm109_vm4, %v17052_v1 }
 0x91c   :  { %v10086_v15 = vpop.f32.mrf.mxu0 }
 0x91d   :  { %v10087_v2 = vadd.f32 %v10086_v15, %v17267_v10  ;;  %v10218_v21 = vpop.f32.mrf.mxu1 }
 0x91e   :  { %v10357_v39 = vpop.f32.mrf.mxu2 }
 0x91f   :  { %12561 = vmatmul.msk.f32.gmra.mxu3 %vm109_vm4, %v17279_v27  ;;  %v10387_v11 = vadd.f32 %v10357_v39, %v10242_v13  ;;  %v10243_v24 = vadd.f32 %v10215_v38, %v10087_v2  ;;  %12514 = vmatmul.msk.f32.gmra.mxu0 %vm109_vm4, %v17262_v35  ;;  %v10844_v13 = vld [vmem:[#allocation3 + $0x468] sm:$0xff] }
 0x920   :  { %12531 = vmatmul.msk.f32.gmra.mxu1 %vm109_vm4, %v17303_v61 }
 0x922   :  { %v10502_v58 = vpop.f32.mrf.mxu3 }
 0x923   :  { %v17470_v5 = vadd.f32 %v10502_v58, %v10387_v11  ;;  %12546 = vmatmul.msk.f32.gmra.mxu2 %vm109_vm4, %v17066_v30 }
 0x924   :  { %v10089_v1 = vpop.f32.mrf.mxu0 }
 0x925   :  { %v10090_v10 = vadd.f32 %v10089_v1, %v17284_v16  ;;  %v10221_v50 = vpop.f32.mrf.mxu1  ;;  %v17768_v16 = vld [vmem:[#allocation9_spill] sm:$0xff] }
 0x926   :  { %v10360_v42 = vpop.f32.mrf.mxu2 }
 0x927   :  { %12562 = vmatmul.msk.f32.gmra.mxu3 %vm109_vm4, %v17767_v43  ;;  %v10388_v3 = vadd.f32 %v10360_v42, %v10243_v24  ;;  %v10244_v14 = vadd.f32 %v10218_v21, %v10090_v10  ;;  %12515 = vmatmul.msk.f32.gmra.mxu0 %vm109_vm4, %v17279_v27  ;;  %v10989_v21 = vld [vmem:[#allocation3 + $0x469] sm:$0xff] }
 0x928   :  { %12532 = vmatmul.msk.f32.gmra.mxu1 %vm109_vm4, %v17320_v52 }
 0x92a   :  { %v10505_v35 = vpop.f32.mrf.mxu3 }
 0x92b   :  { %v17481_v61 = vadd.f32 %v10505_v35, %v10388_v3  ;;  %12547 = vmatmul.msk.f32.gmra.mxu2 %vm109_vm4, %v17080_v0  ;;  %v10990_v3 = vld [vmem:[#allocation3 + $0x471] sm:$0xff] }
 0x92c   :  { %v10092_v30 = vpop.f32.mrf.mxu0 }
 0x92d   :  { %v10093_v7 = vadd.f32 %v10092_v30, %v17768_v16  ;;  %v10224_v60 = vpop.f32.mrf.mxu1 }
 0x92e   :  { %v10363_v59 = vpop.f32.mrf.mxu2 }
 0x92f   :  { %12563 = vmatmul.msk.f32.gmra.mxu3 %vm109_vm4, %v17769_v40  ;;  %v10389_v55 = vadd.f32 %v10363_v59, %v10244_v14  ;;  %v10245_v9 = vadd.f32 %v10221_v50, %v10093_v7  ;;  %12516 = vmatmul.msk.f32.gmra.mxu0 %vm109_vm4, %v17767_v43  ;;  %v10845_v50 = vld [vmem:[#allocation3 + $0x470] sm:$0xff]  ;;  %v11195_v59 = vld [vmem:[%s17705_s3 + $0x18] sm:$0xff] }
 0x930   :  { %12533 = vmatmul.msk.f32.gmra.mxu1 %vm109_vm4, %v17337_v12  ;;  %11244 = vmatpush.msra.mxu0 %v11195_v59 }
 0x932   :  { %v10508_v27 = vpop.f32.mrf.mxu3 }
 0x933   :  { %v17492_v52 = vadd.f32 %v10508_v27, %v10389_v55  ;;  %12548 = vmatmul.msk.f32.gmra.mxu2 %vm109_vm4, %v17326_v44  ;;  %v17771_v44 = vld [vmem:[#allocation14_spill] sm:$0xff] }
 0x934   :  { %v10095_v0 = vpop.f32.mrf.mxu0 }
 0x935   :  { %v10096_v22 = vadd.f32 %v10095_v0, %v17770_v34  ;;  %v10227_v47 = vpop.f32.mrf.mxu1 }
 0x936   :  { %v10366_v45 = vpop.f32.mrf.mxu2 }
 0x937   :  { %12564 = vmatmul.msk.f32.gmra.mxu3 %vm109_vm4, %v10987_v32  ;;  %v10390_v20 = vadd.f32 %v10366_v45, %v10245_v9  ;;  %v10246_v37 = vadd.f32 %v10224_v60, %v10096_v22  ;;  %12517 = vmatmul.msk.f32.gmra.mxu0 %vm109_vm4, %v17769_v40 }
 0x938   :  { %12534 = vmatmul.msk.f32.gmra.mxu1 %vm109_vm4, %v10699_v28 }
 0x93a   :  { %v10511_v12 = vpop.f32.mrf.mxu3 }
 0x93b   :  { %v17501_v53 = vadd.f32 %v10511_v12, %v10390_v20  ;;  %12549 = vmatmul.msk.f32.gmra.mxu2 %vm109_vm4, %v17771_v44 }
 0x93c   :  { %v10098_v46 = vpop.f32.mrf.mxu0 }
 0x93d   :  { %v10099_v62 = vadd.f32 %v10098_v46, %v17772_v29  ;;  %v10230_v23 = vpop.f32.mrf.mxu1 }
 0x93e   :  { %v10369_v26 = vpop.f32.mrf.mxu2 }
 0x93f   :  { %12565 = vmatmul.msk.f32.gmra.mxu3 %vm109_vm4, %v10988_v57  ;;  %v10391_v54 = vadd.f32 %v10369_v26, %v10246_v37  ;;  %v10247_v38 = vadd.f32 %v10227_v47, %v10099_v62  ;;  %12518 = vmatmul.msk.f32.gmra.mxu0 %vm109_vm4, %v10987_v32 }
 0x940   :  { %12535 = vmatmul.msk.f32.gmra.mxu1 %vm109_vm4, %v10700_v18 }
 0x942   :  { %v10514_v15 = vpop.f32.mrf.mxu3 }
 0x943   :  { %v17509_v2 = vadd.f32 %v10514_v15, %v10391_v54  ;;  %12550 = vmatmul.msk.f32.gmra.mxu2 %vm109_vm4, %v10844_v13 }
 0x944   :  { %v10101_v39 = vpop.f32.mrf.mxu0 }
 0x945   :  { %v10102_v11 = vadd.f32 %v10101_v39, %v17352_v31  ;;  %v10766_v24 = vpop.f32.mrf.mxu1 }
 0x946   :  { %v10372_v58 = vpop.f32.mrf.mxu2 }
 0x947   :  { %12566 = vmatmul.msk.f32.gmra.mxu3 %vm109_vm4, %v10989_v21  ;;  %v10392_v1 = vadd.f32 %v10372_v58, %v10247_v38  ;;  %v10248_v10 = vadd.f32 %v10230_v23, %v10102_v11  ;;  %12519 = vmatmul.msk.f32.gmra.mxu0 %vm109_vm4, %v10988_v57 }
 0x94a   :  { %v10517_v42 = vpop.f32.mrf.mxu3 }
 0x94b   :  { %v17515_v43 = vadd.f32 %v10517_v42, %v10392_v1  ;;  %12551 = vmatmul.msk.f32.gmra.mxu2 %vm109_vm4, %v10845_v50 }
 0x94c   :  { %v10620_v14 = vpop.f32.mrf.mxu0 }
 0x94d   :  { %v10668_v35 = vadd.f32 %v10620_v14, %v17366_v8  ;;  %v10769_v30 = vpop.f32.mrf.mxu1 }
 0x94e   :  { %v10375_v31 = vpop.f32.mrf.mxu2 }
 0x94f   :  { %12567 = vmatmul.msk.f32.gmra.mxu3 %vm109_vm4, %v10990_v3  ;;  %v10393_v16 = vadd.f32 %v10375_v31, %v10248_v10  ;;  %v10814_v7 = vadd.f32 %v10766_v24, %v10668_v35  ;;  %v11194_v31 = vld [vmem:[%s17705_s3 + $0x10] sm:$0xff] }
 0x950   :  { %11245 = vmatpush.msra.mxu0 %v11194_v31 }
 0x952   :  { %v10520_v60 = vpop.f32.mrf.mxu3 }
 0x953   :  { %v17523_v40 = vadd.f32 %v10520_v60, %v10393_v16 }
 0x954   :  { %v10623_v55 = vpop.f32.mrf.mxu0 }
 0x955   :  { %v10669_v9 = vadd.f32 %v10623_v55, %v17377_v51  ;;  %v10772_v27 = vpop.f32.mrf.mxu1 }
 0x956   :  { %v10911_v0 = vpop.f32.mrf.mxu2 }
 0x957   :  { %v10959_v8 = vadd.f32 %v10911_v0, %v10814_v7  ;;  %v10815_v34 = vadd.f32 %v10769_v30, %v10669_v9 }
 0x95a   :  { %v11056_v22 = vpop.f32.mrf.mxu3 }
 0x95b   :  { %v11104_v47 = vadd.f32 %v11056_v22, %v10959_v8 }
 0x95c   :  { %v10626_v28 = vpop.f32.mrf.mxu0 }
 0x95d   :  { %v10670_v32 = vadd.f32 %v10626_v28, %v17388_v49  ;;  %v10775_v45 = vpop.f32.mrf.mxu1  ;;  %v11120_v44 = vadd.f32 %v17104_v63, %v11104_v47 }
 0x95e   :  { %v10914_v20 = vpop.f32.mrf.mxu2 }
 0x95f   :  { %v10960_v37 = vadd.f32 %v10914_v20, %v10815_v34  ;;  %v10816_v12 = vadd.f32 %v10772_v27, %v10670_v32  ;;  %v11136_v23 = vmax.f32 %v11120_v44, 0.0 }
 0x961   :  { %v11152_v49 = vsel %vm7116_vm7, %v11136_v23, 0.0 }
 0x962   :  { %v11059_v46 = vpop.f32.mrf.mxu3 }
 0x963   :  { %v11105_v29 = vadd.f32 %v11059_v46, %v10960_v37 }
 0x964   :  { %v10629_v62 = vpop.f32.mrf.mxu0 }
 0x965   :  { %v11121_v51 = vadd.f32 %v17104_v63, %v11105_v29  ;;  %v10671_v18 = vadd.f32 %v10629_v62, %v17399_v17  ;;  %v10778_v57 = vpop.f32.mrf.mxu1 }
 0x966   :  { %v10917_v26 = vpop.f32.mrf.mxu2 }
 0x967   :  { %v11137_v54 = vmax.f32 %v11121_v51, 0.0  ;;  %v10961_v38 = vadd.f32 %v10917_v26, %v10816_v12  ;;  %v10817_v13 = vadd.f32 %v10775_v45, %v10671_v18 }
 0x969   :  { %v11153_v15 = vsel %vm7116_vm7, %v11137_v54, 0.0 }
 0x96a   :  { %v11154_v21 = vadd.f32 %v11153_v15, %v11152_v49  ;;  %v11062_v39 = vpop.f32.mrf.mxu3 }
 0x96b   :  { %v11106_v11 = vadd.f32 %v11062_v39, %v10961_v38 }
 0x96c   :  { %v10632_v24 = vpop.f32.mrf.mxu0 }
 0x96d   :  { %v11122_v58 = vadd.f32 %v17104_v63, %v11106_v11  ;;  %v10672_v1 = vadd.f32 %v10632_v24, %v17410_v19  ;;  %v10781_v10 = vpop.f32.mrf.mxu1 }
 0x96e   :  { %v10920_v50 = vpop.f32.mrf.mxu2 }
 0x96f   :  { %v11138_v17 = vmax.f32 %v11122_v58, 0.0  ;;  %v10962_v42 = vadd.f32 %v10920_v50, %v10817_v13  ;;  %v10818_v3 = vadd.f32 %v10778_v57, %v10672_v1 }
 0x971   :  { %v11155_v14 = vsel %vm7116_vm7, %v11138_v17, 0.0 }
 0x972   :  { %v11156_v35 = vadd.f32 %v11155_v14, %v11154_v21  ;;  %v11065_v30 = vpop.f32.mrf.mxu3 }
 0x973   :  { %v11107_v16 = vadd.f32 %v11065_v30, %v10962_v42 }
 0x974   :  { %v10635_v7 = vpop.f32.mrf.mxu0 }
 0x975   :  { %v11123_v60 = vadd.f32 %v17104_v63, %v11107_v16  ;;  %v10784_v59 = vpop.f32.mrf.mxu1  ;;  %v10673_v0 = vadd.f32 %v10635_v7, %v17421_v33  ;;  %v17773_v33 = vld [vmem:[#allocation10_spill] sm:$0xff] }
 0x976   :  { %v10923_v19 = vpop.f32.mrf.mxu2  ;;  %v10081_v18 = vadd.f32 %v17438_v41, %v17773_v33 }
 0x977   :  { %v11139_v55 = vmax.f32 %v11123_v60, 0.0  ;;  %v10963_v9 = vadd.f32 %v10923_v19, %v10818_v3  ;;  %v10819_v32 = vadd.f32 %v10781_v10, %v10673_v0 }
 0x979   :  { %v11157_v27 = vsel %vm7116_vm7, %v11139_v55, 0.0 }
 0x97a   :  { %v11158_v8 = vadd.f32 %v11157_v27, %v11156_v35  ;;  %v11068_v34 = vpop.f32.mrf.mxu3 }
 0x97b   :  { %v11108_v22 = vadd.f32 %v11068_v34, %v10963_v9 }
 0x97c   :  { %v10638_v47 = vpop.f32.mrf.mxu0 }
 0x97d   :  { %v11124_v28 = vadd.f32 %v17104_v63, %v11108_v22  ;;  %v10787_v45 = vpop.f32.mrf.mxu1  ;;  %v10674_v46 = vadd.f32 %v10638_v47, %v17434_v4  ;;  %v17549_v63 = vld [vmem:[%s17706_s4 + $0x1] ss:$0 sm:$0xff]  ;;  %v10241_v4 = vadd.f32 %v17425_v56, %v10081_v18 }
 0x97e   :  { %v10926_v20 = vpop.f32.mrf.mxu2 }
 0x97f   :  { %v11140_v37 = vmax.f32 %v11124_v28, 0.0  ;;  %v10964_v12 = vadd.f32 %v10926_v20, %v10819_v32  ;;  %v10820_v26 = vadd.f32 %v10784_v59, %v10674_v46  ;;  %v10386_v11 = vadd.f32 %v17451_v48, %v10241_v4  ;;  %v11193_v48 = vld [vmem:[%s17705_s3 + $0x8] sm:$0xff] }
 0x980   :  { %11246 = vmatpush.msra.mxu0 %v11193_v48 }
 0x981   :  { %v11159_v44 = vsel %vm7116_vm7, %v11140_v37, 0.0  ;;  %v10531_v42 = vadd.f32 %v17459_v6, %v10386_v11 }
 0x982   :  { %v11160_v29 = vadd.f32 %v11159_v44, %v11158_v8  ;;  %v11071_v62 = vpop.f32.mrf.mxu3 }
 0x983   :  { %v11109_v23 = vadd.f32 %v11071_v62, %v10964_v12 }
 0x984   :  { %v10641_v51 = vpop.f32.mrf.mxu0 }
 0x985   :  { %v11125_v57 = vadd.f32 %v17549_v63, %v11109_v23  ;;  %v10790_v54 = vpop.f32.mrf.mxu1  ;;  %v10675_v21 = vadd.f32 %v10641_v51, %v17446_v25 }
 0x986   :  { %v10929_v38 = vpop.f32.mrf.mxu2 }
 0x987   :  { %v11141_v13 = vmax.f32 %v11125_v57, 0.0  ;;  %v10965_v49 = vadd.f32 %v10929_v38, %v10820_v26  ;;  %v10821_v10 = vadd.f32 %v10787_v45, %v10675_v21 }
 0x989   :  { %v11161_v15 = vsel %vm7116_vm7, %v11141_v13, 0.0 }
 0x98a   :  { %v11162_v39 = vadd.f32 %v11161_v15, %v11160_v29  ;;  %v11074_v41 = vpop.f32.mrf.mxu3 }
 0x98b   :  { %v11110_v24 = vadd.f32 %v11074_v41, %v10965_v49 }
 0x98c   :  { %v10644_v58 = vpop.f32.mrf.mxu0 }
 0x98d   :  { %v11126_v1 = vadd.f32 %v17549_v63, %v11110_v24  ;;  %v10793_v17 = vpop.f32.mrf.mxu1  ;;  %v10676_v35 = vadd.f32 %v10644_v58, %v10531_v42 }
 0x98e   :  { %v10932_v50 = vpop.f32.mrf.mxu2 }
 0x98f   :  { %v11142_v3 = vmax.f32 %v11126_v1, 0.0  ;;  %v10966_v14 = vadd.f32 %v10932_v50, %v10821_v10  ;;  %v10822_v60 = vadd.f32 %v10790_v54, %v10676_v35 }
 0x991   :  { %v11163_v56 = vsel %vm7116_vm7, %v11142_v3, 0.0 }
 0x992   :  { %v11164_v30 = vadd.f32 %v11163_v56, %v11162_v39  ;;  %v11077_v25 = vpop.f32.mrf.mxu3 }
 0x993   :  { %v11111_v31 = vadd.f32 %v11077_v25, %v10966_v14 }
 0x994   :  { %v10647_v16 = vpop.f32.mrf.mxu0 }
 0x995   :  { %v11127_v7 = vadd.f32 %v17549_v63, %v11111_v31  ;;  %v10796_v55 = vpop.f32.mrf.mxu1  ;;  %v10677_v27 = vadd.f32 %v10647_v16, %v17470_v5 }
 0x996   :  { %v10935_v59 = vpop.f32.mrf.mxu2 }
 0x997   :  { %v11143_v19 = vmax.f32 %v11127_v7, 0.0  ;;  %v10967_v6 = vadd.f32 %v10935_v59, %v10822_v60  ;;  %v10823_v28 = vadd.f32 %v10793_v17, %v10677_v27 }
 0x999   :  { %v11165_v9 = vsel %vm7116_vm7, %v11143_v19, 0.0 }
 0x99a   :  { %v11166_v0 = vadd.f32 %v11165_v9, %v11164_v30  ;;  %v11080_v8 = vpop.f32.mrf.mxu3 }
 0x99b   :  { %v11112_v34 = vadd.f32 %v11080_v8, %v10967_v6 }
 0x99c   :  { %v10650_v22 = vpop.f32.mrf.mxu0 }
 0x99d   :  { %v11128_v47 = vadd.f32 %v17549_v63, %v11112_v34  ;;  %v10678_v12 = vadd.f32 %v10650_v22, %v17481_v61  ;;  %v10799_v29 = vpop.f32.mrf.mxu1 }
 0x99e   :  { %v10938_v32 = vpop.f32.mrf.mxu2 }
 0x99f   :  { %v11144_v45 = vmax.f32 %v11128_v47, 0.0  ;;  %v10968_v20 = vadd.f32 %v10938_v32, %v10823_v28  ;;  %v10824_v51 = vadd.f32 %v10796_v55, %v10678_v12 }
 0x9a1   :  { %v11167_v37 = vsel %vm7116_vm7, %v11144_v45, 0.0 }
 0x9a2   :  { %v11168_v44 = vadd.f32 %v11167_v37, %v11166_v0  ;;  %v11083_v46 = vpop.f32.mrf.mxu3 }
 0x9a3   :  { %v11113_v62 = vadd.f32 %v11083_v46, %v10968_v20 }
 0x9a4   :  { %v10653_v23 = vpop.f32.mrf.mxu0 }
 0x9a5   :  { %v11129_v5 = vadd.f32 %v17549_v63, %v11113_v62  ;;  %v10679_v54 = vadd.f32 %v10653_v23, %v17492_v52  ;;  %v10802_v61 = vpop.f32.mrf.mxu1  ;;  %v11192_v52 = vld [vmem:[%s17705_s3] sm:$0xff]  ;;  %v11210_v23 = vld [vmem:[%s17705_s3 + $0x90] sm:$0xff] }
 0x9a6   :  { %v10941_v33 = vpop.f32.mrf.mxu2  ;;  %11247 = vmatpush.msra.mxu0 %v11192_v52 }
 0x9a7   :  { %v11145_v18 = vmax.f32 %v11129_v5, 0.0  ;;  %v10969_v57 = vadd.f32 %v10941_v33, %v10824_v51  ;;  %v10825_v21 = vadd.f32 %v10799_v29, %v10679_v54 }
 0x9a9   :  { %v11169_v26 = vsel %vm7116_vm7, %v11145_v18, 0.0 }
 0x9aa   :  { %v11170_v38 = vadd.f32 %v11169_v26, %v11168_v44  ;;  %v11086_v13 = vpop.f32.mrf.mxu3  ;;  %v11208_v26 = vld [vmem:[%s17705_s3 + $0x80] sm:$0xff] }
 0x9ab   :  { %v11114_v49 = vadd.f32 %v11086_v13, %v10969_v57  ;;  %v9838_v13 = vrot.slane %v17357_v36, 4 }
 0x9ac   :  { %v10656_v4 = vpop.f32.mrf.mxu0 }
 0x9ad   :  { %v11130_v15 = vadd.f32 %v17549_v63, %v11114_v49  ;;  %v10680_v58 = vadd.f32 %v10656_v4, %v17501_v53  ;;  %v10805_v56 = vpop.f32.mrf.mxu1 }
 0x9ae   :  { %v10944_v39 = vpop.f32.mrf.mxu2 }
 0x9af   :  { %v11146_v41 = vmax.f32 %v11130_v15, 0.0  ;;  %v10970_v11 = vadd.f32 %v10944_v39, %v10825_v21  ;;  %v10826_v3 = vadd.f32 %v10802_v61, %v10680_v58  ;;  %v11206_v15 = vld [vmem:[%s17705_s3 + $0x70] sm:$0xff]  ;;  %v11205_v39 = vld [vmem:[%s17705_s3 + $0x68] sm:$0xff] }
 0x9b1   :  { %v11171_v24 = vsel %vm7116_vm7, %v11146_v41, 0.0  ;;  %v9839_v41 = vadd.f32 %v9838_v13, %v17357_v36  ;;  %v11202_v36 = vld [vmem:[%s17705_s3 + $0x50] sm:$0xff] }
 0x9b2   :  { %v11172_v1 = vadd.f32 %v11171_v24, %v11170_v38  ;;  %v11089_v10 = vpop.f32.mrf.mxu3  ;;  %v11207_v38 = vld [vmem:[%s17705_s3 + $0x78] sm:$0xff]  ;;  %v11204_v24 = vld [vmem:[%s17705_s3 + $0x60] sm:$0xff] }
 0x9b3   :  { %v11115_v50 = vadd.f32 %v11089_v10, %v10970_v11 }
 0x9b4   :  { %v10659_v17 = vpop.f32.mrf.mxu0 }
 0x9b5   :  { %v11131_v42 = vadd.f32 %v17549_v63, %v11115_v50  ;;  %v10681_v53 = vadd.f32 %v10659_v17, %v17509_v2  ;;  %v10808_v9 = vpop.f32.mrf.mxu1  ;;  %v11201_v50 = vld [vmem:[%s17705_s3 + $0x48] sm:$0xff] }
 0x9b6   :  { %v10947_v14 = vpop.f32.mrf.mxu2 }
 0x9b7   :  { %v11147_v35 = vmax.f32 %v11131_v42, 0.0  ;;  %v10971_v30 = vadd.f32 %v10947_v14, %v10826_v3  ;;  %v10827_v59 = vadd.f32 %v10805_v56, %v10681_v53  ;;  %v11200_v3 = vld [vmem:[%s17705_s3 + $0x40] sm:$0xff]  ;;  %v11199_v56 = vld [vmem:[%s17705_s3 + $0x38] sm:$0xff] }
 0x9b9   :  { %v11173_v25 = vsel %vm7116_vm7, %v11147_v35, 0.0 }
 0x9ba   :  { %v11174_v48 = vadd.f32 %v11173_v25, %v11172_v1  ;;  %v11092_v31 = vpop.f32.mrf.mxu3  ;;  %v11203_v1 = vld [vmem:[%s17705_s3 + $0x58] sm:$0xff]  ;;  %v11198_v25 = vld [vmem:[%s17705_s3 + $0x30] sm:$0xff] }
 0x9bb   :  { %v11116_v16 = vadd.f32 %v11092_v31, %v10971_v30 }
 0x9bc   :  { %v10662_v7 = vpop.f32.mrf.mxu0 }
 0x9bd   :  { %v11132_v60 = vadd.f32 %v17549_v63, %v11116_v16  ;;  %v10682_v0 = vadd.f32 %v10662_v7, %v17515_v43  ;;  %v10811_v29 = vpop.f32.mrf.mxu1  ;;  %v11211_v43 = vld [vmem:[%s17705_s3 + $0x98] sm:$0xff]  ;;  %v11196_v7 = vld [vmem:[%s17705_s3 + $0x20] sm:$0xff] }
 0x9be   :  { %v10950_v19 = vpop.f32.mrf.mxu2  ;;  %11254 = vmatpush.msra.mxu1 %v11211_v43  ;;  %v12575_v43 = vld [vmem:[%s17706_s4 + $0x3] ss:$0 sm:$0xff] }
 0x9bf   :  { %v11148_v6 = vmax.f32 %v11132_v60, 0.0  ;;  %v10972_v55 = vadd.f32 %v10950_v19, %v10827_v59  ;;  %v10828_v47 = vadd.f32 %v10808_v9, %v10682_v0  ;;  %v17774_v59 = vld [vmem:[#allocation7_spill] sm:$0xff]  ;;  %v11223_v0 = vld [vmem:[%s17705_s3 + $0xf8] sm:$0xff] }
 0x9c0   :  { %11255 = vmatpush.msra.mxu1 %v11210_v23  ;;  %v11225_v9 = vld [vmem:[%s17705_s3 + $0x108] sm:$0xff] }
 0x9c1   :  { %v11175_v27 = vsel %vm7116_vm7, %v11148_v6, 0.0  ;;  %v11227_v6 = vld [vmem:[%s17705_s3 + $0x118] sm:$0xff] }
 0x9c2   :  { %v11176_v8 = vadd.f32 %v11175_v27, %v11174_v48  ;;  %v11095_v34 = vpop.f32.mrf.mxu3  ;;  %v11197_v48 = vld [vmem:[%s17705_s3 + $0x28] sm:$0xff]  ;;  %11276 = vmatpush.msra.mxu2 %v11227_v6  ;;  %v11224_v27 = vld [vmem:[%s17705_s3 + $0x100] sm:$0xff] }
 0x9c3   :  { %v11117_v22 = vadd.f32 %v11095_v34, %v10972_v55  ;;  %v11226_v55 = vld [vmem:[%s17705_s3 + $0x110] sm:$0xff]  ;;  %v11221_v34 = vld [vmem:[%s17705_s3 + $0xe8] sm:$0xff] }
 0x9c4   :  { %v10665_v32 = vpop.f32.mrf.mxu0  ;;  %11277 = vmatpush.msra.mxu2 %v11226_v55 }
 0x9c5   :  { %v11133_v2 = vadd.f32 %v17549_v63, %v11117_v22  ;;  %v10683_v12 = vadd.f32 %v10665_v32, %v17523_v40  ;;  %v11209_v40 = vld [vmem:[%s17705_s3 + $0x88] sm:$0xff]  ;;  %v11220_v22 = vld [vmem:[%s17705_s3 + $0xe0] sm:$0xff] }
 0x9c6   :  { %v10953_v28 = vpop.f32.mrf.mxu2  ;;  %11256 = vmatpush.msra.mxu1 %v11209_v40  ;;  %11278 = vmatpush.msra.mxu2 %v11225_v9  ;;  %v11216_v32 = vld [vmem:[%s17705_s3 + $0xc0] sm:$0xff] }
 0x9c7   :  { %v11149_v45 = vmax.f32 %v11133_v2, 0.0  ;;  %v10973_v20 = vadd.f32 %v10953_v28, %v10828_v47  ;;  %v10829_v51 = vadd.f32 %v10811_v29, %v10683_v12  ;;  %v11219_v2 = vld [vmem:[%s17705_s3 + $0xd8] sm:$0xff]  ;;  %v11218_v47 = vld [vmem:[%s17705_s3 + $0xd0] sm:$0xff]  ;;  %v11217_v28 = vld [vmem:[%s17705_s3 + $0xc8] sm:$0xff] }
 0x9c8   :  { %11257 = vmatpush.msra.mxu1 %v11208_v26  ;;  %11279 = vmatpush.msra.mxu2 %v11224_v27  ;;  %v11213_v12 = vld [vmem:[%s17705_s3 + $0xa8] sm:$0xff]  ;;  %v11212_v29 = vld [vmem:[%s17705_s3 + $0xa0] sm:$0xff] }
 0x9c9   :  { %v11177_v37 = vsel %vm7116_vm7, %v11149_v45, 0.0  ;;  %v11215_v45 = vld [vmem:[%s17705_s3 + $0xb8] sm:$0xff]  ;;  %v12576_v40 = vld [vmem:[%s17706_s4 + $0x4] ss:$0 sm:$0xff] }
 0x9ca   :  { %v11178_v44 = vadd.f32 %v11177_v37, %v11176_v8  ;;  %v11098_v46 = vpop.f32.mrf.mxu3  ;;  %11258 = vmatpush.msra.mxu1 %v11207_v38  ;;  %v11222_v8 = vld [vmem:[%s17705_s3 + $0xf0] sm:$0xff]  ;;  %11280 = vmatpush.msra.mxu2 %v11223_v0 }
 0x9cb   :  { %v11118_v62 = vadd.f32 %v11098_v46, %v10973_v20  ;;  %v12574_v20 = vld [vmem:[%s17706_s4 + $0x2] ss:$0 sm:$0xff]  ;;  %v11214_v37 = vld [vmem:[%s17705_s3 + $0xb0] sm:$0xff]  ;;  %s12645_s3 = smov [#allocation4]   ;;  %s11323_s4 = sshll.u32 %s17707_s5, 4  ;;  %s11324_s4 = int_to_ptr.hbm [resolvable:$true] %s11323_s4 }
 0x9cc   :  { %11259 = vmatpush.msra.mxu1 %v11206_v15  ;;  %11281 = vmatpush.msra.mxu2 %v11222_v8  ;;  %s11321_s1 = sshll.u32 %s12645_s3, 4  ;;  %s11322_s1 = int_to_ptr.vmem [resolvable:$true] %s11321_s1 }
 0x9cd   :  { %v11134_v5 = vadd.f32 %v17549_v63, %v11118_v62 }
 0x9ce   :  { %v10956_v33 = vpop.f32.mrf.mxu2  ;;  %11260 = vmatpush.msra.mxu1 %v11205_v39  ;;  %11282 = vmatpush.msra.mxu2 %v11221_v34 }
 0x9cf   :  { %v11150_v18 = vmax.f32 %v11134_v5, 0.0  ;;  %v10974_v57 = vadd.f32 %v10956_v33, %v10829_v51 }
 0x9d0   :  { %11261 = vmatpush.msra.mxu1 %v11204_v24  ;;  %11283 = vmatpush.msra.mxu2 %v11220_v22 }
 0x9d1   :  { %v11179_v54 = vsel %vm7116_vm7, %v11150_v18, 0.0 }
 0x9d2   :  { %v11180_v49 = vadd.f32 %v11179_v54, %v11178_v44  ;;  %v11101_v4 = vpop.f32.mrf.mxu3  ;;  %11262 = vmatpush.msra.mxu1 %v11203_v1  ;;  %11284 = vmatpush.msra.mxu2 %v11219_v2 }
 0x9d3   :  { %v11119_v61 = vadd.f32 %v11101_v4, %v10974_v57 }
 0x9d4   :  { %11263 = vmatpush.msra.mxu1 %v11202_v36  ;;  %11285 = vmatpush.msra.mxu2 %v11218_v47 }
 0x9d5   :  { %v11135_v21 = vadd.f32 %v17549_v63, %v11119_v61  ;;  %v9840_v63 = vrot.slane %v9839_v41, 2 }
 0x9d6   :  { %11264 = vmatpush.msra.mxu1 %v11201_v50  ;;  %11286 = vmatpush.msra.mxu2 %v11217_v28 }
 0x9d7   :  { %v11151_v11 = vmax.f32 %v11135_v21, 0.0  ;;  %v9841_v17 = vadd.f32 %v9840_v63, %v9839_v41 }
 0x9d8   :  { %11265 = vmatpush.msra.mxu1 %v11200_v3  ;;  %11287 = vmatpush.msra.mxu2 %v11216_v32 }
 0x9d9   :  { %v11181_v58 = vsel %vm7116_vm7, %v11151_v11, 0.0  ;;  %v9842_v35 = vrot.slane %v9841_v17, 1 }
 0x9da   :  { %v11182_v10 = vadd.f32 %v11181_v58, %v11180_v49  ;;  %11266 = vmatpush.msra.mxu1 %v11199_v56  ;;  %11288 = vmatpush.msra.mxu2 %v11215_v45 }
 0x9db   :  { %v9843_v31 = vadd.f32 %v9842_v35, %v9841_v17 }
 0x9dc   :  { %v11183_v52 = vrot.slane %v11182_v10, 4  ;;  %11267 = vmatpush.msra.mxu1 %v11198_v25  ;;  %11289 = vmatpush.msra.mxu2 %v11214_v37 }
 0x9de   :  { %v11184_v42 = vadd.f32 %v11183_v52, %v11182_v10  ;;  %11268 = vmatpush.msra.mxu1 %v11197_v48  ;;  %11290 = vmatpush.msra.mxu2 %v11213_v12 }
 0x9e0   :  { %v11185_v14 = vrot.slane %v11184_v42, 2  ;;  %11269 = vmatpush.msra.mxu1 %v11196_v7  ;;  %11291 = vmatpush.msra.mxu2 %v11212_v29 }
 0x9e2   :  { %v11186_v30 = vadd.f32 %v11185_v14, %v11184_v42 }
 0x9e4   :  { %v11187_v53 = vrot.slane %v11186_v30, 1 }
 0x9e6   :  { %v11188_v16 = vadd.f32 %v11187_v53, %v11186_v30 }
 0x9e8   :  { %v11189_v60 = vadd.f32 %v11188_v16, %v9843_v31 }
 0x9ea   :  { %v11191_v19 = vsel %vm11190_vm8, %v17774_v59, %v11189_v60 }
 0x9eb   :  { %12568 = vmatmul.msk.f32.vlgmr.msra.gmra.mxu0 %vm7116_vm7, %v11191_v19 }
 0xa68   :  { %v11249_v44 = vpop.f32.mrf.mxu0 }
 0xa69   :  { %v11250_v46 = vadd.f32 %v12574_v20, %v11249_v44 }
 0xa6b   :  { %v11252_v62 = vmax.f32 %v11250_v46, 0.0 }
 0xa6d   :  { %11270 = vmatmul.f32.vlgmr.msra.gmra.mxu1 %v11252_v62 }
 0xaea   :  { %v11271_v23 = vpop.f32.mrf.mxu1 }
 0xaeb   :  { %v11272_v5 = vadd.f32 %v12575_v43, %v11271_v23 }
 0xaed   :  { %v11274_v51 = vmax.f32 %v11272_v5, 0.0 }
 0xaef   :  { %11292 = vmatmul.f32.vlgmr.msra.gmra.mxu2 %v11274_v51 }
 0xb72   :  { %v11293_v33 = vpop.f32.mrf.mxu2 }
 0xb73   :  { %v11294_v18 = vadd.f32 %v12576_v40, %v11293_v33 }
 0xb75   :  { %v12569_v57 = vmul.f32 -1.442695, %v11294_v18 }
 0xb77   :  { %12577 = vpow2.f32 %v12569_v57 }
 0xb7d   :  { %v12578_v26 = vpop.eup %12577 }
 0xb7e   :  { %v11299_v54 = vadd.f32 1.0, %v12578_v26 }
 0xb80   :  { %12579 = vrcp.f32 %v11299_v54  ;;  %v11311_v4 = vand.u32 2147483648, %v11299_v54  ;;  %v11309_v15 = vand.u32 2147483647, %v11299_v54  ;;  %vm11305_vm10 = vweird.f32 %v11299_v54 }
 0xb82   :  { %v11312_v39 = vor.u32 1.1754944e-38, %v11311_v4  ;;  %vm11310_vm12 = vcmp.eq.f32.partialorder %v11309_v15, 8.507059e+37 }
 0xb86   :  { %v12580_v38 = vpop.eup %12579 }
 0xb87   :  { %v11301_v13 = vmul.f32 %v12580_v38, %v11299_v54  ;;  %vm11306_vm9 = vweird.f32 %v12580_v38 }
 0xb88   :  { %vm11307_vm11 = vmor %vm11305_vm10, %vm11306_vm9 }
 0xb89   :  { %v11302_v49 = vsub.f32 1.0, %v11301_v13 }
 0xb8b   :  { %v11303_v61 = vmul.f32 %v12580_v38, %v11302_v49 }
 0xb8d   :  { %v11304_v21 = vadd.f32 %v12580_v38, %v11303_v61 }
 0xb8f   :  { %v11308_v41 = vsel %vm11307_vm11, %v12580_v38, %v11304_v21 }
 0xb90   :  { %v11313_v11 = vsel %vm11310_vm12, %v11312_v39, %v11308_v41 }
 0xb91   :  { %11315 = vst [vmem:[#allocation4] sm:$0x3] %v11313_v11 }
 0xb92   :  { %11326 = dma.vmem_to_hbm [thread:$0]  %s11322_s1, 32, %s11324_s4, [#allocation5]  }
 0xb93   :  { %12642 = dma.done.wait [#allocation5], 32  }
 0xb94   :  { %12643 = vsyncadd [#allocation5], 4294967264 }
 0xb95   :  { %11331 = vsyncpa [#allocation5], 1 }

</bundles_post_ra>
